<compile_context>
chip_gen: v5e
topology: v5e:2x2
jax: 0.10.0
libtpu: 0.0.40
codegen_flags: <defaults>
</compile_context>

<pallas_src>
import jax
import jax.numpy as jnp
from jax.experimental import pallas as pl
from jax.experimental.pallas import tpu as pltpu

NUM_VGGFACE2_CLASSES = 8631   # InceptionResnetV1(classify=True) output width
EMBED_DIM = 512               # facenet embedding width
STEM_OUT = 32                 # conv2d_1a output channels
K_TILE = 4352                 # tile along the 8631 (padded to 8704) logits dim
NUM_K_SPLITS = 2              # "parallel" split of the K reduction (2 TCs on v7x)
LANE = 128                    # TPU lane width
HEAD_BATCH_PAD = 16           # bf16 packs 2 rows/sublane -> pad batch to 16
STEM_BLOCK_N = 2              # images per stem grid step


def _ceil_to(x, m):
    return ((x + m - 1) // m) * m


# ----------------------------------------------------------------------------
# Pallas kernels
# ----------------------------------------------------------------------------
def _stem_pool_embed_kernel(p_ref, wt_ref, b_ref, we_ref, o_ref):
    # Fused: im2col conv (conv2d_1a stand-in) + ReLU + global average pool
    # + embedding linear.  STEM_BLOCK_N images per grid step (static unroll).
    #   p_ref : (B, K, R) bf16  transposed im2col patches (R = Ho*Wo, lane dim)
    #   wt_ref: (Cout, K) bf16  conv weight (Cout-major)
    #   b_ref : (Cout, 1) f32   conv bias (column, broadcast over lanes)
    #   we_ref: (Cout, D) bf16  embedding weight
    #   o_ref : (B, 1, D) f32   embeddings of this block of images
    n_img, _, r = p_ref.shape
    inv_r = 1.0 / r
    for b in range(n_img):                           # static unroll (B small)
        # conv: (Cout, K) @ (K, R) -> (Cout, R), lane-dense, f32 accumulation
        y = jnp.dot(wt_ref[...], p_ref[b], preferred_element_type=jnp.float32)
        y = jnp.maximum(y + b_ref[...], 0.0)
        # global average pool over R (lane-axis reduce: ~R/128 VPU adds/row)
        pooled = jnp.sum(y, axis=1, keepdims=True) * inv_r          # (Cout, 1)
        # embedding (no bias): emb[d] = sum_c pooled[c] * we[c, d]
        # (tiny 32x512 broadcast-multiply + sublane sum; avoids any transpose)
        o_ref[b] = jnp.sum(pooled * we_ref[...], axis=0, keepdims=True)  # (1, D)


def _head_kernel(emb_ref, wl_ref, bl_ref, wf_ref, o_ref):
    # Grid: (c, k) = (parallel K-split, inner K tiles).  For each K tile:
    #   logits_k = emb @ Wl[:, k] + bl[k]        (facenet classify logits)
    #   h_k      = relu(logits_k)                (FaceNet.relu)
    #   o       += h_k @ Wf[k, :]                (FaceNet.fc, accumulated)
    # emb/Wl/Wf are bf16 (MXU-native, half the HBM bytes); accumulation is f32
    # directly into the VMEM-resident (npad, 128) output partial of split c.
    # fc bias + the sum over the NUM_K_SPLITS partials happen in the wrapper.
    @pl.when(pl.program_id(1) == 0)
    def _():
        o_ref[...] = jnp.zeros_like(o_ref)

    logits = jnp.dot(emb_ref[...], wl_ref[...],
                     preferred_element_type=jnp.float32) + bl_ref[...]
    h = jnp.maximum(logits, 0.0).astype(jnp.bfloat16)
    o_ref[...] += jnp.dot(h, wf_ref[...], preferred_element_type=jnp.float32)


# ----------------------------------------------------------------------------
# pallas_call wrappers
# ----------------------------------------------------------------------------
def _stem_pool_embed(patches_t, wt, b, we):
    n, kdim, r = patches_t.shape                  # n is a multiple of STEM_BLOCK_N
    cout = wt.shape[0]
    d = we.shape[1]
    out = pl.pallas_call(
        _stem_pool_embed_kernel,
        out_shape=jax.ShapeDtypeStruct((n, 1, d), jnp.float32),
        grid=(n // STEM_BLOCK_N,),
        in_specs=[
            pl.BlockSpec((STEM_BLOCK_N, kdim, r), lambda i: (i, 0, 0)),
            pl.BlockSpec((cout, kdim), lambda i: (0, 0)),
            pl.BlockSpec((cout, 1), lambda i: (0, 0)),
            pl.BlockSpec((cout, d), lambda i: (0, 0)),
        ],
        out_specs=pl.BlockSpec((STEM_BLOCK_N, 1, d), lambda i: (i, 0, 0)),
        compiler_params=pltpu.CompilerParams(
            dimension_semantics=("parallel",)),
    )(patches_t, wt, b, we)
    return out.reshape(n, d)


def _head(emb_p, wl_p, bl_p, wf_p):
    npad, d = emb_p.shape            # (16*, 512) bf16
    kp = wl_p.shape[1]               # 8704
    ncp = wf_p.shape[1]              # 128 (padded num_classes)
    assert kp % (NUM_K_SPLITS * K_TILE) == 0
    n_inner = kp // (NUM_K_SPLITS * K_TILE)       # 1 with K_TILE=4352
    return pl.pallas_call(
        _head_kernel,
        out_shape=jax.ShapeDtypeStruct((NUM_K_SPLITS, npad, ncp), jnp.float32),
        grid_spec=pltpu.PrefetchScalarGridSpec(
            num_scalar_prefetch=0,
            grid=(NUM_K_SPLITS, n_inner),
            in_specs=[
                pl.BlockSpec((npad, d), lambda c, k: (0, 0)),
                pl.BlockSpec((d, K_TILE), lambda c, k: (0, c * n_inner + k)),
                pl.BlockSpec((1, K_TILE), lambda c, k: (0, c * n_inner + k)),
                pl.BlockSpec((K_TILE, ncp), lambda c, k: (c * n_inner + k, 0)),
            ],
            # leading dim squeezed: kernel sees an (npad, ncp) accumulator,
            # VMEM-resident across the inner ("arbitrary") reduction axis.
            out_specs=pl.BlockSpec((None, npad, ncp), lambda c, k: (c, 0, 0)),
        ),
        compiler_params=pltpu.CompilerParams(
            # "parallel" K-split -> the two halves land on v7x's two TCs.
            dimension_semantics=("parallel", "arbitrary"),
            # double-buffered bf16 tiles ~11.2 MB (512x4352x2 + 4352x128x2, x2
            # buffers): needs >16 MiB scoped VMEM on v5e; fits 32 MiB on all
            # gens incl. v7x's 64 MiB physical VMEM.
            vmem_limit_bytes=32 * 1024 * 1024,
        ),
    )(emb_p, wl_p, bl_p, wf_p)


# ----------------------------------------------------------------------------
# Glue: im2col, parameter init, one-time prep, full forward
# ----------------------------------------------------------------------------
def _im2col_t(x_nhwc, kh, kw, stride):
    """im2col with the patch axis K second and R=Ho*Wo last (lane-dense)."""
    n, h, w, c = x_nhwc.shape
    ho = (h - kh) // stride + 1
    wo = (w - kw) // stride + 1
    cols = []
    for i in range(kh):
        for j in range(kw):
            cols.append(x_nhwc[:, i:i + stride * ho:stride,
                               j:j + stride * wo:stride, :])
    patches = jnp.stack(cols, axis=3)                  # (N, Ho, Wo, kh*kw, C)
    patches = patches.reshape(n, ho * wo, kh * kw * c)  # (N, R, K), K=(kh,kw,cin)
    return jnp.transpose(patches, (0, 2, 1)), n, ho, wo  # (N, K, R)


def init_params(key, num_classes):
    ks = jax.random.split(key, 8)
    # PyTorch-convention shapes
    return {
        "conv_w":   0.1 * jax.random.normal(ks[0], (STEM_OUT, 3, 3, 3), jnp.float32),
        "conv_b":   0.1 * jax.random.normal(ks[1], (STEM_OUT,), jnp.float32),
        "embed_w":  0.1 * jax.random.normal(ks[2], (EMBED_DIM, STEM_OUT), jnp.float32),
        "logits_w": 0.05 * jax.random.normal(ks[3], (NUM_VGGFACE2_CLASSES, EMBED_DIM), jnp.float32),
        "logits_b": 0.05 * jax.random.normal(ks[4], (NUM_VGGFACE2_CLASSES,), jnp.float32),
        "fc_w":     0.01 * jax.random.normal(ks[5], (num_classes, NUM_VGGFACE2_CLASSES), jnp.float32),
        "fc_b":     0.01 * jax.random.normal(ks[6], (num_classes,), jnp.float32),
    }


def prepare_params(params):
    """One-time transposes / padding / bf16 casts (hoisted out of the forward)."""
    kp = _ceil_to(NUM_VGGFACE2_CLASSES, NUM_K_SPLITS * K_TILE)          # 8704
    pad_k = kp - NUM_VGGFACE2_CLASSES
    nc = params["fc_w"].shape[0]
    ncp = _ceil_to(nc, LANE)                                            # 128
    pad_nc = ncp - nc
    # NOTE: the K / nc padding MUST be exact zeros: relu(emb @ 0 + 0) = 0 and
    # zero Wf rows/cols contribute nothing, keeping the result exact.
    return {
        # (Cout, kh*kw*Cin) bf16, K ordered (kh, kw, cin) to match _im2col_t
        "conv_w_t":  jnp.transpose(params["conv_w"], (0, 2, 3, 1))
                        .reshape(STEM_OUT, -1).astype(jnp.bfloat16),
        "conv_b":    params["conv_b"].reshape(STEM_OUT, 1),                        # (32, 1) f32
        "embed_w_t": params["embed_w"].T.astype(jnp.bfloat16),                     # (32, 512) bf16
        "wl_p": jnp.pad(params["logits_w"].T, ((0, 0), (0, pad_k))).astype(jnp.bfloat16),  # (512, 8704)
        "bl_p": jnp.pad(params["logits_b"], (0, pad_k)).reshape(1, kp),                    # (1, 8704) f32
        "wf_p": jnp.pad(params["fc_w"].T, ((0, pad_k), (0, pad_nc))).astype(jnp.bfloat16), # (8704, 128)
        "bf_p": jnp.pad(params["fc_b"], (0, pad_nc)).reshape(1, ncp),                      # (1, 128) f32
    }


def facenet_forward(x_nchw, prepped, num_classes):
    # NCHW (PyTorch) -> NHWC, bf16 (halves im2col HBM bytes; f32 MXU accum)
    x = jnp.transpose(x_nchw, (0, 2, 3, 1)).astype(jnp.bfloat16)

    # Lane-dense transposed im2col: (N, 27, Ho*Wo), padded to STEM_BLOCK_N imgs.
    patches_t, n, _, _ = _im2col_t(x, 3, 3, 2)
    n_stem = _ceil_to(n, STEM_BLOCK_N)
    patches_t = jnp.pad(patches_t, ((0, n_stem - n), (0, 0), (0, 0)))

    # Fused conv stem (conv2d_1a stand-in) + ReLU + global avg pool + embedding
    # linear (last_linear stand-in, no bias): one kernel, grid over image blocks.
    emb = _stem_pool_embed(patches_t, prepped["conv_w_t"],
                           prepped["conv_b"], prepped["embed_w_t"])   # (n_stem, 512) f32

    # Pad batch to 16 (bf16 sublane packing) and cast to bf16 for the head.
    npad = _ceil_to(n_stem, HEAD_BATCH_PAD)
    emb_p = jnp.pad(emb, ((0, npad - n_stem), (0, 0))).astype(jnp.bfloat16)

    # classify logits (512 -> 8631) + ReLU + fc(8631 -> num_classes), fused,
    # tiled over K, split 2-way across TensorCores; combine partials + fc bias.
    partials = _head(emb_p, prepped["wl_p"], prepped["bl_p"], prepped["wf_p"])
    out_p = jnp.sum(partials, axis=0) + prepped["bf_p"]              # (npad, 128)
    return out_p[:n, :num_classes]


if __name__ == "__main__":
    num_classes = 10
    key = jax.random.PRNGKey(0)
    k_x, k_p = jax.random.split(key)

    # small-shape example input, PyTorch NCHW convention
    x = jax.random.normal(k_x, (2, 3, 16, 16), jnp.float32)
    params = init_params(k_p, num_classes)
    prepped = prepare_params(params)          # one-time weight prep (not per-call)

    fwd = jax.jit(facenet_forward, static_argnums=2)   # num_classes is static
    out = fwd(x, prepped, num_classes)
    out = jax.block_until_ready(out)
    assert out.shape == (2, num_classes), out.shape
    assert bool(jnp.all(jnp.isfinite(out)))
    print("KERNEL_OK")
</pallas_src>

<mosaic_0001>
module attributes {stable_mosaic.version = 11 : i64} {
  func.func @_stem_pool_embed_kernel(%arg0: i32, %arg1: memref<2x27x49xbf16, #tpu.memory_space<vmem>>, %arg2: memref<32x27xbf16, #tpu.memory_space<vmem>>, %arg3: memref<32x1xf32, #tpu.memory_space<vmem>>, %arg4: memref<32x512xbf16, #tpu.memory_space<vmem>>, %arg5: memref<2x1x512xf32, #tpu.memory_space<vmem>>) attributes {dimension_semantics = [#tpu.dimension_semantics<parallel>], iteration_bounds = array<i64: 1>, scalar_prefetch = 0 : i64, scratch_operands = 0 : i64, tpu.core_type = #tpu.core_type<tc>, window_params = [{transform_indices = @transform_0, window_bounds = array<i64: 2, 27, 49>}, {pipeline_mode = #tpu.pipeline_mode<synchronous>, transform_indices = @transform_1, window_bounds = array<i64: 32, 27>}, {pipeline_mode = #tpu.pipeline_mode<synchronous>, transform_indices = @transform_2, window_bounds = array<i64: 32, 1>}, {pipeline_mode = #tpu.pipeline_mode<synchronous>, transform_indices = @transform_3, window_bounds = array<i64: 32, 512>}, {transform_indices = @transform_4, window_bounds = array<i64: 2, 1, 512>}]} {
    %c0 = arith.constant 0 : index
    %c0_0 = arith.constant 0 : index
    %0 = vector.load %arg2[%c0, %c0_0] : memref<32x27xbf16, #tpu.memory_space<vmem>>, vector<32x27xbf16>
    %c0_1 = arith.constant 0 : index
    %c0_2 = arith.constant 0 : index
    %c0_3 = arith.constant 0 : index
    %1 = vector.load %arg1[%c0_1, %c0_2, %c0_3] : memref<2x27x49xbf16, #tpu.memory_space<vmem>>, vector<1x27x49xbf16>
    %2 = vector.shape_cast %1 : vector<1x27x49xbf16> to vector<27x49xbf16>
    %cst = arith.constant dense<0.000000e+00> : vector<32x49xf32>
    %3 = tpu.matmul %0, %2, %cst {dimension_numbers = #tpu.dot_dimension_numbers<[1], [0], [0], [1], [0, 0, 1, 1], [], []>} : vector<32x27xbf16>, vector<27x49xbf16>, vector<32x49xf32> -> vector<32x49xf32>
    %c0_4 = arith.constant 0 : index
    %c0_5 = arith.constant 0 : index
    %4 = vector.load %arg3[%c0_4, %c0_5] : memref<32x1xf32, #tpu.memory_space<vmem>>, vector<32x1xf32>
    %5 = vector.broadcast %4 : vector<32x1xf32> to vector<32x49xf32>
    %6 = arith.addf %3, %5 : vector<32x49xf32>
    %cst_6 = arith.constant 0.000000e+00 : f32
    %7 = vector.broadcast %cst_6 : f32 to vector<32x49xf32>
    %8 = arith.maximumf %6, %7 : vector<32x49xf32>
    %cst_7 = arith.constant dense<0.000000e+00> : vector<32xf32>
    %9 = vector.multi_reduction <add>, %8, %cst_7 [1] : vector<32x49xf32> to vector<32xf32>
    %10 = vector.shape_cast %9 : vector<32xf32> to vector<32x1xf32>
    %cst_8 = arith.constant 0.0204081628 : f32
    %11 = vector.broadcast %cst_8 : f32 to vector<32x1xf32>
    %12 = arith.mulf %10, %11 : vector<32x1xf32>
    %c0_9 = arith.constant 0 : index
    %c0_10 = arith.constant 0 : index
    %13 = vector.load %arg4[%c0_9, %c0_10] : memref<32x512xbf16, #tpu.memory_space<vmem>>, vector<32x512xbf16>
    %14 = arith.extf %13 : vector<32x512xbf16> to vector<32x512xf32>
    %15 = vector.broadcast %12 : vector<32x1xf32> to vector<32x512xf32>
    %16 = arith.mulf %15, %14 : vector<32x512xf32>
    %cst_11 = arith.constant dense<0.000000e+00> : vector<512xf32>
    %17 = vector.multi_reduction <add>, %16, %cst_11 [0] : vector<32x512xf32> to vector<512xf32>
    %18 = vector.shape_cast %17 : vector<512xf32> to vector<1x512xf32>
    %c0_12 = arith.constant 0 : index
    %c0_13 = arith.constant 0 : index
    %c0_14 = arith.constant 0 : index
    %19 = vector.load %arg5[%c0_12, %c0_13, %c0_14] : memref<2x1x512xf32, #tpu.memory_space<vmem>>, vector<1x1x512xf32>
    %20 = vector.shape_cast %19 : vector<1x1x512xf32> to vector<1x512xf32>
    %21 = vector.shape_cast %18 : vector<1x512xf32> to vector<1x1x512xf32>
    tpu.vector_store %arg5[%c0_12, %c0_13, %c0_14], %21 {strides = array<i32>} : memref<2x1x512xf32, #tpu.memory_space<vmem>>, vector<1x1x512xf32>,
    %c0_15 = arith.constant 0 : index
    %c0_16 = arith.constant 0 : index
    %22 = vector.load %arg2[%c0_15, %c0_16] : memref<32x27xbf16, #tpu.memory_space<vmem>>, vector<32x27xbf16>
    %c1 = arith.constant 1 : index
    %c0_17 = arith.constant 0 : index
    %c0_18 = arith.constant 0 : index
    %23 = vector.load %arg1[%c1, %c0_17, %c0_18] : memref<2x27x49xbf16, #tpu.memory_space<vmem>>, vector<1x27x49xbf16>
    %24 = vector.shape_cast %23 : vector<1x27x49xbf16> to vector<27x49xbf16>
    %cst_19 = arith.constant dense<0.000000e+00> : vector<32x49xf32>
    %25 = tpu.matmul %22, %24, %cst_19 {dimension_numbers = #tpu.dot_dimension_numbers<[1], [0], [0], [1], [0, 0, 1, 1], [], []>} : vector<32x27xbf16>, vector<27x49xbf16>, vector<32x49xf32> -> vector<32x49xf32>
    %c0_20 = arith.constant 0 : index
    %c0_21 = arith.constant 0 : index
    %26 = vector.load %arg3[%c0_20, %c0_21] : memref<32x1xf32, #tpu.memory_space<vmem>>, vector<32x1xf32>
    %27 = vector.broadcast %26 : vector<32x1xf32> to vector<32x49xf32>
    %28 = arith.addf %25, %27 : vector<32x49xf32>
    %cst_22 = arith.constant 0.000000e+00 : f32
    %29 = vector.broadcast %cst_22 : f32 to vector<32x49xf32>
    %30 = arith.maximumf %28, %29 : vector<32x49xf32>
    %cst_23 = arith.constant dense<0.000000e+00> : vector<32xf32>
    %31 = vector.multi_reduction <add>, %30, %cst_23 [1] : vector<32x49xf32> to vector<32xf32>
    %32 = vector.shape_cast %31 : vector<32xf32> to vector<32x1xf32>
    %cst_24 = arith.constant 0.0204081628 : f32
    %33 = vector.broadcast %cst_24 : f32 to vector<32x1xf32>
    %34 = arith.mulf %32, %33 : vector<32x1xf32>
    %c0_25 = arith.constant 0 : index
    %c0_26 = arith.constant 0 : index
    %35 = vector.load %arg4[%c0_25, %c0_26] : memref<32x512xbf16, #tpu.memory_space<vmem>>, vector<32x512xbf16>
    %36 = arith.extf %35 : vector<32x512xbf16> to vector<32x512xf32>
    %37 = vector.broadcast %34 : vector<32x1xf32> to vector<32x512xf32>
    %38 = arith.mulf %37, %36 : vector<32x512xf32>
    %cst_27 = arith.constant dense<0.000000e+00> : vector<512xf32>
    %39 = vector.multi_reduction <add>, %38, %cst_27 [0] : vector<32x512xf32> to vector<512xf32>
    %40 = vector.shape_cast %39 : vector<512xf32> to vector<1x512xf32>
    %c1_28 = arith.constant 1 : index
    %c0_29 = arith.constant 0 : index
    %c0_30 = arith.constant 0 : index
    %41 = vector.load %arg5[%c1_28, %c0_29, %c0_30] : memref<2x1x512xf32, #tpu.memory_space<vmem>>, vector<1x1x512xf32>
    %42 = vector.shape_cast %41 : vector<1x1x512xf32> to vector<1x512xf32>
    %43 = vector.shape_cast %40 : vector<1x512xf32> to vector<1x1x512xf32>
    tpu.vector_store %arg5[%c1_28, %c0_29, %c0_30], %43 {strides = array<i32>} : memref<2x1x512xf32, #tpu.memory_space<vmem>>, vector<1x1x512xf32>,
    return
  }
  func.func @transform_0(%arg0: i32) -> (i32, i32, i32) {
    %c0_i32 = arith.constant 0 : i32
    %c0_i32_0 = arith.constant 0 : i32
    %c0_i32_1 = arith.constant 0 : i32
    return %arg0, %c0_i32, %c0_i32_0 : i32, i32, i32
  }
  func.func @transform_1(%arg0: i32) -> (i32, i32) {
    %c0_i32 = arith.constant 0 : i32
    %c0_i32_0 = arith.constant 0 : i32
    %c0_i32_1 = arith.constant 0 : i32
    return %c0_i32, %c0_i32_0 : i32, i32
  }
  func.func @transform_2(%arg0: i32) -> (i32, i32) {
    %c0_i32 = arith.constant 0 : i32
    %c0_i32_0 = arith.constant 0 : i32
    %c0_i32_1 = arith.constant 0 : i32
    return %c0_i32, %c0_i32_0 : i32, i32
  }
  func.func @transform_3(%arg0: i32) -> (i32, i32) {
    %c0_i32 = arith.constant 0 : i32
    %c0_i32_0 = arith.constant 0 : i32
    %c0_i32_1 = arith.constant 0 : i32
    return %c0_i32, %c0_i32_0 : i32, i32
  }
  func.func @transform_4(%arg0: i32) -> (i32, i32, i32) {
    %c0_i32 = arith.constant 0 : i32
    %c0_i32_0 = arith.constant 0 : i32
    %c0_i32_1 = arith.constant 0 : i32
    return %arg0, %c0_i32, %c0_i32_0 : i32, i32, i32
  }
}

module attributes {stable_mosaic.version = 11 : i64} {
  func.func @_head_kernel(%arg0: i32, %arg1: i32, %arg2: memref<16x512xbf16, #tpu.memory_space<vmem>>, %arg3: memref<512x4352xbf16, #tpu.memory_space<vmem>>, %arg4: memref<1x4352xf32, #tpu.memory_space<vmem>>, %arg5: memref<4352x128xbf16, #tpu.memory_space<vmem>>, %arg6: memref<1x16x128xf32, #tpu.memory_space<vmem>>) attributes {dimension_semantics = [#tpu.dimension_semantics<parallel>, #tpu.dimension_semantics<arbitrary>], iteration_bounds = array<i64: 2, 1>, scalar_prefetch = 0 : i64, scratch_operands = 0 : i64, tpu.core_type = #tpu.core_type<tc>, window_params = [{pipeline_mode = #tpu.pipeline_mode<synchronous>, transform_indices = @transform_0, window_bounds = array<i64: 16, 512>}, {transform_indices = @transform_1, window_bounds = array<i64: 512, 4352>}, {transform_indices = @transform_2, window_bounds = array<i64: 1, 4352>}, {transform_indices = @transform_3, window_bounds = array<i64: 4352, 128>}, {transform_indices = @transform_4, window_bounds = array<i64: 1, 16, 128>}]} {
    %c0_i32 = arith.constant 0 : i32
    %0 = arith.cmpi eq, %arg1, %c0_i32 : i32
    %1 = arith.extui %0 : i1 to i32
    %c0_i32_0 = arith.constant 0 : i32
    %2 = arith.cmpi ne, %1, %c0_i32_0 : i32
    scf.if %2 {
      %cst_16 = arith.constant 0.000000e+00 : f32
      %20 = vector.broadcast %cst_16 : f32 to vector<16x128xf32>
      %c0_17 = arith.constant 0 : index
      %c0_18 = arith.constant 0 : index
      %c0_19 = arith.constant 0 : index
      %21 = vector.load %arg6[%c0_17, %c0_18, %c0_19] : memref<1x16x128xf32, #tpu.memory_space<vmem>>, vector<1x16x128xf32>
      %22 = vector.shape_cast %21 : vector<1x16x128xf32> to vector<16x128xf32>
      %23 = vector.shape_cast %20 : vector<16x128xf32> to vector<1x16x128xf32>
      tpu.vector_store %arg6[%c0_17, %c0_18, %c0_19], %23 {strides = array<i32>} : memref<1x16x128xf32, #tpu.memory_space<vmem>>, vector<1x16x128xf32>,
    } else {
    }
    %c0 = arith.constant 0 : index
    %c0_1 = arith.constant 0 : index
    %3 = vector.load %arg2[%c0, %c0_1] : memref<16x512xbf16, #tpu.memory_space<vmem>>, vector<16x512xbf16>
    %c0_2 = arith.constant 0 : index
    %c0_3 = arith.constant 0 : index
    %4 = vector.load %arg3[%c0_2, %c0_3] : memref<512x4352xbf16, #tpu.memory_space<vmem>>, vector<512x4352xbf16>
    %cst = arith.constant dense<0.000000e+00> : vector<16x4352xf32>
    %5 = tpu.matmul %3, %4, %cst {dimension_numbers = #tpu.dot_dimension_numbers<[1], [0], [0], [1], [0, 0, 1, 1], [], []>} : vector<16x512xbf16>, vector<512x4352xbf16>, vector<16x4352xf32> -> vector<16x4352xf32>
    %c0_4 = arith.constant 0 : index
    %c0_5 = arith.constant 0 : index
    %6 = vector.load %arg4[%c0_4, %c0_5] : memref<1x4352xf32, #tpu.memory_space<vmem>>, vector<1x4352xf32>
    %7 = vector.broadcast %6 : vector<1x4352xf32> to vector<16x4352xf32>
    %8 = arith.addf %5, %7 : vector<16x4352xf32>
    %cst_6 = arith.constant 0.000000e+00 : f32
    %9 = vector.broadcast %cst_6 : f32 to vector<16x4352xf32>
    %10 = arith.maximumf %8, %9 : vector<16x4352xf32>
    %11 = arith.truncf %10 : vector<16x4352xf32> to vector<16x4352xbf16>
    %c0_7 = arith.constant 0 : index
    %c0_8 = arith.constant 0 : index
    %c0_9 = arith.constant 0 : index
    %12 = vector.load %arg6[%c0_7, %c0_8, %c0_9] : memref<1x16x128xf32, #tpu.memory_space<vmem>>, vector<1x16x128xf32>
    %13 = vector.shape_cast %12 : vector<1x16x128xf32> to vector<16x128xf32>
    %c0_10 = arith.constant 0 : index
    %c0_11 = arith.constant 0 : index
    %14 = vector.load %arg5[%c0_10, %c0_11] : memref<4352x128xbf16, #tpu.memory_space<vmem>>, vector<4352x128xbf16>
    %cst_12 = arith.constant dense<0.000000e+00> : vector<16x128xf32>
    %15 = tpu.matmul %11, %14, %cst_12 {dimension_numbers = #tpu.dot_dimension_numbers<[1], [0], [0], [1], [0, 0, 1, 1], [], []>} : vector<16x4352xbf16>, vector<4352x128xbf16>, vector<16x128xf32> -> vector<16x128xf32>
    %16 = arith.addf %13, %15 : vector<16x128xf32>
    %c0_13 = arith.constant 0 : index
    %c0_14 = arith.constant 0 : index
    %c0_15 = arith.constant 0 : index
    %17 = vector.load %arg6[%c0_13, %c0_14, %c0_15] : memref<1x16x128xf32, #tpu.memory_space<vmem>>, vector<1x16x128xf32>
    %18 = vector.shape_cast %17 : vector<1x16x128xf32> to vector<16x128xf32>
    %19 = vector.shape_cast %16 : vector<16x128xf32> to vector<1x16x128xf32>
    tpu.vector_store %arg6[%c0_13, %c0_14, %c0_15], %19 {strides = array<i32>} : memref<1x16x128xf32, #tpu.memory_space<vmem>>, vector<1x16x128xf32>,
    return
  }
  func.func @transform_0(%arg0: i32, %arg1: i32) -> (i32, i32) {
    %c0_i32 = arith.constant 0 : i32
    %c0_i32_0 = arith.constant 0 : i32
    %c0_i32_1 = arith.constant 0 : i32
    return %c0_i32, %c0_i32_0 : i32, i32
  }
  func.func @transform_1(%arg0: i32, %arg1: i32) -> (i32, i32) {
    %c1_i32 = arith.constant 1 : i32
    %0 = arith.muli %arg0, %c1_i32 : i32
    %1 = arith.addi %0, %arg1 : i32
    %c0_i32 = arith.constant 0 : i32
    %c0_i32_0 = arith.constant 0 : i32
    return %c0_i32, %1 : i32, i32
  }
  func.func @transform_2(%arg0: i32, %arg1: i32) -> (i32, i32) {
    %c1_i32 = arith.constant 1 : i32
    %0 = arith.muli %arg0, %c1_i32 : i32
    %1 = arith.addi %0, %arg1 : i32
    %c0_i32 = arith.constant 0 : i32
    %c0_i32_0 = arith.constant 0 : i32
    return %c0_i32, %1 : i32, i32
  }
  func.func @transform_3(%arg0: i32, %arg1: i32) -> (i32, i32) {
    %c1_i32 = arith.constant 1 : i32
    %0 = arith.muli %arg0, %c1_i32 : i32
    %1 = arith.addi %0, %arg1 : i32
    %c0_i32 = arith.constant 0 : i32
    %c0_i32_0 = arith.constant 0 : i32
    return %1, %c0_i32 : i32, i32
  }
  func.func @transform_4(%arg0: i32, %arg1: i32) -> (i32, i32, i32) {
    %c0_i32 = arith.constant 0 : i32
    %c0_i32_0 = arith.constant 0 : i32
    %c0_i32_1 = arith.constant 0 : i32
    return %arg0, %c0_i32, %c0_i32_0 : i32, i32, i32
  }
}

</mosaic_0001>

<bundles_post_ra>
// kernel: facenet_forward.2
= control target key start
LH: loop header
LB: loop body
LE: loop exit
PB: predicated region body
PF: predicated region fallthrough
CT: control target
= control target key end

     0   :  { %9 = vsyncpa [#allocation3], 0  ;;  %s723_s0 = inlined_call_operand.vmem [shape: bf16[2,27,49], index: 0, kind: input, shape index: {}]   ;;  %s724_s1 = inlined_call_operand.hbm [shape: bf16[32,27], index: 1, kind: input, shape index: {}]   ;;  %s725_s2 = inlined_call_operand.vmem [shape: f32[32,1], index: 2, kind: input, shape index: {}]   ;;  %s726_s3 = inlined_call_operand.hbm [shape: bf16[32,512], index: 3, kind: input, shape index: {}]   ;;  %s727_s4 = inlined_call_operand.vmem [shape: f32[2,1,512], index: 4, kind: output, shape index: {}]  }
   0x1   :  { %s17_s17 = sshll.u32 %s724_s1, 4  ;;  %s18_s17 = int_to_ptr.hbm [resolvable:$true] %s17_s17 }
   0x2   :  { %10 = vsyncpa [#allocation5], 0  ;;  %s565_s18 = smov [#allocation2]   ;;  %s32_s22 = sshll.u32 %s726_s3, 4  ;;  %s33_s22 = int_to_ptr.hbm [resolvable:$true] %s32_s22 }
   0x3   :  { %s19_s19 = sshll.u32 %s565_s18, 4  ;;  %s566_s23 = smov 64   ;;  %s20_s19 = int_to_ptr.vmem [resolvable:$true] %s19_s19 }
   0x4   :  { %s567_s24 = smov 4   ;;  %s568_s25 = smov [#allocation4]  }
   0x5   :  { %25 = dma.hbm_to_vmem [thread:$0]  %s18_s17, 256, %s20_s19, [#allocation3], %s566_s23, %s566_s23, %s567_s24  }
   0x6   :  { %s34_s26 = sshll.u32 %s568_s25, 4  ;;  %s569_s27 = smov 256   ;;  %s35_s26 = int_to_ptr.vmem [resolvable:$true] %s34_s26 }
   0x7   :  { %s570_s28 = smov 16  }
   0x8   :  { %40 = dma.hbm_to_vmem [thread:$0]  %s33_s22, 1024, %s35_s26, [#allocation5], %s569_s27, %s569_s27, %s570_s28  }
   0x9   :  { %561 = dma.done.wait [#allocation3], 256  }
   0xa   :  { %562 = vsyncadd [#allocation3], 4294967040 }
   0xb   :  { %563 = dma.done.wait [#allocation5], 1024  }
   0xc   :  { %564 = vsyncadd [#allocation5], 4294966272  ;;  %vm110_vm0 = vcmask 1044480   ;;  %v571_v0 = vmov 0   ;;  %vm111_vm1 = vcmask 1045504   ;;  %v572_v1 = vmov 65535  }
   0xd   :  { %510 = vset.pattern.permute.xlu0 %v571_v0  ;;  %511 = vset.pattern.permute.xlu1 %v571_v0  ;;  %v112_v2 = vsel %vm110_vm0, 4294967295, %v572_v1  ;;  %v463_v4 = vld [vmem:[%s723_s0 + $0x8] sm:$0xf]  ;;  %v493_v5 = vld [vmem:[%s723_s0 + $0x8] sm:$0x30]  ;;  %v58_v9 = vld [vmem:[%s725_s2] sm:$0xff] }
   0xe   :  { %512 = vset.pattern.permute.xlu2 %v571_v0  ;;  %v113_v3 = vsel %vm111_vm1, %v112_v2, 0  ;;  %v485_v6 = vld [vmem:[%s723_s0 + $0x18] sm:$0xf]  ;;  %v464_v7 = vor.u32 %v493_v5, %v463_v4  ;;  %v497_v8 = vld [vmem:[%s723_s0 + $0x18] sm:$0x30]  ;;  %64 = vperm.xlu0 %510, %v58_v9   ;;  %v60_v13 = vld [vmem:[%s725_s2 + $0x10] sm:$0xff] }
   0xf   :  { %v486_v10 = vor.u32 %v497_v8, %v485_v6  ;;  %267 = vperm.xlu1 %511, %v58_v9   ;;  %v492_v14 = vld [vmem:[%s723_s0] sm:$0xff]  ;;  %v496_v15 = vld [vmem:[%s723_s0 + $0x10] sm:$0xff]  ;;  %74 = vperm.xlu2 %512, %v60_v13   ;;  %v491_v17 = vld [vmem:[#allocation2 + $0x8] sm:$0xff]  ;;  %vm103_vm2 = vcmask 220160   ;;  %vm140_vm3 = vcmask 400384   ;;  %vm240_vm4 = vcmask 1040384  }
  0x10   :  { %v115_v11 = vand.u32 %v464_v7, %v113_v3  ;;  %v490_v16 = vld [vmem:[#allocation2] sm:$0xff]  ;;  %v59_v18 = vld [vmem:[%s725_s2 + $0x8] sm:$0xff]  ;;  %v61_v21 = vld [vmem:[%s725_s2 + $0x18] sm:$0xff]  ;;  %vm242_vm5 = vcmask 1042434   ;;  %vm244_vm6 = vcmask 1041408  }
  0x11   :  { %v313_v12 = vand.u32 %v486_v10, %v113_v3  ;;  %v494_v19 = vld [vmem:[#allocation2] sm:$0xff]  ;;  %v495_v20 = vld [vmem:[#allocation2 + $0x8] sm:$0xff]  ;;  %v642_v63 = vld [vmem:[#allocation4] sm:$0xff] }
  0x12   :  { %123 = vmatpush.bf16.msra.mxu0 %v115_v11  ;;  %498 = vmatpush.bf16.msra.mxu2 %v115_v11  ;;  %v644_v0 = vld [vmem:[#allocation4 + $0x8] sm:$0xff]  ;;  %v646_v2 = vld [vmem:[#allocation4 + $0x10] sm:$0xff]  ;;  %v648_v3 = vld [vmem:[#allocation4 + $0x18] sm:$0xff]  ;;  %v165_v4 = vunpack.c.l.bf16 %v642_v63  ;;  %v166_v7 = vunpack.c.h.bf16 %v642_v63 }
  0x13   :  { %321 = vmatpush.bf16.msra.mxu1 %v313_v12  ;;  %500 = vmatpush.bf16.msra.mxu3 %v313_v12  ;;  %v651_v6 = vld [vmem:[#allocation4 + $0x20] sm:$0xff]  ;;  %v167_v8 = vunpack.c.l.bf16 %v644_v0  ;;  %v168_v9 = vunpack.c.h.bf16 %v644_v0  ;;  %v656_v10 = vld [vmem:[#allocation4 + $0x28] sm:$0xff]  ;;  %v169_v11 = vunpack.c.l.bf16 %v646_v2  ;;  %v170_v12 = vunpack.c.h.bf16 %v646_v2 }
  0x16   :  { %124 = vmatpush.bf16.msra.mxu0 %v492_v14  ;;  %499 = vmatpush.bf16.msra.mxu2 %v492_v14  ;;  %v172_v14 = vunpack.c.h.bf16 %v648_v3 }
  0x17   :  { %322 = vmatpush.bf16.msra.mxu1 %v496_v15  ;;  %501 = vmatpush.bf16.msra.mxu3 %v496_v15 }
  0x18   :  { %69 = vperm.xlu0 %510, %v59_v18   ;;  %272 = vperm.xlu1 %511, %v59_v18  }
  0x19   :  { %465 = vmatmul.msk.bf16.vlgmr.msra.gmra.mxu0 %vm103_vm2, %v490_v16  ;;  %466 = vmatmul.msk.bf16.vlgmr.msra.gmra.mxu2 %vm103_vm2, %v491_v17  ;;  %v173_v16 = vunpack.c.l.bf16 %v651_v6  ;;  %v174_v17 = vunpack.c.h.bf16 %v651_v6 }
  0x1a   :  { %487 = vmatmul.msk.bf16.vlgmr.msra.gmra.mxu1 %vm103_vm2, %v494_v19  ;;  %488 = vmatmul.msk.bf16.vlgmr.msra.gmra.mxu3 %vm103_vm2, %v495_v20 }
  0x1b   :  { %277 = vperm.xlu2 %512, %v60_v13   ;;  %v171_v13 = vunpack.c.l.bf16 %v648_v3 }
  0x20   :  { %79 = vperm.xlu0 %510, %v61_v21   ;;  %282 = vperm.xlu1 %511, %v61_v21   ;;  %v175_v21 = vunpack.c.l.bf16 %v656_v10 }
  0x69   :  { %v75_v23 = vpop.permute.xlu2 %74 }
  0x75   :  { %v278_v39 = vpop.permute.xlu2 %277 }
  0x80   :  { %v65_v22 = vpop.permute.xlu0 %64 }
  0x81   :  { %v268_v24 = vpop.permute.xlu1 %267 }
  0x8a   :  { %v70_v30 = vpop.permute.xlu0 %69  ;;  %v273_v41 = vpop.permute.xlu1 %272 }
  0x92   :  { %v80_v48 = vpop.permute.xlu0 %79  ;;  %v283_v56 = vpop.permute.xlu1 %282 }
  0x96   :  { %v126_v25 = vpop.f32.mrf.mxu0 }
  0x97   :  { %v324_v26 = vpop.f32.mrf.mxu1  ;;  %v127_v27 = vadd.f32 %v126_v25, %v65_v22  ;;  %v176_v22 = vunpack.c.h.bf16 %v656_v10 }
  0x98   :  { %v325_v28 = vadd.f32 %v324_v26, %v268_v24 }
  0x99   :  { %v136_v29 = vmax.f32 %v127_v27, 0.0 }
  0x9a   :  { %v334_v31 = vmax.f32 %v325_v28, 0.0 }
  0x9b   :  { %v141_v32 = vsel %vm140_vm3, %v136_v29, 0.0 }
  0x9c   :  { %v131_v33 = vpop.f32.mrf.mxu2  ;;  %142 = vadd.xlane.f32.xlu2 %v141_v32  ;;  %v338_v34 = vsel %vm140_vm3, %v334_v31, 0.0  ;;  %v668_v32 = vld [vmem:[#allocation4 + $0x38] sm:$0xff] }
  0x9d   :  { %v132_v35 = vadd.f32 %v131_v33, %v75_v23  ;;  %339 = vadd.xlane.f32.xlu1 %v338_v34  ;;  %v329_v36 = vpop.f32.mrf.mxu3  ;;  %v666_v23 = vld [vmem:[#allocation4 + $0x30] sm:$0xff] }
  0x9e   :  { %v128_v37 = vpop.f32.mrf.mxu0  ;;  %v330_v46 = vadd.f32 %v329_v36, %v278_v39  ;;  %v177_v34 = vunpack.c.l.bf16 %v666_v23 }
  0x9f   :  { %v138_v38 = vmax.f32 %v132_v35, 0.0  ;;  %v129_v40 = vadd.f32 %v128_v37, %v70_v30  ;;  %v326_v42 = vpop.f32.mrf.mxu1  ;;  %v178_v35 = vunpack.c.h.bf16 %v666_v23 }
  0xa0   :  { %v327_v45 = vadd.f32 %v326_v42, %v273_v41  ;;  %v336_v52 = vmax.f32 %v330_v46, 0.0  ;;  %v179_v42 = vunpack.c.l.bf16 %v668_v32 }
  0xa1   :  { %v137_v43 = vmax.f32 %v129_v40, 0.0  ;;  %v147_v44 = vsel %vm140_vm3, %v138_v38, 0.0 }
  0xa2   :  { %v335_v51 = vmax.f32 %v327_v45, 0.0  ;;  %v344_v58 = vsel %vm140_vm3, %v336_v52, 0.0 }
  0xa3   :  { %v144_v47 = vsel %vm140_vm3, %v137_v43, 0.0  ;;  %v180_v43 = vunpack.c.h.bf16 %v668_v32 }
  0xa4   :  { %v133_v49 = vpop.f32.mrf.mxu2  ;;  %145 = vadd.xlane.f32.xlu0 %v144_v47  ;;  %148 = vadd.xlane.f32.xlu2 %v147_v44  ;;  %v341_v59 = vsel %vm140_vm3, %v335_v51, 0.0  ;;  %v247_v47 = vlaneseq }
  0xa5   :  { %v134_v50 = vadd.f32 %v133_v49, %v80_v48  ;;  %v331_v54 = vpop.f32.mrf.mxu3 }
  0xa6   :  { %v332_v57 = vadd.f32 %v331_v54, %v283_v56  ;;  %vm703_vm7 = vcmp.lt.s32.totalorder %v247_v47, 512 }
  0xa7   :  { %v139_v53 = vmax.f32 %v134_v50, 0.0 }
  0xa8   :  { %v337_v60 = vmax.f32 %v332_v57, 0.0 }
  0xa9   :  { %v150_v55 = vsel %vm140_vm3, %v139_v53, 0.0 }
  0xaa   :  { %151 = vadd.xlane.f32.xlu1 %v150_v55  ;;  %v347_v61 = vsel %vm140_vm3, %v337_v60, 0.0 }
  0xac   :  { %345 = vadd.xlane.f32.xlu0 %v344_v58  ;;  %342 = vadd.xlane.f32.xlu2 %v341_v59 }
  0xb4   :  { %348 = vadd.xlane.f32.xlu2 %v347_v61 }
 0x10f   :  { %v143_v62 = vpop.xlane.xlu2 %142 }
 0x110   :  { %v340_v1 = vpop.xlane.xlu1 %339  ;;  %v153_v5 = vmul.f32 0.020408163, %v143_v62 }
 0x111   :  { %v350_v33 = vmul.f32 0.020408163, %v340_v1 }
 0x112   :  { %v181_v19 = vmul.f32 %v165_v4, %v153_v5  ;;  %v182_v24 = vmul.f32 %v166_v7, %v153_v5  ;;  %v183_v25 = vmul.f32 %v167_v8, %v153_v5  ;;  %v184_v26 = vmul.f32 %v168_v9, %v153_v5 }
 0x113   :  { %v378_v48 = vmul.f32 %v350_v33, %v165_v4  ;;  %v379_v62 = vmul.f32 %v350_v33, %v166_v7  ;;  %v380_v63 = vmul.f32 %v350_v33, %v167_v8  ;;  %v381_v0 = vmul.f32 %v350_v33, %v168_v9 }
 0x117   :  { %v146_v15 = vpop.xlane.xlu0 %145  ;;  %v149_v18 = vpop.xlane.xlu2 %148 }
 0x118   :  { %v154_v20 = vmul.f32 0.020408163, %v146_v15  ;;  %v155_v27 = vmul.f32 0.020408163, %v149_v18 }
 0x11a   :  { %v185_v28 = vmul.f32 %v169_v11, %v154_v20  ;;  %v186_v29 = vmul.f32 %v170_v12, %v154_v20  ;;  %v187_v30 = vmul.f32 %v171_v13, %v154_v20  ;;  %v188_v31 = vmul.f32 %v172_v14, %v154_v20 }
 0x11b   :  { %v189_v40 = vmul.f32 %v173_v16, %v155_v27  ;;  %v190_v41 = vmul.f32 %v174_v17, %v155_v27  ;;  %v191_v45 = vmul.f32 %v175_v21, %v155_v27  ;;  %v192_v46 = vmul.f32 %v176_v22, %v155_v27 }
 0x11c   :  { %v197_v36 = vadd.f32 %v185_v28, %v181_v19  ;;  %v206_v37 = vadd.f32 %v186_v29, %v182_v24  ;;  %v215_v38 = vadd.f32 %v187_v30, %v183_v25  ;;  %v224_v39 = vadd.f32 %v188_v31, %v184_v26 }
 0x11d   :  { %v152_v44 = vpop.xlane.xlu1 %151 }
 0x11e   :  { %v198_v49 = vadd.f32 %v197_v36, %v189_v40  ;;  %v207_v50 = vadd.f32 %v206_v37, %v190_v41  ;;  %v156_v51 = vmul.f32 0.020408163, %v152_v44  ;;  %v216_v54 = vadd.f32 %v215_v38, %v191_v45 }
 0x11f   :  { %v346_v52 = vpop.xlane.xlu0 %345  ;;  %v343_v53 = vpop.xlane.xlu2 %342  ;;  %v225_v55 = vadd.f32 %v224_v39, %v192_v46 }
 0x120   :  { %v352_v56 = vmul.f32 0.020408163, %v346_v52  ;;  %v351_v57 = vmul.f32 0.020408163, %v343_v53  ;;  %v193_v58 = vmul.f32 %v177_v34, %v156_v51  ;;  %v194_v59 = vmul.f32 %v178_v35, %v156_v51 }
 0x121   :  { %v195_v60 = vmul.f32 %v179_v42, %v156_v51  ;;  %v196_v61 = vmul.f32 %v180_v43, %v156_v51 }
 0x122   :  { %v386_v1 = vmul.f32 %v352_v56, %v173_v16  ;;  %v199_v2 = vadd.f32 %v198_v49, %v193_v58  ;;  %v208_v3 = vadd.f32 %v207_v50, %v194_v59  ;;  %v382_v15 = vmul.f32 %v351_v57, %v169_v11 }
 0x123   :  { %v217_v4 = vadd.f32 %v216_v54, %v195_v60  ;;  %v226_v5 = vadd.f32 %v225_v55, %v196_v61  ;;  %v383_v18 = vmul.f32 %v351_v57, %v170_v12  ;;  %v384_v19 = vmul.f32 %v351_v57, %v171_v13 }
 0x124   :  { %v385_v20 = vmul.f32 %v351_v57, %v172_v14  ;;  %v200_v24 = vrot.slane %v199_v2, 4  ;;  %v209_v25 = vrot.slane %v208_v3, 4  ;;  %v394_v28 = vadd.f32 %v382_v15, %v378_v48 }
 0x125   :  { %v218_v26 = vrot.slane %v217_v4, 4  ;;  %v227_v27 = vrot.slane %v226_v5, 4  ;;  %v403_v29 = vadd.f32 %v383_v18, %v379_v62  ;;  %v412_v30 = vadd.f32 %v384_v19, %v380_v63 }
 0x126   :  { %v421_v31 = vadd.f32 %v385_v20, %v381_v0  ;;  %v201_v7 = vadd.f32 %v200_v24, %v199_v2  ;;  %v210_v8 = vadd.f32 %v209_v25, %v208_v3  ;;  %v387_v11 = vmul.f32 %v352_v56, %v174_v17 }
 0x127   :  { %v219_v9 = vadd.f32 %v218_v26, %v217_v4  ;;  %v228_v16 = vadd.f32 %v227_v27, %v226_v5  ;;  %v349_v33 = vpop.xlane.xlu2 %348  ;;  %v388_v12 = vmul.f32 %v352_v56, %v175_v21  ;;  %v389_v13 = vmul.f32 %v352_v56, %v176_v22 }
 0x128   :  { %v395_v14 = vadd.f32 %v394_v28, %v386_v1  ;;  %v202_v36 = vrot.slane %v201_v7, 2  ;;  %v211_v37 = vrot.slane %v210_v8, 2  ;;  %v404_v40 = vadd.f32 %v403_v29, %v387_v11 }
 0x129   :  { %v220_v38 = vrot.slane %v219_v9, 2  ;;  %v229_v39 = vrot.slane %v228_v16, 2  ;;  %v413_v41 = vadd.f32 %v412_v30, %v388_v12  ;;  %v422_v44 = vadd.f32 %v421_v31, %v389_v13 }
 0x12a   :  { %v353_v45 = vmul.f32 0.020408163, %v349_v33  ;;  %v203_v46 = vadd.f32 %v202_v36, %v201_v7  ;;  %v212_v48 = vadd.f32 %v211_v37, %v210_v8 }
 0x12b   :  { %v221_v6 = vadd.f32 %v220_v38, %v219_v9  ;;  %v230_v17 = vadd.f32 %v229_v39, %v228_v16 }
 0x12c   :  { %v390_v21 = vmul.f32 %v353_v45, %v177_v34  ;;  %v391_v10 = vmul.f32 %v353_v45, %v178_v35  ;;  %v392_v22 = vmul.f32 %v353_v45, %v179_v42  ;;  %v393_v49 = vmul.f32 %v353_v45, %v180_v43 }
 0x12d   :  { %v204_v50 = vrot.slane %v203_v46, 1  ;;  %v213_v51 = vrot.slane %v212_v48, 1  ;;  %v222_v52 = vrot.slane %v221_v6, 1  ;;  %v231_v53 = vrot.slane %v230_v17, 1 }
 0x12e   :  { %v396_v54 = vadd.f32 %v395_v14, %v390_v21  ;;  %v405_v55 = vadd.f32 %v404_v40, %v391_v10  ;;  %v414_v56 = vadd.f32 %v413_v41, %v392_v22  ;;  %v423_v57 = vadd.f32 %v422_v44, %v393_v49 }
 0x12f   :  { %v214_v23 = vadd.f32 %v213_v51, %v212_v48  ;;  %v223_v35 = vadd.f32 %v222_v52, %v221_v6  ;;  %v232_v58 = vadd.f32 %v231_v53, %v230_v17  ;;  %v205_v60 = vadd.f32 %v204_v50, %v203_v46 }
 0x130   :  { %v397_v42 = vrot.slane %v396_v54, 4  ;;  %v406_v59 = vrot.slane %v405_v55, 4  ;;  %v415_v32 = vrot.slane %v414_v56, 4  ;;  %v424_v43 = vrot.slane %v423_v57, 4 }
 0x131   :  { %v237_v61 = vrot.slane %v214_v23, 7  ;;  %v238_v62 = vrot.slane %v223_v35, 6  ;;  %v239_v63 = vrot.slane %v232_v58, 5 }
 0x132   :  { %v398_v0 = vadd.f32 %v397_v42, %v396_v54  ;;  %v407_v1 = vadd.f32 %v406_v59, %v405_v55  ;;  %v416_v2 = vadd.f32 %v415_v32, %v414_v56  ;;  %v425_v3 = vadd.f32 %v424_v43, %v423_v57 }
 0x133   :  { %v241_v47 = vsel %vm240_vm4, %v205_v60, %v237_v61  ;;  %v243_v4 = vsel %vm242_vm5, %v238_v62, %v239_v63 }
 0x134   :  { %v245_v5 = vsel %vm244_vm6, %v241_v47, %v243_v4  ;;  %v399_v15 = vrot.slane %v398_v0, 2  ;;  %v408_v18 = vrot.slane %v407_v1, 2  ;;  %v417_v19 = vrot.slane %v416_v2, 2 }
 0x135   :  { %251 = vst.msk [vmem:[%s727_s4] sm:$0xf] %vm703_vm7, %v245_v5  ;;  %v426_v20 = vrot.slane %v425_v3, 2 }
 0x136   :  { %v400_v24 = vadd.f32 %v399_v15, %v398_v0  ;;  %v409_v25 = vadd.f32 %v408_v18, %v407_v1  ;;  %v418_v26 = vadd.f32 %v417_v19, %v416_v2 }
 0x137   :  { %v427_v27 = vadd.f32 %v426_v20, %v425_v3 }
 0x138   :  { %v401_v28 = vrot.slane %v400_v24, 1  ;;  %v410_v29 = vrot.slane %v409_v25, 1  ;;  %v419_v30 = vrot.slane %v418_v26, 1 }
 0x139   :  { %v428_v31 = vrot.slane %v427_v27, 1 }
 0x13a   :  { %v411_v7 = vadd.f32 %v410_v29, %v409_v25  ;;  %v420_v8 = vadd.f32 %v419_v30, %v418_v26  ;;  %v402_v16 = vadd.f32 %v401_v28, %v400_v24 }
 0x13b   :  { %v429_v9 = vadd.f32 %v428_v31, %v427_v27 }
 0x13c   :  { %v434_v33 = vrot.slane %v411_v7, 7  ;;  %v435_v11 = vrot.slane %v420_v8, 6 }
 0x13d   :  { %v436_v12 = vrot.slane %v429_v9, 5 }
 0x13e   :  { %v437_v13 = vsel %vm240_vm4, %v402_v16, %v434_v33 }
 0x13f   :  { %v438_v14 = vsel %vm242_vm5, %v435_v11, %v436_v12 }
 0x140   :  { %v439_v36 = vsel %vm244_vm6, %v437_v13, %v438_v14 }
 0x141   :  { %489 = vst.msk [vmem:[%s727_s4 + $0x4] sm:$0xf] %vm703_vm7, %v439_v36 }
 0x142   :  { %447 = vsyncpa [#allocation3], 1 }
 0x143   :  { %448 = vsyncpa [#allocation5], 1 }

// kernel: facenet_forward.3
= control target key start
LH: loop header
LB: loop body
LE: loop exit
PB: predicated region body
PF: predicated region fallthrough
CT: control target
= control target key end

     0   :  { %s22317_s0 = inlined_call_operand.vmem [shape: bf16[16,512], index: 0, kind: input, shape index: {}]   ;;  %s22318_s1 = inlined_call_operand.hbm [shape: bf16[512,8704], index: 1, kind: input, shape index: {}]   ;;  %s22319_s2 = inlined_call_operand.hbm [shape: f32[1,8704], index: 2, kind: input, shape index: {}]   ;;  %s22320_s3 = inlined_call_operand.hbm [shape: bf16[8704,128], index: 3, kind: input, shape index: {}]   ;;  %s22321_s4 = inlined_call_operand.vmem [shape: f32[2,16,128], index: 4, kind: output, shape index: {}]  }
   0x1   :  { %22359 = sst [smem:[#allocation112_spill]] %s22319_s2 }
   0x2   :  { %9 = vsyncpa [#allocation3], 0 }
   0x3   :  { %11 = vsyncpa [#allocation3 + $0x1], 0 }
   0x4   :  { %12 = vsyncpa [#allocation5], 0 }
   0x5   :  { %14 = vsyncpa [#allocation5 + $0x1], 0  ;;  %s18837_s15 = smov 0   ;;  %s18839_s16 = smov 0  }
   0x6   :  { %s18841_s17 = smov 0   ;;  %s18843_s18 = smov 0  }
   0x7   :  { %s18845_s19 = smov 0   ;;  %s18847_s20 = smov 0  }
   0x8 LB: > { %22360 = sst [smem:[#allocation9_spill]] %s18793_s17  ;;  %s22322_s21 = sadd.s32 4294967295, %s18805_s20   ;;  %s18805_s20 = sphi %s18847_s20, %s20_s20   ;;  %s18801_s19 = sphi %s18845_s19, %s22628_s19   ;;  %s18797_s18 = sphi %s18843_s18, %s22627_s18   ;;  %s18793_s17 = sphi %s18841_s17, %s22623_s17   ;;  %s18789_s16 = sphi %s18839_s16, %s22626_s16   ;;  %s18785_s15 = sphi %s18837_s15, %s22625_s15  }
   0x9   : > { %s32_s22 = sadd.s32 1, %s18801_s19  ;;  %s62_s23 = sadd.s32 1, %s18793_s17 }
   0xa   : > { %p34_p0 = scmp.ge.s32.totalorder %s32_s22, 2  ;;  %p69_p1 = scmp.ne.s32.totalorder %s18793_s17, %s18789_s16 }
   0xb   : > { %p70_p2 = scmp.eq.s32.totalorder %s18805_s20, 0  ;;  %p75_p4 = scmp.ne.s32.totalorder %s18789_s16, %s18785_s15 }
   0xc   : > { %s22630_s22 = smov (%p34_p0, %s32_s22), 0  ;;  %p76_p5 = scmp.eq.s32.totalorder %s22322_s21, 0 }
   0xd   : > { %22361 = sst [smem:[#allocation10_spill]] %s22630_s22  ;;  %p71_p3 = por %p70_p2, %p69_p1 }
   0xe   : > { %s59_s24 = ssub.s32 %s18801_s19, %s22630_s22  ;;  %p18878_p7 = por %p76_p5, %p75_p4 }
   0xf   : > { %p60_p6 = scmp.eq.s32.totalorder %s59_s24, 0  ;;  %p18602_p8 = scmp.lt.s32.totalorder %s18805_s20, 2 }
  0x10   : > { %s18887_s27 = sand.u32 1, %s18793_s17   ;;  %s207_s30 = sand.u32 1, %s18805_s20  }
  0x11   : > { %s18884_s26 = scalar_select %p60_p6, %s18793_s17, %s62_s23  }
  0x12   : > { %p18889_p9 = pnand %p18602_p8, %p71_p3  ;;  %s18580_s29 = smul.u32 8704, %s18887_s27 }
  0x13   : > { %22363 = sst [smem:[#allocation11_spill]] %s18884_s26  ;;  %s18581_s5 = smul.u32 34, %s18887_s27 }
  0x14   : > { %p11752_p10 = scmp.ge.s32.totalorder %s18805_s20, 1  ;;  %s213_s6 = smul.u32 34, %s18801_s19 }
  0x15   : > { %p248_p11 = scmp.lt.s32.totalorder %s18805_s20, 3  ;;  %s18582_s7 = smul.u32 2176, %s18887_s27 }
  0x16   : > { %s22365_s2 = sld [smem:[#allocation112_spill]]  ;;  %s211_s11 = scalar_lea.vmem [#allocation4], %s18581_s5 }
  0x17   : > { %s220_s12 = sshll.u32 %s211_s11, 4  ;;  %p18903_p12 = pnand %p11752_p10, %p248_p11  ;;  %s221_s12 = int_to_ptr.vmem [resolvable:$true] %s220_s12 }
  0x18   : > { %s208_s15 = scalar_lea.sflag [#allocation5], %s207_s30  ;;  %s17213_s23 = smul.u32 136, %s18801_s19 }
  0x19   : > { %s188_s24 = scalar_lea.vmem [#allocation2], %s18580_s29  ;;  %s18807_s11 = smov 4352  }
  0x1a   : > { %s197_s21 = sshll.u32 %s188_s24, 4  ;;  %s194_s5 = scalar_lea.hbm %s22318_s1, %s17213_s23  ;;  %s198_s21 = int_to_ptr.vmem [resolvable:$true] %s197_s21 }
  0x1b   : > { %s195_s9 = sshll.u32 %s194_s5, 4  ;;  %s18809_s22 = smov 136   ;;  %s196_s9 = int_to_ptr.hbm [resolvable:$true] %s195_s9 }
  0x1c   : > { %s216_s10 = scalar_lea.hbm %s22365_s2, %s213_s6  ;;  %s18808_s2 = smov 2176  }
  0x1d   : > { %s218_s13 = sshll.u32 %s216_s10, 4  ;;  %s185_s10 = scalar_lea.sflag [#allocation3], %s18887_s27  ;;  %s219_s13 = int_to_ptr.hbm [resolvable:$true] %s218_s13 }
  0x1e   : > { %18598 = dma.hbm_to_vmem [thread:$0]  (!%p18889_p9), %s219_s13, 544, %s221_s12, %s208_s15  }
  0x1f   : > { %18595 = dma.hbm_to_vmem [thread:$0]  (!%p18889_p9), %s196_s9, 139264, %s198_s21, %s185_s10, %s18807_s11, %s18808_s2, %s18809_s22  }
  0x20   : > { %s17214_s30 = smul.u32 2176, %s18801_s19  ;;  %s231_s26 = scalar_lea.vmem [#allocation6], %s18582_s7 }
  0x21   : > { %s240_s12 = sshll.u32 %s231_s26, 4  ;;  %s18810_s23 = smov 64   ;;  %s241_s12 = int_to_ptr.vmem [resolvable:$true] %s240_s12 }
  0x22   : > { %s237_s24 = scalar_lea.hbm %s22320_s3, %s17214_s30  ;;  %s18811_s6 = smov 4  }
  0x23   : > { %s238_s17 = sshll.u32 %s237_s24, 4  ;;  %252 = sbr.rel (%p18903_p12) target bundleno = 1566 (0x61e), region = 36  ;;  %s239_s17 = int_to_ptr.hbm [resolvable:$true] %s238_s17 }
  0x24   : > { %18601 = dma.hbm_to_vmem [thread:$0]  (!%p18889_p9), %s239_s17, 34816, %s241_s12, %s208_s15, %s18810_s23, %s18810_s23, %s18811_s6  }
  0x28   : > { %s18925_s2 = sand.u32 1, %s18789_s16  }
  0x29   : > { %s18583_s21 = smul.u32 8704, %s18925_s2  ;;  %s255_s22 = scalar_lea.sflag [#allocation3], %s18925_s2 }
  0x2b   : > { %s18929_s26 = scalar_lea.vmem [#allocation2], %s18583_s21 }
  0x2c   : > { %18776 = dma.done.wait (%p18878_p7), %s255_s22, 139264  }
  0x2d   : > { %18778 = vsyncadd (%p18878_p7), %s255_s22, 4294828032  ;;  %s22367_s17 = sadd.s32 4294967295, %s18805_s20   ;;  %s18584_s28 = smul.u32 34, %s18925_s2 }
  0x2e   : > { %s264_s27 = sand.u32 1, %s22367_s17  }
  0x2f   : > { %s265_s7 = scalar_lea.sflag [#allocation5], %s264_s27  ;;  %s18938_s14 = scalar_lea.vmem [#allocation4], %s18584_s28 }
  0x30   : > { %18780 = dma.done.wait (%p18878_p7), %s265_s7, 35360  }
  0x31   : > { %18782 = vsyncadd (%p18878_p7), %s265_s7, 4294931936  ;;  %v12725_v0 = vld [vmem:[%s18929_s26 + $0x770] sm:$0xf]  ;;  %v17475_v1 = vld [vmem:[%s18929_s26 + $0x7f4] sm:$0xf0]  ;;  %s18585_s17 = smul.u32 2176, %s18925_s2 }
  0x32   : > { %v13813_v2 = vld [vmem:[%s18929_s26 + $0xff0] sm:$0xf]  ;;  %v12726_v3 = vor.u32 %v17475_v1, %v12725_v0  ;;  %v17747_v4 = vld [vmem:[%s18929_s26 + $0x1074] sm:$0xf0]  ;;  %v12589_v11 = vld [vmem:[%s18929_s26 + $0x660] sm:$0xf] }
  0x33   : > { %v14901_v5 = vld [vmem:[%s18929_s26 + $0x1870] sm:$0xf]  ;;  %v18019_v6 = vld [vmem:[%s18929_s26 + $0x18f4] sm:$0xf0]  ;;  %v13814_v7 = vor.u32 %v17747_v4, %v13813_v2  ;;  %v17441_v13 = vld [vmem:[%s18929_s26 + $0x6e4] sm:$0xf0] }
  0x34   : > { %v14902_v8 = vor.u32 %v18019_v6, %v14901_v5  ;;  %v15989_v9 = vld [vmem:[%s18929_s26 + $0x20f0] sm:$0xf]  ;;  %v18291_v10 = vld [vmem:[%s18929_s26 + $0x2174] sm:$0xf0]  ;;  %6961 = vmatpush.bf16.msra.mxu0 %v12726_v3  ;;  %v13677_v14 = vld [vmem:[%s18929_s26 + $0xee0] sm:$0xf]  ;;  %v12590_v16 = vor.u32 %v17441_v13, %v12589_v11 }
  0x35   : > { %v15990_v12 = vor.u32 %v18291_v10, %v15989_v9  ;;  %v17713_v15 = vld [vmem:[%s18929_s26 + $0xf64] sm:$0xf0]  ;;  %6975 = vmatpush.bf16.msra.mxu1 %v13814_v7  ;;  %v14765_v18 = vld [vmem:[%s18929_s26 + $0x1760] sm:$0xf]  ;;  %v12453_v23 = vld [vmem:[%s18929_s26 + $0x550] sm:$0xf] }
  0x36   : > { %6989 = vmatpush.bf16.msra.mxu2 %v14902_v8  ;;  %v13678_v17 = vor.u32 %v17713_v15, %v13677_v14  ;;  %v17985_v19 = vld [vmem:[%s18929_s26 + $0x17e4] sm:$0xf0]  ;;  %v15853_v20 = vld [vmem:[%s18929_s26 + $0x1fe0] sm:$0xf]  ;;  %v17407_v24 = vld [vmem:[%s18929_s26 + $0x5d4] sm:$0xf0] }
  0x37   : > { %7003 = vmatpush.bf16.msra.mxu3 %v15990_v12  ;;  %v14766_v21 = vor.u32 %v17985_v19, %v14765_v18  ;;  %v18257_v22 = vld [vmem:[%s18929_s26 + $0x2064] sm:$0xf0]  ;;  %v13541_v26 = vld [vmem:[%s18929_s26 + $0xdd0] sm:$0xf]  ;;  %v17679_v27 = vld [vmem:[%s18929_s26 + $0xe54] sm:$0xf0]  ;;  %v12454_v29 = vor.u32 %v17407_v24, %v12453_v23 }
  0x38   : > { %v15854_v25 = vor.u32 %v18257_v22, %v15853_v20  ;;  %v14629_v28 = vld [vmem:[%s18929_s26 + $0x1650] sm:$0xf]  ;;  %6962 = vmatpush.bf16.msra.mxu0 %v12590_v16  ;;  %v17951_v30 = vld [vmem:[%s18929_s26 + $0x16d4] sm:$0xf0]  ;;  %v13542_v33 = vor.u32 %v17679_v27, %v13541_v26  ;;  %v12317_v35 = vld [vmem:[%s18929_s26 + $0x440] sm:$0xf] }
  0x39   : > { %v15717_v31 = vld [vmem:[%s18929_s26 + $0x1ed0] sm:$0xf]  ;;  %v18223_v32 = vld [vmem:[%s18929_s26 + $0x1f54] sm:$0xf0]  ;;  %6976 = vmatpush.bf16.msra.mxu1 %v13678_v17  ;;  %v14630_v34 = vor.u32 %v17951_v30, %v14629_v28  ;;  %v17373_v36 = vld [vmem:[%s18929_s26 + $0x4c4] sm:$0xf0] }
  0x3a   : > { %6990 = vmatpush.bf16.msra.mxu2 %v14766_v21  ;;  %v13405_v37 = vld [vmem:[%s18929_s26 + $0xcc0] sm:$0xf]  ;;  %v15718_v38 = vor.u32 %v18223_v32, %v15717_v31  ;;  %v17645_v39 = vld [vmem:[%s18929_s26 + $0xd44] sm:$0xf0]  ;;  %v12318_v44 = vor.u32 %v17373_v36, %v12317_v35  ;;  %v12181_v47 = vld [vmem:[%s18929_s26 + $0x330] sm:$0xf] }
  0x3b   : > { %7004 = vmatpush.bf16.msra.mxu3 %v15854_v25  ;;  %v14493_v40 = vld [vmem:[%s18929_s26 + $0x1540] sm:$0xf]  ;;  %v17917_v41 = vld [vmem:[%s18929_s26 + $0x15c4] sm:$0xf0]  ;;  %v13406_v45 = vor.u32 %v17645_v39, %v13405_v37  ;;  %v17339_v48 = vld [vmem:[%s18929_s26 + $0x3b4] sm:$0xf0] }
  0x3c   : > { %v15581_v42 = vld [vmem:[%s18929_s26 + $0x1dc0] sm:$0xf]  ;;  %v18189_v43 = vld [vmem:[%s18929_s26 + $0x1e44] sm:$0xf0]  ;;  %6963 = vmatpush.bf16.msra.mxu0 %v12454_v29  ;;  %v14494_v46 = vor.u32 %v17917_v41, %v14493_v40  ;;  %v13269_v49 = vld [vmem:[%s18929_s26 + $0xbb0] sm:$0xf]  ;;  %v12182_v56 = vor.u32 %v17339_v48, %v12181_v47 }
  0x3d   : > { %6977 = vmatpush.bf16.msra.mxu1 %v13542_v33  ;;  %v15582_v50 = vor.u32 %v18189_v43, %v15581_v42  ;;  %v17611_v51 = vld [vmem:[%s18929_s26 + $0xc34] sm:$0xf0]  ;;  %v14357_v52 = vld [vmem:[%s18929_s26 + $0x1430] sm:$0xf]  ;;  %v12045_v59 = vld [vmem:[%s18929_s26 + $0x220] sm:$0xf] }
  0x3e   : > { %6991 = vmatpush.bf16.msra.mxu2 %v14630_v34  ;;  %v17883_v53 = vld [vmem:[%s18929_s26 + $0x14b4] sm:$0xf0]  ;;  %v15445_v54 = vld [vmem:[%s18929_s26 + $0x1cb0] sm:$0xf]  ;;  %v13270_v57 = vor.u32 %v17611_v51, %v13269_v49  ;;  %v17305_v60 = vld [vmem:[%s18929_s26 + $0x2a4] sm:$0xf0] }
  0x3f   : > { %7005 = vmatpush.bf16.msra.mxu3 %v15718_v38  ;;  %v18155_v55 = vld [vmem:[%s18929_s26 + $0x1d34] sm:$0xf0]  ;;  %v14358_v58 = vor.u32 %v17883_v53, %v14357_v52  ;;  %v13133_v61 = vld [vmem:[%s18929_s26 + $0xaa0] sm:$0xf]  ;;  %v17577_v63 = vld [vmem:[%s18929_s26 + $0xb24] sm:$0xf0]  ;;  %v12046_v4 = vor.u32 %v17305_v60, %v12045_v59 }
  0x40   : > { %6964 = vmatpush.bf16.msra.mxu0 %v12318_v44  ;;  %v15446_v62 = vor.u32 %v18155_v55, %v15445_v54  ;;  %v14221_v0 = vld [vmem:[%s18929_s26 + $0x1320] sm:$0xf]  ;;  %v17849_v1 = vld [vmem:[%s18929_s26 + $0x13a4] sm:$0xf0]  ;;  %v13134_v5 = vor.u32 %v17577_v63, %v13133_v61  ;;  %v11909_v7 = vld [vmem:[%s18929_s26 + $0x110] sm:$0xf] }
  0x41   : > { %6978 = vmatpush.bf16.msra.mxu1 %v13406_v45  ;;  %v15309_v2 = vld [vmem:[%s18929_s26 + $0x1ba0] sm:$0xf]  ;;  %v18121_v3 = vld [vmem:[%s18929_s26 + $0x1c24] sm:$0xf0]  ;;  %v14222_v6 = vor.u32 %v17849_v1, %v14221_v0  ;;  %v17271_v8 = vld [vmem:[%s18929_s26 + $0x194] sm:$0xf0] }
  0x42   : > { %6992 = vmatpush.bf16.msra.mxu2 %v14494_v46  ;;  %v12997_v9 = vld [vmem:[%s18929_s26 + $0x990] sm:$0xf]  ;;  %v15310_v10 = vor.u32 %v18121_v3, %v15309_v2  ;;  %v17543_v11 = vld [vmem:[%s18929_s26 + $0xa14] sm:$0xf0]  ;;  %v11910_v16 = vor.u32 %v17271_v8, %v11909_v7  ;;  %v11773_v17 = vld [vmem:[%s18929_s26] sm:$0xf] }
  0x43   : > { %7006 = vmatpush.bf16.msra.mxu3 %v15582_v50  ;;  %v14085_v12 = vld [vmem:[%s18929_s26 + $0x1210] sm:$0xf]  ;;  %v17815_v13 = vld [vmem:[%s18929_s26 + $0x1294] sm:$0xf0]  ;;  %v17237_v18 = vld [vmem:[%s18929_s26 + $0x84] sm:$0xf0]  ;;  %v12998_v19 = vor.u32 %v17543_v11, %v12997_v9 }
  0x44   : > { %6965 = vmatpush.bf16.msra.mxu0 %v12182_v56  ;;  %v15173_v14 = vld [vmem:[%s18929_s26 + $0x1a90] sm:$0xf]  ;;  %v18087_v15 = vld [vmem:[%s18929_s26 + $0x1b14] sm:$0xf0]  ;;  %v14086_v20 = vor.u32 %v17815_v13, %v14085_v12  ;;  %v12861_v21 = vld [vmem:[%s18929_s26 + $0x880] sm:$0xf]  ;;  %v11774_v31 = vor.u32 %v17237_v18, %v11773_v17 }
  0x45   : > { %6979 = vmatpush.bf16.msra.mxu1 %v13270_v57  ;;  %v17509_v22 = vld [vmem:[%s18929_s26 + $0x904] sm:$0xf0]  ;;  %v13949_v23 = vld [vmem:[%s18929_s26 + $0x1100] sm:$0xf]  ;;  %v15174_v24 = vor.u32 %v18087_v15, %v15173_v14  ;;  %v17458_v28 = vld [vmem:[%s18929_s26 + $0x774] sm:$0xf] }
  0x46   : > { %6993 = vmatpush.bf16.msra.mxu2 %v14358_v58  ;;  %v17781_v25 = vld [vmem:[%s18929_s26 + $0x1184] sm:$0xf0]  ;;  %v15037_v26 = vld [vmem:[%s18929_s26 + $0x1980] sm:$0xf]  ;;  %v12727_v29 = vld [vmem:[%s18929_s26 + $0x7f8] sm:$0xf0]  ;;  %v12862_v35 = vor.u32 %v17509_v22, %v12861_v21 }
  0x47   : > { %7007 = vmatpush.bf16.msra.mxu3 %v15446_v62  ;;  %v18053_v27 = vld [vmem:[%s18929_s26 + $0x1a04] sm:$0xf0]  ;;  %v17730_v30 = vld [vmem:[%s18929_s26 + $0xff4] sm:$0xf]  ;;  %v13815_v32 = vld [vmem:[%s18929_s26 + $0x1078] sm:$0xf0]  ;;  %v13950_v36 = vor.u32 %v17781_v25, %v13949_v23  ;;  %v12730_v40 = vor.u32 %v17458_v28, %v12727_v29 }
  0x48   : > { %6966 = vmatpush.bf16.msra.mxu0 %v12046_v4  ;;  %v18002_v33 = vld [vmem:[%s18929_s26 + $0x1874] sm:$0xf]  ;;  %v14903_v34 = vld [vmem:[%s18929_s26 + $0x18f8] sm:$0xf0]  ;;  %v15038_v39 = vor.u32 %v18053_v27, %v15037_v26  ;;  %v13818_v41 = vor.u32 %v17730_v30, %v13815_v32  ;;  %v17424_v43 = vld [vmem:[%s18929_s26 + $0x664] sm:$0xf] }
  0x49   : > { %6980 = vmatpush.bf16.msra.mxu1 %v13134_v5  ;;  %v18274_v37 = vld [vmem:[%s18929_s26 + $0x20f4] sm:$0xf]  ;;  %v15991_v38 = vld [vmem:[%s18929_s26 + $0x2178] sm:$0xf0]  ;;  %v14906_v42 = vor.u32 %v18002_v33, %v14903_v34  ;;  %v12591_v44 = vld [vmem:[%s18929_s26 + $0x6e8] sm:$0xf0] }
  0x4a   : > { %6994 = vmatpush.bf16.msra.mxu2 %v14222_v6  ;;  %v17696_v45 = vld [vmem:[%s18929_s26 + $0xee4] sm:$0xf]  ;;  %v15994_v46 = vor.u32 %v18274_v37, %v15991_v38  ;;  %v13679_v47 = vld [vmem:[%s18929_s26 + $0xf68] sm:$0xf0]  ;;  %v12594_v52 = vor.u32 %v17424_v43, %v12591_v44  ;;  %v17390_v53 = vld [vmem:[%s18929_s26 + $0x554] sm:$0xf] }
  0x4b   : > { %7008 = vmatpush.bf16.msra.mxu3 %v15310_v10  ;;  %v17968_v48 = vld [vmem:[%s18929_s26 + $0x1764] sm:$0xf]  ;;  %v14767_v49 = vld [vmem:[%s18929_s26 + $0x17e8] sm:$0xf0]  ;;  %v12455_v54 = vld [vmem:[%s18929_s26 + $0x5d8] sm:$0xf0]  ;;  %v13682_v56 = vor.u32 %v17696_v45, %v13679_v47 }
  0x4c   : > { %6967 = vmatpush.bf16.msra.mxu0 %v11910_v16  ;;  %v18240_v50 = vld [vmem:[%s18929_s26 + $0x1fe4] sm:$0xf]  ;;  %v15855_v51 = vld [vmem:[%s18929_s26 + $0x2068] sm:$0xf0]  ;;  %v17662_v55 = vld [vmem:[%s18929_s26 + $0xdd4] sm:$0xf]  ;;  %v14770_v57 = vor.u32 %v17968_v48, %v14767_v49  ;;  %v12458_v5 = vor.u32 %v17390_v53, %v12455_v54 }
  0x4d   : > { %6981 = vmatpush.bf16.msra.mxu1 %v12998_v19  ;;  %v13543_v58 = vld [vmem:[%s18929_s26 + $0xe58] sm:$0xf0]  ;;  %v17934_v59 = vld [vmem:[%s18929_s26 + $0x1654] sm:$0xf]  ;;  %v11765_v60 = vld [vmem:[%s22317_s0 + $0x8] sm:$0xf]  ;;  %v15858_v61 = vor.u32 %v18240_v50, %v15855_v51 }
  0x4e   : > { %6995 = vmatpush.bf16.msra.mxu2 %v14086_v20  ;;  %v14631_v62 = vld [vmem:[%s18929_s26 + $0x16d8] sm:$0xf0]  ;;  %v18206_v63 = vld [vmem:[%s18929_s26 + $0x1ed4] sm:$0xf]  ;;  %v17219_v0 = vld [vmem:[%s22317_s0 + $0x14] sm:$0xf0]  ;;  %v13546_v10 = vor.u32 %v17662_v55, %v13543_v58 }
  0x4f   : > { %7009 = vmatpush.bf16.msra.mxu3 %v15174_v24  ;;  %v15719_v1 = vld [vmem:[%s18929_s26 + $0x1f58] sm:$0xf0]  ;;  %v17356_v2 = vld [vmem:[%s18929_s26 + $0x444] sm:$0xf]  ;;  %v12319_v3 = vld [vmem:[%s18929_s26 + $0x4c8] sm:$0xf0]  ;;  %v19040_v4 = vor.u32 %v17219_v0, %v11765_v60  ;;  %v14634_v11 = vor.u32 %v17934_v59, %v14631_v62 }
  0x50   : > { %6968 = vmatpush.bf16.msra.mxu0 %v11774_v31  ;;  %v17628_v6 = vld [vmem:[%s18929_s26 + $0xcc4] sm:$0xf]  ;;  %v13407_v7 = vld [vmem:[%s18929_s26 + $0xd48] sm:$0xf0]  ;;  %v11757_v12 = vld [vmem:[%s22317_s0] sm:$0xf]  ;;  %v15722_v15 = vor.u32 %v18206_v63, %v15719_v1  ;;  %v12322_v24 = vor.u32 %v17356_v2, %v12319_v3 }
  0x51   : > { %6982 = vmatpush.bf16.msra.mxu1 %v12862_v35  ;;  %v17900_v8 = vld [vmem:[%s18929_s26 + $0x1544] sm:$0xf]  ;;  %v14495_v9 = vld [vmem:[%s18929_s26 + $0x15c8] sm:$0xf0]  ;;  %v17218_v13 = vld [vmem:[%s22317_s0 + $0xc] sm:$0xf0]  ;;  %v13410_v25 = vor.u32 %v17628_v6, %v13407_v7 }
  0x52   : > { %6996 = vmatpush.bf16.msra.mxu2 %v13950_v36  ;;  %v17217_v14 = vld [vmem:[%s22317_s0 + $0xc] sm:$0xf]  ;;  %v19056_v16 = vor.u32 %v17218_v13, %v11757_v12  ;;  %v11767_v17 = vld [vmem:[%s22317_s0 + $0x18] sm:$0xf0]  ;;  %v17216_v18 = vld [vmem:[%s22317_s0 + $0x4] sm:$0xf]  ;;  %v14498_v26 = vor.u32 %v17900_v8, %v14495_v9 }
  0x53   : > { %7010 = vmatpush.bf16.msra.mxu3 %v15038_v39  ;;  %v11759_v19 = vld [vmem:[%s22317_s0 + $0x10] sm:$0xf0]  ;;  %v18172_v20 = vld [vmem:[%s18929_s26 + $0x1dc4] sm:$0xf]  ;;  %v15583_v21 = vld [vmem:[%s18929_s26 + $0x1e48] sm:$0xf0]  ;;  %v19069_v22 = vor.u32 %v17217_v14, %v11767_v17 }
  0x54   : > { %7017 = vmatpush.bf16.msrb.mxu0 %v12730_v40  ;;  %v19071_v23 = vor.u32 %v17216_v18, %v11759_v19  ;;  %v17322_v27 = vld [vmem:[%s18929_s26 + $0x334] sm:$0xf]  ;;  %v12183_v28 = vld [vmem:[%s18929_s26 + $0x3b8] sm:$0xf0]  ;;  %v15586_v30 = vor.u32 %v18172_v20, %v15583_v21  ;;  %v17288_v39 = vld [vmem:[%s18929_s26 + $0x224] sm:$0xf] }
  0x55   : > { %7031 = vmatpush.bf16.msrb.mxu1 %v13818_v41  ;;  %6997 = vmatmul.bf16.vlgmr.msra.gmra.mxu2 %v19040_v4  ;;  %v17594_v29 = vld [vmem:[%s18929_s26 + $0xbb4] sm:$0xf]  ;;  %v13271_v31 = vld [vmem:[%s18929_s26 + $0xc38] sm:$0xf0]  ;;  %v12186_v36 = vor.u32 %v17322_v27, %v12183_v28  ;;  %v12047_v40 = vld [vmem:[%s18929_s26 + $0x2a8] sm:$0xf0] }
  0x56   : > { %7045 = vmatpush.bf16.msrb.mxu2 %v14906_v42  ;;  %v17866_v32 = vld [vmem:[%s18929_s26 + $0x1434] sm:$0xf]  ;;  %v14359_v33 = vld [vmem:[%s18929_s26 + $0x14b8] sm:$0xf0]  ;;  %6969 = vmatmul.bf16.vlgmr.msra.gmra.mxu0 %v19056_v16  ;;  %v13274_v37 = vor.u32 %v17594_v29, %v13271_v31  ;;  %v17560_v41 = vld [vmem:[%s18929_s26 + $0xaa4] sm:$0xf]  ;;  %v12050_v48 = vor.u32 %v17288_v39, %v12047_v40 }
  0x57   : > { %7059 = vmatpush.bf16.msrb.mxu3 %v15994_v46  ;;  %v18138_v34 = vld [vmem:[%s18929_s26 + $0x1cb4] sm:$0xf]  ;;  %v15447_v35 = vld [vmem:[%s18929_s26 + $0x1d38] sm:$0xf0]  ;;  %6983 = vmatmul.bf16.vlgmr.msra.gmra.mxu1 %v19071_v23  ;;  %v14362_v38 = vor.u32 %v17866_v32, %v14359_v33  ;;  %v13135_v43 = vld [vmem:[%s18929_s26 + $0xb28] sm:$0xf0] }
  0x58   : > { %7018 = vmatpush.bf16.msrb.mxu0 %v12594_v52  ;;  %7011 = vmatmul.bf16.vlgmr.msra.gmra.mxu3 %v19069_v22  ;;  %v15450_v42 = vor.u32 %v18138_v34, %v15447_v35  ;;  %v17832_v44 = vld [vmem:[%s18929_s26 + $0x1324] sm:$0xf]  ;;  %v14223_v45 = vld [vmem:[%s18929_s26 + $0x13a8] sm:$0xf0]  ;;  %v13138_v49 = vor.u32 %v17560_v41, %v13135_v43  ;;  %v17254_v51 = vld [vmem:[%s18929_s26 + $0x114] sm:$0xf] }
  0x59   : > { %7032 = vmatpush.bf16.msrb.mxu1 %v13682_v56  ;;  %v18104_v46 = vld [vmem:[%s18929_s26 + $0x1ba4] sm:$0xf]  ;;  %v15311_v47 = vld [vmem:[%s18929_s26 + $0x1c28] sm:$0xf0]  ;;  %v14226_v50 = vor.u32 %v17832_v44, %v14223_v45  ;;  %v11911_v52 = vld [vmem:[%s18929_s26 + $0x198] sm:$0xf0] }
  0x5a   : > { %7046 = vmatpush.bf16.msrb.mxu2 %v14770_v57  ;;  %v17526_v53 = vld [vmem:[%s18929_s26 + $0x994] sm:$0xf]  ;;  %v15314_v54 = vor.u32 %v18104_v46, %v15311_v47  ;;  %v12999_v55 = vld [vmem:[%s18929_s26 + $0xa18] sm:$0xf0]  ;;  %v11914_v60 = vor.u32 %v17254_v51, %v11911_v52  ;;  %v11775_v62 = vld [vmem:[%s18929_s26 + $0x88] sm:$0xf0] }
  0x5b   : > { %7060 = vmatpush.bf16.msrb.mxu3 %v15858_v61  ;;  %v17798_v56 = vld [vmem:[%s18929_s26 + $0x1214] sm:$0xf]  ;;  %v14087_v57 = vld [vmem:[%s18929_s26 + $0x1298] sm:$0xf0]  ;;  %v17220_v61 = vld [vmem:[%s18929_s26 + $0x4] sm:$0xf]  ;;  %v13002_v63 = vor.u32 %v17526_v53, %v12999_v55 }
  0x5c   : > { %7019 = vmatpush.bf16.msrb.mxu0 %v12458_v5  ;;  %v18070_v58 = vld [vmem:[%s18929_s26 + $0x1a94] sm:$0xf]  ;;  %v15175_v59 = vld [vmem:[%s18929_s26 + $0x1b18] sm:$0xf0]  ;;  %v14090_v0 = vor.u32 %v17798_v56, %v14087_v57  ;;  %v17492_v1 = vld [vmem:[%s18929_s26 + $0x884] sm:$0xf]  ;;  %v11778_v12 = vor.u32 %v17220_v61, %v11775_v62 }
  0x5d   : > { %7033 = vmatpush.bf16.msrb.mxu1 %v13546_v10  ;;  %v12863_v2 = vld [vmem:[%s18929_s26 + $0x908] sm:$0xf0]  ;;  %v17764_v3 = vld [vmem:[%s18929_s26 + $0x1104] sm:$0xf]  ;;  %v15178_v5 = vor.u32 %v18070_v58, %v15175_v59  ;;  %v12733_v9 = vld [vmem:[%s18929_s26 + $0x778] sm:$0xf] }
  0x5e   : > { %7047 = vmatpush.bf16.msrb.mxu2 %v14634_v11  ;;  %v13951_v6 = vld [vmem:[%s18929_s26 + $0x1188] sm:$0xf0]  ;;  %v18036_v7 = vld [vmem:[%s18929_s26 + $0x1984] sm:$0xf]  ;;  %v17476_v10 = vld [vmem:[%s18929_s26 + $0x7fc] sm:$0xf0]  ;;  %v12866_v17 = vor.u32 %v17492_v1, %v12863_v2 }
  0x5f   : > { %7061 = vmatpush.bf16.msrb.mxu3 %v15722_v15  ;;  %v15039_v8 = vld [vmem:[%s18929_s26 + $0x1a08] sm:$0xf0]  ;;  %v13821_v11 = vld [vmem:[%s18929_s26 + $0xff8] sm:$0xf]  ;;  %v17748_v13 = vld [vmem:[%s18929_s26 + $0x107c] sm:$0xf0]  ;;  %v13954_v18 = vor.u32 %v17764_v3, %v13951_v6 }
  0x60   : > { %7020 = vmatpush.bf16.msrb.mxu0 %v12322_v24  ;;  %v14909_v14 = vld [vmem:[%s18929_s26 + $0x1878] sm:$0xf]  ;;  %v18020_v15 = vld [vmem:[%s18929_s26 + $0x18fc] sm:$0xf0]  ;;  %v15042_v21 = vor.u32 %v18036_v7, %v15039_v8  ;;  %v12734_v24 = vor.u32 %v17476_v10, %v12733_v9  ;;  %v12597_v27 = vld [vmem:[%s18929_s26 + $0x668] sm:$0xf] }
  0x61   : > { %7034 = vmatpush.bf16.msrb.mxu1 %v13410_v25  ;;  %v15997_v19 = vld [vmem:[%s18929_s26 + $0x20f8] sm:$0xf]  ;;  %v18292_v20 = vld [vmem:[%s18929_s26 + $0x217c] sm:$0xf0]  ;;  %v13822_v25 = vor.u32 %v17748_v13, %v13821_v11  ;;  %v17442_v28 = vld [vmem:[%s18929_s26 + $0x6ec] sm:$0xf0] }
  0x62   : > { %7048 = vmatpush.bf16.msrb.mxu2 %v14498_v26  ;;  %v14910_v26 = vor.u32 %v18020_v15, %v14909_v14  ;;  %v13685_v29 = vld [vmem:[%s18929_s26 + $0xee8] sm:$0xf]  ;;  %v17714_v31 = vld [vmem:[%s18929_s26 + $0xf6c] sm:$0xf0]  ;;  %v12461_v39 = vld [vmem:[%s18929_s26 + $0x558] sm:$0xf] }
  0x63   : > { %7062 = vmatpush.bf16.msrb.mxu3 %v15586_v30  ;;  %v15998_v30 = vor.u32 %v18292_v20, %v15997_v19  ;;  %v14773_v32 = vld [vmem:[%s18929_s26 + $0x1768] sm:$0xf]  ;;  %v17986_v33 = vld [vmem:[%s18929_s26 + $0x17ec] sm:$0xf0]  ;;  %v17408_v40 = vld [vmem:[%s18929_s26 + $0x5dc] sm:$0xf0] }
  0x64   : > { %7021 = vmatpush.bf16.msrb.mxu0 %v12186_v36  ;;  %v15861_v34 = vld [vmem:[%s18929_s26 + $0x1fe8] sm:$0xf]  ;;  %v18258_v35 = vld [vmem:[%s18929_s26 + $0x206c] sm:$0xf0]  ;;  %v12598_v36 = vor.u32 %v17442_v28, %v12597_v27  ;;  %v13549_v41 = vld [vmem:[%s18929_s26 + $0xdd8] sm:$0xf] }
  0x65   : > { %7035 = vmatpush.bf16.msrb.mxu1 %v13274_v37  ;;  %v13686_v37 = vor.u32 %v17714_v31, %v13685_v29  ;;  %v17680_v43 = vld [vmem:[%s18929_s26 + $0xe5c] sm:$0xf0]  ;;  %v14637_v44 = vld [vmem:[%s18929_s26 + $0x1658] sm:$0xf]  ;;  %v12325_v51 = vld [vmem:[%s18929_s26 + $0x448] sm:$0xf] }
  0x66   : > { %7049 = vmatpush.bf16.msrb.mxu2 %v14362_v38  ;;  %v14774_v38 = vor.u32 %v17986_v33, %v14773_v32  ;;  %v17952_v45 = vld [vmem:[%s18929_s26 + $0x16dc] sm:$0xf0]  ;;  %v15725_v46 = vld [vmem:[%s18929_s26 + $0x1ed8] sm:$0xf]  ;;  %v17374_v52 = vld [vmem:[%s18929_s26 + $0x4cc] sm:$0xf0] }
  0x67   : > { %7063 = vmatpush.bf16.msrb.mxu3 %v15450_v42  ;;  %v15862_v42 = vor.u32 %v18258_v35, %v15861_v34  ;;  %v18224_v47 = vld [vmem:[%s18929_s26 + $0x1f5c] sm:$0xf0]  ;;  %v13413_v53 = vld [vmem:[%s18929_s26 + $0xcc8] sm:$0xf]  ;;  %v17646_v55 = vld [vmem:[%s18929_s26 + $0xd4c] sm:$0xf0] }
  0x68   : > { %7022 = vmatpush.bf16.msrb.mxu0 %v12050_v48  ;;  %v12462_v48 = vor.u32 %v17408_v40, %v12461_v39  ;;  %v14501_v56 = vld [vmem:[%s18929_s26 + $0x1548] sm:$0xf]  ;;  %v17918_v57 = vld [vmem:[%s18929_s26 + $0x15cc] sm:$0xf0]  ;;  %v13414_v61 = vor.u32 %v17646_v55, %v13413_v53  ;;  %v13277_v1 = vld [vmem:[%s18929_s26 + $0xbb8] sm:$0xf] }
  0x69   : > { %7036 = vmatpush.bf16.msrb.mxu1 %v13138_v49  ;;  %v13550_v49 = vor.u32 %v17680_v43, %v13549_v41  ;;  %v15589_v58 = vld [vmem:[%s18929_s26 + $0x1dc8] sm:$0xf]  ;;  %v18190_v59 = vld [vmem:[%s18929_s26 + $0x1e4c] sm:$0xf0]  ;;  %v14502_v62 = vor.u32 %v17918_v57, %v14501_v56  ;;  %v17612_v3 = vld [vmem:[%s18929_s26 + $0xc3c] sm:$0xf0] }
  0x6a   : > { %7050 = vmatpush.bf16.msrb.mxu2 %v14226_v50  ;;  %v14638_v50 = vor.u32 %v17952_v45, %v14637_v44  ;;  %v15590_v2 = vor.u32 %v18190_v59, %v15589_v58  ;;  %v17884_v6 = vld [vmem:[%s18929_s26 + $0x14bc] sm:$0xf0]  ;;  %v15453_v7 = vld [vmem:[%s18929_s26 + $0x1cb8] sm:$0xf]  ;;  %v13278_v10 = vor.u32 %v17612_v3, %v13277_v1  ;;  %v17306_v13 = vld [vmem:[%s18929_s26 + $0x2ac] sm:$0xf0] }
  0x6b   : > { %7064 = vmatpush.bf16.msrb.mxu3 %v15314_v54  ;;  %v15726_v54 = vor.u32 %v18224_v47, %v15725_v46  ;;  %v18156_v8 = vld [vmem:[%s18929_s26 + $0x1d3c] sm:$0xf0]  ;;  %v13141_v14 = vld [vmem:[%s18929_s26 + $0xaa8] sm:$0xf]  ;;  %v17850_v19 = vld [vmem:[%s18929_s26 + $0x13ac] sm:$0xf0] }
  0x6c   : > { %7023 = vmatpush.bf16.msrb.mxu0 %v11914_v60  ;;  %v12326_v60 = vor.u32 %v17374_v52, %v12325_v51  ;;  %v15454_v15 = vor.u32 %v18156_v8, %v15453_v7  ;;  %v15317_v20 = vld [vmem:[%s18929_s26 + $0x1ba8] sm:$0xf]  ;;  %v11917_v27 = vld [vmem:[%s18929_s26 + $0x118] sm:$0xf]  ;;  %v17272_v28 = vld [vmem:[%s18929_s26 + $0x19c] sm:$0xf0] }
  0x6d   : > { %7037 = vmatpush.bf16.msrb.mxu1 %v13002_v63  ;;  %v12189_v63 = vld [vmem:[%s18929_s26 + $0x338] sm:$0xf]  ;;  %v17544_v31 = vld [vmem:[%s18929_s26 + $0xa1c] sm:$0xf0]  ;;  %v12869_v41 = vld [vmem:[%s18929_s26 + $0x888] sm:$0xf] }
  0x6e   : > { %7051 = vmatpush.bf16.msrb.mxu2 %v14090_v0  ;;  %v17340_v0 = vld [vmem:[%s18929_s26 + $0x3bc] sm:$0xf0]  ;;  %v13005_v29 = vld [vmem:[%s18929_s26 + $0x998] sm:$0xf]  ;;  %v13957_v43 = vld [vmem:[%s18929_s26 + $0x1108] sm:$0xf] }
  0x6f   : > { %7065 = vmatpush.bf16.msrb.mxu3 %v15178_v5  ;;  %v14365_v5 = vld [vmem:[%s18929_s26 + $0x1438] sm:$0xf]  ;;  %v12190_v9 = vor.u32 %v17340_v0, %v12189_v63  ;;  %v17816_v33 = vld [vmem:[%s18929_s26 + $0x129c] sm:$0xf0]  ;;  %v13006_v39 = vor.u32 %v17544_v31, %v13005_v29  ;;  %v17782_v45 = vld [vmem:[%s18929_s26 + $0x118c] sm:$0xf0] }
  0x70   : > { %7024 = vmatpush.bf16.msrb.mxu0 %v11778_v12  ;;  %v14366_v11 = vor.u32 %v17884_v6, %v14365_v5  ;;  %v12053_v12 = vld [vmem:[%s18929_s26 + $0x228] sm:$0xf]  ;;  %v14093_v32 = vld [vmem:[%s18929_s26 + $0x1218] sm:$0xf]  ;;  %v18088_v35 = vld [vmem:[%s18929_s26 + $0x1b1c] sm:$0xf0]  ;;  %v13958_v56 = vor.u32 %v17782_v45, %v13957_v43 }
  0x71   : > { %7038 = vmatpush.bf16.msrb.mxu1 %v12866_v17  ;;  %v17578_v17 = vld [vmem:[%s18929_s26 + $0xb2c] sm:$0xf0]  ;;  %v15181_v34 = vld [vmem:[%s18929_s26 + $0x1a98] sm:$0xf]  ;;  %v14094_v40 = vor.u32 %v17816_v33, %v14093_v32  ;;  %v15045_v46 = vld [vmem:[%s18929_s26 + $0x1988] sm:$0xf] }
  0x72   : > { %7052 = vmatpush.bf16.msrb.mxu2 %v13954_v18  ;;  %v14229_v18 = vld [vmem:[%s18929_s26 + $0x1328] sm:$0xf]  ;;  %v15182_v44 = vor.u32 %v18088_v35, %v15181_v34  ;;  %v18054_v47 = vld [vmem:[%s18929_s26 + $0x1a0c] sm:$0xf0]  ;;  %v13823_v52 = vld [vmem:[%s18929_s26 + $0x1080] sm:$0xf0] }
  0x73   : > { %7066 = vmatpush.bf16.msrb.mxu3 %v15042_v21  ;;  %7025 = vmatmul.bf16.vlgmr.msrb.gmra.mxu0 %v19056_v16  ;;  %v18122_v21 = vld [vmem:[%s18929_s26 + $0x1c2c] sm:$0xf0]  ;;  %v18003_v53 = vld [vmem:[%s18929_s26 + $0x187c] sm:$0xf]  ;;  %v15999_v58 = vld [vmem:[%s18929_s26 + $0x2180] sm:$0xf0]  ;;  %v15046_v59 = vor.u32 %v18054_v47, %v15045_v46 }
  0x74   : > { %7073 = vmatpush.bf16.msra.mxu0 %v12734_v24  ;;  %7039 = vmatmul.bf16.vlgmr.msrb.gmra.mxu1 %v19071_v23  ;;  %v12054_v24 = vor.u32 %v17306_v13, %v12053_v12  ;;  %v18275_v57 = vld [vmem:[%s18929_s26 + $0x20fc] sm:$0xf]  ;;  %v17425_v63 = vld [vmem:[%s18929_s26 + $0x66c] sm:$0xf]  ;;  %v12599_v0 = vld [vmem:[%s18929_s26 + $0x6f0] sm:$0xf0] }
  0x75   : > { %7087 = vmatpush.bf16.msra.mxu1 %v13822_v25  ;;  %7053 = vmatmul.bf16.vlgmr.msrb.gmra.mxu2 %v19040_v4  ;;  %v13142_v25 = vor.u32 %v17578_v17, %v13141_v14  ;;  %v17697_v1 = vld [vmem:[%s18929_s26 + $0xeec] sm:$0xf]  ;;  %v13687_v3 = vld [vmem:[%s18929_s26 + $0xf70] sm:$0xf0]  ;;  %v17391_v12 = vld [vmem:[%s18929_s26 + $0x55c] sm:$0xf] }
  0x76   : > { %7101 = vmatpush.bf16.msra.mxu2 %v14910_v26  ;;  %7067 = vmatmul.bf16.vlgmr.msrb.gmra.mxu3 %v19069_v22  ;;  %v14230_v26 = vor.u32 %v17850_v19, %v14229_v18  ;;  %v17969_v5 = vld [vmem:[%s18929_s26 + $0x176c] sm:$0xf]  ;;  %v14775_v6 = vld [vmem:[%s18929_s26 + $0x17f0] sm:$0xf0]  ;;  %v12463_v13 = vld [vmem:[%s18929_s26 + $0x5e0] sm:$0xf0] }
  0x77   : > { %7115 = vmatpush.bf16.msra.mxu3 %v15998_v30  ;;  %v15318_v30 = vor.u32 %v18122_v21, %v15317_v20  ;;  %v18241_v7 = vld [vmem:[%s18929_s26 + $0x1fec] sm:$0xf]  ;;  %v15863_v8 = vld [vmem:[%s18929_s26 + $0x2070] sm:$0xf0]  ;;  %v17663_v14 = vld [vmem:[%s18929_s26 + $0xddc] sm:$0xf] }
  0x78   : > { %7074 = vmatpush.bf16.msra.mxu0 %v12598_v36  ;;  %v11918_v36 = vor.u32 %v17272_v28, %v11917_v27  ;;  %v13551_v17 = vld [vmem:[%s18929_s26 + $0xe60] sm:$0xf0]  ;;  %v17935_v18 = vld [vmem:[%s18929_s26 + $0x165c] sm:$0xf]  ;;  %v17357_v27 = vld [vmem:[%s18929_s26 + $0x44c] sm:$0xf] }
  0x79   : > { %7088 = vmatpush.bf16.msra.mxu1 %v13686_v37  ;;  %v11781_v37 = vld [vmem:[%s18929_s26 + $0x8] sm:$0xf]  ;;  %v14639_v19 = vld [vmem:[%s18929_s26 + $0x16e0] sm:$0xf0]  ;;  %v18207_v20 = vld [vmem:[%s18929_s26 + $0x1edc] sm:$0xf] }
  0x7a   : > { %7102 = vmatpush.bf16.msra.mxu2 %v14774_v38  ;;  %v17238_v38 = vld [vmem:[%s18929_s26 + $0x8c] sm:$0xf0]  ;;  %v15727_v21 = vld [vmem:[%s18929_s26 + $0x1f60] sm:$0xf0]  ;;  %v12327_v28 = vld [vmem:[%s18929_s26 + $0x4d0] sm:$0xf0] }
  0x7b   : > { %7116 = vmatpush.bf16.msra.mxu3 %v15862_v42  ;;  %v17510_v42 = vld [vmem:[%s18929_s26 + $0x90c] sm:$0xf0]  ;;  %v11782_v51 = vor.u32 %v17238_v38, %v11781_v37  ;;  %v17629_v29 = vld [vmem:[%s18929_s26 + $0xccc] sm:$0xf]  ;;  %v13415_v31 = vld [vmem:[%s18929_s26 + $0xd50] sm:$0xf0] }
  0x7c   : > { %7075 = vmatpush.bf16.msra.mxu0 %v12462_v48  ;;  %v17459_v48 = vld [vmem:[%s18929_s26 + $0x77c] sm:$0xf]  ;;  %v12870_v55 = vor.u32 %v17510_v42, %v12869_v41  ;;  %v17901_v32 = vld [vmem:[%s18929_s26 + $0x154c] sm:$0xf]  ;;  %v14503_v33 = vld [vmem:[%s18929_s26 + $0x15d0] sm:$0xf0]  ;;  %v13418_v37 = vor.u32 %v17629_v29, %v13415_v31 }
  0x7d   : > { %7089 = vmatpush.bf16.msra.mxu1 %v13550_v49  ;;  %v12735_v49 = vld [vmem:[%s18929_s26 + $0x800] sm:$0xf0]  ;;  %v18173_v34 = vld [vmem:[%s18929_s26 + $0x1dcc] sm:$0xf]  ;;  %v15591_v35 = vld [vmem:[%s18929_s26 + $0x1e50] sm:$0xf0]  ;;  %v14506_v38 = vor.u32 %v17901_v32, %v14503_v33 }
  0x7e   : > { %7103 = vmatpush.bf16.msra.mxu2 %v14638_v50  ;;  %v17731_v50 = vld [vmem:[%s18929_s26 + $0xffc] sm:$0xf]  ;;  %v15594_v42 = vor.u32 %v18173_v34, %v15591_v35  ;;  %v13279_v43 = vld [vmem:[%s18929_s26 + $0xc40] sm:$0xf0]  ;;  %v14917_v29 = vld [vmem:[%s18929_s26 + $0x1880] sm:$0xf] }
  0x7f   : > { %7117 = vmatpush.bf16.msra.mxu3 %v15726_v54  ;;  %v14911_v54 = vld [vmem:[%s18929_s26 + $0x1900] sm:$0xf0]  ;;  %v17595_v41 = vld [vmem:[%s18929_s26 + $0xbbc] sm:$0xf]  ;;  %v16005_v33 = vld [vmem:[%s18929_s26 + $0x2100] sm:$0xf] }
  0x80   : > { %7076 = vmatpush.bf16.msra.mxu0 %v12326_v60  ;;  %v12738_v60 = vor.u32 %v17459_v48, %v12735_v49  ;;  %v14367_v45 = vld [vmem:[%s18929_s26 + $0x14c0] sm:$0xf0]  ;;  %v18139_v46 = vld [vmem:[%s18929_s26 + $0x1cbc] sm:$0xf]  ;;  %v13282_v49 = vor.u32 %v17595_v41, %v13279_v43  ;;  %v18293_v34 = vld [vmem:[%s18929_s26 + $0x2184] sm:$0xf0] }
  0x81   : > { %7090 = vmatpush.bf16.msra.mxu1 %v13414_v61  ;;  %v13826_v61 = vor.u32 %v17731_v50, %v13823_v52  ;;  %v15455_v47 = vld [vmem:[%s18929_s26 + $0x1d40] sm:$0xf0]  ;;  %v12055_v52 = vld [vmem:[%s18929_s26 + $0x2b0] sm:$0xf0]  ;;  %v13693_v41 = vld [vmem:[%s18929_s26 + $0xef0] sm:$0xf] }
  0x82   : > { %7104 = vmatpush.bf16.msra.mxu2 %v14502_v62  ;;  %v14914_v62 = vor.u32 %v18003_v53, %v14911_v54  ;;  %v17561_v53 = vld [vmem:[%s18929_s26 + $0xaac] sm:$0xf]  ;;  %v15458_v54 = vor.u32 %v18139_v46, %v15455_v47  ;;  %v17715_v43 = vld [vmem:[%s18929_s26 + $0xf74] sm:$0xf0]  ;;  %v15869_v46 = vld [vmem:[%s18929_s26 + $0x1ff0] sm:$0xf] }
  0x83   : > { %7118 = vmatpush.bf16.msra.mxu3 %v15590_v2  ;;  %v16002_v2 = vor.u32 %v18275_v57, %v15999_v58  ;;  %v14231_v57 = vld [vmem:[%s18929_s26 + $0x13b0] sm:$0xf0]  ;;  %v18105_v58 = vld [vmem:[%s18929_s26 + $0x1bac] sm:$0xf]  ;;  %v18259_v47 = vld [vmem:[%s18929_s26 + $0x2074] sm:$0xf0] }
  0x84   : > { %7077 = vmatpush.bf16.msra.mxu0 %v12190_v9  ;;  %v12602_v9 = vor.u32 %v17425_v63, %v12599_v0  ;;  %v17255_v63 = vld [vmem:[%s18929_s26 + $0x11c] sm:$0xf]  ;;  %v11919_v0 = vld [vmem:[%s18929_s26 + $0x1a0] sm:$0xf0]  ;;  %s21636_s2 = scalar_lea.vmem [#allocation6], %s18585_s17  ;;  %p320_p13 = scmp.lt.s32.totalorder %s18797_s18, 1 }
  0x85   : > { %7091 = vmatpush.bf16.msra.mxu1 %v13278_v10  ;;  %v13690_v10 = vor.u32 %v17697_v1, %v13687_v3  ;;  %v17527_v1 = vld [vmem:[%s18929_s26 + $0x99c] sm:$0xf]  ;;  %v13007_v3 = vld [vmem:[%s18929_s26 + $0xa20] sm:$0xf0] }
  0x86   : > { %7105 = vmatpush.bf16.msra.mxu2 %v14366_v11  ;;  %v14778_v11 = vor.u32 %v17969_v5, %v14775_v6  ;;  %v17799_v5 = vld [vmem:[%s18929_s26 + $0x121c] sm:$0xf]  ;;  %v14095_v6 = vld [vmem:[%s18929_s26 + $0x12a0] sm:$0xf0]  ;;  %s22632_s18 = smov (!%p320_p13, %s18797_s18), 1 }
  0x87   : > { %7119 = vmatpush.bf16.msra.mxu3 %v15454_v15  ;;  %v15866_v15 = vor.u32 %v18241_v7, %v15863_v8  ;;  %v18071_v7 = vld [vmem:[%s18929_s26 + $0x1a9c] sm:$0xf]  ;;  %v15183_v8 = vld [vmem:[%s18929_s26 + $0x1b20] sm:$0xf0] }
  0x88   : > { %7078 = vmatpush.bf16.msra.mxu0 %v12054_v24  ;;  %v12466_v24 = vor.u32 %v17391_v12, %v12463_v13  ;;  %v13010_v12 = vor.u32 %v17527_v1, %v13007_v3  ;;  %v14098_v13 = vor.u32 %v17799_v5, %v14095_v6  ;;  %v13421_v1 = vld [vmem:[%s18929_s26 + $0xcd0] sm:$0xf]  ;;  %v17647_v3 = vld [vmem:[%s18929_s26 + $0xd54] sm:$0xf0] }
  0x89   : > { %7092 = vmatpush.bf16.msra.mxu1 %v13142_v25  ;;  %v13554_v25 = vor.u32 %v17663_v14, %v13551_v17  ;;  %v17493_v14 = vld [vmem:[%s18929_s26 + $0x88c] sm:$0xf]  ;;  %v14509_v5 = vld [vmem:[%s18929_s26 + $0x1550] sm:$0xf]  ;;  %v17919_v6 = vld [vmem:[%s18929_s26 + $0x15d4] sm:$0xf0] }
  0x8a   : > { %7106 = vmatpush.bf16.msra.mxu2 %v14230_v26  ;;  %v14642_v26 = vor.u32 %v17935_v18, %v14639_v19  ;;  %v17765_v17 = vld [vmem:[%s18929_s26 + $0x110c] sm:$0xf]  ;;  %v15186_v18 = vor.u32 %v18071_v7, %v15183_v8  ;;  %v13959_v19 = vld [vmem:[%s18929_s26 + $0x1190] sm:$0xf0]  ;;  %v15597_v7 = vld [vmem:[%s18929_s26 + $0x1dd0] sm:$0xf] }
  0x8b   : > { %7120 = vmatpush.bf16.msra.mxu3 %v15318_v30  ;;  %v15730_v30 = vor.u32 %v18207_v20, %v15727_v21  ;;  %v18037_v20 = vld [vmem:[%s18929_s26 + $0x198c] sm:$0xf]  ;;  %v15047_v21 = vld [vmem:[%s18929_s26 + $0x1a10] sm:$0xf0]  ;;  %v13962_v32 = vor.u32 %v17765_v17, %v13959_v19  ;;  %v18191_v8 = vld [vmem:[%s18929_s26 + $0x1e54] sm:$0xf0] }
  0x8c   : > { %7079 = vmatpush.bf16.msra.mxu0 %v11918_v36  ;;  %v12330_v36 = vor.u32 %v17357_v27, %v12327_v28  ;;  %v17749_v28 = vld [vmem:[%s18929_s26 + $0x1084] sm:$0xf0]  ;;  %v15050_v35 = vor.u32 %v18037_v20, %v15047_v21  ;;  %v15461_v20 = vld [vmem:[%s18929_s26 + $0x1cc0] sm:$0xf] }
  0x8d   : > { %7093 = vmatpush.bf16.msra.mxu1 %v13006_v39  ;;  %v17323_v39 = vld [vmem:[%s18929_s26 + $0x33c] sm:$0xf]  ;;  %v17613_v17 = vld [vmem:[%s18929_s26 + $0xc44] sm:$0xf0] }
  0x8e   : > { %7107 = vmatpush.bf16.msra.mxu2 %v14094_v40  ;;  %v12191_v40 = vld [vmem:[%s18929_s26 + $0x3c0] sm:$0xf0]  ;;  %v17885_v19 = vld [vmem:[%s18929_s26 + $0x14c4] sm:$0xf0] }
  0x8f   : > { %7121 = vmatpush.bf16.msra.mxu3 %v15182_v44  ;;  %v17867_v44 = vld [vmem:[%s18929_s26 + $0x143c] sm:$0xf]  ;;  %v12194_v48 = vor.u32 %v17323_v39, %v12191_v40  ;;  %v12605_v39 = vld [vmem:[%s18929_s26 + $0x670] sm:$0xf]  ;;  %v17443_v40 = vld [vmem:[%s18929_s26 + $0x6f4] sm:$0xf0] }
  0x90   : > { %7080 = vmatpush.bf16.msra.mxu0 %v11782_v51  ;;  %v14370_v50 = vor.u32 %v17867_v44, %v14367_v45  ;;  %v17289_v51 = vld [vmem:[%s18929_s26 + $0x22c] sm:$0xf]  ;;  %v14781_v44 = vld [vmem:[%s18929_s26 + $0x1770] sm:$0xf]  ;;  %v17987_v45 = vld [vmem:[%s18929_s26 + $0x17f4] sm:$0xf0] }
  0x91   : > { %7094 = vmatpush.bf16.msra.mxu1 %v12870_v55  ;;  %v13143_v55 = vld [vmem:[%s18929_s26 + $0xb30] sm:$0xf0]  ;;  %v18157_v21 = vld [vmem:[%s18929_s26 + $0x1d44] sm:$0xf0] }
  0x92   : > { %7108 = vmatpush.bf16.msra.mxu2 %v13958_v56  ;;  %v17833_v56 = vld [vmem:[%s18929_s26 + $0x132c] sm:$0xf] }
  0x93   : > { %7122 = vmatpush.bf16.msra.mxu3 %v15046_v59  ;;  %7081 = vmatmul.bf16.vlgmr.msra.gmra.mxu0 %v19056_v16  ;;  %v15319_v59 = vld [vmem:[%s18929_s26 + $0x1c30] sm:$0xf0] }
  0x94   : > { %7129 = vmatpush.bf16.msrb.mxu0 %v12738_v60  ;;  %7095 = vmatmul.bf16.vlgmr.msra.gmra.mxu1 %v19071_v23  ;;  %v12058_v60 = vor.u32 %v17289_v51, %v12055_v52  ;;  %v12469_v51 = vld [vmem:[%s18929_s26 + $0x560] sm:$0xf]  ;;  %v17409_v52 = vld [vmem:[%s18929_s26 + $0x5e4] sm:$0xf0] }
  0x95   : > { %7143 = vmatpush.bf16.msrb.mxu1 %v13826_v61  ;;  %7109 = vmatmul.bf16.vlgmr.msra.gmra.mxu2 %v19040_v4  ;;  %v13146_v61 = vor.u32 %v17561_v53, %v13143_v55  ;;  %v13557_v53 = vld [vmem:[%s18929_s26 + $0xde0] sm:$0xf]  ;;  %v17681_v55 = vld [vmem:[%s18929_s26 + $0xe64] sm:$0xf0] }
  0x96   : > { %7157 = vmatpush.bf16.msrb.mxu2 %v14914_v62  ;;  %7123 = vmatmul.bf16.vlgmr.msra.gmra.mxu3 %v19069_v22  ;;  %v14234_v62 = vor.u32 %v17833_v56, %v14231_v57  ;;  %v14645_v56 = vld [vmem:[%s18929_s26 + $0x1660] sm:$0xf]  ;;  %v17953_v57 = vld [vmem:[%s18929_s26 + $0x16e4] sm:$0xf0] }
  0x97   : > { %7171 = vmatpush.bf16.msrb.mxu3 %v16002_v2  ;;  %v15322_v2 = vor.u32 %v18105_v58, %v15319_v59  ;;  %v15733_v58 = vld [vmem:[%s18929_s26 + $0x1ee0] sm:$0xf]  ;;  %v18225_v59 = vld [vmem:[%s18929_s26 + $0x1f64] sm:$0xf0] }
  0x98   : > { %7130 = vmatpush.bf16.msrb.mxu0 %v12602_v9  ;;  %v11922_v9 = vor.u32 %v17255_v63, %v11919_v0  ;;  %v12333_v63 = vld [vmem:[%s18929_s26 + $0x450] sm:$0xf]  ;;  %v17375_v0 = vld [vmem:[%s18929_s26 + $0x4d4] sm:$0xf0] }
  0x99   : > { %7144 = vmatpush.bf16.msrb.mxu1 %v13690_v10  ;;  %v17221_v10 = vld [vmem:[%s18929_s26 + $0xc] sm:$0xf] }
  0x9a   : > { %7158 = vmatpush.bf16.msrb.mxu2 %v14778_v11  ;;  %v11783_v11 = vld [vmem:[%s18929_s26 + $0x90] sm:$0xf0] }
  0x9b   : > { %7172 = vmatpush.bf16.msrb.mxu3 %v15866_v15  ;;  %v12871_v15 = vld [vmem:[%s18929_s26 + $0x910] sm:$0xf0]  ;;  %v11786_v27 = vor.u32 %v17221_v10, %v11783_v11  ;;  %v13422_v10 = vor.u32 %v17647_v3, %v13421_v1  ;;  %v14510_v11 = vor.u32 %v17919_v6, %v14509_v5  ;;  %v18004_v1 = vld [vmem:[%s18929_s26 + $0x1884] sm:$0xf] }
  0x9c   : > { %7131 = vmatpush.bf16.msrb.mxu0 %v12466_v24  ;;  %v12741_v24 = vld [vmem:[%s18929_s26 + $0x780] sm:$0xf]  ;;  %v12874_v31 = vor.u32 %v17493_v14, %v12871_v15  ;;  %v15598_v15 = vor.u32 %v18191_v8, %v15597_v7  ;;  %v18276_v6 = vld [vmem:[%s18929_s26 + $0x2104] sm:$0xf]  ;;  %v16007_v7 = vld [vmem:[%s18929_s26 + $0x2188] sm:$0xf0] }
  0x9d   : > { %7145 = vmatpush.bf16.msrb.mxu1 %v13554_v25  ;;  %v17477_v25 = vld [vmem:[%s18929_s26 + $0x804] sm:$0xf0]  ;;  %v13285_v14 = vld [vmem:[%s18929_s26 + $0xbc0] sm:$0xf] }
  0x9e   : > { %7159 = vmatpush.bf16.msrb.mxu2 %v14642_v26  ;;  %v13829_v26 = vld [vmem:[%s18929_s26 + $0x1000] sm:$0xf] }
  0x9f   : > { %7173 = vmatpush.bf16.msrb.mxu3 %v15730_v30  ;;  %v18021_v30 = vld [vmem:[%s18929_s26 + $0x1904] sm:$0xf0] }
  0xa0   : > { %7132 = vmatpush.bf16.msrb.mxu0 %v12330_v36  ;;  %v12742_v36 = vor.u32 %v17477_v25, %v12741_v24  ;;  %v13286_v25 = vor.u32 %v17613_v17, %v13285_v14  ;;  %v17698_v14 = vld [vmem:[%s18929_s26 + $0xef4] sm:$0xf]  ;;  %v13695_v17 = vld [vmem:[%s18929_s26 + $0xf78] sm:$0xf0] }
  0xa1   : > { %7146 = vmatpush.bf16.msrb.mxu1 %v13418_v37  ;;  %v13830_v37 = vor.u32 %v17749_v28, %v13829_v26  ;;  %v17307_v28 = vld [vmem:[%s18929_s26 + $0x2b4] sm:$0xf0] }
  0xa2   : > { %7160 = vmatpush.bf16.msrb.mxu2 %v14506_v38  ;;  %v14918_v38 = vor.u32 %v18021_v30, %v14917_v29  ;;  %v13149_v29 = vld [vmem:[%s18929_s26 + $0xab0] sm:$0xf]  ;;  %v15462_v30 = vor.u32 %v18157_v21, %v15461_v20  ;;  %v18242_v20 = vld [vmem:[%s18929_s26 + $0x1ff4] sm:$0xf]  ;;  %v15871_v21 = vld [vmem:[%s18929_s26 + $0x2078] sm:$0xf0] }
  0xa3   : > { %7174 = vmatpush.bf16.msrb.mxu3 %v15594_v42  ;;  %v16006_v42 = vor.u32 %v18293_v34, %v16005_v33  ;;  %v17851_v33 = vld [vmem:[%s18929_s26 + $0x13b4] sm:$0xf0]  ;;  %v15325_v34 = vld [vmem:[%s18929_s26 + $0x1bb0] sm:$0xf] }
  0xa4   : > { %7133 = vmatpush.bf16.msrb.mxu0 %v12194_v48  ;;  %v12606_v48 = vor.u32 %v17443_v40, %v12605_v39  ;;  %v11925_v39 = vld [vmem:[%s18929_s26 + $0x120] sm:$0xf]  ;;  %v17273_v40 = vld [vmem:[%s18929_s26 + $0x1a4] sm:$0xf0] }
  0xa5   : > { %7147 = vmatpush.bf16.msrb.mxu1 %v13282_v49  ;;  %v13694_v49 = vor.u32 %v17715_v43, %v13693_v41  ;;  %v13013_v41 = vld [vmem:[%s18929_s26 + $0x9a0] sm:$0xf]  ;;  %v17545_v43 = vld [vmem:[%s18929_s26 + $0xa24] sm:$0xf0] }
  0xa6   : > { %7161 = vmatpush.bf16.msrb.mxu2 %v14370_v50  ;;  %v14782_v50 = vor.u32 %v17987_v45, %v14781_v44  ;;  %v14101_v44 = vld [vmem:[%s18929_s26 + $0x1220] sm:$0xf]  ;;  %v17817_v45 = vld [vmem:[%s18929_s26 + $0x12a4] sm:$0xf0] }
  0xa7   : > { %7175 = vmatpush.bf16.msrb.mxu3 %v15458_v54  ;;  %v15870_v54 = vor.u32 %v18259_v47, %v15869_v46  ;;  %v15189_v46 = vld [vmem:[%s18929_s26 + $0x1aa0] sm:$0xf]  ;;  %v18089_v47 = vld [vmem:[%s18929_s26 + $0x1b24] sm:$0xf0] }
  0xa8   : > { %7134 = vmatpush.bf16.msrb.mxu0 %v12058_v60  ;;  %v12470_v60 = vor.u32 %v17409_v52, %v12469_v51  ;;  %v13014_v51 = vor.u32 %v17545_v43, %v13013_v41  ;;  %v14102_v52 = vor.u32 %v17817_v45, %v14101_v44  ;;  %v17630_v41 = vld [vmem:[%s18929_s26 + $0xcd4] sm:$0xf]  ;;  %v13423_v43 = vld [vmem:[%s18929_s26 + $0xd58] sm:$0xf0] }
  0xa9   : > { %7148 = vmatpush.bf16.msrb.mxu1 %v13146_v61  ;;  %v13558_v61 = vor.u32 %v17681_v55, %v13557_v53  ;;  %v12877_v53 = vld [vmem:[%s18929_s26 + $0x890] sm:$0xf]  ;;  %v17902_v44 = vld [vmem:[%s18929_s26 + $0x1554] sm:$0xf]  ;;  %v14511_v45 = vld [vmem:[%s18929_s26 + $0x15d8] sm:$0xf0] }
  0xaa   : > { %7162 = vmatpush.bf16.msrb.mxu2 %v14234_v62  ;;  %v14646_v62 = vor.u32 %v17953_v57, %v14645_v56  ;;  %v13965_v55 = vld [vmem:[%s18929_s26 + $0x1110] sm:$0xf]  ;;  %v15190_v56 = vor.u32 %v18089_v47, %v15189_v46  ;;  %v17783_v57 = vld [vmem:[%s18929_s26 + $0x1194] sm:$0xf0]  ;;  %v18174_v46 = vld [vmem:[%s18929_s26 + $0x1dd4] sm:$0xf] }
  0xab   : > { %7176 = vmatpush.bf16.msrb.mxu3 %v15322_v2  ;;  %v15734_v2 = vor.u32 %v18225_v59, %v15733_v58  ;;  %v15053_v58 = vld [vmem:[%s18929_s26 + $0x1990] sm:$0xf]  ;;  %v18055_v59 = vld [vmem:[%s18929_s26 + $0x1a14] sm:$0xf0]  ;;  %v13966_v5 = vor.u32 %v17783_v57, %v13965_v55  ;;  %v15599_v47 = vld [vmem:[%s18929_s26 + $0x1e58] sm:$0xf0] }
  0xac   : > { %7135 = vmatpush.bf16.msrb.mxu0 %v11922_v9  ;;  %v12334_v9 = vor.u32 %v17375_v0, %v12333_v63  ;;  %v13831_v0 = vld [vmem:[%s18929_s26 + $0x1088] sm:$0xf0]  ;;  %v15054_v8 = vor.u32 %v18055_v59, %v15053_v58  ;;  %v15602_v55 = vor.u32 %v18174_v46, %v15599_v47  ;;  %v17868_v57 = vld [vmem:[%s18929_s26 + $0x1444] sm:$0xf]  ;;  %v17478_v46 = vld [vmem:[%s18929_s26 + $0x80c] sm:$0xf0] }
  0xad   : > { %7149 = vmatpush.bf16.msrb.mxu1 %v13010_v12  ;;  %v12197_v12 = vld [vmem:[%s18929_s26 + $0x340] sm:$0xf]  ;;  %v14375_v58 = vld [vmem:[%s18929_s26 + $0x14c8] sm:$0xf0]  ;;  %v18140_v59 = vld [vmem:[%s18929_s26 + $0x1cc4] sm:$0xf] }
  0xae   : > { %7163 = vmatpush.bf16.msrb.mxu2 %v14098_v13  ;;  %v17341_v13 = vld [vmem:[%s18929_s26 + $0x3c4] sm:$0xf0] }
  0xaf   : > { %7177 = vmatpush.bf16.msrb.mxu3 %v15186_v18  ;;  %v14373_v18 = vld [vmem:[%s18929_s26 + $0x1440] sm:$0xf]  ;;  %v12198_v24 = vor.u32 %v17341_v13, %v12197_v12  ;;  %v17426_v12 = vld [vmem:[%s18929_s26 + $0x674] sm:$0xf]  ;;  %v12607_v13 = vld [vmem:[%s18929_s26 + $0x6f8] sm:$0xf0] }
  0xb0   : > { %7136 = vmatpush.bf16.msrb.mxu0 %v11786_v27  ;;  %v14374_v26 = vor.u32 %v17885_v19, %v14373_v18  ;;  %v12061_v27 = vld [vmem:[%s18929_s26 + $0x230] sm:$0xf]  ;;  %v17970_v18 = vld [vmem:[%s18929_s26 + $0x1774] sm:$0xf]  ;;  %v14783_v19 = vld [vmem:[%s18929_s26 + $0x17f8] sm:$0xf0] }
  0xb1   : > { %7150 = vmatpush.bf16.msrb.mxu1 %v12874_v31  ;;  %v17579_v31 = vld [vmem:[%s18929_s26 + $0xb34] sm:$0xf0]  ;;  %v13837_v47 = vld [vmem:[%s18929_s26 + $0x1008] sm:$0xf] }
  0xb2   : > { %7164 = vmatpush.bf16.msrb.mxu2 %v13962_v32  ;;  %v14237_v32 = vld [vmem:[%s18929_s26 + $0x1330] sm:$0xf] }
  0xb3   : > { %7178 = vmatpush.bf16.msrb.mxu3 %v15050_v35  ;;  %7137 = vmatmul.bf16.vlgmr.msrb.gmra.mxu0 %v19056_v16  ;;  %v18123_v35 = vld [vmem:[%s18929_s26 + $0x1c34] sm:$0xf0] }
  0xb4   : > { %7185 = vmatpush.bf16.msra.mxu0 %v12742_v36  ;;  %7151 = vmatmul.bf16.vlgmr.msrb.gmra.mxu1 %v19071_v23  ;;  %v12062_v36 = vor.u32 %v17307_v28, %v12061_v27  ;;  %v17392_v27 = vld [vmem:[%s18929_s26 + $0x564] sm:$0xf]  ;;  %v12471_v28 = vld [vmem:[%s18929_s26 + $0x5e8] sm:$0xf0] }
  0xb5   : > { %7199 = vmatpush.bf16.msra.mxu1 %v13830_v37  ;;  %7165 = vmatmul.bf16.vlgmr.msrb.gmra.mxu2 %v19040_v4  ;;  %v13150_v37 = vor.u32 %v17579_v31, %v13149_v29  ;;  %v17664_v29 = vld [vmem:[%s18929_s26 + $0xde4] sm:$0xf]  ;;  %v13559_v31 = vld [vmem:[%s18929_s26 + $0xe68] sm:$0xf0] }
  0xb6   : > { %7213 = vmatpush.bf16.msra.mxu2 %v14918_v38  ;;  %7179 = vmatmul.bf16.vlgmr.msrb.gmra.mxu3 %v19069_v22  ;;  %v14238_v38 = vor.u32 %v17851_v33, %v14237_v32  ;;  %v17936_v32 = vld [vmem:[%s18929_s26 + $0x1664] sm:$0xf]  ;;  %v14647_v33 = vld [vmem:[%s18929_s26 + $0x16e8] sm:$0xf0] }
  0xb7   : > { %7227 = vmatpush.bf16.msra.mxu3 %v16006_v42  ;;  %v15326_v42 = vor.u32 %v18123_v35, %v15325_v34  ;;  %v18208_v34 = vld [vmem:[%s18929_s26 + $0x1ee4] sm:$0xf]  ;;  %v15735_v35 = vld [vmem:[%s18929_s26 + $0x1f68] sm:$0xf0] }
  0xb8   : > { %7186 = vmatpush.bf16.msra.mxu0 %v12606_v48  ;;  %v11926_v48 = vor.u32 %v17273_v40, %v11925_v39  ;;  %v17358_v39 = vld [vmem:[%s18929_s26 + $0x454] sm:$0xf]  ;;  %v12335_v40 = vld [vmem:[%s18929_s26 + $0x4d8] sm:$0xf0] }
  0xb9   : > { %7200 = vmatpush.bf16.msra.mxu1 %v13694_v49  ;;  %v11789_v49 = vld [vmem:[%s18929_s26 + $0x10] sm:$0xf] }
  0xba   : > { %7214 = vmatpush.bf16.msra.mxu2 %v14782_v50  ;;  %v17239_v50 = vld [vmem:[%s18929_s26 + $0x94] sm:$0xf0] }
  0xbb   : > { %7228 = vmatpush.bf16.msra.mxu3 %v15870_v54  ;;  %v17511_v54 = vld [vmem:[%s18929_s26 + $0x914] sm:$0xf0]  ;;  %v11790_v63 = vor.u32 %v17239_v50, %v11789_v49  ;;  %v17324_v49 = vld [vmem:[%s18929_s26 + $0x344] sm:$0xf]  ;;  %v13426_v50 = vor.u32 %v17630_v41, %v13423_v43  ;;  %v13967_v41 = vld [vmem:[%s18929_s26 + $0x1198] sm:$0xf0] }
  0xbc   : > { %7187 = vmatpush.bf16.msra.mxu0 %v12470_v60  ;;  %v17460_v60 = vld [vmem:[%s18929_s26 + $0x784] sm:$0xf]  ;;  %v12878_v3 = vor.u32 %v17511_v54, %v12877_v53  ;;  %v15055_v43 = vld [vmem:[%s18929_s26 + $0x1a18] sm:$0xf0] }
  0xbd   : > { %7201 = vmatpush.bf16.msra.mxu1 %v13558_v61  ;;  %v12743_v61 = vld [vmem:[%s18929_s26 + $0x808] sm:$0xf0]  ;;  %v17596_v53 = vld [vmem:[%s18929_s26 + $0xbc4] sm:$0xf] }
  0xbe   : > { %7215 = vmatpush.bf16.msra.mxu2 %v14646_v62  ;;  %v17732_v62 = vld [vmem:[%s18929_s26 + $0x1004] sm:$0xf] }
  0xbf   : > { %7229 = vmatpush.bf16.msra.mxu3 %v15734_v2  ;;  %v14919_v2 = vld [vmem:[%s18929_s26 + $0x1908] sm:$0xf0]  ;;  %v19352_v54 = vld [vmem:[%s18938_s14] sm:$0xff] }
  0xc0   : > { %7188 = vmatpush.bf16.msra.mxu0 %v12334_v9  ;;  %v12746_v9 = vor.u32 %v17460_v60, %v12743_v61  ;;  %v15463_v60 = vld [vmem:[%s18929_s26 + $0x1d48] sm:$0xf0] }
  0xc1   : > { %7202 = vmatpush.bf16.msra.mxu1 %v13422_v10  ;;  %v13834_v10 = vor.u32 %v17732_v62, %v13831_v0  ;;  %v22331_v62 = vperm.slane %v19352_v54, 0  ;;  %v14378_v0 = vor.u32 %v17868_v57, %v14375_v58  ;;  %v18294_v57 = vld [vmem:[%s18929_s26 + $0x218c] sm:$0xf0] }
  0xc2   : > { %7216 = vmatpush.bf16.msra.mxu2 %v14510_v11  ;;  %v14922_v11 = vor.u32 %v18004_v1, %v14919_v2  ;;  %v17290_v1 = vld [vmem:[%s18929_s26 + $0x234] sm:$0xf]  ;;  %v12063_v2 = vld [vmem:[%s18929_s26 + $0x2b8] sm:$0xf0] }
  0xc3   : > { %7230 = vmatpush.bf16.msra.mxu3 %v15598_v15  ;;  %v16010_v15 = vor.u32 %v18276_v6, %v16007_v7  ;;  %v13151_v6 = vld [vmem:[%s18929_s26 + $0xb38] sm:$0xf0]  ;;  %v17834_v7 = vld [vmem:[%s18929_s26 + $0x1334] sm:$0xf] }
  0xc4   : > { %7189 = vmatpush.bf16.msra.mxu0 %v12198_v24  ;;  %v12610_v24 = vor.u32 %v17426_v12, %v12607_v13  ;;  %v12066_v12 = vor.u32 %v17290_v1, %v12063_v2  ;;  %v13701_v1 = vld [vmem:[%s18929_s26 + $0xef8] sm:$0xf] }
  0xc5   : > { %7203 = vmatpush.bf16.msra.mxu1 %v13286_v25  ;;  %v13698_v25 = vor.u32 %v17698_v14, %v13695_v17  ;;  %v17256_v17 = vld [vmem:[%s18929_s26 + $0x124] sm:$0xf] }
  0xc6   : > { %7217 = vmatpush.bf16.msra.mxu2 %v14374_v26  ;;  %v14786_v26 = vor.u32 %v17970_v18, %v14783_v19  ;;  %v11927_v18 = vld [vmem:[%s18929_s26 + $0x1a8] sm:$0xf0]  ;;  %v17528_v19 = vld [vmem:[%s18929_s26 + $0x9a4] sm:$0xf] }
  0xc7   : > { %7231 = vmatpush.bf16.msra.mxu3 %v15462_v30  ;;  %v15874_v30 = vor.u32 %v18242_v20, %v15871_v21 }
  0xc8   : > { %7190 = vmatpush.bf16.msra.mxu0 %v12062_v36  ;;  %v12474_v36 = vor.u32 %v17392_v27, %v12471_v28  ;;  %v18072_v28 = vld [vmem:[%s18929_s26 + $0x1aa4] sm:$0xf] }
  0xc9   : > { %7204 = vmatpush.bf16.msra.mxu1 %v13150_v37  ;;  %v13562_v37 = vor.u32 %v17664_v29, %v13559_v31  ;;  %v15191_v29 = vld [vmem:[%s18929_s26 + $0x1b28] sm:$0xf0]  ;;  %v11930_v31 = vor.u32 %v17256_v17, %v11927_v18  ;;  %v17682_v18 = vld [vmem:[%s18929_s26 + $0xe6c] sm:$0xf0] }
  0xca   : > { %7218 = vmatpush.bf16.msra.mxu2 %v14238_v38  ;;  %v14650_v38 = vor.u32 %v17936_v32, %v14647_v33  ;;  %v17222_v32 = vld [vmem:[%s18929_s26 + $0x14] sm:$0xf]  ;;  %v11791_v33 = vld [vmem:[%s18929_s26 + $0x98] sm:$0xf0] }
  0xcb   : > { %7232 = vmatpush.bf16.msra.mxu3 %v15326_v42  ;;  %v15738_v42 = vor.u32 %v18208_v34, %v15735_v35 }
  0xcc   : > { %7191 = vmatpush.bf16.msra.mxu0 %v11926_v48  ;;  %v12338_v48 = vor.u32 %v17358_v39, %v12335_v40  ;;  %v17766_v39 = vld [vmem:[%s18929_s26 + $0x1114] sm:$0xf]  ;;  %v15194_v40 = vor.u32 %v18072_v28, %v15191_v29 }
  0xcd   : > { %7205 = vmatpush.bf16.msra.mxu1 %v13014_v51  ;;  %v14514_v51 = vor.u32 %v17902_v44, %v14511_v45  ;;  %v12749_v45 = vld [vmem:[%s18929_s26 + $0x788] sm:$0xf] }
  0xce   : > { %7219 = vmatpush.bf16.msra.mxu2 %v14102_v52  ;;  %v12199_v52 = vld [vmem:[%s18929_s26 + $0x3c8] sm:$0xf0] }
  0xcf   : > { %7233 = vmatpush.bf16.msra.mxu3 %v15190_v56  ;;  %v13287_v56 = vld [vmem:[%s18929_s26 + $0xc48] sm:$0xf0]  ;;  %v12202_v61 = vor.u32 %v17324_v49, %v12199_v52  ;;  %v11794_v49 = vor.u32 %v17222_v32, %v11791_v33  ;;  %v18022_v52 = vld [vmem:[%s18929_s26 + $0x190c] sm:$0xf0]  ;;  %v22330_v33 = vperm.slane %v19352_v54, 1 }
  0xd0   : > { %7192 = vmatpush.bf16.msra.mxu0 %v11790_v63  ;;  %v13290_v63 = vor.u32 %v17596_v53, %v13287_v56  ;;  %v16013_v56 = vld [vmem:[%s18929_s26 + $0x2108] sm:$0xf] }
  0xd1   : > { %7206 = vmatpush.bf16.msra.mxu1 %v12878_v3  ;;  %v17562_v3 = vld [vmem:[%s18929_s26 + $0xab4] sm:$0xf]  ;;  %v16014_v2 = vor.u32 %v18294_v57, %v16013_v56  ;;  %v15469_v56 = vld [vmem:[%s18929_s26 + $0x1cc8] sm:$0xf]  ;;  %v18158_v57 = vld [vmem:[%s18929_s26 + $0x1d4c] sm:$0xf0] }
  0xd2   : > { %7220 = vmatpush.bf16.msra.mxu2 %v13966_v5  ;;  %v15466_v5 = vor.u32 %v18140_v59, %v15463_v60  ;;  %v13154_v14 = vor.u32 %v17562_v3, %v13151_v6  ;;  %v12750_v59 = vor.u32 %v17478_v46, %v12749_v45  ;;  %v17716_v3 = vld [vmem:[%s18929_s26 + $0xf7c] sm:$0xf0]  ;;  %v12205_v45 = vld [vmem:[%s18929_s26 + $0x348] sm:$0xf]  ;;  %v17342_v46 = vld [vmem:[%s18929_s26 + $0x3cc] sm:$0xf0] }
  0xd3   : > { %7234 = vmatpush.bf16.msra.mxu3 %v15054_v8  ;;  %7193 = vmatmul.bf16.vlgmr.msra.gmra.mxu0 %v19056_v16  ;;  %v14239_v8 = vld [vmem:[%s18929_s26 + $0x13b8] sm:$0xf0]  ;;  %v17988_v6 = vld [vmem:[%s18929_s26 + $0x17fc] sm:$0xf0] }
  0xd4   : > { %7241 = vmatpush.bf16.msrb.mxu0 %v12746_v9  ;;  %7207 = vmatmul.bf16.vlgmr.msra.gmra.mxu1 %v19071_v23  ;;  %v18106_v9 = vld [vmem:[%s18929_s26 + $0x1bb4] sm:$0xf]  ;;  %v6984_v20 = vpop.f32.mrf.mxu1 }
  0xd5   : > { %7255 = vmatpush.bf16.msrb.mxu1 %v13834_v10  ;;  %7221 = vmatmul.bf16.vlgmr.msra.gmra.mxu2 %v19040_v4  ;;  %v15327_v10 = vld [vmem:[%s18929_s26 + $0x1c38] sm:$0xf0] }
  0xd6   : > { %7269 = vmatpush.bf16.msrb.mxu2 %v14922_v11  ;;  %7235 = vmatmul.bf16.vlgmr.msra.gmra.mxu3 %v19069_v22  ;;  %v6970_v11 = vpop.f32.mrf.mxu0  ;;  %v15330_v21 = vor.u32 %v18106_v9, %v15327_v10 }
  0xd7   : > { %7283 = vmatpush.bf16.msrb.mxu3 %v16010_v15  ;;  %v6971_v13 = vadd.f32 %v6970_v11, %v22331_v62  ;;  %v14242_v15 = vor.u32 %v17834_v7, %v14239_v8  ;;  %v15877_v7 = vld [vmem:[%s18929_s26 + $0x1ff8] sm:$0xf]  ;;  %v18260_v8 = vld [vmem:[%s18929_s26 + $0x207c] sm:$0xf0]  ;;  %v13702_v11 = vor.u32 %v17716_v3, %v13701_v1  ;;  %v15470_v3 = vor.u32 %v18158_v57, %v15469_v56  ;;  %v18277_v56 = vld [vmem:[%s18929_s26 + $0x210c] sm:$0xf] }
  0xd8   : > { %7242 = vmatpush.bf16.msrb.mxu0 %v12610_v24  ;;  %v13015_v24 = vld [vmem:[%s18929_s26 + $0xa28] sm:$0xf0]  ;;  %v15878_v17 = vor.u32 %v18260_v8, %v15877_v7  ;;  %v13157_v1 = vld [vmem:[%s18929_s26 + $0xab8] sm:$0xf]  ;;  %v17852_v7 = vld [vmem:[%s18929_s26 + $0x13bc] sm:$0xf0] }
  0xd9   : > { %7256 = vmatpush.bf16.msrb.mxu1 %v13698_v25  ;;  %v17800_v25 = vld [vmem:[%s18929_s26 + $0x1224] sm:$0xf]  ;;  %v6985_v27 = vadd.f32 %v6984_v20, %v6971_v13  ;;  %v13018_v35 = vor.u32 %v17528_v19, %v13015_v24  ;;  %v12477_v13 = vld [vmem:[%s18929_s26 + $0x568] sm:$0xf]  ;;  %v17954_v20 = vld [vmem:[%s18929_s26 + $0x16ec] sm:$0xf0] }
  0xda   : > { %7270 = vmatpush.bf16.msrb.mxu2 %v14786_v26  ;;  %v14103_v26 = vld [vmem:[%s18929_s26 + $0x12a8] sm:$0xf0]  ;;  %v14653_v19 = vld [vmem:[%s18929_s26 + $0x1668] sm:$0xf]  ;;  %v16015_v57 = vld [vmem:[%s18929_s26 + $0x2190] sm:$0xf0] }
  0xdb   : > { %7284 = vmatpush.bf16.msrb.mxu3 %v15874_v30  ;;  %v6998_v30 = vpop.f32.mrf.mxu2  ;;  %v7012_v44 = vpop.f32.mrf.mxu3  ;;  %v15741_v24 = vld [vmem:[%s18929_s26 + $0x1ee8] sm:$0xf]  ;;  %v14654_v29 = vor.u32 %v17954_v20, %v14653_v19  ;;  %v17274_v19 = vld [vmem:[%s18929_s26 + $0x1ac] sm:$0xf0] }
  0xdc   : > { %7243 = vmatpush.bf16.msrb.mxu0 %v12474_v36  ;;  %v6999_v34 = vadd.f32 %v6998_v30, %v6985_v27  ;;  %v14106_v36 = vor.u32 %v17800_v25, %v14103_v26  ;;  %v18226_v25 = vld [vmem:[%s18929_s26 + $0x1f6c] sm:$0xf0]  ;;  %v12341_v27 = vld [vmem:[%s18929_s26 + $0x458] sm:$0xf]  ;;  %v17376_v30 = vld [vmem:[%s18929_s26 + $0x4dc] sm:$0xf0] }
  0xdd   : > { %7257 = vmatpush.bf16.msrb.mxu1 %v13562_v37  ;;  %v17494_v37 = vld [vmem:[%s18929_s26 + $0x894] sm:$0xf]  ;;  %v13021_v20 = vld [vmem:[%s18929_s26 + $0x9a8] sm:$0xf]  ;;  %v13725_v62 = vld [vmem:[%s18929_s26 + $0xf10] sm:$0xf] }
  0xde   : > { %7271 = vmatpush.bf16.msrb.mxu2 %v14650_v38  ;;  %v12879_v38 = vld [vmem:[%s18929_s26 + $0x918] sm:$0xf0]  ;;  %v19404_v10 = vpop.f32.mrf.mxu0 }
  0xdf   : > { %7285 = vmatpush.bf16.msrb.mxu3 %v15738_v42  ;;  %v18038_v42 = vld [vmem:[%s18929_s26 + $0x1994] sm:$0xf]  ;;  %v12882_v53 = vor.u32 %v17494_v37, %v12879_v38  ;;  %v17920_v37 = vld [vmem:[%s18929_s26 + $0x15dc] sm:$0xf0]  ;;  %v15605_v38 = vld [vmem:[%s18929_s26 + $0x1dd8] sm:$0xf] }
  0xe0   : > { %7244 = vmatpush.bf16.msrb.mxu0 %v12338_v48  ;;  %v19389_v48 = vadd.f32 %v7012_v44, %v6999_v34  ;;  %v15058_v58 = vor.u32 %v18038_v42, %v15055_v43  ;;  %v15742_v34 = vor.u32 %v18226_v25, %v15741_v24  ;;  %v17546_v25 = vld [vmem:[%s18929_s26 + $0xa2c] sm:$0xf0] }
  0xe1   : > { %7258 = vmatpush.bf16.msrb.mxu1 %v13426_v50  ;;  %v17750_v50 = vld [vmem:[%s18929_s26 + $0x108c] sm:$0xf0] }
  0xe2   : > { %7272 = vmatpush.bf16.msrb.mxu2 %v14514_v51  ;;  %v14925_v51 = vld [vmem:[%s18929_s26 + $0x1888] sm:$0xf]  ;;  %v13838_v60 = vor.u32 %v17750_v50, %v13837_v47 }
  0xe3   : > { %7286 = vmatpush.bf16.msrb.mxu3 %v15602_v55  ;;  %v13970_v55 = vor.u32 %v17766_v39, %v13967_v41  ;;  %v19423_v32 = vpop.f32.mrf.mxu2  ;;  %v18192_v39 = vld [vmem:[%s18929_s26 + $0x1e5c] sm:$0xf0]  ;;  %v12342_v41 = vor.u32 %v17376_v30, %v12341_v27  ;;  %v13293_v47 = vld [vmem:[%s18929_s26 + $0xbc8] sm:$0xf]  ;;  %v17818_v27 = vld [vmem:[%s18929_s26 + $0x12ac] sm:$0xf0] }
  0xe4   : > { %7245 = vmatpush.bf16.msrb.mxu0 %v12202_v61  ;;  %v14926_v61 = vor.u32 %v18022_v52, %v14925_v51  ;;  %v15606_v50 = vor.u32 %v18192_v39, %v15605_v38  ;;  %v17614_v51 = vld [vmem:[%s18929_s26 + $0xc4c] sm:$0xf0]  ;;  %v14381_v52 = vld [vmem:[%s18929_s26 + $0x1448] sm:$0xf]  ;;  %v17512_v38 = vld [vmem:[%s18929_s26 + $0x91c] sm:$0xf0] }
  0xe5   : > { %7259 = vmatpush.bf16.msrb.mxu1 %v13290_v63  ;;  %v12613_v63 = vld [vmem:[%s18929_s26 + $0x678] sm:$0xf] }
  0xe6   : > { %7273 = vmatpush.bf16.msrb.mxu2 %v14378_v0  ;;  %v17444_v0 = vld [vmem:[%s18929_s26 + $0x6fc] sm:$0xf0]  ;;  %v13973_v39 = vld [vmem:[%s18929_s26 + $0x1118] sm:$0xf] }
  0xe7   : > { %7287 = vmatpush.bf16.msrb.mxu3 %v15466_v5  ;;  %v14789_v5 = vld [vmem:[%s18929_s26 + $0x1778] sm:$0xf]  ;;  %v12614_v9 = vor.u32 %v17444_v0, %v12613_v63  ;;  %v17308_v0 = vld [vmem:[%s18929_s26 + $0x2bc] sm:$0xf0] }
  0xe8   : > { %7246 = vmatpush.bf16.msrb.mxu0 %v12066_v12  ;;  %v14790_v12 = vor.u32 %v17988_v6, %v14789_v5  ;;  %v12069_v63 = vld [vmem:[%s18929_s26 + $0x238] sm:$0xf]  ;;  %v17580_v5 = vld [vmem:[%s18929_s26 + $0xb3c] sm:$0xf0] }
  0xe9   : > { %7260 = vmatpush.bf16.msrb.mxu1 %v13154_v14  ;;  %v17410_v14 = vld [vmem:[%s18929_s26 + $0x5ec] sm:$0xf0]  ;;  %v14245_v6 = vld [vmem:[%s18929_s26 + $0x1338] sm:$0xf] }
  0xea   : > { %7274 = vmatpush.bf16.msrb.mxu2 %v14242_v15  ;;  %v13565_v15 = vld [vmem:[%s18929_s26 + $0xde8] sm:$0xf]  ;;  %v12478_v26 = vor.u32 %v17410_v14, %v12477_v13  ;;  %v12070_v13 = vor.u32 %v17308_v0, %v12069_v63  ;;  %v17427_v63 = vld [vmem:[%s18929_s26 + $0x67c] sm:$0xf]  ;;  %v12615_v0 = vld [vmem:[%s18929_s26 + $0x700] sm:$0xf0] }
  0xeb   : > { %7288 = vmatpush.bf16.msrb.mxu3 %v15330_v21  ;;  %v19412_v21 = vpop.f32.mrf.mxu1  ;;  %v13566_v28 = vor.u32 %v17682_v18, %v13565_v15  ;;  %v13158_v15 = vor.u32 %v17580_v5, %v13157_v1  ;;  %v11933_v18 = vld [vmem:[%s18929_s26 + $0x128] sm:$0xf]  ;;  %v17699_v1 = vld [vmem:[%s18929_s26 + $0xefc] sm:$0xf] }
  0xec   : > { %7247 = vmatpush.bf16.msrb.mxu0 %v11930_v31  ;;  %v13429_v31 = vld [vmem:[%s18929_s26 + $0xcd8] sm:$0xf]  ;;  %v11934_v30 = vor.u32 %v17274_v19, %v11933_v18  ;;  %v17971_v5 = vld [vmem:[%s18929_s26 + $0x177c] sm:$0xf]  ;;  %v17665_v18 = vld [vmem:[%s18929_s26 + $0xdec] sm:$0xf] }
  0xed   : > { %7261 = vmatpush.bf16.msrb.mxu1 %v13018_v35  ;;  %v17648_v35 = vld [vmem:[%s18929_s26 + $0xd5c] sm:$0xf0] }
  0xee   : > { %7275 = vmatpush.bf16.msrb.mxu2 %v14106_v36  ;;  %v14517_v36 = vld [vmem:[%s18929_s26 + $0x1558] sm:$0xf]  ;;  %v13430_v43 = vor.u32 %v17648_v35, %v13429_v31  ;;  %v13022_v35 = vor.u32 %v17546_v25, %v13021_v20  ;;  %v13567_v20 = vld [vmem:[%s18929_s26 + $0xe70] sm:$0xf0] }
  0xef   : > { %7289 = vmatpush.bf16.msrb.mxu3 %v15194_v40  ;;  %v19431_v40 = vpop.f32.mrf.mxu3  ;;  %v14518_v44 = vor.u32 %v17920_v37, %v14517_v36  ;;  %v11797_v31 = vld [vmem:[%s18929_s26 + $0x18] sm:$0xf]  ;;  %v14655_v25 = vld [vmem:[%s18929_s26 + $0x16f0] sm:$0xf0] }
  0xf0   : > { %7248 = vmatpush.bf16.msrb.mxu0 %v11794_v49  ;;  %v7026_v42 = vpop.f32.mrf.mxu0  ;;  %v12885_v37 = vld [vmem:[%s18929_s26 + $0x898] sm:$0xf] }
  0xf1   : > { %7262 = vmatpush.bf16.msrb.mxu1 %v12882_v53  ;;  %v7027_v49 = vadd.f32 %v7026_v42, %v22330_v33  ;;  %v17886_v53 = vld [vmem:[%s18929_s26 + $0x14cc] sm:$0xf0]  ;;  %v17784_v42 = vld [vmem:[%s18929_s26 + $0x119c] sm:$0xf0]  ;;  %v17447_v33 = vld [vmem:[%s18929_s26 + $0x714] sm:$0xf0] }
  0xf2   : > { %7276 = vmatpush.bf16.msrb.mxu2 %v13970_v55 }
  0xf3   : > { %7290 = vmatpush.bf16.msrb.mxu3 %v15058_v58  ;;  %7249 = vmatmul.bf16.vlgmr.msrb.gmra.mxu0 %v19056_v16  ;;  %v7040_v55 = vpop.f32.mrf.mxu1 }
  0xf4   : > { %7297 = vmatpush.bf16.msra.mxu0 %v12750_v59  ;;  %7263 = vmatmul.bf16.vlgmr.msrb.gmra.mxu1 %v19071_v23  ;;  %v7041_v58 = vadd.f32 %v7040_v55, %v7027_v49  ;;  %v12206_v59 = vor.u32 %v17342_v46, %v12205_v45  ;;  %v17461_v45 = vld [vmem:[%s18929_s26 + $0x78c] sm:$0xf]  ;;  %v12751_v46 = vld [vmem:[%s18929_s26 + $0x810] sm:$0xf0]  ;;  %v13974_v55 = vor.u32 %v17784_v42, %v13973_v39  ;;  %v17903_v42 = vld [vmem:[%s18929_s26 + $0x155c] sm:$0xf] }
  0xf5   : > { %7311 = vmatpush.bf16.msra.mxu1 %v13838_v60  ;;  %7277 = vmatmul.bf16.vlgmr.msrb.gmra.mxu2 %v19040_v4  ;;  %v13294_v60 = vor.u32 %v17614_v51, %v13293_v47  ;;  %v17733_v47 = vld [vmem:[%s18929_s26 + $0x100c] sm:$0xf] }
  0xf6   : > { %7325 = vmatpush.bf16.msra.mxu2 %v14926_v61  ;;  %7291 = vmatmul.bf16.vlgmr.msrb.gmra.mxu3 %v19069_v22  ;;  %v14382_v61 = vor.u32 %v17886_v53, %v14381_v52  ;;  %v18005_v51 = vld [vmem:[%s18929_s26 + $0x188c] sm:$0xf]  ;;  %v14927_v52 = vld [vmem:[%s18929_s26 + $0x1910] sm:$0xf0]  ;;  %v12886_v53 = vor.u32 %v17512_v38, %v12885_v37  ;;  %v22329_v38 = vperm.slane %v19352_v54, 2 }
  0xf7   : > { %7339 = vmatpush.bf16.msra.mxu3 %v16014_v2 }
  0xf8   : > { %7298 = vmatpush.bf16.msra.mxu0 %v12614_v9  ;;  %v7054_v2 = vpop.f32.mrf.mxu2  ;;  %v15333_v9 = vld [vmem:[%s18929_s26 + $0x1bb8] sm:$0xf] }
  0xf9   : > { %7312 = vmatpush.bf16.msra.mxu1 %v13702_v11  ;;  %v7055_v8 = vadd.f32 %v7054_v2, %v7041_v58  ;;  %v18124_v11 = vld [vmem:[%s18929_s26 + $0x1c3c] sm:$0xf0]  ;;  %v16018_v2 = vor.u32 %v18277_v56, %v16015_v57 }
  0xfa   : > { %7326 = vmatpush.bf16.msra.mxu2 %v14790_v12  ;;  %v7068_v12 = vpop.f32.mrf.mxu3  ;;  %v15334_v24 = vor.u32 %v18124_v11, %v15333_v9  ;;  %v12618_v9 = vor.u32 %v17427_v63, %v12615_v0  ;;  %v19485_v11 = vpop.f32.mrf.mxu0  ;;  %v18141_v63 = vld [vmem:[%s18929_s26 + $0x1ccc] sm:$0xf]  ;;  %v15471_v0 = vld [vmem:[%s18929_s26 + $0x1d50] sm:$0xf0] }
  0xfb   : > { %7340 = vmatpush.bf16.msra.mxu3 %v15878_v17  ;;  %v19451_v14 = vadd.f32 %v7068_v12, %v7055_v8  ;;  %v14246_v17 = vor.u32 %v17852_v7, %v14245_v6  ;;  %v14791_v6 = vld [vmem:[%s18929_s26 + $0x1800] sm:$0xf0]  ;;  %v18243_v7 = vld [vmem:[%s18929_s26 + $0x1ffc] sm:$0xf] }
  0xfc   : > { %7299 = vmatpush.bf16.msra.mxu0 %v12478_v26  ;;  %v14109_v26 = vld [vmem:[%s18929_s26 + $0x1228] sm:$0xf]  ;;  %v15879_v8 = vld [vmem:[%s18929_s26 + $0x2080] sm:$0xf0] }
  0xfd   : > { %7313 = vmatpush.bf16.msra.mxu1 %v13566_v28  ;;  %v15197_v28 = vld [vmem:[%s18929_s26 + $0x1aa8] sm:$0xf]  ;;  %v14110_v36 = vor.u32 %v17818_v27, %v14109_v26  ;;  %v15882_v19 = vor.u32 %v18243_v7, %v15879_v8  ;;  %v19493_v26 = vpop.f32.mrf.mxu1  ;;  %v18209_v27 = vld [vmem:[%s18929_s26 + $0x1eec] sm:$0xf]  ;;  %v12071_v7 = vld [vmem:[%s18929_s26 + $0x2c0] sm:$0xf0] }
  0xfe   : > { %7327 = vmatpush.bf16.msra.mxu2 %v14654_v29  ;;  %v18090_v29 = vld [vmem:[%s18929_s26 + $0x1b2c] sm:$0xf0]  ;;  %v17563_v8 = vld [vmem:[%s18929_s26 + $0xabc] sm:$0xf] }
  0xff   : > { %7341 = vmatpush.bf16.msra.mxu3 %v15742_v34  ;;  %v17240_v34 = vld [vmem:[%s18929_s26 + $0x9c] sm:$0xf0] }
 0x100   : > { %7300 = vmatpush.bf16.msra.mxu0 %v12342_v41  ;;  %v15198_v41 = vor.u32 %v18090_v29, %v15197_v28  ;;  %v11798_v49 = vor.u32 %v17240_v34, %v11797_v31  ;;  %v15743_v28 = vld [vmem:[%s18929_s26 + $0x1f70] sm:$0xf0]  ;;  %v13570_v31 = vor.u32 %v17665_v18, %v13567_v20  ;;  %v19504_v37 = vpop.f32.mrf.mxu2  ;;  %v15335_v20 = vld [vmem:[%s18929_s26 + $0x1c40] sm:$0xf0] }
 0x101   : > { %7314 = vmatpush.bf16.msra.mxu1 %v13430_v43  ;;  %v15061_v43 = vld [vmem:[%s18929_s26 + $0x1998] sm:$0xf]  ;;  %v15746_v39 = vor.u32 %v18209_v27, %v15743_v28 }
 0x102   : > { %7328 = vmatpush.bf16.msra.mxu2 %v14518_v44  ;;  %v18056_v44 = vld [vmem:[%s18929_s26 + $0x1a1c] sm:$0xf0] }
 0x103   : > { %7342 = vmatpush.bf16.msra.mxu3 %v15606_v50  ;;  %v13839_v50 = vld [vmem:[%s18929_s26 + $0x1090] sm:$0xf0]  ;;  %v15062_v58 = vor.u32 %v18056_v44, %v15061_v43  ;;  %v14519_v43 = vld [vmem:[%s18929_s26 + $0x15e0] sm:$0xf0]  ;;  %v18175_v44 = vld [vmem:[%s18929_s26 + $0x1ddc] sm:$0xf] }
 0x104   : > { %7301 = vmatpush.bf16.msra.mxu0 %v12206_v59  ;;  %v12754_v59 = vor.u32 %v17461_v45, %v12751_v46  ;;  %v15607_v45 = vld [vmem:[%s18929_s26 + $0x1e60] sm:$0xf0]  ;;  %v19512_v46 = vpop.f32.mrf.mxu3 }
 0x105   : > { %7315 = vmatpush.bf16.msra.mxu1 %v13294_v60  ;;  %v13842_v60 = vor.u32 %v17733_v47, %v13839_v50  ;;  %v15610_v57 = vor.u32 %v18175_v44, %v15607_v45  ;;  %v17223_v45 = vld [vmem:[%s18929_s26 + $0x1c] sm:$0xf] }
 0x106   : > { %7329 = vmatpush.bf16.msra.mxu2 %v14382_v61  ;;  %v14930_v61 = vor.u32 %v18005_v51, %v14927_v52  ;;  %v14522_v51 = vor.u32 %v17903_v42, %v14519_v43  ;;  %v17325_v52 = vld [vmem:[%s18929_s26 + $0x34c] sm:$0xf]  ;;  %v15199_v43 = vld [vmem:[%s18929_s26 + $0x1b30] sm:$0xf0] }
 0x107   : > { %7343 = vmatpush.bf16.msra.mxu3 %v15470_v3  ;;  %v13703_v3 = vld [vmem:[%s18929_s26 + $0xf80] sm:$0xf0]  ;;  %v18073_v42 = vld [vmem:[%s18929_s26 + $0x1aac] sm:$0xf] }
 0x108   : > { %7302 = vmatpush.bf16.msra.mxu0 %v12070_v13  ;;  %v13706_v12 = vor.u32 %v17699_v1, %v13703_v3  ;;  %v14794_v13 = vor.u32 %v17971_v5, %v14791_v6  ;;  %v17291_v6 = vld [vmem:[%s18929_s26 + $0x23c] sm:$0xf] }
 0x109   : > { %7316 = vmatpush.bf16.msra.mxu1 %v13158_v15  ;;  %v17393_v15 = vld [vmem:[%s18929_s26 + $0x56c] sm:$0xf] }
 0x10a   : > { %7330 = vmatpush.bf16.msra.mxu2 %v14246_v17  ;;  %v12479_v17 = vld [vmem:[%s18929_s26 + $0x5f0] sm:$0xf0] }
 0x10b   : > { %7344 = vmatpush.bf16.msra.mxu3 %v15334_v24  ;;  %v17937_v24 = vld [vmem:[%s18929_s26 + $0x166c] sm:$0xf]  ;;  %v12482_v29 = vor.u32 %v17393_v15, %v12479_v17  ;;  %v17835_v15 = vld [vmem:[%s18929_s26 + $0x133c] sm:$0xf]  ;;  %v14247_v17 = vld [vmem:[%s18929_s26 + $0x13c0] sm:$0xf0] }
 0x10c   : > { %7303 = vmatpush.bf16.msra.mxu0 %v11934_v30  ;;  %v17359_v30 = vld [vmem:[%s18929_s26 + $0x45c] sm:$0xf]  ;;  %v14658_v34 = vor.u32 %v17937_v24, %v14655_v25  ;;  %v12074_v25 = vor.u32 %v17291_v6, %v12071_v7  ;;  %v16021_v6 = vld [vmem:[%s18929_s26 + $0x2110] sm:$0xf]  ;;  %v18295_v7 = vld [vmem:[%s18929_s26 + $0x2194] sm:$0xf0] }
 0x10d   : > { %7317 = vmatpush.bf16.msra.mxu1 %v13022_v35  ;;  %v12343_v35 = vld [vmem:[%s18929_s26 + $0x4e0] sm:$0xf0] }
 0x10e   : > { %7331 = vmatpush.bf16.msra.mxu2 %v14110_v36  ;;  %v17631_v36 = vld [vmem:[%s18929_s26 + $0xcdc] sm:$0xf]  ;;  %v12346_v47 = vor.u32 %v17359_v30, %v12343_v35  ;;  %v17257_v30 = vld [vmem:[%s18929_s26 + $0x12c] sm:$0xf] }
 0x10f   : > { %7345 = vmatpush.bf16.msra.mxu3 %v15198_v41  ;;  %v13431_v41 = vld [vmem:[%s18929_s26 + $0xd60] sm:$0xf0] }
 0x110   : > { %7304 = vmatpush.bf16.msra.mxu0 %v11798_v49  ;;  %v7082_v49 = vpop.f32.mrf.mxu0  ;;  %v13434_v50 = vor.u32 %v17631_v36, %v13431_v41  ;;  %v13023_v36 = vld [vmem:[%s18929_s26 + $0xa30] sm:$0xf0] }
 0x111   : > { %7318 = vmatpush.bf16.msra.mxu1 %v12886_v53  ;;  %v12207_v53 = vld [vmem:[%s18929_s26 + $0x3d0] sm:$0xf0]  ;;  %v7083_v56 = vadd.f32 %v7082_v49, %v22329_v38  ;;  %v12637_v38 = vld [vmem:[%s18929_s26 + $0x690] sm:$0xf] }
 0x112   : > { %7332 = vmatpush.bf16.msra.mxu2 %v13974_v55  ;;  %v17597_v55 = vld [vmem:[%s18929_s26 + $0xbcc] sm:$0xf]  ;;  %v14111_v41 = vld [vmem:[%s18929_s26 + $0x12b0] sm:$0xf0] }
 0x113   : > { %7346 = vmatpush.bf16.msra.mxu3 %v15062_v58  ;;  %7305 = vmatmul.bf16.vlgmr.msra.gmra.mxu0 %v19056_v16  ;;  %v13295_v58 = vld [vmem:[%s18929_s26 + $0xc50] sm:$0xf0] }
 0x114   : > { %7353 = vmatpush.bf16.msrb.mxu0 %v12754_v59  ;;  %7319 = vmatmul.bf16.vlgmr.msra.gmra.mxu1 %v19071_v23  ;;  %v17869_v59 = vld [vmem:[%s18929_s26 + $0x144c] sm:$0xf]  ;;  %v13298_v3 = vor.u32 %v17597_v55, %v13295_v58  ;;  %v15202_v55 = vor.u32 %v18073_v42, %v15199_v43  ;;  %v15063_v58 = vld [vmem:[%s18929_s26 + $0x1a20] sm:$0xf0]  ;;  %v17683_v43 = vld [vmem:[%s18929_s26 + $0xe74] sm:$0xf0] }
 0x115   : > { %7367 = vmatpush.bf16.msrb.mxu1 %v13842_v60  ;;  %7333 = vmatmul.bf16.vlgmr.msra.gmra.mxu2 %v19040_v4  ;;  %v14383_v60 = vld [vmem:[%s18929_s26 + $0x14d0] sm:$0xf0] }
 0x116   : > { %7381 = vmatpush.bf16.msrb.mxu2 %v14930_v61  ;;  %7347 = vmatmul.bf16.vlgmr.msra.gmra.mxu3 %v19069_v22  ;;  %v7096_v61 = vpop.f32.mrf.mxu1  ;;  %v14386_v5 = vor.u32 %v17869_v59, %v14383_v60  ;;  %v12757_v59 = vld [vmem:[%s18929_s26 + $0x790] sm:$0xf]  ;;  %v17479_v60 = vld [vmem:[%s18929_s26 + $0x814] sm:$0xf0] }
 0x117   : > { %7395 = vmatpush.bf16.msrb.mxu3 %v16018_v2  ;;  %v7097_v1 = vadd.f32 %v7096_v61, %v7083_v56  ;;  %v12210_v2 = vor.u32 %v17325_v52, %v12207_v53  ;;  %v12887_v52 = vld [vmem:[%s18929_s26 + $0x920] sm:$0xf0]  ;;  %v17767_v53 = vld [vmem:[%s18929_s26 + $0x111c] sm:$0xf]  ;;  %v13845_v61 = vld [vmem:[%s18929_s26 + $0x1010] sm:$0xf] }
 0x118   : > { %7354 = vmatpush.bf16.msrb.mxu0 %v12618_v9  ;;  %v7110_v9 = vpop.f32.mrf.mxu2  ;;  %v13975_v56 = vld [vmem:[%s18929_s26 + $0x11a0] sm:$0xf0] }
 0x119   : > { %7368 = vmatpush.bf16.msrb.mxu1 %v13706_v12  ;;  %v15474_v12 = vor.u32 %v18141_v63, %v15471_v0  ;;  %v7111_v18 = vadd.f32 %v7110_v9, %v7097_v1  ;;  %v7124_v24 = vpop.f32.mrf.mxu3  ;;  %v17751_v0 = vld [vmem:[%s18929_s26 + $0x1094] sm:$0xf0]  ;;  %v14933_v1 = vld [vmem:[%s18929_s26 + $0x1890] sm:$0xf]  ;;  %v12758_v9 = vor.u32 %v17479_v60, %v12757_v59  ;;  %v22328_v59 = vperm.slane %v19352_v54, 3 }
 0x11a   : > { %7382 = vmatpush.bf16.msrb.mxu2 %v14794_v13  ;;  %v13159_v13 = vld [vmem:[%s18929_s26 + $0xb40] sm:$0xf0] }
 0x11b   : > { %7396 = vmatpush.bf16.msrb.mxu3 %v15882_v19  ;;  %v18107_v19 = vld [vmem:[%s18929_s26 + $0x1bbc] sm:$0xf]  ;;  %v19532_v27 = vadd.f32 %v7124_v24, %v7111_v18  ;;  %v13162_v28 = vor.u32 %v17563_v8, %v13159_v13  ;;  %v13709_v18 = vld [vmem:[%s18929_s26 + $0xf00] sm:$0xf] }
 0x11c   : > { %7355 = vmatpush.bf16.msrb.mxu0 %v12482_v29  ;;  %v14250_v29 = vor.u32 %v17835_v15, %v14247_v17  ;;  %v15338_v35 = vor.u32 %v18107_v19, %v15335_v20  ;;  %v12621_v15 = vld [vmem:[%s18929_s26 + $0x680] sm:$0xf]  ;;  %v17445_v17 = vld [vmem:[%s18929_s26 + $0x704] sm:$0xf0]  ;;  %v16022_v19 = vor.u32 %v18295_v7, %v16021_v6 }
 0x11d   : > { %7369 = vmatpush.bf16.msrb.mxu1 %v13570_v31  ;;  %v11935_v31 = vld [vmem:[%s18929_s26 + $0x1b0] sm:$0xf0]  ;;  %v17717_v20 = vld [vmem:[%s18929_s26 + $0xf84] sm:$0xf0]  ;;  %v14797_v24 = vld [vmem:[%s18929_s26 + $0x1780] sm:$0xf] }
 0x11e   : > { %7383 = vmatpush.bf16.msrb.mxu2 %v14658_v34  ;;  %v17529_v34 = vld [vmem:[%s18929_s26 + $0x9ac] sm:$0xf]  ;;  %v11938_v44 = vor.u32 %v17257_v30, %v11935_v31  ;;  %v12622_v30 = vor.u32 %v17445_v17, %v12621_v15  ;;  %v19566_v31 = vpop.f32.mrf.mxu0 }
 0x11f   : > { %7397 = vmatpush.bf16.msrb.mxu3 %v15746_v39  ;;  %v17801_v39 = vld [vmem:[%s18929_s26 + $0x122c] sm:$0xf]  ;;  %v13026_v49 = vor.u32 %v17529_v34, %v13023_v36  ;;  %v13710_v34 = vor.u32 %v17717_v20, %v13709_v18  ;;  %v12485_v36 = vld [vmem:[%s18929_s26 + $0x570] sm:$0xf]  ;;  %v17615_v18 = vld [vmem:[%s18929_s26 + $0xc54] sm:$0xf0] }
 0x120   : > { %7356 = vmatpush.bf16.msrb.mxu0 %v12346_v47  ;;  %v11799_v47 = vld [vmem:[%s18929_s26 + $0xa0] sm:$0xf0]  ;;  %v17887_v20 = vld [vmem:[%s18929_s26 + $0x14d4] sm:$0xf0] }
 0x121   : > { %7370 = vmatpush.bf16.msrb.mxu1 %v13434_v50  ;;  %v14114_v50 = vor.u32 %v17801_v39, %v14111_v41  ;;  %v11802_v63 = vor.u32 %v17223_v45, %v11799_v47  ;;  %v17411_v39 = vld [vmem:[%s18929_s26 + $0x5f4] sm:$0xf0]  ;;  %v13573_v41 = vld [vmem:[%s18929_s26 + $0xdf0] sm:$0xf]  ;;  %v19574_v47 = vpop.f32.mrf.mxu1 }
 0x122   : > { %7384 = vmatpush.bf16.msrb.mxu2 %v14522_v51  ;;  %v17495_v51 = vld [vmem:[%s18929_s26 + $0x89c] sm:$0xf]  ;;  %v17955_v45 = vld [vmem:[%s18929_s26 + $0x16f4] sm:$0xf0] }
 0x123   : > { %7398 = vmatpush.bf16.msrb.mxu3 %v15610_v57  ;;  %v18039_v57 = vld [vmem:[%s18929_s26 + $0x199c] sm:$0xf] }
 0x124   : > { %7357 = vmatpush.bf16.msrb.mxu0 %v12210_v2  ;;  %v18023_v2 = vld [vmem:[%s18929_s26 + $0x1914] sm:$0xf0]  ;;  %v15066_v8 = vor.u32 %v18039_v57, %v15063_v58  ;;  %v13437_v57 = vld [vmem:[%s18929_s26 + $0xce0] sm:$0xf]  ;;  %v19585_v58 = vpop.f32.mrf.mxu2 }
 0x125   : > { %7371 = vmatpush.bf16.msrb.mxu1 %v13298_v3  ;;  %v12890_v3 = vor.u32 %v17495_v51, %v12887_v52  ;;  %v14934_v13 = vor.u32 %v18023_v2, %v14933_v1  ;;  %v12486_v51 = vor.u32 %v17411_v39, %v12485_v36  ;;  %v12349_v52 = vld [vmem:[%s18929_s26 + $0x460] sm:$0xf]  ;;  %v18193_v2 = vld [vmem:[%s18929_s26 + $0x1e64] sm:$0xf0] }
 0x126   : > { %7385 = vmatpush.bf16.msrb.mxu2 %v14386_v5  ;;  %v13978_v5 = vor.u32 %v17767_v53, %v13975_v56  ;;  %v13574_v53 = vor.u32 %v17683_v43, %v13573_v41  ;;  %v17377_v56 = vld [vmem:[%s18929_s26 + $0x4e4] sm:$0xf0]  ;;  %v15613_v1 = vld [vmem:[%s18929_s26 + $0x1de0] sm:$0xf] }
 0x127   : > { %7399 = vmatpush.bf16.msrb.mxu3 %v15474_v12  ;;  %v13846_v12 = vor.u32 %v17751_v0, %v13845_v61  ;;  %v17649_v61 = vld [vmem:[%s18929_s26 + $0xd64] sm:$0xf0]  ;;  %v15614_v17 = vor.u32 %v18193_v2, %v15613_v1  ;;  %v12077_v36 = vld [vmem:[%s18929_s26 + $0x240] sm:$0xf]  ;;  %v17547_v2 = vld [vmem:[%s18929_s26 + $0xa34] sm:$0xf0] }
 0x128   : > { %7358 = vmatpush.bf16.msrb.mxu0 %v12074_v25  ;;  %v17989_v25 = vld [vmem:[%s18929_s26 + $0x1804] sm:$0xf0]  ;;  %v13438_v7 = vor.u32 %v17649_v61, %v13437_v57  ;;  %v13165_v41 = vld [vmem:[%s18929_s26 + $0xac0] sm:$0xf]  ;;  %v11941_v61 = vld [vmem:[%s18929_s26 + $0x130] sm:$0xf] }
 0x129   : > { %7372 = vmatpush.bf16.msrb.mxu1 %v13162_v28  ;;  %v15885_v28 = vld [vmem:[%s18929_s26 + $0x2000] sm:$0xf]  ;;  %v17921_v0 = vld [vmem:[%s18929_s26 + $0x15e4] sm:$0xf0] }
 0x12a   : > { %7386 = vmatpush.bf16.msrb.mxu2 %v14250_v29  ;;  %v18261_v29 = vld [vmem:[%s18929_s26 + $0x2084] sm:$0xf0] }
 0x12b   : > { %7400 = vmatpush.bf16.msrb.mxu3 %v15338_v35  ;;  %v14798_v35 = vor.u32 %v17989_v25, %v14797_v24  ;;  %v15886_v42 = vor.u32 %v18261_v29, %v15885_v28  ;;  %v15477_v25 = vld [vmem:[%s18929_s26 + $0x1cd0] sm:$0xf]  ;;  %v18159_v28 = vld [vmem:[%s18929_s26 + $0x1d54] sm:$0xf0]  ;;  %v17309_v39 = vld [vmem:[%s18929_s26 + $0x2c4] sm:$0xf0] }
 0x12c   : > { %7359 = vmatpush.bf16.msrb.mxu0 %v11938_v44  ;;  %v14661_v44 = vld [vmem:[%s18929_s26 + $0x1670] sm:$0xf]  ;;  %v15478_v43 = vor.u32 %v18159_v28, %v15477_v25  ;;  %v17785_v25 = vld [vmem:[%s18929_s26 + $0x11a4] sm:$0xf0]  ;;  %v15069_v28 = vld [vmem:[%s18929_s26 + $0x19a0] sm:$0xf] }
 0x12d   : > { %7373 = vmatpush.bf16.msrb.mxu1 %v13026_v49  ;;  %v15749_v49 = vld [vmem:[%s18929_s26 + $0x1ef0] sm:$0xf] }
 0x12e   : > { %7387 = vmatpush.bf16.msrb.mxu2 %v14114_v50  ;;  %v18227_v50 = vld [vmem:[%s18929_s26 + $0x1f74] sm:$0xf0] }
 0x12f   : > { %7401 = vmatpush.bf16.msrb.mxu3 %v15202_v55  ;;  %v14662_v55 = vor.u32 %v17955_v45, %v14661_v44  ;;  %v15750_v60 = vor.u32 %v18227_v50, %v15749_v49  ;;  %v17581_v44 = vld [vmem:[%s18929_s26 + $0xb44] sm:$0xf0]  ;;  %v14253_v45 = vld [vmem:[%s18929_s26 + $0x1340] sm:$0xf] }
 0x130   : > { %7360 = vmatpush.bf16.msrb.mxu0 %v11802_v63  ;;  %v14525_v63 = vld [vmem:[%s18929_s26 + $0x1560] sm:$0xf]  ;;  %v7138_v6 = vpop.f32.mrf.mxu0  ;;  %v17853_v49 = vld [vmem:[%s18929_s26 + $0x13c4] sm:$0xf0]  ;;  %v13166_v57 = vor.u32 %v17581_v44, %v13165_v41  ;;  %v18006_v41 = vld [vmem:[%s18929_s26 + $0x1894] sm:$0xf] }
 0x131   : > { %7374 = vmatpush.bf16.msrb.mxu1 %v12890_v3  ;;  %v19593_v3 = vpop.f32.mrf.mxu3  ;;  %v7139_v15 = vadd.f32 %v7138_v6, %v22328_v59  ;;  %v7152_v24 = vpop.f32.mrf.mxu1  ;;  %v17819_v6 = vld [vmem:[%s18929_s26 + $0x12b4] sm:$0xf0]  ;;  %v17837_v59 = vld [vmem:[%s18929_s26 + $0x134c] sm:$0xf] }
 0x132   : > { %7388 = vmatpush.bf16.msrb.mxu2 %v13978_v5  ;;  %v12350_v5 = vor.u32 %v17377_v56, %v12349_v52  ;;  %v18125_v52 = vld [vmem:[%s18929_s26 + $0x1c44] sm:$0xf0] }
 0x133   : > { %7402 = vmatpush.bf16.msrb.mxu3 %v15066_v8  ;;  %7361 = vmatmul.bf16.vlgmr.msrb.gmra.mxu0 %v19056_v16  ;;  %v14526_v8 = vor.u32 %v17921_v0, %v14525_v63  ;;  %v7153_v29 = vadd.f32 %v7152_v24, %v7139_v15  ;;  %v17275_v63 = vld [vmem:[%s18929_s26 + $0x1b4] sm:$0xf0]  ;;  %v13029_v0 = vld [vmem:[%s18929_s26 + $0x9b0] sm:$0xf] }
 0x134   : > { %7409 = vmatpush.bf16.msra.mxu0 %v12758_v9  ;;  %7375 = vmatmul.bf16.vlgmr.msrb.gmra.mxu1 %v19071_v23  ;;  %v12213_v9 = vld [vmem:[%s18929_s26 + $0x350] sm:$0xf]  ;;  %v13030_v15 = vor.u32 %v17547_v2, %v13029_v0  ;;  %v17972_v0 = vld [vmem:[%s18929_s26 + $0x1784] sm:$0xf] }
 0x135   : > { %7423 = vmatpush.bf16.msra.mxu1 %v13846_v12  ;;  %7389 = vmatmul.bf16.vlgmr.msrb.gmra.mxu2 %v19040_v4  ;;  %v17343_v12 = vld [vmem:[%s18929_s26 + $0x3d4] sm:$0xf0]  ;;  %v18244_v2 = vld [vmem:[%s18929_s26 + $0x2004] sm:$0xf] }
 0x136   : > { %7437 = vmatpush.bf16.msra.mxu2 %v14934_v13  ;;  %7403 = vmatmul.bf16.vlgmr.msrb.gmra.mxu3 %v19069_v22  ;;  %v13301_v13 = vld [vmem:[%s18929_s26 + $0xbd0] sm:$0xf] }
 0x137   : > { %7451 = vmatpush.bf16.msra.mxu3 %v16022_v19  ;;  %v14389_v19 = vld [vmem:[%s18929_s26 + $0x1450] sm:$0xf] }
 0x138   : > { %7410 = vmatpush.bf16.msra.mxu0 %v12622_v30  ;;  %v12214_v30 = vor.u32 %v17343_v12, %v12213_v9  ;;  %v11942_v9 = vor.u32 %v17275_v63, %v11941_v61  ;;  %v11805_v12 = vld [vmem:[%s18929_s26 + $0x20] sm:$0xf]  ;;  %v13711_v63 = vld [vmem:[%s18929_s26 + $0xf88] sm:$0xf0] }
 0x139   : > { %7424 = vmatpush.bf16.msra.mxu1 %v13710_v34  ;;  %v13302_v34 = vor.u32 %v17615_v18, %v13301_v13  ;;  %v17241_v13 = vld [vmem:[%s18929_s26 + $0xa4] sm:$0xf0]  ;;  %v12893_v18 = vld [vmem:[%s18929_s26 + $0x8a0] sm:$0xf] }
 0x13a   : > { %7438 = vmatpush.bf16.msra.mxu2 %v14798_v35  ;;  %v14390_v35 = vor.u32 %v17887_v20, %v14389_v19  ;;  %v17513_v19 = vld [vmem:[%s18929_s26 + $0x924] sm:$0xf0]  ;;  %v13981_v20 = vld [vmem:[%s18929_s26 + $0x1120] sm:$0xf] }
 0x13b   : > { %7452 = vmatpush.bf16.msra.mxu3 %v15886_v42  ;;  %v7166_v42 = vpop.f32.mrf.mxu2  ;;  %v13982_v44 = vor.u32 %v17785_v25, %v13981_v20  ;;  %v14663_v20 = vld [vmem:[%s18929_s26 + $0x16f8] sm:$0xf0]  ;;  %v18210_v25 = vld [vmem:[%s18929_s26 + $0x1ef4] sm:$0xf] }
 0x13c   : > { %7411 = vmatpush.bf16.msra.mxu0 %v12486_v51  ;;  %v7167_v50 = vadd.f32 %v7166_v42, %v7153_v29  ;;  %v15341_v51 = vld [vmem:[%s18929_s26 + $0x1bc0] sm:$0xf]  ;;  %v18057_v29 = vld [vmem:[%s18929_s26 + $0x1a24] sm:$0xf0]  ;;  %v14935_v42 = vld [vmem:[%s18929_s26 + $0x1918] sm:$0xf0] }
 0x13d   : > { %7425 = vmatpush.bf16.msra.mxu1 %v13574_v53  ;;  %v7180_v53 = vpop.f32.mrf.mxu3  ;;  %v15342_v1 = vor.u32 %v18125_v52, %v15341_v51 }
 0x13e   : > { %7439 = vmatpush.bf16.msra.mxu2 %v14662_v55  ;;  %v12078_v55 = vor.u32 %v17309_v39, %v12077_v36  ;;  %v19613_v56 = vadd.f32 %v7180_v53, %v7167_v50  ;;  %v11806_v36 = vor.u32 %v17241_v13, %v11805_v12  ;;  %v13847_v39 = vld [vmem:[%s18929_s26 + $0x1098] sm:$0xf0]  ;;  %v15070_v50 = vor.u32 %v18057_v29, %v15069_v28  ;;  %v17394_v12 = vld [vmem:[%s18929_s26 + $0x574] sm:$0xf] }
 0x13f   : > { %7453 = vmatpush.bf16.msra.mxu3 %v15750_v60  ;;  %v14254_v60 = vor.u32 %v17853_v49, %v14253_v45  ;;  %v18278_v45 = vld [vmem:[%s18929_s26 + $0x2114] sm:$0xf]  ;;  %v16023_v49 = vld [vmem:[%s18929_s26 + $0x2198] sm:$0xf0]  ;;  %v14938_v53 = vor.u32 %v18006_v41, %v14935_v42  ;;  %v19669_v42 = vld [vmem:[%s18938_s14] sm:$0xff] }
 0x140   : > { %7412 = vmatpush.bf16.msra.mxu0 %v12350_v5  ;;  %v14117_v5 = vld [vmem:[%s18929_s26 + $0x1230] sm:$0xf]  ;;  %v16026_v61 = vor.u32 %v18278_v45, %v16023_v49  ;;  %v12487_v13 = vld [vmem:[%s18929_s26 + $0x5f8] sm:$0xf0]  ;;  %v13439_v45 = vld [vmem:[%s18929_s26 + $0xd68] sm:$0xf0] }
 0x141   : > { %7426 = vmatpush.bf16.msra.mxu1 %v13438_v7  ;;  %v15205_v7 = vld [vmem:[%s18929_s26 + $0x1ab0] sm:$0xf]  ;;  %v15751_v28 = vld [vmem:[%s18929_s26 + $0x1f78] sm:$0xf0]  ;;  %v12490_v29 = vor.u32 %v17394_v12, %v12487_v13  ;;  %v17904_v49 = vld [vmem:[%s18929_s26 + $0x1564] sm:$0xf] }
 0x142   : > { %7440 = vmatpush.bf16.msra.mxu2 %v14526_v8  ;;  %v18091_v8 = vld [vmem:[%s18929_s26 + $0x1b34] sm:$0xf0]  ;;  %v18142_v13 = vld [vmem:[%s18929_s26 + $0x1cd4] sm:$0xf] }
 0x143   : > { %7454 = vmatpush.bf16.msra.mxu3 %v15614_v17  ;;  %v14118_v17 = vor.u32 %v17819_v6, %v14117_v5  ;;  %v15206_v24 = vor.u32 %v18091_v8, %v15205_v7  ;;  %v15887_v5 = vld [vmem:[%s18929_s26 + $0x2088] sm:$0xf0]  ;;  %v19647_v7 = vpop.f32.mrf.mxu0  ;;  %v19666_v41 = vpop.f32.mrf.mxu2 }
 0x144   : > { %7413 = vmatpush.bf16.msra.mxu0 %v12214_v30  ;;  %v17462_v30 = vld [vmem:[%s18929_s26 + $0x794] sm:$0xf] }
 0x145   : > { %7427 = vmatpush.bf16.msra.mxu1 %v13302_v34  ;;  %v12759_v34 = vld [vmem:[%s18929_s26 + $0x818] sm:$0xf0] }
 0x146   : > { %7441 = vmatpush.bf16.msra.mxu2 %v14390_v35  ;;  %v17734_v35 = vld [vmem:[%s18929_s26 + $0x1014] sm:$0xf]  ;;  %v12762_v51 = vor.u32 %v17462_v30, %v12759_v34  ;;  %v17360_v30 = vld [vmem:[%s18929_s26 + $0x464] sm:$0xf] }
 0x147   : > { %7455 = vmatpush.bf16.msra.mxu3 %v15478_v43  ;;  %v12894_v43 = vor.u32 %v17513_v19, %v12893_v18  ;;  %v13850_v52 = vor.u32 %v17734_v35, %v13847_v39  ;;  %v13575_v18 = vld [vmem:[%s18929_s26 + $0xe78] sm:$0xf0]  ;;  %v17938_v19 = vld [vmem:[%s18929_s26 + $0x1674] sm:$0xf]  ;;  %v17632_v39 = vld [vmem:[%s18929_s26 + $0xce4] sm:$0xf] }
 0x148   : > { %7414 = vmatpush.bf16.msra.mxu0 %v12078_v55  ;;  %v17428_v55 = vld [vmem:[%s18929_s26 + $0x684] sm:$0xf]  ;;  %v14666_v35 = vor.u32 %v17938_v19, %v14663_v20 }
 0x149   : > { %7428 = vmatpush.bf16.msra.mxu1 %v13166_v57  ;;  %v12623_v57 = vld [vmem:[%s18929_s26 + $0x708] sm:$0xf0] }
 0x14a   : > { %7442 = vmatpush.bf16.msra.mxu2 %v14254_v60  ;;  %v17700_v60 = vld [vmem:[%s18929_s26 + $0xf04] sm:$0xf]  ;;  %v12626_v6 = vor.u32 %v17428_v55, %v12623_v57 }
 0x14b   : > { %7456 = vmatpush.bf16.msra.mxu3 %v15342_v1  ;;  %v14799_v1 = vld [vmem:[%s18929_s26 + $0x1808] sm:$0xf0]  ;;  %v13714_v8 = vor.u32 %v17700_v60, %v13711_v63  ;;  %v13442_v60 = vor.u32 %v17632_v39, %v13439_v45  ;;  %v17326_v63 = vld [vmem:[%s18929_s26 + $0x354] sm:$0xf]  ;;  %v18108_v45 = vld [vmem:[%s18929_s26 + $0x1bc4] sm:$0xf] }
 0x14c   : > { %7415 = vmatpush.bf16.msra.mxu0 %v11942_v9  ;;  %v14802_v9 = vor.u32 %v17972_v0, %v14799_v1  ;;  %v12215_v0 = vld [vmem:[%s18929_s26 + $0x3d8] sm:$0xf0]  ;;  %v17598_v1 = vld [vmem:[%s18929_s26 + $0xbd4] sm:$0xf]  ;;  %v14255_v39 = vld [vmem:[%s18929_s26 + $0x13c8] sm:$0xf0] }
 0x14d   : > { %7429 = vmatpush.bf16.msra.mxu1 %v13030_v15  ;;  %v17666_v15 = vld [vmem:[%s18929_s26 + $0xdf4] sm:$0xf] }
 0x14e   : > { %7443 = vmatpush.bf16.msra.mxu2 %v14118_v17  ;;  %v15890_v17 = vor.u32 %v18244_v2, %v15887_v5  ;;  %v13578_v34 = vor.u32 %v17666_v15, %v13575_v18  ;;  %v15479_v15 = vld [vmem:[%s18929_s26 + $0x1d58] sm:$0xf0]  ;;  %v12218_v18 = vor.u32 %v17326_v63, %v12215_v0  ;;  %v17530_v63 = vld [vmem:[%s18929_s26 + $0x9b4] sm:$0xf] }
 0x14f   : > { %7457 = vmatpush.bf16.msra.mxu3 %v15206_v24  ;;  %v19655_v24 = vpop.f32.mrf.mxu1 }
 0x150   : > { %7416 = vmatpush.bf16.msra.mxu0 %v11806_v36  ;;  %v12351_v36 = vld [vmem:[%s18929_s26 + $0x4e8] sm:$0xf0]  ;;  %v7194_v57 = vpop.f32.mrf.mxu0 }
 0x151   : > { %7430 = vmatpush.bf16.msra.mxu1 %v12894_v43  ;;  %v22327_v43 = vperm.slane %v19669_v42, 4  ;;  %v12354_v55 = vor.u32 %v17360_v30, %v12351_v36  ;;  %v17836_v36 = vld [vmem:[%s18929_s26 + $0x1344] sm:$0xf] }
 0x152   : > { %7444 = vmatpush.bf16.msra.mxu2 %v13982_v44  ;;  %v15754_v44 = vor.u32 %v18210_v25, %v15751_v28  ;;  %v17292_v25 = vld [vmem:[%s18929_s26 + $0x244] sm:$0xf]  ;;  %v12079_v28 = vld [vmem:[%s18929_s26 + $0x2c8] sm:$0xf0] }
 0x153   : > { %7458 = vmatpush.bf16.msra.mxu3 %v15070_v50  ;;  %7417 = vmatmul.bf16.vlgmr.msra.gmra.mxu0 %v19056_v16  ;;  %v14527_v50 = vld [vmem:[%s18929_s26 + $0x15e8] sm:$0xf0]  ;;  %v7195_v2 = vadd.f32 %v7194_v57, %v22327_v43  ;;  %v14258_v57 = vor.u32 %v17836_v36, %v14255_v39  ;;  %v13853_v36 = vld [vmem:[%s18929_s26 + $0x1018] sm:$0xf]  ;;  %v13175_v43 = vld [vmem:[%s18929_s26 + $0xb50] sm:$0xf0] }
 0x154   : > { %7465 = vmatpush.bf16.msrb.mxu0 %v12762_v51  ;;  %7431 = vmatmul.bf16.vlgmr.msra.gmra.mxu1 %v19071_v23  ;;  %v18176_v51 = vld [vmem:[%s18929_s26 + $0x1de4] sm:$0xf] }
 0x155   : > { %7479 = vmatpush.bf16.msrb.mxu1 %v13850_v52  ;;  %7445 = vmatmul.bf16.vlgmr.msra.gmra.mxu2 %v19040_v4  ;;  %v15615_v52 = vld [vmem:[%s18929_s26 + $0x1e68] sm:$0xf0] }
 0x156   : > { %7493 = vmatpush.bf16.msrb.mxu2 %v14938_v53  ;;  %7459 = vmatmul.bf16.vlgmr.msra.gmra.mxu3 %v19069_v22  ;;  %v19677_v53 = vpop.f32.mrf.mxu3  ;;  %v15618_v5 = vor.u32 %v18176_v51, %v15615_v52  ;;  %v12082_v51 = vor.u32 %v17292_v25, %v12079_v28  ;;  %v13983_v28 = vld [vmem:[%s18929_s26 + $0x11a8] sm:$0xf0] }
 0x157   : > { %7507 = vmatpush.bf16.msrb.mxu3 %v16026_v61  ;;  %v14530_v61 = vor.u32 %v17904_v49, %v14527_v50  ;;  %v7208_v12 = vpop.f32.mrf.mxu1  ;;  %v15343_v49 = vld [vmem:[%s18929_s26 + $0x1c48] sm:$0xf0] }
 0x158   : > { %7466 = vmatpush.bf16.msrb.mxu0 %v12626_v6  ;;  %v13303_v6 = vld [vmem:[%s18929_s26 + $0xc58] sm:$0xf0]  ;;  %v7222_v30 = vpop.f32.mrf.mxu2  ;;  %v15346_v0 = vor.u32 %v18108_v45, %v15343_v49  ;;  %v14941_v45 = vld [vmem:[%s18929_s26 + $0x1898] sm:$0xf]  ;;  %v18024_v49 = vld [vmem:[%s18929_s26 + $0x191c] sm:$0xf0] }
 0x159   : > { %7480 = vmatpush.bf16.msrb.mxu1 %v13714_v8  ;;  %v17870_v8 = vld [vmem:[%s18929_s26 + $0x1454] sm:$0xf]  ;;  %v13306_v19 = vor.u32 %v17598_v1, %v13303_v6  ;;  %v13031_v1 = vld [vmem:[%s18929_s26 + $0xa38] sm:$0xf0] }
 0x15a   : > { %7494 = vmatpush.bf16.msrb.mxu2 %v14802_v9  ;;  %v14391_v9 = vld [vmem:[%s18929_s26 + $0x14d8] sm:$0xf0]  ;;  %v18074_v6 = vld [vmem:[%s18929_s26 + $0x1ab4] sm:$0xf] }
 0x15b   : > { %7508 = vmatpush.bf16.msrb.mxu3 %v15890_v17  ;;  %v7209_v17 = vadd.f32 %v7208_v12, %v7195_v2  ;;  %v14394_v20 = vor.u32 %v17870_v8, %v14391_v9  ;;  %v17802_v2 = vld [vmem:[%s18929_s26 + $0x1234] sm:$0xf]  ;;  %v15207_v8 = vld [vmem:[%s18929_s26 + $0x1b38] sm:$0xf0]  ;;  %v17224_v12 = vld [vmem:[%s18929_s26 + $0x24] sm:$0xf] }
 0x15c   : > { %7467 = vmatpush.bf16.msrb.mxu0 %v12490_v29  ;;  %v17564_v29 = vld [vmem:[%s18929_s26 + $0xac4] sm:$0xf]  ;;  %v15210_v25 = vor.u32 %v18074_v6, %v15207_v8  ;;  %v17718_v8 = vld [vmem:[%s18929_s26 + $0xf8c] sm:$0xf0] }
 0x15d   : > { %7481 = vmatpush.bf16.msrb.mxu1 %v13578_v34  ;;  %v15482_v34 = vor.u32 %v18142_v13, %v15479_v15  ;;  %v11807_v13 = vld [vmem:[%s18929_s26 + $0xa8] sm:$0xf0]  ;;  %v13034_v15 = vor.u32 %v17530_v63, %v13031_v1  ;;  %v12629_v1 = vld [vmem:[%s18929_s26 + $0x688] sm:$0xf] }
 0x15e   : > { %7495 = vmatpush.bf16.msrb.mxu2 %v14666_v35  ;;  %v13167_v35 = vld [vmem:[%s18929_s26 + $0xb48] sm:$0xf0]  ;;  %v7236_v50 = vpop.f32.mrf.mxu3  ;;  %v11810_v39 = vor.u32 %v17224_v12, %v11807_v13  ;;  %v17990_v12 = vld [vmem:[%s18929_s26 + $0x180c] sm:$0xf0]  ;;  %v15893_v13 = vld [vmem:[%s18929_s26 + $0x2008] sm:$0xf] }
 0x15f   : > { %7509 = vmatpush.bf16.msrb.mxu3 %v15754_v44  ;;  %v7223_v44 = vadd.f32 %v7222_v30, %v7209_v17  ;;  %v15071_v30 = vld [vmem:[%s18929_s26 + $0x1a28] sm:$0xf0] }
 0x160   : > { %7468 = vmatpush.bf16.msrb.mxu0 %v12354_v55  ;;  %v13170_v55 = vor.u32 %v17564_v29, %v13167_v35  ;;  %v18040_v29 = vld [vmem:[%s18929_s26 + $0x19a4] sm:$0xf]  ;;  %v17480_v35 = vld [vmem:[%s18929_s26 + $0x81c] sm:$0xf0] }
 0x161   : > { %7482 = vmatpush.bf16.msrb.mxu1 %v13442_v60  ;;  %v19697_v52 = vadd.f32 %v7236_v50, %v7223_v44  ;;  %v17258_v60 = vld [vmem:[%s18929_s26 + $0x134] sm:$0xf]  ;;  %v17752_v44 = vld [vmem:[%s18929_s26 + $0x109c] sm:$0xf0] }
 0x162   : > { %7496 = vmatpush.bf16.msrb.mxu2 %v14530_v61  ;;  %v11943_v61 = vld [vmem:[%s18929_s26 + $0x1b8] sm:$0xf0]  ;;  %v13854_v63 = vor.u32 %v17752_v44, %v13853_v36  ;;  %v17956_v36 = vld [vmem:[%s18929_s26 + $0x16fc] sm:$0xf0]  ;;  %v15757_v44 = vld [vmem:[%s18929_s26 + $0x1ef8] sm:$0xf] }
 0x163   : > { %7510 = vmatpush.bf16.msrb.mxu3 %v15618_v5  ;;  %22368 = vst [vmem:[#allocation12_spill] sm:$0xff] %v19697_v52  ;;  %v14119_v5 = vld [vmem:[%s18929_s26 + $0x12b8] sm:$0xf0]  ;;  %v11946_v9 = vor.u32 %v17258_v60, %v11943_v61  ;;  %v15074_v60 = vor.u32 %v18040_v29, %v15071_v30  ;;  %v13581_v29 = vld [vmem:[%s18929_s26 + $0xdf8] sm:$0xf] }
 0x164   : > { %7469 = vmatpush.bf16.msrb.mxu0 %v12218_v18  ;;  %v14122_v17 = vor.u32 %v17802_v2, %v14119_v5  ;;  %v17496_v18 = vld [vmem:[%s18929_s26 + $0x8a4] sm:$0xf]  ;;  %v17446_v2 = vld [vmem:[%s18929_s26 + $0x70c] sm:$0xf0]  ;;  %v13717_v5 = vld [vmem:[%s18929_s26 + $0xf08] sm:$0xf] }
 0x165   : > { %7483 = vmatpush.bf16.msrb.mxu1 %v13306_v19  ;;  %v12895_v19 = vld [vmem:[%s18929_s26 + $0x928] sm:$0xf0]  ;;  %v12639_v52 = vld [vmem:[%s18929_s26 + $0x718] sm:$0xf0] }
 0x166   : > { %7497 = vmatpush.bf16.msrb.mxu2 %v14394_v20  ;;  %v17768_v20 = vld [vmem:[%s18929_s26 + $0x1124] sm:$0xf]  ;;  %v12898_v50 = vor.u32 %v17496_v18, %v12895_v19  ;;  %v19731_v18 = vpop.f32.mrf.mxu0  ;;  %v13718_v19 = vor.u32 %v17718_v8, %v13717_v5  ;;  %v17922_v5 = vld [vmem:[%s18929_s26 + $0x15ec] sm:$0xf0] }
 0x167   : > { %7511 = vmatpush.bf16.msrb.mxu3 %v15482_v34  ;;  %v12765_v34 = vld [vmem:[%s18929_s26 + $0x798] sm:$0xf]  ;;  %v18194_v8 = vld [vmem:[%s18929_s26 + $0x1e6c] sm:$0xf0] }
 0x168   : > { %7470 = vmatpush.bf16.msrb.mxu0 %v12082_v51  ;;  %v13986_v51 = vor.u32 %v17768_v20, %v13983_v28  ;;  %v12766_v61 = vor.u32 %v17480_v35, %v12765_v34  ;;  %v17412_v28 = vld [vmem:[%s18929_s26 + $0x5fc] sm:$0xf0]  ;;  %v14669_v35 = vld [vmem:[%s18929_s26 + $0x1678] sm:$0xf] }
 0x169   : > { %7484 = vmatpush.bf16.msrb.mxu1 %v13170_v55  ;;  %v16029_v55 = vld [vmem:[%s18929_s26 + $0x2118] sm:$0xf]  ;;  %v17684_v34 = vld [vmem:[%s18929_s26 + $0xe7c] sm:$0xf0] }
 0x16a   : > { %7498 = vmatpush.bf16.msrb.mxu2 %v14258_v57  ;;  %v18296_v57 = vld [vmem:[%s18929_s26 + $0x219c] sm:$0xf0] }
 0x16b   : > { %7512 = vmatpush.bf16.msrb.mxu3 %v15346_v0  ;;  %v14942_v0 = vor.u32 %v18024_v49, %v14941_v45  ;;  %v16030_v6 = vor.u32 %v18296_v57, %v16029_v55  ;;  %v18228_v45 = vld [vmem:[%s18929_s26 + $0x1f7c] sm:$0xf0]  ;;  %v14670_v55 = vor.u32 %v17956_v36, %v14669_v35  ;;  %v17378_v57 = vld [vmem:[%s18929_s26 + $0x4ec] sm:$0xf0] }
 0x16c   : > { %7471 = vmatpush.bf16.msrb.mxu0 %v11946_v9  ;;  %v14805_v9 = vld [vmem:[%s18929_s26 + $0x1788] sm:$0xf]  ;;  %v17888_v35 = vld [vmem:[%s18929_s26 + $0x14dc] sm:$0xf0] }
 0x16d   : > { %7485 = vmatpush.bf16.msrb.mxu1 %v13034_v15  ;;  %v18262_v15 = vld [vmem:[%s18929_s26 + $0x208c] sm:$0xf0]  ;;  %v14806_v20 = vor.u32 %v17990_v12, %v14805_v9  ;;  %v19758_v9 = vpop.f32.mrf.mxu3 }
 0x16e   : > { %7499 = vmatpush.bf16.msrb.mxu2 %v14122_v17  ;;  %v12630_v17 = vor.u32 %v17446_v2, %v12629_v1  ;;  %v15894_v30 = vor.u32 %v18262_v15, %v15893_v13  ;;  %v17650_v1 = vld [vmem:[%s18929_s26 + $0xd6c] sm:$0xf0]  ;;  %v14533_v2 = vld [vmem:[%s18929_s26 + $0x1568] sm:$0xf]  ;;  %22369 = vst [vmem:[#allocation13_spill] sm:$0xff] %v19758_v9 }
 0x16f   : > { %7513 = vmatpush.bf16.msrb.mxu3 %v15210_v25  ;;  %v12493_v25 = vld [vmem:[%s18929_s26 + $0x578] sm:$0xf]  ;;  %v17838_v9 = vld [vmem:[%s18929_s26 + $0x1354] sm:$0xf] }
 0x170   : > { %7472 = vmatpush.bf16.msrb.mxu0 %v11810_v39  ;;  %v19739_v39 = vpop.f32.mrf.mxu1  ;;  %v12494_v49 = vor.u32 %v17412_v28, %v12493_v25  ;;  %v7250_v13 = vpop.f32.mrf.mxu0  ;;  %v13309_v25 = vld [vmem:[%s18929_s26 + $0xbd8] sm:$0xf] }
 0x171   : > { %7486 = vmatpush.bf16.msrb.mxu1 %v12898_v50  ;;  %v12357_v50 = vld [vmem:[%s18929_s26 + $0x468] sm:$0xf] }
 0x172   : > { %7500 = vmatpush.bf16.msrb.mxu2 %v13986_v51  ;;  %v13582_v51 = vor.u32 %v17684_v34, %v13581_v29  ;;  %v12358_v12 = vor.u32 %v17378_v57, %v12357_v50  ;;  %v14397_v34 = vld [vmem:[%s18929_s26 + $0x1458] sm:$0xf]  ;;  %v12085_v57 = vld [vmem:[%s18929_s26 + $0x248] sm:$0xf] }
 0x173   : > { %7514 = vmatpush.bf16.msrb.mxu3 %v15074_v60  ;;  %7473 = vmatmul.bf16.vlgmr.msrb.gmra.mxu0 %v19056_v16  ;;  %v13445_v60 = vld [vmem:[%s18929_s26 + $0xce8] sm:$0xf] }
 0x174   : > { %7521 = vmatpush.bf16.msra.mxu0 %v12766_v61  ;;  %7487 = vmatmul.bf16.vlgmr.msrb.gmra.mxu1 %v19071_v23  ;;  %v19750_v61 = vpop.f32.mrf.mxu2  ;;  %v13446_v15 = vor.u32 %v17650_v1, %v13445_v60  ;;  %v17310_v60 = vld [vmem:[%s18929_s26 + $0x2cc] sm:$0xf0] }
 0x175   : > { %7535 = vmatpush.bf16.msra.mxu1 %v13854_v63  ;;  %7501 = vmatmul.bf16.vlgmr.msrb.gmra.mxu2 %v19040_v4  ;;  %v22325_v63 = vperm.slane %v19669_v42, 5 }
 0x176   : > { %7549 = vmatpush.bf16.msra.mxu2 %v14942_v0  ;;  %7515 = vmatmul.bf16.vlgmr.msrb.gmra.mxu3 %v19069_v22  ;;  %v15758_v0 = vor.u32 %v18228_v45, %v15757_v44  ;;  %v15485_v44 = vld [vmem:[%s18929_s26 + $0x1cd8] sm:$0xf]  ;;  %v18160_v45 = vld [vmem:[%s18929_s26 + $0x1d5c] sm:$0xf0] }
 0x177   : > { %7563 = vmatpush.bf16.msra.mxu3 %v16030_v6  ;;  %v15621_v6 = vld [vmem:[%s18929_s26 + $0x1de8] sm:$0xf]  ;;  %v7251_v28 = vadd.f32 %v7250_v13, %v22325_v63  ;;  %v17701_v63 = vld [vmem:[%s18929_s26 + $0xf0c] sm:$0xf] }
 0x178   : > { %7522 = vmatpush.bf16.msra.mxu0 %v12630_v17  ;;  %v14534_v17 = vor.u32 %v17922_v5, %v14533_v2  ;;  %v15622_v29 = vor.u32 %v18194_v8, %v15621_v6  ;;  %v7264_v36 = vpop.f32.mrf.mxu1  ;;  %v15486_v2 = vor.u32 %v18160_v45, %v15485_v44  ;;  %v17582_v5 = vld [vmem:[%s18929_s26 + $0xb4c] sm:$0xf0]  ;;  %v14261_v6 = vld [vmem:[%s18929_s26 + $0x1348] sm:$0xf]  ;;  %v14125_v44 = vld [vmem:[%s18929_s26 + $0x1238] sm:$0xf] }
 0x179   : > { %7536 = vmatpush.bf16.msra.mxu1 %v13718_v19  ;;  %v12221_v19 = vld [vmem:[%s18929_s26 + $0x358] sm:$0xf]  ;;  %v17854_v8 = vld [vmem:[%s18929_s26 + $0x13cc] sm:$0xf0]  ;;  %v15349_v13 = vld [vmem:[%s18929_s26 + $0x1bc8] sm:$0xf] }
 0x17a   : > { %7550 = vmatpush.bf16.msra.mxu2 %v14806_v20  ;;  %v17344_v20 = vld [vmem:[%s18929_s26 + $0x3dc] sm:$0xf0] }
 0x17b   : > { %7564 = vmatpush.bf16.msra.mxu3 %v15894_v30  ;;  %v17616_v30 = vld [vmem:[%s18929_s26 + $0xc5c] sm:$0xf0]  ;;  %v12222_v50 = vor.u32 %v17344_v20, %v12221_v19  ;;  %v12086_v19 = vor.u32 %v17310_v60, %v12085_v57  ;;  %v17242_v57 = vld [vmem:[%s18929_s26 + $0xac] sm:$0xf0] }
 0x17c   : > { %7523 = vmatpush.bf16.msra.mxu0 %v12494_v49  ;;  %v7265_v49 = vadd.f32 %v7264_v36, %v7251_v28  ;;  %v7278_v1 = vpop.f32.mrf.mxu2  ;;  %v14262_v28 = vor.u32 %v17854_v8, %v14261_v6  ;;  %v17548_v36 = vld [vmem:[%s18929_s26 + $0xa3c] sm:$0xf0]  ;;  %v17786_v8 = vld [vmem:[%s18929_s26 + $0x11ac] sm:$0xf0] }
 0x17d   : > { %7537 = vmatpush.bf16.msra.mxu1 %v13582_v51  ;;  %v13310_v51 = vor.u32 %v17616_v30, %v13309_v25  ;;  %v17276_v30 = vld [vmem:[%s18929_s26 + $0x1bc] sm:$0xf0] }
 0x17e   : > { %7551 = vmatpush.bf16.msra.mxu2 %v14670_v55  ;;  %v14398_v55 = vor.u32 %v17888_v35, %v14397_v34  ;;  %v13037_v34 = vld [vmem:[%s18929_s26 + $0x9b8] sm:$0xf]  ;;  %v17820_v45 = vld [vmem:[%s18929_s26 + $0x12bc] sm:$0xf0] }
 0x17f   : > { %7565 = vmatpush.bf16.msra.mxu3 %v15758_v0  ;;  %v13173_v0 = vld [vmem:[%s18929_s26 + $0xac8] sm:$0xf]  ;;  %v13038_v60 = vor.u32 %v17548_v36, %v13037_v34  ;;  %v18279_v36 = vld [vmem:[%s18929_s26 + $0x211c] sm:$0xf] }
 0x180   : > { %7524 = vmatpush.bf16.msra.mxu0 %v12358_v12  ;;  %v7279_v12 = vadd.f32 %v7278_v1, %v7265_v49  ;;  %v13174_v25 = vor.u32 %v17582_v5, %v13173_v0  ;;  %v15213_v49 = vld [vmem:[%s18929_s26 + $0x1ab8] sm:$0xf]  ;;  %v14126_v0 = vor.u32 %v17820_v45, %v14125_v44  ;;  %v12901_v1 = vld [vmem:[%s18929_s26 + $0x8a8] sm:$0xf]  ;;  %v16031_v44 = vld [vmem:[%s18929_s26 + $0x21a0] sm:$0xf0] }
 0x181   : > { %7538 = vmatpush.bf16.msra.mxu1 %v13446_v15  ;;  %v18126_v15 = vld [vmem:[%s18929_s26 + $0x1c4c] sm:$0xf0]  ;;  %v13989_v5 = vld [vmem:[%s18929_s26 + $0x1128] sm:$0xf] }
 0x182   : > { %7552 = vmatpush.bf16.msra.mxu2 %v14534_v17  ;;  %v7292_v17 = vpop.f32.mrf.mxu3  ;;  %v15350_v35 = vor.u32 %v18126_v15, %v15349_v13  ;;  %v18058_v13 = vld [vmem:[%s18929_s26 + $0x1a2c] sm:$0xf0]  ;;  %v17463_v15 = vld [vmem:[%s18929_s26 + $0x79c] sm:$0xf] }
 0x183   : > { %7566 = vmatpush.bf16.msra.mxu3 %v15622_v29  ;;  %v19778_v20 = vadd.f32 %v7292_v17, %v7279_v12  ;;  %v11949_v29 = vld [vmem:[%s18929_s26 + $0x138] sm:$0xf]  ;;  %v15077_v12 = vld [vmem:[%s18929_s26 + $0x19a8] sm:$0xf]  ;;  %v12767_v17 = vld [vmem:[%s18929_s26 + $0x820] sm:$0xf0] }
 0x184   : > { %7525 = vmatpush.bf16.msra.mxu0 %v12222_v50  ;;  %v18092_v50 = vld [vmem:[%s18929_s26 + $0x1b3c] sm:$0xf0]  ;;  %v15078_v45 = vor.u32 %v18058_v13, %v15077_v12  ;;  %v19812_v12 = vpop.f32.mrf.mxu0 }
 0x185   : > { %22370 = vst [vmem:[#allocation14_spill] sm:$0xff] %v19778_v20  ;;  %7539 = vmatpush.bf16.msra.mxu1 %v13310_v51  ;;  %v11950_v51 = vor.u32 %v17276_v30, %v11949_v29  ;;  %v15214_v6 = vor.u32 %v18092_v50, %v15213_v49  ;;  %v18007_v29 = vld [vmem:[%s18929_s26 + $0x189c] sm:$0xf]  ;;  %v14943_v30 = vld [vmem:[%s18929_s26 + $0x1920] sm:$0xf0]  ;;  %v12770_v49 = vor.u32 %v17463_v15, %v12767_v17 }
 0x186   : > { %7553 = vmatpush.bf16.msra.mxu2 %v14398_v55  ;;  %v11813_v55 = vld [vmem:[%s18929_s26 + $0x28] sm:$0xf]  ;;  %v17395_v17 = vld [vmem:[%s18929_s26 + $0x57c] sm:$0xf]  ;;  %v14269_v20 = vld [vmem:[%s18929_s26 + $0x1350] sm:$0xf] }
 0x187   : > { %7567 = vmatpush.bf16.msra.mxu3 %v15486_v2  ;;  %v17514_v2 = vld [vmem:[%s18929_s26 + $0x92c] sm:$0xf0] }
 0x188   : > { %7526 = vmatpush.bf16.msra.mxu0 %v12086_v19  ;;  %v17735_v19 = vld [vmem:[%s18929_s26 + $0x101c] sm:$0xf]  ;;  %v12902_v34 = vor.u32 %v17514_v2, %v12901_v1  ;;  %v17973_v1 = vld [vmem:[%s18929_s26 + $0x178c] sm:$0xf]  ;;  %v14807_v2 = vld [vmem:[%s18929_s26 + $0x1810] sm:$0xf0] }
 0x189   : > { %7540 = vmatpush.bf16.msra.mxu1 %v13174_v25  ;;  %v11814_v25 = vor.u32 %v17242_v57, %v11813_v55  ;;  %v17429_v55 = vld [vmem:[%s18929_s26 + $0x68c] sm:$0xf]  ;;  %v12631_v57 = vld [vmem:[%s18929_s26 + $0x710] sm:$0xf0]  ;;  %v14810_v15 = vor.u32 %v17973_v1, %v14807_v2 }
 0x18a   : > { %7554 = vmatpush.bf16.msra.mxu2 %v14262_v28  ;;  %v13855_v28 = vld [vmem:[%s18929_s26 + $0x10a0] sm:$0xf0]  ;;  %v13447_v1 = vld [vmem:[%s18929_s26 + $0xd70] sm:$0xf0]  ;;  %v17905_v2 = vld [vmem:[%s18929_s26 + $0x156c] sm:$0xf] }
 0x18b   : > { %7568 = vmatpush.bf16.msra.mxu3 %v15350_v35  ;;  %v13990_v35 = vor.u32 %v17786_v8, %v13989_v5  ;;  %v13858_v50 = vor.u32 %v17735_v19, %v13855_v28  ;;  %v18245_v5 = vld [vmem:[%s18929_s26 + $0x200c] sm:$0xf]  ;;  %v12634_v8 = vor.u32 %v17429_v55, %v12631_v57  ;;  %v12495_v19 = vld [vmem:[%s18929_s26 + $0x600] sm:$0xf0]  ;;  %v19831_v57 = vpop.f32.mrf.mxu2 }
 0x18c   : > { %7527 = vmatpush.bf16.msra.mxu0 %v11950_v51  ;;  %v14946_v51 = vor.u32 %v18007_v29, %v14943_v30  ;;  %v13583_v29 = vld [vmem:[%s18929_s26 + $0xe80] sm:$0xf0]  ;;  %v17939_v30 = vld [vmem:[%s18929_s26 + $0x167c] sm:$0xf]  ;;  %v17633_v55 = vld [vmem:[%s18929_s26 + $0xcec] sm:$0xf] }
 0x18d   : > { %7541 = vmatpush.bf16.msra.mxu1 %v13038_v60  ;;  %v16034_v60 = vor.u32 %v18279_v36, %v16031_v44  ;;  %v18211_v36 = vld [vmem:[%s18929_s26 + $0x1efc] sm:$0xf]  ;;  %v15759_v44 = vld [vmem:[%s18929_s26 + $0x1f80] sm:$0xf0] }
 0x18e   : > { %7555 = vmatpush.bf16.msra.mxu2 %v14126_v0  ;;  %v13719_v0 = vld [vmem:[%s18929_s26 + $0xf90] sm:$0xf0] }
 0x18f   : > { %7569 = vmatpush.bf16.msra.mxu3 %v15214_v6  ;;  %v15895_v6 = vld [vmem:[%s18929_s26 + $0x2090] sm:$0xf0]  ;;  %v13722_v13 = vor.u32 %v17701_v63, %v13719_v0  ;;  %v12498_v63 = vor.u32 %v17395_v17, %v12495_v19  ;;  %v15762_v0 = vor.u32 %v18211_v36, %v15759_v44  ;;  %v13450_v19 = vor.u32 %v17633_v55, %v13447_v1  ;;  %v13311_v44 = vld [vmem:[%s18929_s26 + $0xc60] sm:$0xf0] }
 0x190   : > { %7528 = vmatpush.bf16.msra.mxu0 %v11814_v25  ;;  %v17667_v25 = vld [vmem:[%s18929_s26 + $0xdfc] sm:$0xf]  ;;  %v15898_v28 = vor.u32 %v18245_v5, %v15895_v6  ;;  %v14535_v5 = vld [vmem:[%s18929_s26 + $0x15f0] sm:$0xf0]  ;;  %v18177_v6 = vld [vmem:[%s18929_s26 + $0x1dec] sm:$0xf]  ;;  %v7306_v17 = vpop.f32.mrf.mxu0 }
 0x191   : > { %7542 = vmatpush.bf16.msra.mxu1 %v12902_v34  ;;  %v14671_v34 = vld [vmem:[%s18929_s26 + $0x1700] sm:$0xf0] }
 0x192   : > { %7556 = vmatpush.bf16.msra.mxu2 %v13990_v35  ;;  %v19820_v35 = vpop.f32.mrf.mxu1 }
 0x193   : > { %7570 = vmatpush.bf16.msra.mxu3 %v15078_v45  ;;  %7529 = vmatmul.bf16.vlgmr.msra.gmra.mxu0 %v19056_v16  ;;  %v17361_v45 = vld [vmem:[%s18929_s26 + $0x46c] sm:$0xf] }
 0x194   : > { %7577 = vmatpush.bf16.msrb.mxu0 %v12770_v49  ;;  %7543 = vmatmul.bf16.vlgmr.msra.gmra.mxu1 %v19071_v23  ;;  %v13586_v49 = vor.u32 %v17667_v25, %v13583_v29  ;;  %v14538_v25 = vor.u32 %v17905_v2, %v14535_v5  ;;  %v12223_v29 = vld [vmem:[%s18929_s26 + $0x3e0] sm:$0xf0]  ;;  %v17293_v5 = vld [vmem:[%s18929_s26 + $0x24c] sm:$0xf] }
 0x195   : > { %7591 = vmatpush.bf16.msrb.mxu1 %v13858_v50  ;;  %7557 = vmatmul.bf16.vlgmr.msra.gmra.mxu2 %v19040_v4  ;;  %v14674_v50 = vor.u32 %v17939_v30, %v14671_v34  ;;  %v17599_v30 = vld [vmem:[%s18929_s26 + $0xbdc] sm:$0xf] }
 0x196   : > { %7605 = vmatpush.bf16.msrb.mxu2 %v14946_v51  ;;  %7571 = vmatmul.bf16.vlgmr.msra.gmra.mxu3 %v19069_v22  ;;  %v12359_v51 = vld [vmem:[%s18929_s26 + $0x4f0] sm:$0xf0] }
 0x197   : > { %7619 = vmatpush.bf16.msrb.mxu3 %v16034_v60  ;;  %v22326_v60 = vperm.slane %v19669_v42, 6 }
 0x198   : > { %7578 = vmatpush.bf16.msrb.mxu0 %v12634_v8  ;;  %v15623_v8 = vld [vmem:[%s18929_s26 + $0x1e70] sm:$0xf0] }
 0x199   : > { %7592 = vmatpush.bf16.msrb.mxu1 %v13722_v13  ;;  %v19839_v13 = vpop.f32.mrf.mxu3  ;;  %v7307_v34 = vadd.f32 %v7306_v17, %v22326_v60  ;;  %v15626_v36 = vor.u32 %v18177_v6, %v15623_v8  ;;  %v12087_v6 = vld [vmem:[%s18929_s26 + $0x2d0] sm:$0xf0]  ;;  %v17565_v8 = vld [vmem:[%s18929_s26 + $0xacc] sm:$0xf]  ;;  %v7334_v17 = vpop.f32.mrf.mxu2 }
 0x19a   : > { %7606 = vmatpush.bf16.msrb.mxu2 %v14810_v15  ;;  %22371 = vst [vmem:[#allocation15_spill] sm:$0xff] %v19839_v13  ;;  %v12362_v15 = vor.u32 %v17361_v45, %v12359_v51  ;;  %v14399_v45 = vld [vmem:[%s18929_s26 + $0x14e0] sm:$0xf0]  ;;  %v7320_v51 = vpop.f32.mrf.mxu1  ;;  %v13183_v13 = vld [vmem:[%s18929_s26 + $0xb58] sm:$0xf0] }
 0x19b   : > { %7620 = vmatpush.bf16.msrb.mxu3 %v15898_v28  ;;  %v17327_v28 = vld [vmem:[%s18929_s26 + $0x35c] sm:$0xf]  ;;  %v7321_v55 = vadd.f32 %v7320_v51, %v7307_v34  ;;  %v14263_v34 = vld [vmem:[%s18929_s26 + $0x13d0] sm:$0xf0] }
 0x19c   : > { %7579 = vmatpush.bf16.msrb.mxu0 %v12498_v63  ;;  %v17871_v63 = vld [vmem:[%s18929_s26 + $0x145c] sm:$0xf]  ;;  %v12226_v1 = vor.u32 %v17327_v28, %v12223_v29  ;;  %v18109_v28 = vld [vmem:[%s18929_s26 + $0x1bcc] sm:$0xf]  ;;  %v12090_v29 = vor.u32 %v17293_v5, %v12087_v6 }
 0x19d   : > { %7593 = vmatpush.bf16.msrb.mxu1 %v13586_v49  ;;  %v18143_v49 = vld [vmem:[%s18929_s26 + $0x1cdc] sm:$0xf]  ;;  %v14402_v2 = vor.u32 %v17871_v63, %v14399_v45  ;;  %v11951_v45 = vld [vmem:[%s18929_s26 + $0x1c0] sm:$0xf0] }
 0x19e   : > { %7607 = vmatpush.bf16.msrb.mxu2 %v14674_v50  ;;  %v15487_v50 = vld [vmem:[%s18929_s26 + $0x1d60] sm:$0xf0]  ;;  %v17259_v63 = vld [vmem:[%s18929_s26 + $0x13c] sm:$0xf] }
 0x19f   : > { %7621 = vmatpush.bf16.msrb.mxu3 %v15762_v0  ;;  %v13314_v0 = vor.u32 %v17599_v30, %v13311_v44  ;;  %v15490_v60 = vor.u32 %v18143_v49, %v15487_v50  ;;  %v14266_v44 = vor.u32 %v17837_v59, %v14263_v34  ;;  %v17531_v51 = vld [vmem:[%s18929_s26 + $0x9bc] sm:$0xf]  ;;  %v13039_v50 = vld [vmem:[%s18929_s26 + $0xa40] sm:$0xf0]  ;;  %v17225_v59 = vld [vmem:[%s18929_s26 + $0x2c] sm:$0xf] }
 0x1a0   : > { %7580 = vmatpush.bf16.msrb.mxu0 %v12362_v15  ;;  %v7335_v15 = vadd.f32 %v7334_v17, %v7321_v55  ;;  %v17803_v55 = vld [vmem:[%s18929_s26 + $0x123c] sm:$0xf]  ;;  %v12903_v17 = vld [vmem:[%s18929_s26 + $0x930] sm:$0xf0]  ;;  %v17769_v34 = vld [vmem:[%s18929_s26 + $0x112c] sm:$0xf] }
 0x1a1   : > { %7594 = vmatpush.bf16.msrb.mxu1 %v13450_v19  ;;  %v15351_v19 = vld [vmem:[%s18929_s26 + $0x1c50] sm:$0xf0]  ;;  %v18075_v5 = vld [vmem:[%s18929_s26 + $0x1abc] sm:$0xf] }
 0x1a2   : > { %7608 = vmatpush.bf16.msrb.mxu2 %v14538_v25  ;;  %v7348_v25 = vpop.f32.mrf.mxu3  ;;  %v15354_v49 = vor.u32 %v18109_v28, %v15351_v19  ;;  %v13991_v28 = vld [vmem:[%s18929_s26 + $0x11b0] sm:$0xf0]  ;;  %v18041_v19 = vld [vmem:[%s18929_s26 + $0x19ac] sm:$0xf] }
 0x1a3   : > { %7622 = vmatpush.bf16.msrb.mxu3 %v15626_v36  ;;  %v19859_v30 = vadd.f32 %v7348_v25, %v7335_v15  ;;  %v13178_v36 = vor.u32 %v17565_v8, %v13175_v43  ;;  %v11954_v43 = vor.u32 %v17259_v63, %v11951_v45  ;;  %v17497_v8 = vld [vmem:[%s18929_s26 + $0x8ac] sm:$0xf]  ;;  %v15079_v25 = vld [vmem:[%s18929_s26 + $0x1a30] sm:$0xf0]  ;;  %v17481_v63 = vld [vmem:[%s18929_s26 + $0x824] sm:$0xf0] }
 0x1a4   : > { %7581 = vmatpush.bf16.msrb.mxu0 %v12226_v1  ;;  %v14127_v1 = vld [vmem:[%s18929_s26 + $0x12c0] sm:$0xf0]  ;;  %v13861_v45 = vld [vmem:[%s18929_s26 + $0x1020] sm:$0xf] }
 0x1a5   : > { %22372 = vst [vmem:[#allocation16_spill] sm:$0xff] %v19859_v30  ;;  %7595 = vmatpush.bf16.msrb.mxu1 %v13314_v0  ;;  %v15215_v0 = vld [vmem:[%s18929_s26 + $0x1b40] sm:$0xf0]  ;;  %v14130_v6 = vor.u32 %v17803_v55, %v14127_v1  ;;  %v13994_v55 = vor.u32 %v17769_v34, %v13991_v28  ;;  %v16037_v1 = vld [vmem:[%s18929_s26 + $0x2120] sm:$0xf]  ;;  %v12638_v28 = vor.u32 %v17447_v33, %v12637_v38  ;;  %v19901_v33 = vpop.f32.mrf.mxu1 }
 0x1a6   : > { %7609 = vmatpush.bf16.msrb.mxu2 %v14402_v2  ;;  %v11815_v2 = vld [vmem:[%s18929_s26 + $0xb0] sm:$0xf0]  ;;  %v15218_v15 = vor.u32 %v18075_v5, %v15215_v0  ;;  %v18297_v5 = vld [vmem:[%s18929_s26 + $0x21a4] sm:$0xf0]  ;;  %v15082_v0 = vor.u32 %v18041_v19, %v15079_v25  ;;  %v15901_v34 = vld [vmem:[%s18929_s26 + $0x2010] sm:$0xf]  ;;  %v19893_v19 = vpop.f32.mrf.mxu0 }
 0x1a7   : > { %7623 = vmatpush.bf16.msrb.mxu3 %v15490_v60  ;;  %v13042_v60 = vor.u32 %v17531_v51, %v13039_v50  ;;  %v14949_v51 = vld [vmem:[%s18929_s26 + $0x18a0] sm:$0xf]  ;;  %v18025_v50 = vld [vmem:[%s18929_s26 + $0x1924] sm:$0xf0]  ;;  %v17583_v30 = vld [vmem:[%s18929_s26 + $0xb54] sm:$0xf0] }
 0x1a8   : > { %7582 = vmatpush.bf16.msrb.mxu0 %v12090_v29  ;;  %v12773_v29 = vld [vmem:[%s18929_s26 + $0x7a0] sm:$0xf] }
 0x1a9   : > { %7596 = vmatpush.bf16.msrb.mxu1 %v13178_v36  ;;  %v11818_v36 = vor.u32 %v17225_v59, %v11815_v2  ;;  %v14950_v2 = vor.u32 %v18025_v50, %v14949_v51  ;;  %v17685_v51 = vld [vmem:[%s18929_s26 + $0xe84] sm:$0xf0]  ;;  %v14677_v50 = vld [vmem:[%s18929_s26 + $0x1680] sm:$0xf] }
 0x1aa   : > { %7610 = vmatpush.bf16.msrb.mxu2 %v14266_v44  ;;  %v17753_v44 = vld [vmem:[%s18929_s26 + $0x10a4] sm:$0xf0]  ;;  %v15765_v38 = vld [vmem:[%s18929_s26 + $0x1f00] sm:$0xf] }
 0x1ab   : > { %7624 = vmatpush.bf16.msrb.mxu3 %v15354_v49  ;;  %v12906_v49 = vor.u32 %v17497_v8, %v12903_v17  ;;  %v13862_v59 = vor.u32 %v17753_v44, %v13861_v45  ;;  %v14813_v8 = vld [vmem:[%s18929_s26 + $0x1790] sm:$0xf]  ;;  %v17991_v17 = vld [vmem:[%s18929_s26 + $0x1814] sm:$0xf0]  ;;  %v17413_v45 = vld [vmem:[%s18929_s26 + $0x604] sm:$0xf0] }
 0x1ac   : > { %7583 = vmatpush.bf16.msrb.mxu0 %v11954_v43  ;;  %v12774_v43 = vor.u32 %v17481_v63, %v12773_v29  ;;  %v14814_v29 = vor.u32 %v17991_v17, %v14813_v8  ;;  %v12501_v63 = vld [vmem:[%s18929_s26 + $0x580] sm:$0xf]  ;;  %v17651_v8 = vld [vmem:[%s18929_s26 + $0xd74] sm:$0xf0]  ;;  %v14541_v17 = vld [vmem:[%s18929_s26 + $0x1570] sm:$0xf] }
 0x1ad   : > { %7597 = vmatpush.bf16.msrb.mxu1 %v13042_v60  ;;  %v16038_v60 = vor.u32 %v18297_v5, %v16037_v1  ;;  %v12365_v1 = vld [vmem:[%s18929_s26 + $0x470] sm:$0xf] }
 0x1ae   : > { %7611 = vmatpush.bf16.msrb.mxu2 %v14130_v6  ;;  %v17719_v6 = vld [vmem:[%s18929_s26 + $0xf94] sm:$0xf0] }
 0x1af   : > { %7625 = vmatpush.bf16.msrb.mxu3 %v15218_v15  ;;  %v18263_v15 = vld [vmem:[%s18929_s26 + $0x2094] sm:$0xf0]  ;;  %v13726_v25 = vor.u32 %v17719_v6, %v13725_v62  ;;  %v12502_v62 = vor.u32 %v17413_v45, %v12501_v63 }
 0x1b0   : > { %7584 = vmatpush.bf16.msrb.mxu0 %v11818_v36  ;;  %v13589_v36 = vld [vmem:[%s18929_s26 + $0xe00] sm:$0xf]  ;;  %v15902_v44 = vor.u32 %v18263_v15, %v15901_v34  ;;  %v17923_v34 = vld [vmem:[%s18929_s26 + $0x15f4] sm:$0xf0]  ;;  %v15629_v15 = vld [vmem:[%s18929_s26 + $0x1df0] sm:$0xf]  ;;  %v7362_v63 = vpop.f32.mrf.mxu0 }
 0x1b1   : > { %7598 = vmatpush.bf16.msrb.mxu1 %v12906_v49  ;;  %v17957_v49 = vld [vmem:[%s18929_s26 + $0x1704] sm:$0xf0]  ;;  %v13590_v5 = vor.u32 %v17685_v51, %v13589_v36  ;;  %v14542_v36 = vor.u32 %v17923_v34, %v14541_v17  ;;  %v12093_v34 = vld [vmem:[%s18929_s26 + $0x250] sm:$0xf] }
 0x1b2   : > { %7612 = vmatpush.bf16.msrb.mxu2 %v13994_v55  ;;  %v18229_v55 = vld [vmem:[%s18929_s26 + $0x1f84] sm:$0xf0] }
 0x1b3   : > { %7626 = vmatpush.bf16.msrb.mxu3 %v15082_v0  ;;  %7585 = vmatmul.bf16.vlgmr.msrb.gmra.mxu0 %v19056_v16  ;;  %v14678_v0 = vor.u32 %v17957_v49, %v14677_v50  ;;  %v15766_v6 = vor.u32 %v18229_v55, %v15765_v38  ;;  %v17345_v51 = vld [vmem:[%s18929_s26 + $0x3e4] sm:$0xf0]  ;;  %v13317_v50 = vld [vmem:[%s18929_s26 + $0xbe0] sm:$0xf] }
 0x1b4   : > { %7633 = vmatpush.bf16.msra.mxu0 %v12774_v43  ;;  %7599 = vmatmul.bf16.vlgmr.msrb.gmra.mxu1 %v19071_v23  ;;  %v17379_v43 = vld [vmem:[%s18929_s26 + $0x4f4] sm:$0xf0]  ;;  %v17617_v55 = vld [vmem:[%s18929_s26 + $0xc64] sm:$0xf0] }
 0x1b5   : > { %7647 = vmatpush.bf16.msra.mxu1 %v13862_v59  ;;  %7613 = vmatmul.bf16.vlgmr.msrb.gmra.mxu2 %v19040_v4  ;;  %v13453_v59 = vld [vmem:[%s18929_s26 + $0xcf0] sm:$0xf] }
 0x1b6   : > { %7661 = vmatpush.bf16.msra.mxu2 %v14950_v2  ;;  %7627 = vmatmul.bf16.vlgmr.msrb.gmra.mxu3 %v19069_v22  ;;  %v19912_v2 = vpop.f32.mrf.mxu2  ;;  %v13454_v45 = vor.u32 %v17651_v8, %v13453_v59 }
 0x1b7   : > { %7675 = vmatpush.bf16.msra.mxu3 %v16038_v60  ;;  %22373 = vst [vmem:[#allocation17_spill] sm:$0xff] %v19912_v2  ;;  %v22332_v60 = vperm.slane %v19669_v42, 7  ;;  %v13733_v2 = vld [vmem:[%s18929_s26 + $0xf18] sm:$0xf] }
 0x1b8   : > { %7634 = vmatpush.bf16.msra.mxu0 %v12638_v28  ;;  %v18195_v28 = vld [vmem:[%s18929_s26 + $0x1e74] sm:$0xf0] }
 0x1b9   : > { %7648 = vmatpush.bf16.msra.mxu1 %v13726_v25  ;;  %v19920_v25 = vpop.f32.mrf.mxu3  ;;  %v7363_v49 = vadd.f32 %v7362_v63, %v22332_v60  ;;  %v15630_v38 = vor.u32 %v18195_v28, %v15629_v15  ;;  %v17311_v15 = vld [vmem:[%s18929_s26 + $0x2d4] sm:$0xf0]  ;;  %v13181_v28 = vld [vmem:[%s18929_s26 + $0xad0] sm:$0xf] }
 0x1ba   : > { %7662 = vmatpush.bf16.msra.mxu2 %v14814_v29  ;;  %22374 = vst [vmem:[#allocation18_spill] sm:$0xff] %v19920_v25  ;;  %v12366_v29 = vor.u32 %v17379_v43, %v12365_v1  ;;  %v17889_v1 = vld [vmem:[%s18929_s26 + $0x14e4] sm:$0xf0]  ;;  %v7376_v43 = vpop.f32.mrf.mxu1  ;;  %v17702_v25 = vld [vmem:[%s18929_s26 + $0xf14] sm:$0xf] }
 0x1bb   : > { %7676 = vmatpush.bf16.msra.mxu3 %v15902_v44  ;;  %v12229_v44 = vld [vmem:[%s18929_s26 + $0x360] sm:$0xf]  ;;  %v7377_v59 = vadd.f32 %v7376_v43, %v7363_v49  ;;  %v17855_v49 = vld [vmem:[%s18929_s26 + $0x13d4] sm:$0xf0] }
 0x1bc   : > { %7635 = vmatpush.bf16.msra.mxu0 %v12502_v62  ;;  %v14405_v62 = vld [vmem:[%s18929_s26 + $0x1460] sm:$0xf]  ;;  %v12230_v8 = vor.u32 %v17345_v51, %v12229_v44  ;;  %v15357_v44 = vld [vmem:[%s18929_s26 + $0x1bd0] sm:$0xf]  ;;  %v12094_v51 = vor.u32 %v17311_v15, %v12093_v34 }
 0x1bd   : > { %7649 = vmatpush.bf16.msra.mxu1 %v13590_v5  ;;  %v15493_v5 = vld [vmem:[%s18929_s26 + $0x1ce0] sm:$0xf]  ;;  %v14406_v17 = vor.u32 %v17889_v1, %v14405_v62  ;;  %v17277_v1 = vld [vmem:[%s18929_s26 + $0x1c4] sm:$0xf0] }
 0x1be   : > { %7663 = vmatpush.bf16.msra.mxu2 %v14678_v0  ;;  %v18161_v0 = vld [vmem:[%s18929_s26 + $0x1d64] sm:$0xf0]  ;;  %v7390_v63 = vpop.f32.mrf.mxu2  ;;  %v11957_v62 = vld [vmem:[%s18929_s26 + $0x140] sm:$0xf] }
 0x1bf   : > { %7677 = vmatpush.bf16.msra.mxu3 %v15766_v6  ;;  %v13318_v6 = vor.u32 %v17617_v55, %v13317_v50  ;;  %v15494_v60 = vor.u32 %v18161_v0, %v15493_v5  ;;  %v14270_v55 = vor.u32 %v17855_v49, %v14269_v20  ;;  %v13045_v43 = vld [vmem:[%s18929_s26 + $0x9c0] sm:$0xf]  ;;  %v17549_v0 = vld [vmem:[%s18929_s26 + $0xa44] sm:$0xf0]  ;;  %v11821_v20 = vld [vmem:[%s18929_s26 + $0x30] sm:$0xf] }
 0x1c0   : > { %7636 = vmatpush.bf16.msra.mxu0 %v12366_v29  ;;  %v7391_v29 = vadd.f32 %v7390_v63, %v7377_v59  ;;  %v14133_v59 = vld [vmem:[%s18929_s26 + $0x1240] sm:$0xf]  ;;  %v17515_v63 = vld [vmem:[%s18929_s26 + $0x934] sm:$0xf0]  ;;  %v13997_v49 = vld [vmem:[%s18929_s26 + $0x1130] sm:$0xf] }
 0x1c1   : > { %7650 = vmatpush.bf16.msra.mxu1 %v13454_v45  ;;  %v18127_v45 = vld [vmem:[%s18929_s26 + $0x1c54] sm:$0xf0]  ;;  %v15221_v34 = vld [vmem:[%s18929_s26 + $0x1ac0] sm:$0xf] }
 0x1c2   : > { %7664 = vmatpush.bf16.msra.mxu2 %v14542_v36  ;;  %v7404_v36 = vpop.f32.mrf.mxu3  ;;  %v15358_v5 = vor.u32 %v18127_v45, %v15357_v44  ;;  %v17787_v44 = vld [vmem:[%s18929_s26 + $0x11b4] sm:$0xf0]  ;;  %v15085_v45 = vld [vmem:[%s18929_s26 + $0x19b0] sm:$0xf] }
 0x1c3   : > { %7678 = vmatpush.bf16.msra.mxu3 %v15630_v38  ;;  %v19940_v50 = vadd.f32 %v7404_v36, %v7391_v29  ;;  %v13182_v38 = vor.u32 %v17583_v30, %v13181_v28  ;;  %v11958_v30 = vor.u32 %v17277_v1, %v11957_v62  ;;  %v12909_v28 = vld [vmem:[%s18929_s26 + $0x8b0] sm:$0xf]  ;;  %v18059_v36 = vld [vmem:[%s18929_s26 + $0x1a34] sm:$0xf0]  ;;  %v12775_v62 = vld [vmem:[%s18929_s26 + $0x828] sm:$0xf0] }
 0x1c4   : > { %7637 = vmatpush.bf16.msra.mxu0 %v12230_v8  ;;  %v17821_v8 = vld [vmem:[%s18929_s26 + $0x12c4] sm:$0xf0]  ;;  %v17736_v1 = vld [vmem:[%s18929_s26 + $0x1024] sm:$0xf] }
 0x1c5   : > { %22375 = vst [vmem:[#allocation19_spill] sm:$0xff] %v19940_v50  ;;  %7651 = vmatpush.bf16.msra.mxu1 %v13318_v6  ;;  %v18093_v6 = vld [vmem:[%s18929_s26 + $0x1b44] sm:$0xf0]  ;;  %v14134_v15 = vor.u32 %v17821_v8, %v14133_v59  ;;  %v13998_v59 = vor.u32 %v17787_v44, %v13997_v49  ;;  %v18280_v8 = vld [vmem:[%s18929_s26 + $0x2124] sm:$0xf] }
 0x1c6   : > { %7665 = vmatpush.bf16.msra.mxu2 %v14406_v17  ;;  %v17243_v17 = vld [vmem:[%s18929_s26 + $0xb4] sm:$0xf0]  ;;  %v15222_v29 = vor.u32 %v18093_v6, %v15221_v34  ;;  %v16039_v34 = vld [vmem:[%s18929_s26 + $0x21a8] sm:$0xf0]  ;;  %v15086_v6 = vor.u32 %v18059_v36, %v15085_v45  ;;  %v17430_v50 = vld [vmem:[%s18929_s26 + $0x694] sm:$0xf]  ;;  %v19975_v36 = vpop.f32.mrf.mxu0 }
 0x1c7   : > { %7679 = vmatpush.bf16.msra.mxu3 %v15494_v60  ;;  %v13046_v60 = vor.u32 %v17549_v0, %v13045_v43  ;;  %v18008_v43 = vld [vmem:[%s18929_s26 + $0x18a4] sm:$0xf]  ;;  %v14951_v0 = vld [vmem:[%s18929_s26 + $0x1928] sm:$0xf0]  ;;  %v18246_v49 = vld [vmem:[%s18929_s26 + $0x2014] sm:$0xf]  ;;  %v12642_v44 = vor.u32 %v17430_v50, %v12639_v52  ;;  %v19982_v52 = vpop.f32.mrf.mxu1 }
 0x1c8   : > { %7638 = vmatpush.bf16.msra.mxu0 %v12094_v51  ;;  %v17464_v51 = vld [vmem:[%s18929_s26 + $0x7a4] sm:$0xf]  ;;  %v19986_v50 = vld [vmem:[%s18938_s14 + $0x8] sm:$0xff] }
 0x1c9   : > { %7652 = vmatpush.bf16.msra.mxu1 %v13182_v38  ;;  %v11822_v38 = vor.u32 %v17243_v17, %v11821_v20  ;;  %v14954_v17 = vor.u32 %v18008_v43, %v14951_v0  ;;  %v17396_v45 = vld [vmem:[%s18929_s26 + $0x584] sm:$0xf]  ;;  %22376 = vst [vmem:[#allocation20_spill] sm:$0xff] %v19986_v50 }
 0x1ca   : > { %7666 = vmatpush.bf16.msra.mxu2 %v14270_v55  ;;  %v13863_v55 = vld [vmem:[%s18929_s26 + $0x10a8] sm:$0xf0]  ;;  %v17940_v0 = vld [vmem:[%s18929_s26 + $0x1684] sm:$0xf] }
 0x1cb   : > { %7680 = vmatpush.bf16.msra.mxu3 %v15358_v5  ;;  %v12910_v5 = vor.u32 %v17515_v63, %v12909_v28  ;;  %v13866_v20 = vor.u32 %v17736_v1, %v13863_v55  ;;  %v17974_v28 = vld [vmem:[%s18929_s26 + $0x1794] sm:$0xf]  ;;  %v14815_v63 = vld [vmem:[%s18929_s26 + $0x1818] sm:$0xf0]  ;;  %v12503_v1 = vld [vmem:[%s18929_s26 + $0x608] sm:$0xf0] }
 0x1cc   : > { %7639 = vmatpush.bf16.msra.mxu0 %v11958_v30  ;;  %v12778_v30 = vor.u32 %v17464_v51, %v12775_v62  ;;  %v14818_v62 = vor.u32 %v17974_v28, %v14815_v63  ;;  %v13591_v55 = vld [vmem:[%s18929_s26 + $0xe88] sm:$0xf0]  ;;  %v13455_v63 = vld [vmem:[%s18929_s26 + $0xd78] sm:$0xf0] }
 0x1cd   : > { %7653 = vmatpush.bf16.msra.mxu1 %v13046_v60  ;;  %v16042_v60 = vor.u32 %v18280_v8, %v16039_v34  ;;  %v15767_v8 = vld [vmem:[%s18929_s26 + $0x1f88] sm:$0xf0]  ;;  %v17362_v34 = vld [vmem:[%s18929_s26 + $0x474] sm:$0xf] }
 0x1ce   : > { %7667 = vmatpush.bf16.msra.mxu2 %v14134_v15  ;;  %v13727_v15 = vld [vmem:[%s18929_s26 + $0xf98] sm:$0xf0] }
 0x1cf   : > { %7681 = vmatpush.bf16.msra.mxu3 %v15222_v29  ;;  %v15903_v29 = vld [vmem:[%s18929_s26 + $0x2098] sm:$0xf0]  ;;  %v13730_v51 = vor.u32 %v17702_v25, %v13727_v15  ;;  %v12506_v25 = vor.u32 %v17396_v45, %v12503_v1  ;;  %v22333_v15 = vperm.slane %v19986_v50, 0 }
 0x1d0   : > { %7640 = vmatpush.bf16.msra.mxu0 %v11822_v38  ;;  %v17668_v38 = vld [vmem:[%s18929_s26 + $0xe04] sm:$0xf]  ;;  %v15906_v43 = vor.u32 %v18246_v49, %v15903_v29  ;;  %v17906_v49 = vld [vmem:[%s18929_s26 + $0x1574] sm:$0xf]  ;;  %v14543_v29 = vld [vmem:[%s18929_s26 + $0x15f8] sm:$0xf0]  ;;  %v7418_v1 = vpop.f32.mrf.mxu0 }
 0x1d1   : > { %7654 = vmatpush.bf16.msra.mxu1 %v12910_v5  ;;  %v14679_v5 = vld [vmem:[%s18929_s26 + $0x1708] sm:$0xf0]  ;;  %v15631_v45 = vld [vmem:[%s18929_s26 + $0x1e78] sm:$0xf0] }
 0x1d2   : > { %7668 = vmatpush.bf16.msra.mxu2 %v13998_v59  ;;  %v18212_v59 = vld [vmem:[%s18929_s26 + $0x1f04] sm:$0xf] }
 0x1d3   : > { %7682 = vmatpush.bf16.msra.mxu3 %v15086_v6  ;;  %7641 = vmatmul.bf16.vlgmr.msra.gmra.mxu0 %v19056_v16  ;;  %v13594_v6 = vor.u32 %v17668_v38, %v13591_v55  ;;  %v15770_v28 = vor.u32 %v18212_v59, %v15767_v8  ;;  %v14546_v55 = vor.u32 %v17906_v49, %v14543_v29  ;;  %v17294_v29 = vld [vmem:[%s18929_s26 + $0x254] sm:$0xf] }
 0x1d4   : > { %7689 = vmatpush.bf16.msrb.mxu0 %v12778_v30  ;;  %7655 = vmatmul.bf16.vlgmr.msra.gmra.mxu1 %v19071_v23  ;;  %v14682_v30 = vor.u32 %v17940_v0, %v14679_v5  ;;  %v12231_v0 = vld [vmem:[%s18929_s26 + $0x3e8] sm:$0xf0]  ;;  %v17600_v5 = vld [vmem:[%s18929_s26 + $0xbe4] sm:$0xf]  ;;  %v7419_v59 = vadd.f32 %v7418_v1, %v22333_v15 }
 0x1d5   : > { %7703 = vmatpush.bf16.msrb.mxu1 %v13866_v20  ;;  %7669 = vmatmul.bf16.vlgmr.msra.gmra.mxu2 %v19040_v4  ;;  %v12367_v20 = vld [vmem:[%s18929_s26 + $0x4f8] sm:$0xf0] }
 0x1d6   : > { %7717 = vmatpush.bf16.msrb.mxu2 %v14954_v17  ;;  %7683 = vmatmul.bf16.vlgmr.msra.gmra.mxu3 %v19069_v22  ;;  %v17634_v17 = vld [vmem:[%s18929_s26 + $0xcf4] sm:$0xf] }
 0x1d7   : > { %7731 = vmatpush.bf16.msrb.mxu3 %v16042_v60  ;;  %v19996_v60 = vpop.f32.mrf.mxu2  ;;  %v13458_v38 = vor.u32 %v17634_v17, %v13455_v63 }
 0x1d8   : > { %7690 = vmatpush.bf16.msrb.mxu0 %v12642_v44  ;;  %22377 = vst [vmem:[#allocation21_spill] sm:$0xff] %v19996_v60  ;;  %v18178_v44 = vld [vmem:[%s18929_s26 + $0x1df4] sm:$0xf]  ;;  %v17448_v60 = vld [vmem:[%s18929_s26 + $0x71c] sm:$0xf0] }
 0x1d9   : > { %7704 = vmatpush.bf16.msrb.mxu1 %v13730_v51  ;;  %v20004_v51 = vpop.f32.mrf.mxu3  ;;  %v15634_v8 = vor.u32 %v18178_v44, %v15631_v45  ;;  %v12095_v44 = vld [vmem:[%s18929_s26 + $0x2d8] sm:$0xf0]  ;;  %v17566_v45 = vld [vmem:[%s18929_s26 + $0xad4] sm:$0xf] }
 0x1da   : > { %7718 = vmatpush.bf16.msrb.mxu2 %v14818_v62  ;;  %22378 = vst [vmem:[#allocation22_spill] sm:$0xff] %v20004_v51  ;;  %v12370_v62 = vor.u32 %v17362_v34, %v12367_v20  ;;  %v17872_v34 = vld [vmem:[%s18929_s26 + $0x1464] sm:$0xf]  ;;  %v14407_v20 = vld [vmem:[%s18929_s26 + $0x14e8] sm:$0xf0]  ;;  %v7432_v51 = vpop.f32.mrf.mxu1 }
 0x1db   : > { %7732 = vmatpush.bf16.msrb.mxu3 %v15906_v43  ;;  %v17328_v43 = vld [vmem:[%s18929_s26 + $0x364] sm:$0xf]  ;;  %v7433_v17 = vadd.f32 %v7432_v51, %v7419_v59  ;;  %v14410_v49 = vor.u32 %v17872_v34, %v14407_v20  ;;  %v14271_v51 = vld [vmem:[%s18929_s26 + $0x13d8] sm:$0xf0]  ;;  %v13186_v59 = vor.u32 %v17566_v45, %v13183_v13  ;;  %v11959_v34 = vld [vmem:[%s18929_s26 + $0x1c8] sm:$0xf0] }
 0x1dc   : > { %7691 = vmatpush.bf16.msrb.mxu0 %v12506_v25  ;;  %v13319_v25 = vld [vmem:[%s18929_s26 + $0xc68] sm:$0xf0]  ;;  %v12234_v63 = vor.u32 %v17328_v43, %v12231_v0  ;;  %v18110_v43 = vld [vmem:[%s18929_s26 + $0x1bd4] sm:$0xf]  ;;  %v12098_v0 = vor.u32 %v17294_v29, %v12095_v44  ;;  %v17532_v20 = vld [vmem:[%s18929_s26 + $0x9c4] sm:$0xf] }
 0x1dd   : > { %7705 = vmatpush.bf16.msrb.mxu1 %v13594_v6  ;;  %v18144_v6 = vld [vmem:[%s18929_s26 + $0x1ce4] sm:$0xf]  ;;  %v17498_v45 = vld [vmem:[%s18929_s26 + $0x8b4] sm:$0xf] }
 0x1de   : > { %7719 = vmatpush.bf16.msrb.mxu2 %v14682_v30  ;;  %v15495_v30 = vld [vmem:[%s18929_s26 + $0x1d68] sm:$0xf0]  ;;  %v18076_v29 = vld [vmem:[%s18929_s26 + $0x1ac4] sm:$0xf] }
 0x1df   : > { %7733 = vmatpush.bf16.msrb.mxu3 %v15770_v28  ;;  %v13322_v28 = vor.u32 %v17600_v5, %v13319_v25  ;;  %v7446_v1 = vpop.f32.mrf.mxu2  ;;  %v15498_v15 = vor.u32 %v18144_v6, %v15495_v30  ;;  %v17260_v25 = vld [vmem:[%s18929_s26 + $0x144] sm:$0xf]  ;;  %v13047_v30 = vld [vmem:[%s18929_s26 + $0xa48] sm:$0xf0] }
 0x1e0   : > { %7692 = vmatpush.bf16.msrb.mxu0 %v12370_v62  ;;  %v7447_v62 = vadd.f32 %v7446_v1, %v7433_v17  ;;  %v17804_v17 = vld [vmem:[%s18929_s26 + $0x1244] sm:$0xf]  ;;  %v11962_v13 = vor.u32 %v17260_v25, %v11959_v34  ;;  %v12911_v1 = vld [vmem:[%s18929_s26 + $0x938] sm:$0xf0]  ;;  %v17482_v25 = vld [vmem:[%s18929_s26 + $0x82c] sm:$0xf0] }
 0x1e1   : > { %7706 = vmatpush.bf16.msrb.mxu1 %v13458_v38  ;;  %v15359_v38 = vld [vmem:[%s18929_s26 + $0x1c58] sm:$0xf0]  ;;  %v13869_v34 = vld [vmem:[%s18929_s26 + $0x1028] sm:$0xf] }
 0x1e2   : > { %7720 = vmatpush.bf16.msrb.mxu2 %v14546_v55  ;;  %v7460_v55 = vpop.f32.mrf.mxu3  ;;  %v15362_v6 = vor.u32 %v18110_v43, %v15359_v38  ;;  %v13999_v43 = vld [vmem:[%s18929_s26 + $0x11b8] sm:$0xf0]  ;;  %v18042_v38 = vld [vmem:[%s18929_s26 + $0x19b4] sm:$0xf] }
 0x1e3   : > { %7734 = vmatpush.bf16.msrb.mxu3 %v15634_v8  ;;  %v20024_v5 = vadd.f32 %v7460_v55, %v7447_v62  ;;  %v14274_v8 = vor.u32 %v17838_v9, %v14271_v51  ;;  %v17226_v9 = vld [vmem:[%s18929_s26 + $0x34] sm:$0xf]  ;;  %v15087_v55 = vld [vmem:[%s18929_s26 + $0x1a38] sm:$0xf0] }
 0x1e4   : > { %7693 = vmatpush.bf16.msrb.mxu0 %v12234_v63  ;;  %v14135_v63 = vld [vmem:[%s18929_s26 + $0x12c8] sm:$0xf0]  ;;  %v17770_v51 = vld [vmem:[%s18929_s26 + $0x1134] sm:$0xf] }
 0x1e5   : > { %22379 = vst [vmem:[#allocation23_spill] sm:$0xff] %v20024_v5  ;;  %7707 = vmatpush.bf16.msrb.mxu1 %v13322_v28  ;;  %v15223_v28 = vld [vmem:[%s18929_s26 + $0x1b48] sm:$0xf0]  ;;  %v14138_v44 = vor.u32 %v17804_v17, %v14135_v63  ;;  %v14002_v17 = vor.u32 %v17770_v51, %v13999_v43  ;;  %v16045_v63 = vld [vmem:[%s18929_s26 + $0x2128] sm:$0xf] }
 0x1e6   : > { %7721 = vmatpush.bf16.msrb.mxu2 %v14410_v49  ;;  %v11823_v49 = vld [vmem:[%s18929_s26 + $0xb8] sm:$0xf0]  ;;  %v15226_v62 = vor.u32 %v18076_v29, %v15223_v28  ;;  %v18298_v29 = vld [vmem:[%s18929_s26 + $0x21ac] sm:$0xf0]  ;;  %v15090_v28 = vor.u32 %v18042_v38, %v15087_v55  ;;  %v12645_v5 = vld [vmem:[%s18929_s26 + $0x698] sm:$0xf]  ;;  %v20058_v38 = vpop.f32.mrf.mxu0 }
 0x1e7   : > { %7735 = vmatpush.bf16.msrb.mxu3 %v15498_v15  ;;  %v13050_v15 = vor.u32 %v17532_v20, %v13047_v30  ;;  %v14957_v20 = vld [vmem:[%s18929_s26 + $0x18a8] sm:$0xf]  ;;  %v18026_v30 = vld [vmem:[%s18929_s26 + $0x192c] sm:$0xf0]  ;;  %v15909_v51 = vld [vmem:[%s18929_s26 + $0x2018] sm:$0xf]  ;;  %v12646_v43 = vor.u32 %v17448_v60, %v12645_v5  ;;  %v20066_v60 = vpop.f32.mrf.mxu1 }
 0x1e8   : > { %7694 = vmatpush.bf16.msrb.mxu0 %v12098_v0  ;;  %v12781_v0 = vld [vmem:[%s18929_s26 + $0x7a8] sm:$0xf]  ;;  %22380 = vst [vmem:[#allocation24_spill] sm:$0xff] %v20058_v38  ;;  %v17703_v38 = vld [vmem:[%s18929_s26 + $0xf1c] sm:$0xf] }
 0x1e9   : > { %7708 = vmatpush.bf16.msrb.mxu1 %v13186_v59  ;;  %v11826_v59 = vor.u32 %v17226_v9, %v11823_v49  ;;  %v14958_v49 = vor.u32 %v18026_v30, %v14957_v20  ;;  %v17686_v20 = vld [vmem:[%s18929_s26 + $0xe8c] sm:$0xf0]  ;;  %v14685_v30 = vld [vmem:[%s18929_s26 + $0x1688] sm:$0xf]  ;;  %22381 = vst [vmem:[#allocation25_spill] sm:$0xff] %v20066_v60 }
 0x1ea   : > { %7722 = vmatpush.bf16.msrb.mxu2 %v14274_v8  ;;  %v17754_v8 = vld [vmem:[%s18929_s26 + $0x10ac] sm:$0xf0]  ;;  %v15773_v5 = vld [vmem:[%s18929_s26 + $0x1f08] sm:$0xf]  ;;  %v12647_v60 = vld [vmem:[%s18929_s26 + $0x720] sm:$0xf0] }
 0x1eb   : > { %7736 = vmatpush.bf16.msrb.mxu3 %v15362_v6  ;;  %v12914_v6 = vor.u32 %v17498_v45, %v12911_v1  ;;  %v13870_v9 = vor.u32 %v17754_v8, %v13869_v34  ;;  %v14821_v45 = vld [vmem:[%s18929_s26 + $0x1798] sm:$0xf]  ;;  %v17992_v1 = vld [vmem:[%s18929_s26 + $0x181c] sm:$0xf0]  ;;  %v17414_v34 = vld [vmem:[%s18929_s26 + $0x60c] sm:$0xf0] }
 0x1ec   : > { %7695 = vmatpush.bf16.msrb.mxu0 %v11962_v13  ;;  %v12782_v13 = vor.u32 %v17482_v25, %v12781_v0  ;;  %v14822_v0 = vor.u32 %v17992_v1, %v14821_v45  ;;  %v12509_v25 = vld [vmem:[%s18929_s26 + $0x588] sm:$0xf]  ;;  %v17652_v45 = vld [vmem:[%s18929_s26 + $0xd7c] sm:$0xf0]  ;;  %v14549_v1 = vld [vmem:[%s18929_s26 + $0x1578] sm:$0xf] }
 0x1ed   : > { %7709 = vmatpush.bf16.msrb.mxu1 %v13050_v15  ;;  %v16046_v15 = vor.u32 %v18298_v29, %v16045_v63  ;;  %v12373_v63 = vld [vmem:[%s18929_s26 + $0x478] sm:$0xf] }
 0x1ee   : > { %7723 = vmatpush.bf16.msrb.mxu2 %v14138_v44  ;;  %v17720_v44 = vld [vmem:[%s18929_s26 + $0xf9c] sm:$0xf0] }
 0x1ef   : > { %7737 = vmatpush.bf16.msrb.mxu3 %v15226_v62  ;;  %v18264_v62 = vld [vmem:[%s18929_s26 + $0x209c] sm:$0xf0]  ;;  %v13734_v55 = vor.u32 %v17720_v44, %v13733_v2  ;;  %v12510_v2 = vor.u32 %v17414_v34, %v12509_v25 }
 0x1f0   : > { %7696 = vmatpush.bf16.msrb.mxu0 %v11826_v59  ;;  %v13597_v59 = vld [vmem:[%s18929_s26 + $0xe08] sm:$0xf]  ;;  %v15910_v8 = vor.u32 %v18264_v62, %v15909_v51  ;;  %v17924_v51 = vld [vmem:[%s18929_s26 + $0x15fc] sm:$0xf0]  ;;  %v15637_v62 = vld [vmem:[%s18929_s26 + $0x1df8] sm:$0xf]  ;;  %v7474_v25 = vpop.f32.mrf.mxu0 }
 0x1f1   : > { %7710 = vmatpush.bf16.msrb.mxu1 %v12914_v6  ;;  %v17958_v6 = vld [vmem:[%s18929_s26 + $0x170c] sm:$0xf0]  ;;  %v13598_v29 = vor.u32 %v17686_v20, %v13597_v59  ;;  %v14550_v59 = vor.u32 %v17924_v51, %v14549_v1  ;;  %v12101_v51 = vld [vmem:[%s18929_s26 + $0x258] sm:$0xf] }
 0x1f2   : > { %7724 = vmatpush.bf16.msrb.mxu2 %v14002_v17  ;;  %v18230_v17 = vld [vmem:[%s18929_s26 + $0x1f8c] sm:$0xf0] }
 0x1f3   : > { %7738 = vmatpush.bf16.msrb.mxu3 %v15090_v28  ;;  %7697 = vmatmul.bf16.vlgmr.msrb.gmra.mxu0 %v19056_v16  ;;  %v14686_v28 = vor.u32 %v17958_v6, %v14685_v30  ;;  %v15774_v44 = vor.u32 %v18230_v17, %v15773_v5  ;;  %v17346_v20 = vld [vmem:[%s18929_s26 + $0x3ec] sm:$0xf0]  ;;  %v13325_v30 = vld [vmem:[%s18929_s26 + $0xbe8] sm:$0xf] }
 0x1f4   : > { %7745 = vmatpush.bf16.msra.mxu0 %v12782_v13  ;;  %7711 = vmatmul.bf16.vlgmr.msrb.gmra.mxu1 %v19071_v23  ;;  %v17380_v13 = vld [vmem:[%s18929_s26 + $0x4fc] sm:$0xf0]  ;;  %v17618_v17 = vld [vmem:[%s18929_s26 + $0xc6c] sm:$0xf0] }
 0x1f5   : > { %7759 = vmatpush.bf16.msra.mxu1 %v13870_v9  ;;  %7725 = vmatmul.bf16.vlgmr.msrb.gmra.mxu2 %v19040_v4  ;;  %v13461_v9 = vld [vmem:[%s18929_s26 + $0xcf8] sm:$0xf] }
 0x1f6   : > { %7773 = vmatpush.bf16.msra.mxu2 %v14958_v49  ;;  %7739 = vmatmul.bf16.vlgmr.msrb.gmra.mxu3 %v19069_v22  ;;  %v20077_v49 = vpop.f32.mrf.mxu2  ;;  %v13462_v34 = vor.u32 %v17652_v45, %v13461_v9 }
 0x1f7   : > { %7787 = vmatpush.bf16.msra.mxu3 %v16046_v15  ;;  %22382 = vst [vmem:[#allocation26_spill] sm:$0xff] %v20077_v49  ;;  %v22334_v15 = vperm.slane %v19986_v50, 1  ;;  %v14277_v49 = vld [vmem:[%s18929_s26 + $0x1358] sm:$0xf] }
 0x1f8   : > { %7746 = vmatpush.bf16.msra.mxu0 %v12646_v43  ;;  %v18196_v43 = vld [vmem:[%s18929_s26 + $0x1e7c] sm:$0xf0] }
 0x1f9   : > { %7760 = vmatpush.bf16.msra.mxu1 %v13734_v55  ;;  %v20085_v55 = vpop.f32.mrf.mxu3  ;;  %v7475_v6 = vadd.f32 %v7474_v25, %v22334_v15  ;;  %v15638_v5 = vor.u32 %v18196_v43, %v15637_v62  ;;  %v17312_v62 = vld [vmem:[%s18929_s26 + $0x2dc] sm:$0xf0]  ;;  %v13189_v43 = vld [vmem:[%s18929_s26 + $0xad8] sm:$0xf] }
 0x1fa   : > { %7774 = vmatpush.bf16.msra.mxu2 %v14822_v0  ;;  %22383 = vst [vmem:[#allocation27_spill] sm:$0xff] %v20085_v55  ;;  %v12374_v0 = vor.u32 %v17380_v13, %v12373_v63  ;;  %v17890_v63 = vld [vmem:[%s18929_s26 + $0x14ec] sm:$0xf0]  ;;  %v7488_v13 = vpop.f32.mrf.mxu1  ;;  %v17584_v55 = vld [vmem:[%s18929_s26 + $0xb5c] sm:$0xf0] }
 0x1fb   : > { %7788 = vmatpush.bf16.msra.mxu3 %v15910_v8  ;;  %v12237_v8 = vld [vmem:[%s18929_s26 + $0x368] sm:$0xf]  ;;  %v7489_v9 = vadd.f32 %v7488_v13, %v7475_v6  ;;  %v17856_v6 = vld [vmem:[%s18929_s26 + $0x13dc] sm:$0xf0] }
 0x1fc   : > { %7747 = vmatpush.bf16.msra.mxu0 %v12510_v2  ;;  %v14413_v2 = vld [vmem:[%s18929_s26 + $0x1468] sm:$0xf]  ;;  %v12238_v45 = vor.u32 %v17346_v20, %v12237_v8  ;;  %v15365_v8 = vld [vmem:[%s18929_s26 + $0x1bd8] sm:$0xf]  ;;  %v12102_v20 = vor.u32 %v17312_v62, %v12101_v51 }
 0x1fd   : > { %7761 = vmatpush.bf16.msra.mxu1 %v13598_v29  ;;  %v15501_v29 = vld [vmem:[%s18929_s26 + $0x1ce8] sm:$0xf]  ;;  %v14414_v1 = vor.u32 %v17890_v63, %v14413_v2  ;;  %v17278_v63 = vld [vmem:[%s18929_s26 + $0x1cc] sm:$0xf0] }
 0x1fe   : > { %7775 = vmatpush.bf16.msra.mxu2 %v14686_v28  ;;  %v18162_v28 = vld [vmem:[%s18929_s26 + $0x1d6c] sm:$0xf0]  ;;  %v7502_v25 = vpop.f32.mrf.mxu2  ;;  %v11965_v2 = vld [vmem:[%s18929_s26 + $0x148] sm:$0xf] }
 0x1ff   : > { %7789 = vmatpush.bf16.msra.mxu3 %v15774_v44  ;;  %v13326_v44 = vor.u32 %v17618_v17, %v13325_v30  ;;  %v15502_v15 = vor.u32 %v18162_v28, %v15501_v29  ;;  %v14278_v17 = vor.u32 %v17856_v6, %v14277_v49  ;;  %v13053_v13 = vld [vmem:[%s18929_s26 + $0x9c8] sm:$0xf]  ;;  %v17550_v28 = vld [vmem:[%s18929_s26 + $0xa4c] sm:$0xf0]  ;;  %v11829_v49 = vld [vmem:[%s18929_s26 + $0x38] sm:$0xf] }
 0x200   : > { %7748 = vmatpush.bf16.msra.mxu0 %v12374_v0  ;;  %v7503_v0 = vadd.f32 %v7502_v25, %v7489_v9  ;;  %v14141_v9 = vld [vmem:[%s18929_s26 + $0x1248] sm:$0xf]  ;;  %v17516_v25 = vld [vmem:[%s18929_s26 + $0x93c] sm:$0xf0]  ;;  %v14005_v6 = vld [vmem:[%s18929_s26 + $0x1138] sm:$0xf] }
 0x201   : > { %7762 = vmatpush.bf16.msra.mxu1 %v13462_v34  ;;  %v18128_v34 = vld [vmem:[%s18929_s26 + $0x1c5c] sm:$0xf0]  ;;  %v15229_v51 = vld [vmem:[%s18929_s26 + $0x1ac8] sm:$0xf] }
 0x202   : > { %7776 = vmatpush.bf16.msra.mxu2 %v14550_v59  ;;  %v7516_v59 = vpop.f32.mrf.mxu3  ;;  %v15366_v29 = vor.u32 %v18128_v34, %v15365_v8  ;;  %v17788_v8 = vld [vmem:[%s18929_s26 + $0x11bc] sm:$0xf0]  ;;  %v15093_v34 = vld [vmem:[%s18929_s26 + $0x19b8] sm:$0xf] }
 0x203   : > { %7790 = vmatpush.bf16.msra.mxu3 %v15638_v5  ;;  %v20105_v30 = vadd.f32 %v7516_v59, %v7503_v0  ;;  %v13190_v5 = vor.u32 %v17584_v55, %v13189_v43  ;;  %v11966_v55 = vor.u32 %v17278_v63, %v11965_v2  ;;  %v12917_v43 = vld [vmem:[%s18929_s26 + $0x8b8] sm:$0xf]  ;;  %v18060_v59 = vld [vmem:[%s18929_s26 + $0x1a3c] sm:$0xf0]  ;;  %v12783_v2 = vld [vmem:[%s18929_s26 + $0x830] sm:$0xf0] }
 0x204   : > { %7749 = vmatpush.bf16.msra.mxu0 %v12238_v45  ;;  %v17822_v45 = vld [vmem:[%s18929_s26 + $0x12cc] sm:$0xf0]  ;;  %v17737_v63 = vld [vmem:[%s18929_s26 + $0x102c] sm:$0xf] }
 0x205   : > { %22384 = vst [vmem:[#allocation28_spill] sm:$0xff] %v20105_v30  ;;  %7763 = vmatpush.bf16.msra.mxu1 %v13326_v44  ;;  %v18094_v44 = vld [vmem:[%s18929_s26 + $0x1b4c] sm:$0xf0]  ;;  %v14142_v62 = vor.u32 %v17822_v45, %v14141_v9  ;;  %v14006_v9 = vor.u32 %v17788_v8, %v14005_v6  ;;  %v18281_v45 = vld [vmem:[%s18929_s26 + $0x212c] sm:$0xf] }
 0x206   : > { %7777 = vmatpush.bf16.msra.mxu2 %v14414_v1  ;;  %v17244_v1 = vld [vmem:[%s18929_s26 + $0xbc] sm:$0xf0]  ;;  %v15230_v0 = vor.u32 %v18094_v44, %v15229_v51  ;;  %v16047_v51 = vld [vmem:[%s18929_s26 + $0x21b0] sm:$0xf0]  ;;  %v15094_v44 = vor.u32 %v18060_v59, %v15093_v34  ;;  %v17431_v30 = vld [vmem:[%s18929_s26 + $0x69c] sm:$0xf]  ;;  %v20139_v34 = vpop.f32.mrf.mxu0 }
 0x207   : > { %7791 = vmatpush.bf16.msra.mxu3 %v15502_v15  ;;  %v13054_v15 = vor.u32 %v17550_v28, %v13053_v13  ;;  %v18009_v13 = vld [vmem:[%s18929_s26 + $0x18ac] sm:$0xf]  ;;  %v14959_v28 = vld [vmem:[%s18929_s26 + $0x1930] sm:$0xf0]  ;;  %v18247_v6 = vld [vmem:[%s18929_s26 + $0x201c] sm:$0xf]  ;;  %v12650_v8 = vor.u32 %v17431_v30, %v12647_v60  ;;  %v20147_v60 = vpop.f32.mrf.mxu1 }
 0x208   : > { %7750 = vmatpush.bf16.msra.mxu0 %v12102_v20  ;;  %v17465_v20 = vld [vmem:[%s18929_s26 + $0x7ac] sm:$0xf]  ;;  %22385 = vst [vmem:[#allocation29_spill] sm:$0xff] %v20139_v34  ;;  %v13741_v34 = vld [vmem:[%s18929_s26 + $0xf20] sm:$0xf] }
 0x209   : > { %7764 = vmatpush.bf16.msra.mxu1 %v13190_v5  ;;  %v11830_v5 = vor.u32 %v17244_v1, %v11829_v49  ;;  %v14962_v1 = vor.u32 %v18009_v13, %v14959_v28  ;;  %v13599_v13 = vld [vmem:[%s18929_s26 + $0xe90] sm:$0xf0]  ;;  %v17941_v28 = vld [vmem:[%s18929_s26 + $0x168c] sm:$0xf]  ;;  %22386 = vst [vmem:[#allocation30_spill] sm:$0xff] %v20147_v60 }
 0x20a   : > { %7778 = vmatpush.bf16.msra.mxu2 %v14278_v17  ;;  %v13871_v17 = vld [vmem:[%s18929_s26 + $0x10b0] sm:$0xf0]  ;;  %v18213_v30 = vld [vmem:[%s18929_s26 + $0x1f0c] sm:$0xf]  ;;  %v17449_v60 = vld [vmem:[%s18929_s26 + $0x724] sm:$0xf0] }
 0x20b   : > { %7792 = vmatpush.bf16.msra.mxu3 %v15366_v29  ;;  %v12918_v29 = vor.u32 %v17516_v25, %v12917_v43  ;;  %v13874_v49 = vor.u32 %v17737_v63, %v13871_v17  ;;  %v17975_v43 = vld [vmem:[%s18929_s26 + $0x179c] sm:$0xf]  ;;  %v14823_v25 = vld [vmem:[%s18929_s26 + $0x1820] sm:$0xf0]  ;;  %v12511_v63 = vld [vmem:[%s18929_s26 + $0x610] sm:$0xf0] }
 0x20c   : > { %7751 = vmatpush.bf16.msra.mxu0 %v11966_v55  ;;  %v12786_v55 = vor.u32 %v17465_v20, %v12783_v2  ;;  %v14826_v20 = vor.u32 %v17975_v43, %v14823_v25  ;;  %v17397_v2 = vld [vmem:[%s18929_s26 + $0x58c] sm:$0xf]  ;;  %v13463_v43 = vld [vmem:[%s18929_s26 + $0xd80] sm:$0xf0]  ;;  %v17907_v25 = vld [vmem:[%s18929_s26 + $0x157c] sm:$0xf] }
 0x20d   : > { %7765 = vmatpush.bf16.msra.mxu1 %v13054_v15  ;;  %v16050_v15 = vor.u32 %v18281_v45, %v16047_v51  ;;  %v17363_v45 = vld [vmem:[%s18929_s26 + $0x47c] sm:$0xf] }
 0x20e   : > { %7779 = vmatpush.bf16.msra.mxu2 %v14142_v62  ;;  %v13735_v62 = vld [vmem:[%s18929_s26 + $0xfa0] sm:$0xf0] }
 0x20f   : > { %7793 = vmatpush.bf16.msra.mxu3 %v15230_v0  ;;  %v15911_v0 = vld [vmem:[%s18929_s26 + $0x20a0] sm:$0xf0]  ;;  %v13738_v59 = vor.u32 %v17703_v38, %v13735_v62  ;;  %v12514_v38 = vor.u32 %v17397_v2, %v12511_v63 }
 0x210   : > { %7752 = vmatpush.bf16.msra.mxu0 %v11830_v5  ;;  %v17669_v5 = vld [vmem:[%s18929_s26 + $0xe0c] sm:$0xf]  ;;  %v15914_v17 = vor.u32 %v18247_v6, %v15911_v0  ;;  %v14551_v6 = vld [vmem:[%s18929_s26 + $0x1600] sm:$0xf0]  ;;  %v18179_v0 = vld [vmem:[%s18929_s26 + $0x1dfc] sm:$0xf]  ;;  %v7530_v2 = vpop.f32.mrf.mxu0 }
 0x211   : > { %7766 = vmatpush.bf16.msra.mxu1 %v12918_v29  ;;  %v14687_v29 = vld [vmem:[%s18929_s26 + $0x1710] sm:$0xf0]  ;;  %v13602_v51 = vor.u32 %v17669_v5, %v13599_v13  ;;  %v14554_v5 = vor.u32 %v17907_v25, %v14551_v6  ;;  %v17295_v6 = vld [vmem:[%s18929_s26 + $0x25c] sm:$0xf] }
 0x212   : > { %7780 = vmatpush.bf16.msra.mxu2 %v14006_v9  ;;  %v15775_v9 = vld [vmem:[%s18929_s26 + $0x1f90] sm:$0xf0] }
 0x213   : > { %7794 = vmatpush.bf16.msra.mxu3 %v15094_v44  ;;  %7753 = vmatmul.bf16.vlgmr.msra.gmra.mxu0 %v19056_v16  ;;  %v14690_v44 = vor.u32 %v17941_v28, %v14687_v29  ;;  %v15778_v62 = vor.u32 %v18213_v30, %v15775_v9  ;;  %v12239_v13 = vld [vmem:[%s18929_s26 + $0x3f0] sm:$0xf0]  ;;  %v17601_v28 = vld [vmem:[%s18929_s26 + $0xbec] sm:$0xf] }
 0x214   : > { %7801 = vmatpush.bf16.msrb.mxu0 %v12786_v55  ;;  %7767 = vmatmul.bf16.vlgmr.msra.gmra.mxu1 %v19071_v23  ;;  %v12375_v55 = vld [vmem:[%s18929_s26 + $0x500] sm:$0xf0]  ;;  %v13327_v9 = vld [vmem:[%s18929_s26 + $0xc70] sm:$0xf0] }
 0x215   : > { %7815 = vmatpush.bf16.msrb.mxu1 %v13874_v49  ;;  %7781 = vmatmul.bf16.vlgmr.msra.gmra.mxu2 %v19040_v4  ;;  %v17635_v49 = vld [vmem:[%s18929_s26 + $0xcfc] sm:$0xf] }
 0x216   : > { %7829 = vmatpush.bf16.msrb.mxu2 %v14962_v1  ;;  %7795 = vmatmul.bf16.vlgmr.msra.gmra.mxu3 %v19069_v22  ;;  %v20158_v1 = vpop.f32.mrf.mxu2  ;;  %v13466_v63 = vor.u32 %v17635_v49, %v13463_v43 }
 0x217   : > { %7843 = vmatpush.bf16.msrb.mxu3 %v16050_v15  ;;  %22387 = vst [vmem:[#allocation31_spill] sm:$0xff] %v20158_v1  ;;  %v22335_v15 = vperm.slane %v19986_v50, 2  ;;  %v17839_v1 = vld [vmem:[%s18929_s26 + $0x135c] sm:$0xf] }
 0x218   : > { %7802 = vmatpush.bf16.msrb.mxu0 %v12650_v8  ;;  %v15639_v8 = vld [vmem:[%s18929_s26 + $0x1e80] sm:$0xf0] }
 0x219   : > { %7816 = vmatpush.bf16.msrb.mxu1 %v13738_v59  ;;  %v20166_v59 = vpop.f32.mrf.mxu3  ;;  %v7531_v29 = vadd.f32 %v7530_v2, %v22335_v15  ;;  %v15642_v30 = vor.u32 %v18179_v0, %v15639_v8  ;;  %v12103_v0 = vld [vmem:[%s18929_s26 + $0x2e0] sm:$0xf0]  ;;  %v17567_v8 = vld [vmem:[%s18929_s26 + $0xadc] sm:$0xf] }
 0x21a   : > { %7830 = vmatpush.bf16.msrb.mxu2 %v14826_v20  ;;  %22388 = vst [vmem:[#allocation32_spill] sm:$0xff] %v20166_v59  ;;  %v12378_v20 = vor.u32 %v17363_v45, %v12375_v55  ;;  %v14415_v45 = vld [vmem:[%s18929_s26 + $0x14f0] sm:$0xf0]  ;;  %v7544_v55 = vpop.f32.mrf.mxu1  ;;  %v13191_v59 = vld [vmem:[%s18929_s26 + $0xb60] sm:$0xf0] }
 0x21b   : > { %7844 = vmatpush.bf16.msrb.mxu3 %v15914_v17  ;;  %v17329_v17 = vld [vmem:[%s18929_s26 + $0x36c] sm:$0xf]  ;;  %v7545_v49 = vadd.f32 %v7544_v55, %v7531_v29  ;;  %v14279_v29 = vld [vmem:[%s18929_s26 + $0x13e0] sm:$0xf0] }
 0x21c   : > { %7803 = vmatpush.bf16.msrb.mxu0 %v12514_v38  ;;  %v17873_v38 = vld [vmem:[%s18929_s26 + $0x146c] sm:$0xf]  ;;  %v12242_v43 = vor.u32 %v17329_v17, %v12239_v13  ;;  %v18111_v17 = vld [vmem:[%s18929_s26 + $0x1bdc] sm:$0xf]  ;;  %v12106_v13 = vor.u32 %v17295_v6, %v12103_v0 }
 0x21d   : > { %7817 = vmatpush.bf16.msrb.mxu1 %v13602_v51  ;;  %v18145_v51 = vld [vmem:[%s18929_s26 + $0x1cec] sm:$0xf]  ;;  %v14418_v25 = vor.u32 %v17873_v38, %v14415_v45  ;;  %v11967_v45 = vld [vmem:[%s18929_s26 + $0x1d0] sm:$0xf0] }
 0x21e   : > { %7831 = vmatpush.bf16.msrb.mxu2 %v14690_v44  ;;  %v15503_v44 = vld [vmem:[%s18929_s26 + $0x1d70] sm:$0xf0]  ;;  %v7558_v2 = vpop.f32.mrf.mxu2  ;;  %v17261_v38 = vld [vmem:[%s18929_s26 + $0x14c] sm:$0xf] }
 0x21f   : > { %7845 = vmatpush.bf16.msrb.mxu3 %v15778_v62  ;;  %v13330_v62 = vor.u32 %v17601_v28, %v13327_v9  ;;  %v15506_v15 = vor.u32 %v18145_v51, %v15503_v44  ;;  %v14282_v9 = vor.u32 %v17839_v1, %v14279_v29  ;;  %v17533_v55 = vld [vmem:[%s18929_s26 + $0x9cc] sm:$0xf]  ;;  %v13055_v44 = vld [vmem:[%s18929_s26 + $0xa50] sm:$0xf0]  ;;  %v17227_v1 = vld [vmem:[%s18929_s26 + $0x3c] sm:$0xf] }
 0x220   : > { %7804 = vmatpush.bf16.msrb.mxu0 %v12378_v20  ;;  %v7559_v20 = vadd.f32 %v7558_v2, %v7545_v49  ;;  %v17805_v49 = vld [vmem:[%s18929_s26 + $0x124c] sm:$0xf]  ;;  %v12919_v2 = vld [vmem:[%s18929_s26 + $0x940] sm:$0xf0]  ;;  %v17771_v29 = vld [vmem:[%s18929_s26 + $0x113c] sm:$0xf] }
 0x221   : > { %7818 = vmatpush.bf16.msrb.mxu1 %v13466_v63  ;;  %v15367_v63 = vld [vmem:[%s18929_s26 + $0x1c60] sm:$0xf0]  ;;  %v18077_v6 = vld [vmem:[%s18929_s26 + $0x1acc] sm:$0xf] }
 0x222   : > { %7832 = vmatpush.bf16.msrb.mxu2 %v14554_v5  ;;  %v7572_v5 = vpop.f32.mrf.mxu3  ;;  %v15370_v51 = vor.u32 %v18111_v17, %v15367_v63  ;;  %v14007_v17 = vld [vmem:[%s18929_s26 + $0x11c0] sm:$0xf0]  ;;  %v18043_v63 = vld [vmem:[%s18929_s26 + $0x19bc] sm:$0xf] }
 0x223   : > { %7846 = vmatpush.bf16.msrb.mxu3 %v15642_v30  ;;  %v20186_v28 = vadd.f32 %v7572_v5, %v7559_v20  ;;  %v13194_v30 = vor.u32 %v17567_v8, %v13191_v59  ;;  %v11970_v59 = vor.u32 %v17261_v38, %v11967_v45  ;;  %v17499_v8 = vld [vmem:[%s18929_s26 + $0x8bc] sm:$0xf]  ;;  %v15095_v5 = vld [vmem:[%s18929_s26 + $0x1a40] sm:$0xf0]  ;;  %v17483_v38 = vld [vmem:[%s18929_s26 + $0x834] sm:$0xf0] }
 0x224   : > { %7805 = vmatpush.bf16.msrb.mxu0 %v12242_v43  ;;  %v14143_v43 = vld [vmem:[%s18929_s26 + $0x12d0] sm:$0xf0]  ;;  %v13877_v45 = vld [vmem:[%s18929_s26 + $0x1030] sm:$0xf] }
 0x225   : > { %22389 = vst [vmem:[#allocation33_spill] sm:$0xff] %v20186_v28  ;;  %7819 = vmatpush.bf16.msrb.mxu1 %v13330_v62  ;;  %v15231_v62 = vld [vmem:[%s18929_s26 + $0x1b50] sm:$0xf0]  ;;  %v14146_v0 = vor.u32 %v17805_v49, %v14143_v43  ;;  %v14010_v49 = vor.u32 %v17771_v29, %v14007_v17  ;;  %v16053_v43 = vld [vmem:[%s18929_s26 + $0x2130] sm:$0xf] }
 0x226   : > { %7833 = vmatpush.bf16.msrb.mxu2 %v14418_v25  ;;  %v11831_v25 = vld [vmem:[%s18929_s26 + $0xc0] sm:$0xf0]  ;;  %v15234_v20 = vor.u32 %v18077_v6, %v15231_v62  ;;  %v18299_v6 = vld [vmem:[%s18929_s26 + $0x21b4] sm:$0xf0]  ;;  %v15098_v62 = vor.u32 %v18043_v63, %v15095_v5  ;;  %v12653_v28 = vld [vmem:[%s18929_s26 + $0x6a0] sm:$0xf]  ;;  %v20220_v63 = vpop.f32.mrf.mxu0 }
 0x227   : > { %7847 = vmatpush.bf16.msrb.mxu3 %v15506_v15  ;;  %v13058_v15 = vor.u32 %v17533_v55, %v13055_v44  ;;  %v14965_v55 = vld [vmem:[%s18929_s26 + $0x18b0] sm:$0xf]  ;;  %v18027_v44 = vld [vmem:[%s18929_s26 + $0x1934] sm:$0xf0]  ;;  %v15917_v29 = vld [vmem:[%s18929_s26 + $0x2020] sm:$0xf]  ;;  %v12654_v17 = vor.u32 %v17449_v60, %v12653_v28  ;;  %v20228_v60 = vpop.f32.mrf.mxu1 }
 0x228   : > { %7806 = vmatpush.bf16.msrb.mxu0 %v12106_v13  ;;  %v12789_v13 = vld [vmem:[%s18929_s26 + $0x7b0] sm:$0xf]  ;;  %22390 = vst [vmem:[#allocation34_spill] sm:$0xff] %v20220_v63  ;;  %v17704_v63 = vld [vmem:[%s18929_s26 + $0xf24] sm:$0xf] }
 0x229   : > { %7820 = vmatpush.bf16.msrb.mxu1 %v13194_v30  ;;  %v11834_v30 = vor.u32 %v17227_v1, %v11831_v25  ;;  %v14966_v25 = vor.u32 %v18027_v44, %v14965_v55  ;;  %v17687_v55 = vld [vmem:[%s18929_s26 + $0xe94] sm:$0xf0]  ;;  %v14693_v44 = vld [vmem:[%s18929_s26 + $0x1690] sm:$0xf]  ;;  %22391 = vst [vmem:[#allocation35_spill] sm:$0xff] %v20228_v60 }
 0x22a   : > { %7834 = vmatpush.bf16.msrb.mxu2 %v14282_v9  ;;  %v17755_v9 = vld [vmem:[%s18929_s26 + $0x10b4] sm:$0xf0]  ;;  %v15781_v28 = vld [vmem:[%s18929_s26 + $0x1f10] sm:$0xf]  ;;  %v12655_v60 = vld [vmem:[%s18929_s26 + $0x728] sm:$0xf0] }
 0x22b   : > { %7848 = vmatpush.bf16.msrb.mxu3 %v15370_v51  ;;  %v12922_v51 = vor.u32 %v17499_v8, %v12919_v2  ;;  %v13878_v1 = vor.u32 %v17755_v9, %v13877_v45  ;;  %v14829_v8 = vld [vmem:[%s18929_s26 + $0x17a0] sm:$0xf]  ;;  %v17993_v2 = vld [vmem:[%s18929_s26 + $0x1824] sm:$0xf0]  ;;  %v17415_v45 = vld [vmem:[%s18929_s26 + $0x614] sm:$0xf0] }
 0x22c   : > { %7807 = vmatpush.bf16.msrb.mxu0 %v11970_v59  ;;  %v12790_v59 = vor.u32 %v17483_v38, %v12789_v13  ;;  %v14830_v13 = vor.u32 %v17993_v2, %v14829_v8  ;;  %v12517_v38 = vld [vmem:[%s18929_s26 + $0x590] sm:$0xf]  ;;  %v17653_v8 = vld [vmem:[%s18929_s26 + $0xd84] sm:$0xf0]  ;;  %v14557_v2 = vld [vmem:[%s18929_s26 + $0x1580] sm:$0xf] }
 0x22d   : > { %7821 = vmatpush.bf16.msrb.mxu1 %v13058_v15  ;;  %v16054_v15 = vor.u32 %v18299_v6, %v16053_v43  ;;  %v12381_v43 = vld [vmem:[%s18929_s26 + $0x480] sm:$0xf] }
 0x22e   : > { %7835 = vmatpush.bf16.msrb.mxu2 %v14146_v0  ;;  %v17721_v0 = vld [vmem:[%s18929_s26 + $0xfa4] sm:$0xf0] }
 0x22f   : > { %7849 = vmatpush.bf16.msrb.mxu3 %v15234_v20  ;;  %v18265_v20 = vld [vmem:[%s18929_s26 + $0x20a4] sm:$0xf0]  ;;  %v13742_v5 = vor.u32 %v17721_v0, %v13741_v34  ;;  %v12518_v34 = vor.u32 %v17415_v45, %v12517_v38 }
 0x230   : > { %7808 = vmatpush.bf16.msrb.mxu0 %v11834_v30  ;;  %v13605_v30 = vld [vmem:[%s18929_s26 + $0xe10] sm:$0xf]  ;;  %v15918_v9 = vor.u32 %v18265_v20, %v15917_v29  ;;  %v17925_v29 = vld [vmem:[%s18929_s26 + $0x1604] sm:$0xf0]  ;;  %v15645_v20 = vld [vmem:[%s18929_s26 + $0x1e00] sm:$0xf]  ;;  %v7586_v38 = vpop.f32.mrf.mxu0 }
 0x231   : > { %7822 = vmatpush.bf16.msrb.mxu1 %v12922_v51  ;;  %v17959_v51 = vld [vmem:[%s18929_s26 + $0x1714] sm:$0xf0]  ;;  %v13606_v6 = vor.u32 %v17687_v55, %v13605_v30  ;;  %v14558_v30 = vor.u32 %v17925_v29, %v14557_v2  ;;  %v12109_v29 = vld [vmem:[%s18929_s26 + $0x260] sm:$0xf] }
 0x232   : > { %7836 = vmatpush.bf16.msrb.mxu2 %v14010_v49  ;;  %v18231_v49 = vld [vmem:[%s18929_s26 + $0x1f94] sm:$0xf0] }
 0x233   : > { %7850 = vmatpush.bf16.msrb.mxu3 %v15098_v62  ;;  %7809 = vmatmul.bf16.vlgmr.msrb.gmra.mxu0 %v19056_v16  ;;  %v14694_v62 = vor.u32 %v17959_v51, %v14693_v44  ;;  %v15782_v0 = vor.u32 %v18231_v49, %v15781_v28  ;;  %v17347_v55 = vld [vmem:[%s18929_s26 + $0x3f4] sm:$0xf0]  ;;  %v13333_v44 = vld [vmem:[%s18929_s26 + $0xbf0] sm:$0xf] }
 0x234   : > { %7857 = vmatpush.bf16.msra.mxu0 %v12790_v59  ;;  %7823 = vmatmul.bf16.vlgmr.msrb.gmra.mxu1 %v19071_v23  ;;  %v17381_v59 = vld [vmem:[%s18929_s26 + $0x504] sm:$0xf0]  ;;  %v17619_v49 = vld [vmem:[%s18929_s26 + $0xc74] sm:$0xf0] }
 0x235   : > { %7871 = vmatpush.bf16.msra.mxu1 %v13878_v1  ;;  %7837 = vmatmul.bf16.vlgmr.msrb.gmra.mxu2 %v19040_v4  ;;  %v13469_v1 = vld [vmem:[%s18929_s26 + $0xd00] sm:$0xf] }
 0x236   : > { %7885 = vmatpush.bf16.msra.mxu2 %v14966_v25  ;;  %7851 = vmatmul.bf16.vlgmr.msrb.gmra.mxu3 %v19069_v22  ;;  %v20239_v25 = vpop.f32.mrf.mxu2  ;;  %v13470_v45 = vor.u32 %v17653_v8, %v13469_v1 }
 0x237   : > { %7899 = vmatpush.bf16.msra.mxu3 %v16054_v15  ;;  %22392 = vst [vmem:[#allocation36_spill] sm:$0xff] %v20239_v25  ;;  %v22336_v15 = vperm.slane %v19986_v50, 3  ;;  %v14285_v25 = vld [vmem:[%s18929_s26 + $0x1360] sm:$0xf]  ;;  %v13749_v50 = vld [vmem:[%s18929_s26 + $0xf28] sm:$0xf] }
 0x238   : > { %7858 = vmatpush.bf16.msra.mxu0 %v12654_v17  ;;  %v18197_v17 = vld [vmem:[%s18929_s26 + $0x1e84] sm:$0xf0] }
 0x239   : > { %7872 = vmatpush.bf16.msra.mxu1 %v13742_v5  ;;  %v20247_v5 = vpop.f32.mrf.mxu3  ;;  %v7587_v51 = vadd.f32 %v7586_v38, %v22336_v15  ;;  %v15646_v28 = vor.u32 %v18197_v17, %v15645_v20  ;;  %v17313_v20 = vld [vmem:[%s18929_s26 + $0x2e4] sm:$0xf0]  ;;  %v13197_v17 = vld [vmem:[%s18929_s26 + $0xae0] sm:$0xf] }
 0x23a   : > { %7886 = vmatpush.bf16.msra.mxu2 %v14830_v13  ;;  %22393 = vst [vmem:[#allocation37_spill] sm:$0xff] %v20247_v5  ;;  %v12382_v13 = vor.u32 %v17381_v59, %v12381_v43  ;;  %v17891_v43 = vld [vmem:[%s18929_s26 + $0x14f4] sm:$0xf0]  ;;  %v7600_v59 = vpop.f32.mrf.mxu1  ;;  %v17585_v5 = vld [vmem:[%s18929_s26 + $0xb64] sm:$0xf0] }
 0x23b   : > { %7900 = vmatpush.bf16.msra.mxu3 %v15918_v9  ;;  %v12245_v9 = vld [vmem:[%s18929_s26 + $0x370] sm:$0xf]  ;;  %v7601_v1 = vadd.f32 %v7600_v59, %v7587_v51  ;;  %v17857_v51 = vld [vmem:[%s18929_s26 + $0x13e4] sm:$0xf0] }
 0x23c   : > { %7859 = vmatpush.bf16.msra.mxu0 %v12518_v34  ;;  %v14421_v34 = vld [vmem:[%s18929_s26 + $0x1470] sm:$0xf]  ;;  %v12246_v8 = vor.u32 %v17347_v55, %v12245_v9  ;;  %v15373_v9 = vld [vmem:[%s18929_s26 + $0x1be0] sm:$0xf]  ;;  %v12110_v55 = vor.u32 %v17313_v20, %v12109_v29 }
 0x23d   : > { %7873 = vmatpush.bf16.msra.mxu1 %v13606_v6  ;;  %v15509_v6 = vld [vmem:[%s18929_s26 + $0x1cf0] sm:$0xf]  ;;  %v14422_v2 = vor.u32 %v17891_v43, %v14421_v34  ;;  %v17279_v43 = vld [vmem:[%s18929_s26 + $0x1d4] sm:$0xf0] }
 0x23e   : > { %7887 = vmatpush.bf16.msra.mxu2 %v14694_v62  ;;  %v18163_v62 = vld [vmem:[%s18929_s26 + $0x1d74] sm:$0xf0]  ;;  %v7614_v38 = vpop.f32.mrf.mxu2  ;;  %v11973_v34 = vld [vmem:[%s18929_s26 + $0x150] sm:$0xf] }
 0x23f   : > { %7901 = vmatpush.bf16.msra.mxu3 %v15782_v0  ;;  %v13334_v0 = vor.u32 %v17619_v49, %v13333_v44  ;;  %v15510_v15 = vor.u32 %v18163_v62, %v15509_v6  ;;  %v14286_v49 = vor.u32 %v17857_v51, %v14285_v25  ;;  %v13061_v59 = vld [vmem:[%s18929_s26 + $0x9d0] sm:$0xf]  ;;  %v17551_v62 = vld [vmem:[%s18929_s26 + $0xa54] sm:$0xf0]  ;;  %v11837_v25 = vld [vmem:[%s18929_s26 + $0x40] sm:$0xf] }
 0x240   : > { %7860 = vmatpush.bf16.msra.mxu0 %v12382_v13  ;;  %v7615_v13 = vadd.f32 %v7614_v38, %v7601_v1  ;;  %v14149_v1 = vld [vmem:[%s18929_s26 + $0x1250] sm:$0xf]  ;;  %v17517_v38 = vld [vmem:[%s18929_s26 + $0x944] sm:$0xf0]  ;;  %v14013_v51 = vld [vmem:[%s18929_s26 + $0x1140] sm:$0xf] }
 0x241   : > { %7874 = vmatpush.bf16.msra.mxu1 %v13470_v45  ;;  %v18129_v45 = vld [vmem:[%s18929_s26 + $0x1c64] sm:$0xf0]  ;;  %v15237_v29 = vld [vmem:[%s18929_s26 + $0x1ad0] sm:$0xf] }
 0x242   : > { %7888 = vmatpush.bf16.msra.mxu2 %v14558_v30  ;;  %v7628_v30 = vpop.f32.mrf.mxu3  ;;  %v15374_v6 = vor.u32 %v18129_v45, %v15373_v9  ;;  %v17789_v9 = vld [vmem:[%s18929_s26 + $0x11c4] sm:$0xf0]  ;;  %v15101_v45 = vld [vmem:[%s18929_s26 + $0x19c0] sm:$0xf] }
 0x243   : > { %7902 = vmatpush.bf16.msra.mxu3 %v15646_v28  ;;  %v20267_v44 = vadd.f32 %v7628_v30, %v7615_v13  ;;  %v13198_v28 = vor.u32 %v17585_v5, %v13197_v17  ;;  %v11974_v5 = vor.u32 %v17279_v43, %v11973_v34  ;;  %v12925_v17 = vld [vmem:[%s18929_s26 + $0x8c0] sm:$0xf]  ;;  %v18061_v30 = vld [vmem:[%s18929_s26 + $0x1a44] sm:$0xf0]  ;;  %v12791_v34 = vld [vmem:[%s18929_s26 + $0x838] sm:$0xf0] }
 0x244   : > { %7861 = vmatpush.bf16.msra.mxu0 %v12246_v8  ;;  %v17823_v8 = vld [vmem:[%s18929_s26 + $0x12d4] sm:$0xf0]  ;;  %v17738_v43 = vld [vmem:[%s18929_s26 + $0x1034] sm:$0xf] }
 0x245   : > { %22394 = vst [vmem:[#allocation38_spill] sm:$0xff] %v20267_v44  ;;  %7875 = vmatpush.bf16.msra.mxu1 %v13334_v0  ;;  %v18095_v0 = vld [vmem:[%s18929_s26 + $0x1b54] sm:$0xf0]  ;;  %v14150_v20 = vor.u32 %v17823_v8, %v14149_v1  ;;  %v14014_v1 = vor.u32 %v17789_v9, %v14013_v51  ;;  %v18282_v8 = vld [vmem:[%s18929_s26 + $0x2134] sm:$0xf] }
 0x246   : > { %7889 = vmatpush.bf16.msra.mxu2 %v14422_v2  ;;  %v17245_v2 = vld [vmem:[%s18929_s26 + $0xc4] sm:$0xf0]  ;;  %v15238_v13 = vor.u32 %v18095_v0, %v15237_v29  ;;  %v16055_v29 = vld [vmem:[%s18929_s26 + $0x21b8] sm:$0xf0]  ;;  %v15102_v0 = vor.u32 %v18061_v30, %v15101_v45  ;;  %v17432_v44 = vld [vmem:[%s18929_s26 + $0x6a4] sm:$0xf]  ;;  %v20301_v45 = vpop.f32.mrf.mxu0 }
 0x247   : > { %7903 = vmatpush.bf16.msra.mxu3 %v15510_v15  ;;  %v13062_v15 = vor.u32 %v17551_v62, %v13061_v59  ;;  %v18010_v59 = vld [vmem:[%s18929_s26 + $0x18b4] sm:$0xf]  ;;  %v14967_v62 = vld [vmem:[%s18929_s26 + $0x1938] sm:$0xf0]  ;;  %v18248_v51 = vld [vmem:[%s18929_s26 + $0x2024] sm:$0xf]  ;;  %v12658_v9 = vor.u32 %v17432_v44, %v12655_v60  ;;  %v20309_v60 = vpop.f32.mrf.mxu1 }
 0x248   : > { %7862 = vmatpush.bf16.msra.mxu0 %v12110_v55  ;;  %v17466_v55 = vld [vmem:[%s18929_s26 + $0x7b4] sm:$0xf]  ;;  %22395 = vst [vmem:[#allocation39_spill] sm:$0xff] %v20301_v45  ;;  %v17450_v45 = vld [vmem:[%s18929_s26 + $0x72c] sm:$0xf0] }
 0x249   : > { %7876 = vmatpush.bf16.msra.mxu1 %v13198_v28  ;;  %v11838_v28 = vor.u32 %v17245_v2, %v11837_v25  ;;  %v14970_v2 = vor.u32 %v18010_v59, %v14967_v62  ;;  %v13607_v59 = vld [vmem:[%s18929_s26 + $0xe98] sm:$0xf0]  ;;  %v17942_v62 = vld [vmem:[%s18929_s26 + $0x1694] sm:$0xf]  ;;  %22396 = vst [vmem:[#allocation40_spill] sm:$0xff] %v20309_v60 }
 0x24a   : > { %7890 = vmatpush.bf16.msra.mxu2 %v14286_v49  ;;  %v13879_v49 = vld [vmem:[%s18929_s26 + $0x10b8] sm:$0xf0]  ;;  %v18214_v44 = vld [vmem:[%s18929_s26 + $0x1f14] sm:$0xf]  ;;  %v17840_v60 = vld [vmem:[%s18929_s26 + $0x1364] sm:$0xf] }
 0x24b   : > { %7904 = vmatpush.bf16.msra.mxu3 %v15374_v6  ;;  %v12926_v6 = vor.u32 %v17517_v38, %v12925_v17  ;;  %v13882_v25 = vor.u32 %v17738_v43, %v13879_v49  ;;  %v17976_v17 = vld [vmem:[%s18929_s26 + $0x17a4] sm:$0xf]  ;;  %v14831_v38 = vld [vmem:[%s18929_s26 + $0x1828] sm:$0xf0]  ;;  %v12519_v43 = vld [vmem:[%s18929_s26 + $0x618] sm:$0xf0] }
 0x24c   : > { %7863 = vmatpush.bf16.msra.mxu0 %v11974_v5  ;;  %v12794_v5 = vor.u32 %v17466_v55, %v12791_v34  ;;  %v14834_v55 = vor.u32 %v17976_v17, %v14831_v38  ;;  %v17398_v34 = vld [vmem:[%s18929_s26 + $0x594] sm:$0xf]  ;;  %v13471_v38 = vld [vmem:[%s18929_s26 + $0xd88] sm:$0xf0] }
 0x24d   : > { %7877 = vmatpush.bf16.msra.mxu1 %v13062_v15  ;;  %v16058_v15 = vor.u32 %v18282_v8, %v16055_v29  ;;  %v17364_v8 = vld [vmem:[%s18929_s26 + $0x484] sm:$0xf] }
 0x24e   : > { %7891 = vmatpush.bf16.msra.mxu2 %v14150_v20  ;;  %v13743_v20 = vld [vmem:[%s18929_s26 + $0xfa8] sm:$0xf0] }
 0x24f   : > { %7905 = vmatpush.bf16.msra.mxu3 %v15238_v13  ;;  %v15919_v13 = vld [vmem:[%s18929_s26 + $0x20a8] sm:$0xf0]  ;;  %v13746_v30 = vor.u32 %v17704_v63, %v13743_v20  ;;  %v12522_v63 = vor.u32 %v17398_v34, %v12519_v43 }
 0x250   : > { %7864 = vmatpush.bf16.msra.mxu0 %v11838_v28  ;;  %v17670_v28 = vld [vmem:[%s18929_s26 + $0xe14] sm:$0xf]  ;;  %v15922_v49 = vor.u32 %v18248_v51, %v15919_v13  ;;  %v17908_v51 = vld [vmem:[%s18929_s26 + $0x1584] sm:$0xf]  ;;  %v14559_v13 = vld [vmem:[%s18929_s26 + $0x1608] sm:$0xf0]  ;;  %v7642_v43 = vpop.f32.mrf.mxu0 }
 0x251   : > { %7878 = vmatpush.bf16.msra.mxu1 %v12926_v6  ;;  %v14695_v6 = vld [vmem:[%s18929_s26 + $0x1718] sm:$0xf0]  ;;  %v13610_v29 = vor.u32 %v17670_v28, %v13607_v59  ;;  %v17330_v59 = vld [vmem:[%s18929_s26 + $0x374] sm:$0xf] }
 0x252   : > { %7892 = vmatpush.bf16.msra.mxu2 %v14014_v1  ;;  %v15783_v1 = vld [vmem:[%s18929_s26 + $0x1f98] sm:$0xf0] }
 0x253   : > { %7906 = vmatpush.bf16.msra.mxu3 %v15102_v0  ;;  %7865 = vmatmul.bf16.vlgmr.msra.gmra.mxu0 %v19056_v16  ;;  %v14698_v0 = vor.u32 %v17942_v62, %v14695_v6  ;;  %v15786_v17 = vor.u32 %v18214_v44, %v15783_v1  ;;  %v12247_v62 = vld [vmem:[%s18929_s26 + $0x3f8] sm:$0xf0]  ;;  %v17602_v6 = vld [vmem:[%s18929_s26 + $0xbf4] sm:$0xf] }
 0x254   : > { %7913 = vmatpush.bf16.msrb.mxu0 %v12794_v5  ;;  %7879 = vmatmul.bf16.vlgmr.msra.gmra.mxu1 %v19071_v23  ;;  %v12383_v5 = vld [vmem:[%s18929_s26 + $0x508] sm:$0xf0] }
 0x255   : > { %7927 = vmatpush.bf16.msrb.mxu1 %v13882_v25  ;;  %7893 = vmatmul.bf16.vlgmr.msra.gmra.mxu2 %v19040_v4  ;;  %v17636_v25 = vld [vmem:[%s18929_s26 + $0xd04] sm:$0xf]  ;;  %v12386_v34 = vor.u32 %v17364_v8, %v12383_v5  ;;  %v17874_v8 = vld [vmem:[%s18929_s26 + $0x1474] sm:$0xf]  ;;  %v14423_v5 = vld [vmem:[%s18929_s26 + $0x14f8] sm:$0xf0] }
 0x256   : > { %7941 = vmatpush.bf16.msrb.mxu2 %v14970_v2  ;;  %7907 = vmatmul.bf16.vlgmr.msra.gmra.mxu3 %v19069_v22  ;;  %v20320_v2 = vpop.f32.mrf.mxu2  ;;  %v13474_v28 = vor.u32 %v17636_v25, %v13471_v38  ;;  %v12250_v38 = vor.u32 %v17330_v59, %v12247_v62  ;;  %v18112_v59 = vld [vmem:[%s18929_s26 + $0x1be4] sm:$0xf] }
 0x257   : > { %7955 = vmatpush.bf16.msrb.mxu3 %v16058_v15  ;;  %22397 = vst [vmem:[#allocation41_spill] sm:$0xff] %v20320_v2  ;;  %v20323_v15 = vld [vmem:[%s18938_s14 + $0x8] sm:$0xff] }
 0x258   : > { %7914 = vmatpush.bf16.msrb.mxu0 %v12658_v9  ;;  %22398 = vst [vmem:[#allocation42_spill] sm:$0xff] %v20323_v15  ;;  %v22337_v20 = vperm.slane %v20323_v15, 4  ;;  %v18180_v9 = vld [vmem:[%s18929_s26 + $0x1e04] sm:$0xf]  ;;  %v13199_v2 = vld [vmem:[%s18929_s26 + $0xb68] sm:$0xf0] }
 0x259   : > { %7928 = vmatpush.bf16.msrb.mxu1 %v13746_v30  ;;  %v15647_v30 = vld [vmem:[%s18929_s26 + $0x1e88] sm:$0xf0] }
 0x25a   : > { %7942 = vmatpush.bf16.msrb.mxu2 %v14834_v55  ;;  %v20331_v55 = vpop.f32.mrf.mxu3  ;;  %v7643_v44 = vadd.f32 %v7642_v43, %v22337_v20  ;;  %v15650_v1 = vor.u32 %v18180_v9, %v15647_v30  ;;  %v12111_v9 = vld [vmem:[%s18929_s26 + $0x2e8] sm:$0xf0]  ;;  %v17568_v30 = vld [vmem:[%s18929_s26 + $0xae4] sm:$0xf] }
 0x25b   : > { %7956 = vmatpush.bf16.msrb.mxu3 %v15922_v49  ;;  %22399 = vst [vmem:[#allocation43_spill] sm:$0xff] %v20331_v55  ;;  %v14562_v49 = vor.u32 %v17908_v51, %v14559_v13  ;;  %v7656_v55 = vpop.f32.mrf.mxu1  ;;  %v14426_v51 = vor.u32 %v17874_v8, %v14423_v5  ;;  %v17296_v13 = vld [vmem:[%s18929_s26 + $0x264] sm:$0xf]  ;;  %v11975_v8 = vld [vmem:[%s18929_s26 + $0x1d8] sm:$0xf0] }
 0x25c   : > { %7915 = vmatpush.bf16.msrb.mxu0 %v12522_v63  ;;  %v13335_v63 = vld [vmem:[%s18929_s26 + $0xc78] sm:$0xf0]  ;;  %v7657_v25 = vadd.f32 %v7656_v55, %v7643_v44  ;;  %v14287_v55 = vld [vmem:[%s18929_s26 + $0x13e8] sm:$0xf0]  ;;  %v12114_v62 = vor.u32 %v17296_v13, %v12111_v9  ;;  %v13202_v44 = vor.u32 %v17568_v30, %v13199_v2  ;;  %v17534_v5 = vld [vmem:[%s18929_s26 + $0x9d4] sm:$0xf] }
 0x25d   : > { %7929 = vmatpush.bf16.msrb.mxu1 %v13610_v29  ;;  %v18146_v29 = vld [vmem:[%s18929_s26 + $0x1cf4] sm:$0xf]  ;;  %v17500_v30 = vld [vmem:[%s18929_s26 + $0x8c4] sm:$0xf] }
 0x25e   : > { %7943 = vmatpush.bf16.msrb.mxu2 %v14698_v0  ;;  %v15511_v0 = vld [vmem:[%s18929_s26 + $0x1d78] sm:$0xf0]  ;;  %v7670_v43 = vpop.f32.mrf.mxu2  ;;  %v18078_v13 = vld [vmem:[%s18929_s26 + $0x1ad4] sm:$0xf] }
 0x25f   : > { %7957 = vmatpush.bf16.msrb.mxu3 %v15786_v17  ;;  %v13338_v17 = vor.u32 %v17602_v6, %v13335_v63  ;;  %v15514_v20 = vor.u32 %v18146_v29, %v15511_v0  ;;  %v17262_v63 = vld [vmem:[%s18929_s26 + $0x154] sm:$0xf]  ;;  %v13063_v0 = vld [vmem:[%s18929_s26 + $0xa58] sm:$0xf0] }
 0x260   : > { %7916 = vmatpush.bf16.msrb.mxu0 %v12386_v34  ;;  %v7671_v34 = vadd.f32 %v7670_v43, %v7657_v25  ;;  %v17806_v25 = vld [vmem:[%s18929_s26 + $0x1254] sm:$0xf]  ;;  %v11978_v2 = vor.u32 %v17262_v63, %v11975_v8  ;;  %v12927_v43 = vld [vmem:[%s18929_s26 + $0x948] sm:$0xf0]  ;;  %v17484_v63 = vld [vmem:[%s18929_s26 + $0x83c] sm:$0xf0] }
 0x261   : > { %7930 = vmatpush.bf16.msrb.mxu1 %v13474_v28  ;;  %v15375_v28 = vld [vmem:[%s18929_s26 + $0x1c68] sm:$0xf0]  ;;  %v13885_v8 = vld [vmem:[%s18929_s26 + $0x1038] sm:$0xf] }
 0x262   : > { %7944 = vmatpush.bf16.msrb.mxu2 %v14562_v49  ;;  %v7684_v49 = vpop.f32.mrf.mxu3  ;;  %v15378_v29 = vor.u32 %v18112_v59, %v15375_v28  ;;  %v14015_v59 = vld [vmem:[%s18929_s26 + $0x11c8] sm:$0xf0]  ;;  %v18044_v28 = vld [vmem:[%s18929_s26 + $0x19c4] sm:$0xf] }
 0x263   : > { %7958 = vmatpush.bf16.msrb.mxu3 %v15650_v1  ;;  %v20351_v6 = vadd.f32 %v7684_v49, %v7671_v34  ;;  %v14290_v1 = vor.u32 %v17840_v60, %v14287_v55  ;;  %v17228_v60 = vld [vmem:[%s18929_s26 + $0x44] sm:$0xf]  ;;  %v15103_v49 = vld [vmem:[%s18929_s26 + $0x1a48] sm:$0xf0] }
 0x264   : > { %7917 = vmatpush.bf16.msrb.mxu0 %v12250_v38  ;;  %v14151_v38 = vld [vmem:[%s18929_s26 + $0x12d8] sm:$0xf0]  ;;  %v17772_v55 = vld [vmem:[%s18929_s26 + $0x1144] sm:$0xf] }
 0x265   : > { %22400 = vst [vmem:[#allocation44_spill] sm:$0xff] %v20351_v6  ;;  %7931 = vmatpush.bf16.msrb.mxu1 %v13338_v17  ;;  %v15239_v17 = vld [vmem:[%s18929_s26 + $0x1b58] sm:$0xf0]  ;;  %v14154_v9 = vor.u32 %v17806_v25, %v14151_v38  ;;  %v14018_v25 = vor.u32 %v17772_v55, %v14015_v59  ;;  %v16061_v38 = vld [vmem:[%s18929_s26 + $0x2138] sm:$0xf] }
 0x266   : > { %7945 = vmatpush.bf16.msrb.mxu2 %v14426_v51  ;;  %v11839_v51 = vld [vmem:[%s18929_s26 + $0xc8] sm:$0xf0]  ;;  %v15242_v34 = vor.u32 %v18078_v13, %v15239_v17  ;;  %v18300_v13 = vld [vmem:[%s18929_s26 + $0x21bc] sm:$0xf0]  ;;  %v15106_v17 = vor.u32 %v18044_v28, %v15103_v49  ;;  %v12661_v6 = vld [vmem:[%s18929_s26 + $0x6a8] sm:$0xf]  ;;  %v20385_v28 = vpop.f32.mrf.mxu0 }
 0x267   : > { %7959 = vmatpush.bf16.msrb.mxu3 %v15514_v20  ;;  %v13066_v20 = vor.u32 %v17534_v5, %v13063_v0  ;;  %v14973_v5 = vld [vmem:[%s18929_s26 + $0x18b8] sm:$0xf]  ;;  %v18028_v0 = vld [vmem:[%s18929_s26 + $0x193c] sm:$0xf0]  ;;  %v15925_v55 = vld [vmem:[%s18929_s26 + $0x2028] sm:$0xf]  ;;  %v12662_v59 = vor.u32 %v17450_v45, %v12661_v6  ;;  %v20393_v45 = vpop.f32.mrf.mxu1 }
 0x268   : > { %7918 = vmatpush.bf16.msrb.mxu0 %v12114_v62  ;;  %v12797_v62 = vld [vmem:[%s18929_s26 + $0x7b8] sm:$0xf]  ;;  %22401 = vst [vmem:[#allocation45_spill] sm:$0xff] %v20385_v28  ;;  %v17705_v28 = vld [vmem:[%s18929_s26 + $0xf2c] sm:$0xf] }
 0x269   : > { %7932 = vmatpush.bf16.msrb.mxu1 %v13202_v44  ;;  %v11842_v44 = vor.u32 %v17228_v60, %v11839_v51  ;;  %v14974_v51 = vor.u32 %v18028_v0, %v14973_v5  ;;  %v17688_v5 = vld [vmem:[%s18929_s26 + $0xe9c] sm:$0xf0]  ;;  %v14701_v0 = vld [vmem:[%s18929_s26 + $0x1698] sm:$0xf]  ;;  %22402 = vst [vmem:[#allocation46_spill] sm:$0xff] %v20393_v45 }
 0x26a   : > { %7946 = vmatpush.bf16.msrb.mxu2 %v14290_v1  ;;  %v17756_v1 = vld [vmem:[%s18929_s26 + $0x10bc] sm:$0xf0]  ;;  %v15789_v6 = vld [vmem:[%s18929_s26 + $0x1f18] sm:$0xf]  ;;  %v12663_v45 = vld [vmem:[%s18929_s26 + $0x730] sm:$0xf0] }
 0x26b   : > { %7960 = vmatpush.bf16.msrb.mxu3 %v15378_v29  ;;  %v12930_v29 = vor.u32 %v17500_v30, %v12927_v43  ;;  %v13886_v60 = vor.u32 %v17756_v1, %v13885_v8  ;;  %v14837_v30 = vld [vmem:[%s18929_s26 + $0x17a8] sm:$0xf]  ;;  %v17994_v43 = vld [vmem:[%s18929_s26 + $0x182c] sm:$0xf0]  ;;  %v17416_v8 = vld [vmem:[%s18929_s26 + $0x61c] sm:$0xf0] }
 0x26c   : > { %7919 = vmatpush.bf16.msrb.mxu0 %v11978_v2  ;;  %v12798_v2 = vor.u32 %v17484_v63, %v12797_v62  ;;  %v14838_v62 = vor.u32 %v17994_v43, %v14837_v30  ;;  %v12525_v63 = vld [vmem:[%s18929_s26 + $0x598] sm:$0xf]  ;;  %v17654_v30 = vld [vmem:[%s18929_s26 + $0xd8c] sm:$0xf0]  ;;  %v14565_v43 = vld [vmem:[%s18929_s26 + $0x1588] sm:$0xf] }
 0x26d   : > { %7933 = vmatpush.bf16.msrb.mxu1 %v13066_v20  ;;  %v16062_v20 = vor.u32 %v18300_v13, %v16061_v38  ;;  %v12389_v38 = vld [vmem:[%s18929_s26 + $0x488] sm:$0xf] }
 0x26e   : > { %7947 = vmatpush.bf16.msrb.mxu2 %v14154_v9  ;;  %v17722_v9 = vld [vmem:[%s18929_s26 + $0xfac] sm:$0xf0] }
 0x26f   : > { %7961 = vmatpush.bf16.msrb.mxu3 %v15242_v34  ;;  %v18266_v34 = vld [vmem:[%s18929_s26 + $0x20ac] sm:$0xf0]  ;;  %v13750_v49 = vor.u32 %v17722_v9, %v13749_v50  ;;  %v12526_v50 = vor.u32 %v17416_v8, %v12525_v63 }
 0x270   : > { %7920 = vmatpush.bf16.msrb.mxu0 %v11842_v44  ;;  %v13613_v44 = vld [vmem:[%s18929_s26 + $0xe18] sm:$0xf]  ;;  %v15926_v1 = vor.u32 %v18266_v34, %v15925_v55  ;;  %v17926_v55 = vld [vmem:[%s18929_s26 + $0x160c] sm:$0xf0]  ;;  %v15653_v34 = vld [vmem:[%s18929_s26 + $0x1e08] sm:$0xf]  ;;  %v7698_v63 = vpop.f32.mrf.mxu0 }
 0x271   : > { %7934 = vmatpush.bf16.msrb.mxu1 %v12930_v29  ;;  %v17960_v29 = vld [vmem:[%s18929_s26 + $0x171c] sm:$0xf0]  ;;  %v13614_v13 = vor.u32 %v17688_v5, %v13613_v44  ;;  %v14566_v44 = vor.u32 %v17926_v55, %v14565_v43  ;;  %v12117_v55 = vld [vmem:[%s18929_s26 + $0x268] sm:$0xf] }
 0x272   : > { %7948 = vmatpush.bf16.msrb.mxu2 %v14018_v25  ;;  %v18232_v25 = vld [vmem:[%s18929_s26 + $0x1f9c] sm:$0xf0] }
 0x273   : > { %7962 = vmatpush.bf16.msrb.mxu3 %v15106_v17  ;;  %7921 = vmatmul.bf16.vlgmr.msrb.gmra.mxu0 %v19056_v16  ;;  %v14702_v17 = vor.u32 %v17960_v29, %v14701_v0  ;;  %v15790_v9 = vor.u32 %v18232_v25, %v15789_v6  ;;  %v17348_v5 = vld [vmem:[%s18929_s26 + $0x3fc] sm:$0xf0]  ;;  %v13341_v0 = vld [vmem:[%s18929_s26 + $0xbf8] sm:$0xf] }
 0x274   : > { %7969 = vmatpush.bf16.msra.mxu0 %v12798_v2  ;;  %7935 = vmatmul.bf16.vlgmr.msrb.gmra.mxu1 %v19071_v23  ;;  %v17382_v2 = vld [vmem:[%s18929_s26 + $0x50c] sm:$0xf0]  ;;  %v17620_v25 = vld [vmem:[%s18929_s26 + $0xc7c] sm:$0xf0] }
 0x275   : > { %7983 = vmatpush.bf16.msra.mxu1 %v13886_v60  ;;  %7949 = vmatmul.bf16.vlgmr.msrb.gmra.mxu2 %v19040_v4  ;;  %v13477_v60 = vld [vmem:[%s18929_s26 + $0xd08] sm:$0xf] }
 0x276   : > { %7997 = vmatpush.bf16.msra.mxu2 %v14974_v51  ;;  %7963 = vmatmul.bf16.vlgmr.msrb.gmra.mxu3 %v19069_v22  ;;  %v20404_v51 = vpop.f32.mrf.mxu2  ;;  %v13478_v8 = vor.u32 %v17654_v30, %v13477_v60 }
 0x277   : > { %8011 = vmatpush.bf16.msra.mxu3 %v16062_v20  ;;  %22403 = vst [vmem:[#allocation47_spill] sm:$0xff] %v20404_v51  ;;  %v22340_v20 = vperm.slane %v20323_v15, 5  ;;  %v14293_v51 = vld [vmem:[%s18929_s26 + $0x1368] sm:$0xf] }
 0x278   : > { %7970 = vmatpush.bf16.msra.mxu0 %v12662_v59  ;;  %v18198_v59 = vld [vmem:[%s18929_s26 + $0x1e8c] sm:$0xf0] }
 0x279   : > { %7984 = vmatpush.bf16.msra.mxu1 %v13750_v49  ;;  %v20412_v49 = vpop.f32.mrf.mxu3  ;;  %v7699_v29 = vadd.f32 %v7698_v63, %v22340_v20  ;;  %v15654_v6 = vor.u32 %v18198_v59, %v15653_v34  ;;  %v17314_v34 = vld [vmem:[%s18929_s26 + $0x2ec] sm:$0xf0]  ;;  %v13205_v59 = vld [vmem:[%s18929_s26 + $0xae8] sm:$0xf] }
 0x27a   : > { %7998 = vmatpush.bf16.msra.mxu2 %v14838_v62  ;;  %22404 = vst [vmem:[#allocation48_spill] sm:$0xff] %v20412_v49  ;;  %v12390_v62 = vor.u32 %v17382_v2, %v12389_v38  ;;  %v17892_v38 = vld [vmem:[%s18929_s26 + $0x14fc] sm:$0xf0]  ;;  %v7712_v2 = vpop.f32.mrf.mxu1  ;;  %v17586_v49 = vld [vmem:[%s18929_s26 + $0xb6c] sm:$0xf0] }
 0x27b   : > { %8012 = vmatpush.bf16.msra.mxu3 %v15926_v1  ;;  %v12253_v1 = vld [vmem:[%s18929_s26 + $0x378] sm:$0xf]  ;;  %v7713_v60 = vadd.f32 %v7712_v2, %v7699_v29  ;;  %v17858_v29 = vld [vmem:[%s18929_s26 + $0x13ec] sm:$0xf0] }
 0x27c   : > { %7971 = vmatpush.bf16.msra.mxu0 %v12526_v50  ;;  %v14429_v50 = vld [vmem:[%s18929_s26 + $0x1478] sm:$0xf]  ;;  %v12254_v30 = vor.u32 %v17348_v5, %v12253_v1  ;;  %v15381_v1 = vld [vmem:[%s18929_s26 + $0x1be8] sm:$0xf]  ;;  %v12118_v5 = vor.u32 %v17314_v34, %v12117_v55 }
 0x27d   : > { %7985 = vmatpush.bf16.msra.mxu1 %v13614_v13  ;;  %v15517_v13 = vld [vmem:[%s18929_s26 + $0x1cf8] sm:$0xf]  ;;  %v14430_v43 = vor.u32 %v17892_v38, %v14429_v50  ;;  %v17280_v38 = vld [vmem:[%s18929_s26 + $0x1dc] sm:$0xf0] }
 0x27e   : > { %7999 = vmatpush.bf16.msra.mxu2 %v14702_v17  ;;  %v18164_v17 = vld [vmem:[%s18929_s26 + $0x1d7c] sm:$0xf0]  ;;  %v7726_v63 = vpop.f32.mrf.mxu2  ;;  %v11981_v50 = vld [vmem:[%s18929_s26 + $0x158] sm:$0xf] }
 0x27f   : > { %8013 = vmatpush.bf16.msra.mxu3 %v15790_v9  ;;  %v13342_v9 = vor.u32 %v17620_v25, %v13341_v0  ;;  %v15518_v20 = vor.u32 %v18164_v17, %v15517_v13  ;;  %v14294_v25 = vor.u32 %v17858_v29, %v14293_v51  ;;  %v13069_v2 = vld [vmem:[%s18929_s26 + $0x9d8] sm:$0xf]  ;;  %v17552_v17 = vld [vmem:[%s18929_s26 + $0xa5c] sm:$0xf0]  ;;  %v11845_v51 = vld [vmem:[%s18929_s26 + $0x48] sm:$0xf] }
 0x280   : > { %7972 = vmatpush.bf16.msra.mxu0 %v12390_v62  ;;  %v7727_v62 = vadd.f32 %v7726_v63, %v7713_v60  ;;  %v14157_v60 = vld [vmem:[%s18929_s26 + $0x1258] sm:$0xf]  ;;  %v17518_v63 = vld [vmem:[%s18929_s26 + $0x94c] sm:$0xf0]  ;;  %v14021_v29 = vld [vmem:[%s18929_s26 + $0x1148] sm:$0xf] }
 0x281   : > { %7986 = vmatpush.bf16.msra.mxu1 %v13478_v8  ;;  %v18130_v8 = vld [vmem:[%s18929_s26 + $0x1c6c] sm:$0xf0]  ;;  %v15245_v55 = vld [vmem:[%s18929_s26 + $0x1ad8] sm:$0xf] }
 0x282   : > { %8000 = vmatpush.bf16.msra.mxu2 %v14566_v44  ;;  %v7740_v44 = vpop.f32.mrf.mxu3  ;;  %v15382_v13 = vor.u32 %v18130_v8, %v15381_v1  ;;  %v17790_v1 = vld [vmem:[%s18929_s26 + $0x11cc] sm:$0xf0]  ;;  %v15109_v8 = vld [vmem:[%s18929_s26 + $0x19c8] sm:$0xf] }
 0x283   : > { %8014 = vmatpush.bf16.msra.mxu3 %v15654_v6  ;;  %v20432_v0 = vadd.f32 %v7740_v44, %v7727_v62  ;;  %v13206_v6 = vor.u32 %v17586_v49, %v13205_v59  ;;  %v11982_v49 = vor.u32 %v17280_v38, %v11981_v50  ;;  %v12933_v59 = vld [vmem:[%s18929_s26 + $0x8c8] sm:$0xf]  ;;  %v18062_v44 = vld [vmem:[%s18929_s26 + $0x1a4c] sm:$0xf0]  ;;  %v12799_v50 = vld [vmem:[%s18929_s26 + $0x840] sm:$0xf0] }
 0x284   : > { %7973 = vmatpush.bf16.msra.mxu0 %v12254_v30  ;;  %v17824_v30 = vld [vmem:[%s18929_s26 + $0x12dc] sm:$0xf0]  ;;  %v17739_v38 = vld [vmem:[%s18929_s26 + $0x103c] sm:$0xf] }
 0x285   : > { %22405 = vst [vmem:[#allocation49_spill] sm:$0xff] %v20432_v0  ;;  %7987 = vmatpush.bf16.msra.mxu1 %v13342_v9  ;;  %v18096_v9 = vld [vmem:[%s18929_s26 + $0x1b5c] sm:$0xf0]  ;;  %v14158_v34 = vor.u32 %v17824_v30, %v14157_v60  ;;  %v14022_v60 = vor.u32 %v17790_v1, %v14021_v29  ;;  %v18283_v30 = vld [vmem:[%s18929_s26 + $0x213c] sm:$0xf] }
 0x286   : > { %8001 = vmatpush.bf16.msra.mxu2 %v14430_v43  ;;  %v17246_v43 = vld [vmem:[%s18929_s26 + $0xcc] sm:$0xf0]  ;;  %v15246_v62 = vor.u32 %v18096_v9, %v15245_v55  ;;  %v16063_v55 = vld [vmem:[%s18929_s26 + $0x21c0] sm:$0xf0]  ;;  %v15110_v9 = vor.u32 %v18062_v44, %v15109_v8  ;;  %v17433_v0 = vld [vmem:[%s18929_s26 + $0x6ac] sm:$0xf]  ;;  %v20466_v8 = vpop.f32.mrf.mxu0 }
 0x287   : > { %8015 = vmatpush.bf16.msra.mxu3 %v15518_v20  ;;  %v13070_v20 = vor.u32 %v17552_v17, %v13069_v2  ;;  %v18011_v2 = vld [vmem:[%s18929_s26 + $0x18bc] sm:$0xf]  ;;  %v14975_v17 = vld [vmem:[%s18929_s26 + $0x1940] sm:$0xf0]  ;;  %v18249_v29 = vld [vmem:[%s18929_s26 + $0x202c] sm:$0xf]  ;;  %v12666_v1 = vor.u32 %v17433_v0, %v12663_v45  ;;  %v20474_v45 = vpop.f32.mrf.mxu1 }
 0x288   : > { %7974 = vmatpush.bf16.msra.mxu0 %v12118_v5  ;;  %v17467_v5 = vld [vmem:[%s18929_s26 + $0x7bc] sm:$0xf]  ;;  %22406 = vst [vmem:[#allocation50_spill] sm:$0xff] %v20466_v8  ;;  %v13757_v8 = vld [vmem:[%s18929_s26 + $0xf30] sm:$0xf] }
 0x289   : > { %7988 = vmatpush.bf16.msra.mxu1 %v13206_v6  ;;  %v11846_v6 = vor.u32 %v17246_v43, %v11845_v51  ;;  %v14978_v43 = vor.u32 %v18011_v2, %v14975_v17  ;;  %v13615_v2 = vld [vmem:[%s18929_s26 + $0xea0] sm:$0xf0]  ;;  %v17943_v17 = vld [vmem:[%s18929_s26 + $0x169c] sm:$0xf]  ;;  %22407 = vst [vmem:[#allocation51_spill] sm:$0xff] %v20474_v45 }
 0x28a   : > { %8002 = vmatpush.bf16.msra.mxu2 %v14294_v25  ;;  %v13887_v25 = vld [vmem:[%s18929_s26 + $0x10c0] sm:$0xf0]  ;;  %v18215_v0 = vld [vmem:[%s18929_s26 + $0x1f1c] sm:$0xf]  ;;  %v17451_v45 = vld [vmem:[%s18929_s26 + $0x734] sm:$0xf0] }
 0x28b   : > { %8016 = vmatpush.bf16.msra.mxu3 %v15382_v13  ;;  %v12934_v13 = vor.u32 %v17518_v63, %v12933_v59  ;;  %v13890_v51 = vor.u32 %v17739_v38, %v13887_v25  ;;  %v17977_v59 = vld [vmem:[%s18929_s26 + $0x17ac] sm:$0xf]  ;;  %v14839_v63 = vld [vmem:[%s18929_s26 + $0x1830] sm:$0xf0]  ;;  %v12527_v38 = vld [vmem:[%s18929_s26 + $0x620] sm:$0xf0] }
 0x28c   : > { %7975 = vmatpush.bf16.msra.mxu0 %v11982_v49  ;;  %v12802_v49 = vor.u32 %v17467_v5, %v12799_v50  ;;  %v14842_v5 = vor.u32 %v17977_v59, %v14839_v63  ;;  %v17399_v50 = vld [vmem:[%s18929_s26 + $0x59c] sm:$0xf]  ;;  %v13479_v59 = vld [vmem:[%s18929_s26 + $0xd90] sm:$0xf0]  ;;  %v17909_v63 = vld [vmem:[%s18929_s26 + $0x158c] sm:$0xf] }
 0x28d   : > { %7989 = vmatpush.bf16.msra.mxu1 %v13070_v20  ;;  %v16066_v20 = vor.u32 %v18283_v30, %v16063_v55  ;;  %v17365_v30 = vld [vmem:[%s18929_s26 + $0x48c] sm:$0xf] }
 0x28e   : > { %8003 = vmatpush.bf16.msra.mxu2 %v14158_v34  ;;  %v13751_v34 = vld [vmem:[%s18929_s26 + $0xfb0] sm:$0xf0] }
 0x28f   : > { %8017 = vmatpush.bf16.msra.mxu3 %v15246_v62  ;;  %v15927_v62 = vld [vmem:[%s18929_s26 + $0x20b0] sm:$0xf0]  ;;  %v13754_v44 = vor.u32 %v17705_v28, %v13751_v34  ;;  %v12530_v28 = vor.u32 %v17399_v50, %v12527_v38 }
 0x290   : > { %7976 = vmatpush.bf16.msra.mxu0 %v11846_v6  ;;  %v17671_v6 = vld [vmem:[%s18929_s26 + $0xe1c] sm:$0xf]  ;;  %v15930_v25 = vor.u32 %v18249_v29, %v15927_v62  ;;  %v14567_v29 = vld [vmem:[%s18929_s26 + $0x1610] sm:$0xf0]  ;;  %v18181_v62 = vld [vmem:[%s18929_s26 + $0x1e0c] sm:$0xf]  ;;  %v7754_v50 = vpop.f32.mrf.mxu0 }
 0x291   : > { %7990 = vmatpush.bf16.msra.mxu1 %v12934_v13  ;;  %v14703_v13 = vld [vmem:[%s18929_s26 + $0x1720] sm:$0xf0]  ;;  %v13618_v55 = vor.u32 %v17671_v6, %v13615_v2  ;;  %v14570_v6 = vor.u32 %v17909_v63, %v14567_v29  ;;  %v17297_v29 = vld [vmem:[%s18929_s26 + $0x26c] sm:$0xf] }
 0x292   : > { %8004 = vmatpush.bf16.msra.mxu2 %v14022_v60  ;;  %v15791_v60 = vld [vmem:[%s18929_s26 + $0x1fa0] sm:$0xf0] }
 0x293   : > { %8018 = vmatpush.bf16.msra.mxu3 %v15110_v9  ;;  %7977 = vmatmul.bf16.vlgmr.msra.gmra.mxu0 %v19056_v16  ;;  %v14706_v9 = vor.u32 %v17943_v17, %v14703_v13  ;;  %v15794_v34 = vor.u32 %v18215_v0, %v15791_v60  ;;  %v12255_v2 = vld [vmem:[%s18929_s26 + $0x400] sm:$0xf0]  ;;  %v17603_v17 = vld [vmem:[%s18929_s26 + $0xbfc] sm:$0xf] }
 0x294   : > { %8025 = vmatpush.bf16.msrb.mxu0 %v12802_v49  ;;  %7991 = vmatmul.bf16.vlgmr.msra.gmra.mxu1 %v19071_v23  ;;  %v12391_v49 = vld [vmem:[%s18929_s26 + $0x510] sm:$0xf0]  ;;  %v13343_v60 = vld [vmem:[%s18929_s26 + $0xc80] sm:$0xf0] }
 0x295   : > { %8039 = vmatpush.bf16.msrb.mxu1 %v13890_v51  ;;  %8005 = vmatmul.bf16.vlgmr.msra.gmra.mxu2 %v19040_v4  ;;  %v17637_v51 = vld [vmem:[%s18929_s26 + $0xd0c] sm:$0xf] }
 0x296   : > { %8053 = vmatpush.bf16.msrb.mxu2 %v14978_v43  ;;  %8019 = vmatmul.bf16.vlgmr.msra.gmra.mxu3 %v19069_v22  ;;  %v20485_v43 = vpop.f32.mrf.mxu2  ;;  %v13482_v38 = vor.u32 %v17637_v51, %v13479_v59 }
 0x297   : > { %8067 = vmatpush.bf16.msrb.mxu3 %v16066_v20  ;;  %22408 = vst [vmem:[#allocation52_spill] sm:$0xff] %v20485_v43  ;;  %v22341_v20 = vperm.slane %v20323_v15, 6  ;;  %v17841_v43 = vld [vmem:[%s18929_s26 + $0x136c] sm:$0xf] }
 0x298   : > { %8026 = vmatpush.bf16.msrb.mxu0 %v12666_v1  ;;  %v15655_v1 = vld [vmem:[%s18929_s26 + $0x1e90] sm:$0xf0] }
 0x299   : > { %8040 = vmatpush.bf16.msrb.mxu1 %v13754_v44  ;;  %v20493_v44 = vpop.f32.mrf.mxu3  ;;  %v7755_v13 = vadd.f32 %v7754_v50, %v22341_v20  ;;  %v15658_v0 = vor.u32 %v18181_v62, %v15655_v1  ;;  %v12119_v62 = vld [vmem:[%s18929_s26 + $0x2f0] sm:$0xf0]  ;;  %v17569_v1 = vld [vmem:[%s18929_s26 + $0xaec] sm:$0xf] }
 0x29a   : > { %8054 = vmatpush.bf16.msrb.mxu2 %v14842_v5  ;;  %22409 = vst [vmem:[#allocation53_spill] sm:$0xff] %v20493_v44  ;;  %v12394_v5 = vor.u32 %v17365_v30, %v12391_v49  ;;  %v14431_v30 = vld [vmem:[%s18929_s26 + $0x1500] sm:$0xf0]  ;;  %v7768_v49 = vpop.f32.mrf.mxu1  ;;  %v13207_v44 = vld [vmem:[%s18929_s26 + $0xb70] sm:$0xf0] }
 0x29b   : > { %8068 = vmatpush.bf16.msrb.mxu3 %v15930_v25  ;;  %v17331_v25 = vld [vmem:[%s18929_s26 + $0x37c] sm:$0xf]  ;;  %v7769_v51 = vadd.f32 %v7768_v49, %v7755_v13  ;;  %v14295_v13 = vld [vmem:[%s18929_s26 + $0x13f0] sm:$0xf0] }
 0x29c   : > { %8027 = vmatpush.bf16.msrb.mxu0 %v12530_v28  ;;  %v17875_v28 = vld [vmem:[%s18929_s26 + $0x147c] sm:$0xf]  ;;  %v12258_v59 = vor.u32 %v17331_v25, %v12255_v2  ;;  %v18113_v25 = vld [vmem:[%s18929_s26 + $0x1bec] sm:$0xf]  ;;  %v12122_v2 = vor.u32 %v17297_v29, %v12119_v62 }
 0x29d   : > { %8041 = vmatpush.bf16.msrb.mxu1 %v13618_v55  ;;  %v18147_v55 = vld [vmem:[%s18929_s26 + $0x1cfc] sm:$0xf]  ;;  %v14434_v63 = vor.u32 %v17875_v28, %v14431_v30  ;;  %v11983_v30 = vld [vmem:[%s18929_s26 + $0x1e0] sm:$0xf0] }
 0x29e   : > { %8055 = vmatpush.bf16.msrb.mxu2 %v14706_v9  ;;  %v15519_v9 = vld [vmem:[%s18929_s26 + $0x1d80] sm:$0xf0]  ;;  %v7782_v50 = vpop.f32.mrf.mxu2  ;;  %v17263_v28 = vld [vmem:[%s18929_s26 + $0x15c] sm:$0xf] }
 0x29f   : > { %8069 = vmatpush.bf16.msrb.mxu3 %v15794_v34  ;;  %v13346_v34 = vor.u32 %v17603_v17, %v13343_v60  ;;  %v15522_v20 = vor.u32 %v18147_v55, %v15519_v9  ;;  %v14298_v60 = vor.u32 %v17841_v43, %v14295_v13  ;;  %v17535_v49 = vld [vmem:[%s18929_s26 + $0x9dc] sm:$0xf]  ;;  %v13071_v9 = vld [vmem:[%s18929_s26 + $0xa60] sm:$0xf0]  ;;  %v17229_v43 = vld [vmem:[%s18929_s26 + $0x4c] sm:$0xf] }
 0x2a0   : > { %8028 = vmatpush.bf16.msrb.mxu0 %v12394_v5  ;;  %v7783_v5 = vadd.f32 %v7782_v50, %v7769_v51  ;;  %v17807_v51 = vld [vmem:[%s18929_s26 + $0x125c] sm:$0xf]  ;;  %v12935_v50 = vld [vmem:[%s18929_s26 + $0x950] sm:$0xf0]  ;;  %v17773_v13 = vld [vmem:[%s18929_s26 + $0x114c] sm:$0xf] }
 0x2a1   : > { %8042 = vmatpush.bf16.msrb.mxu1 %v13482_v38  ;;  %v15383_v38 = vld [vmem:[%s18929_s26 + $0x1c70] sm:$0xf0]  ;;  %v18079_v29 = vld [vmem:[%s18929_s26 + $0x1adc] sm:$0xf] }
 0x2a2   : > { %8056 = vmatpush.bf16.msrb.mxu2 %v14570_v6  ;;  %v7796_v6 = vpop.f32.mrf.mxu3  ;;  %v15386_v55 = vor.u32 %v18113_v25, %v15383_v38  ;;  %v14023_v25 = vld [vmem:[%s18929_s26 + $0x11d0] sm:$0xf0]  ;;  %v18045_v38 = vld [vmem:[%s18929_s26 + $0x19cc] sm:$0xf] }
 0x2a3   : > { %8070 = vmatpush.bf16.msrb.mxu3 %v15658_v0  ;;  %v20513_v17 = vadd.f32 %v7796_v6, %v7783_v5  ;;  %v13210_v0 = vor.u32 %v17569_v1, %v13207_v44  ;;  %v11986_v44 = vor.u32 %v17263_v28, %v11983_v30  ;;  %v17501_v1 = vld [vmem:[%s18929_s26 + $0x8cc] sm:$0xf]  ;;  %v15111_v6 = vld [vmem:[%s18929_s26 + $0x1a50] sm:$0xf0]  ;;  %v17485_v28 = vld [vmem:[%s18929_s26 + $0x844] sm:$0xf0] }
 0x2a4   : > { %8029 = vmatpush.bf16.msrb.mxu0 %v12258_v59  ;;  %v14159_v59 = vld [vmem:[%s18929_s26 + $0x12e0] sm:$0xf0]  ;;  %v13893_v30 = vld [vmem:[%s18929_s26 + $0x1040] sm:$0xf] }
 0x2a5   : > { %22410 = vst [vmem:[#allocation54_spill] sm:$0xff] %v20513_v17  ;;  %8043 = vmatpush.bf16.msrb.mxu1 %v13346_v34  ;;  %v15247_v34 = vld [vmem:[%s18929_s26 + $0x1b60] sm:$0xf0]  ;;  %v14162_v62 = vor.u32 %v17807_v51, %v14159_v59  ;;  %v14026_v51 = vor.u32 %v17773_v13, %v14023_v25  ;;  %v16069_v59 = vld [vmem:[%s18929_s26 + $0x2140] sm:$0xf] }
 0x2a6   : > { %8057 = vmatpush.bf16.msrb.mxu2 %v14434_v63  ;;  %v11847_v63 = vld [vmem:[%s18929_s26 + $0xd0] sm:$0xf0]  ;;  %v15250_v5 = vor.u32 %v18079_v29, %v15247_v34  ;;  %v18301_v29 = vld [vmem:[%s18929_s26 + $0x21c4] sm:$0xf0]  ;;  %v15114_v34 = vor.u32 %v18045_v38, %v15111_v6  ;;  %v12669_v17 = vld [vmem:[%s18929_s26 + $0x6b0] sm:$0xf]  ;;  %v20547_v38 = vpop.f32.mrf.mxu0 }
 0x2a7   : > { %8071 = vmatpush.bf16.msrb.mxu3 %v15522_v20  ;;  %v13074_v20 = vor.u32 %v17535_v49, %v13071_v9  ;;  %v14981_v49 = vld [vmem:[%s18929_s26 + $0x18c0] sm:$0xf]  ;;  %v18029_v9 = vld [vmem:[%s18929_s26 + $0x1944] sm:$0xf0]  ;;  %v15933_v13 = vld [vmem:[%s18929_s26 + $0x2030] sm:$0xf]  ;;  %v12670_v25 = vor.u32 %v17451_v45, %v12669_v17  ;;  %v20555_v45 = vpop.f32.mrf.mxu1 }
 0x2a8   : > { %8030 = vmatpush.bf16.msrb.mxu0 %v12122_v2  ;;  %v12805_v2 = vld [vmem:[%s18929_s26 + $0x7c0] sm:$0xf]  ;;  %22411 = vst [vmem:[#allocation55_spill] sm:$0xff] %v20547_v38  ;;  %v17706_v38 = vld [vmem:[%s18929_s26 + $0xf34] sm:$0xf] }
 0x2a9   : > { %8044 = vmatpush.bf16.msrb.mxu1 %v13210_v0  ;;  %v11850_v0 = vor.u32 %v17229_v43, %v11847_v63  ;;  %v14982_v63 = vor.u32 %v18029_v9, %v14981_v49  ;;  %v17689_v49 = vld [vmem:[%s18929_s26 + $0xea4] sm:$0xf0]  ;;  %v14709_v9 = vld [vmem:[%s18929_s26 + $0x16a0] sm:$0xf]  ;;  %22412 = vst [vmem:[#allocation56_spill] sm:$0xff] %v20555_v45 }
 0x2aa   : > { %8058 = vmatpush.bf16.msrb.mxu2 %v14298_v60  ;;  %v17757_v60 = vld [vmem:[%s18929_s26 + $0x10c4] sm:$0xf0]  ;;  %v15797_v17 = vld [vmem:[%s18929_s26 + $0x1f20] sm:$0xf]  ;;  %v12671_v45 = vld [vmem:[%s18929_s26 + $0x738] sm:$0xf0] }
 0x2ab   : > { %8072 = vmatpush.bf16.msrb.mxu3 %v15386_v55  ;;  %v12938_v55 = vor.u32 %v17501_v1, %v12935_v50  ;;  %v13894_v43 = vor.u32 %v17757_v60, %v13893_v30  ;;  %v14845_v1 = vld [vmem:[%s18929_s26 + $0x17b0] sm:$0xf]  ;;  %v17995_v50 = vld [vmem:[%s18929_s26 + $0x1834] sm:$0xf0]  ;;  %v17417_v30 = vld [vmem:[%s18929_s26 + $0x624] sm:$0xf0] }
 0x2ac   : > { %8031 = vmatpush.bf16.msrb.mxu0 %v11986_v44  ;;  %v12806_v44 = vor.u32 %v17485_v28, %v12805_v2  ;;  %v14846_v2 = vor.u32 %v17995_v50, %v14845_v1  ;;  %v12533_v28 = vld [vmem:[%s18929_s26 + $0x5a0] sm:$0xf]  ;;  %v17655_v1 = vld [vmem:[%s18929_s26 + $0xd94] sm:$0xf0]  ;;  %v14573_v50 = vld [vmem:[%s18929_s26 + $0x1590] sm:$0xf] }
 0x2ad   : > { %8045 = vmatpush.bf16.msrb.mxu1 %v13074_v20  ;;  %v16070_v20 = vor.u32 %v18301_v29, %v16069_v59  ;;  %v12397_v59 = vld [vmem:[%s18929_s26 + $0x490] sm:$0xf] }
 0x2ae   : > { %8059 = vmatpush.bf16.msrb.mxu2 %v14162_v62  ;;  %v17723_v62 = vld [vmem:[%s18929_s26 + $0xfb4] sm:$0xf0] }
 0x2af   : > { %8073 = vmatpush.bf16.msrb.mxu3 %v15250_v5  ;;  %v18267_v5 = vld [vmem:[%s18929_s26 + $0x20b4] sm:$0xf0]  ;;  %v13758_v6 = vor.u32 %v17723_v62, %v13757_v8  ;;  %v12534_v8 = vor.u32 %v17417_v30, %v12533_v28 }
 0x2b0   : > { %8032 = vmatpush.bf16.msrb.mxu0 %v11850_v0  ;;  %v13621_v0 = vld [vmem:[%s18929_s26 + $0xe20] sm:$0xf]  ;;  %v15934_v60 = vor.u32 %v18267_v5, %v15933_v13  ;;  %v17927_v13 = vld [vmem:[%s18929_s26 + $0x1614] sm:$0xf0]  ;;  %v15661_v5 = vld [vmem:[%s18929_s26 + $0x1e10] sm:$0xf]  ;;  %v7810_v28 = vpop.f32.mrf.mxu0 }
 0x2b1   : > { %8046 = vmatpush.bf16.msrb.mxu1 %v12938_v55  ;;  %v17961_v55 = vld [vmem:[%s18929_s26 + $0x1724] sm:$0xf0]  ;;  %v13622_v29 = vor.u32 %v17689_v49, %v13621_v0  ;;  %v14574_v0 = vor.u32 %v17927_v13, %v14573_v50  ;;  %v12125_v13 = vld [vmem:[%s18929_s26 + $0x270] sm:$0xf] }
 0x2b2   : > { %8060 = vmatpush.bf16.msrb.mxu2 %v14026_v51  ;;  %v18233_v51 = vld [vmem:[%s18929_s26 + $0x1fa4] sm:$0xf0] }
 0x2b3   : > { %8074 = vmatpush.bf16.msrb.mxu3 %v15114_v34  ;;  %8033 = vmatmul.bf16.vlgmr.msrb.gmra.mxu0 %v19056_v16  ;;  %v14710_v34 = vor.u32 %v17961_v55, %v14709_v9  ;;  %v15798_v62 = vor.u32 %v18233_v51, %v15797_v17  ;;  %v17349_v49 = vld [vmem:[%s18929_s26 + $0x404] sm:$0xf0]  ;;  %v13349_v9 = vld [vmem:[%s18929_s26 + $0xc00] sm:$0xf] }
 0x2b4   : > { %8081 = vmatpush.bf16.msra.mxu0 %v12806_v44  ;;  %8047 = vmatmul.bf16.vlgmr.msrb.gmra.mxu1 %v19071_v23  ;;  %v17383_v44 = vld [vmem:[%s18929_s26 + $0x514] sm:$0xf0]  ;;  %v17621_v51 = vld [vmem:[%s18929_s26 + $0xc84] sm:$0xf0] }
 0x2b5   : > { %8095 = vmatpush.bf16.msra.mxu1 %v13894_v43  ;;  %8061 = vmatmul.bf16.vlgmr.msrb.gmra.mxu2 %v19040_v4  ;;  %v13485_v43 = vld [vmem:[%s18929_s26 + $0xd10] sm:$0xf] }
 0x2b6   : > { %8109 = vmatpush.bf16.msra.mxu2 %v14982_v63  ;;  %8075 = vmatmul.bf16.vlgmr.msrb.gmra.mxu3 %v19069_v22  ;;  %v20566_v63 = vpop.f32.mrf.mxu2  ;;  %v13486_v30 = vor.u32 %v17655_v1, %v13485_v43 }
 0x2b7   : > { %8123 = vmatpush.bf16.msra.mxu3 %v16070_v20  ;;  %22413 = vst [vmem:[#allocation57_spill] sm:$0xff] %v20566_v63  ;;  %v22342_v20 = vperm.slane %v20323_v15, 7  ;;  %v14301_v63 = vld [vmem:[%s18929_s26 + $0x1370] sm:$0xf]  ;;  %v13765_v15 = vld [vmem:[%s18929_s26 + $0xf38] sm:$0xf] }
 0x2b8   : > { %8082 = vmatpush.bf16.msra.mxu0 %v12670_v25  ;;  %v18199_v25 = vld [vmem:[%s18929_s26 + $0x1e94] sm:$0xf0] }
 0x2b9   : > { %8096 = vmatpush.bf16.msra.mxu1 %v13758_v6  ;;  %v20574_v6 = vpop.f32.mrf.mxu3  ;;  %v7811_v55 = vadd.f32 %v7810_v28, %v22342_v20  ;;  %v15662_v17 = vor.u32 %v18199_v25, %v15661_v5  ;;  %v17315_v5 = vld [vmem:[%s18929_s26 + $0x2f4] sm:$0xf0]  ;;  %v13213_v25 = vld [vmem:[%s18929_s26 + $0xaf0] sm:$0xf] }
 0x2ba   : > { %8110 = vmatpush.bf16.msra.mxu2 %v14846_v2  ;;  %22414 = vst [vmem:[#allocation58_spill] sm:$0xff] %v20574_v6  ;;  %v12398_v2 = vor.u32 %v17383_v44, %v12397_v59  ;;  %v17893_v59 = vld [vmem:[%s18929_s26 + $0x1504] sm:$0xf0]  ;;  %v7824_v44 = vpop.f32.mrf.mxu1  ;;  %v17587_v6 = vld [vmem:[%s18929_s26 + $0xb74] sm:$0xf0] }
 0x2bb   : > { %8124 = vmatpush.bf16.msra.mxu3 %v15934_v60  ;;  %v12261_v60 = vld [vmem:[%s18929_s26 + $0x380] sm:$0xf]  ;;  %v7825_v43 = vadd.f32 %v7824_v44, %v7811_v55  ;;  %v17859_v55 = vld [vmem:[%s18929_s26 + $0x13f4] sm:$0xf0] }
 0x2bc   : > { %8083 = vmatpush.bf16.msra.mxu0 %v12534_v8  ;;  %v14437_v8 = vld [vmem:[%s18929_s26 + $0x1480] sm:$0xf]  ;;  %v12262_v1 = vor.u32 %v17349_v49, %v12261_v60  ;;  %v15389_v60 = vld [vmem:[%s18929_s26 + $0x1bf0] sm:$0xf]  ;;  %v12126_v49 = vor.u32 %v17315_v5, %v12125_v13 }
 0x2bd   : > { %8097 = vmatpush.bf16.msra.mxu1 %v13622_v29  ;;  %v15525_v29 = vld [vmem:[%s18929_s26 + $0x1d00] sm:$0xf]  ;;  %v14438_v50 = vor.u32 %v17893_v59, %v14437_v8  ;;  %v17281_v59 = vld [vmem:[%s18929_s26 + $0x1e4] sm:$0xf0] }
 0x2be   : > { %8111 = vmatpush.bf16.msra.mxu2 %v14710_v34  ;;  %v18165_v34 = vld [vmem:[%s18929_s26 + $0x1d84] sm:$0xf0]  ;;  %v7838_v28 = vpop.f32.mrf.mxu2  ;;  %v11989_v8 = vld [vmem:[%s18929_s26 + $0x160] sm:$0xf] }
 0x2bf   : > { %8125 = vmatpush.bf16.msra.mxu3 %v15798_v62  ;;  %v13350_v62 = vor.u32 %v17621_v51, %v13349_v9  ;;  %v15526_v20 = vor.u32 %v18165_v34, %v15525_v29  ;;  %v14302_v51 = vor.u32 %v17859_v55, %v14301_v63  ;;  %v13077_v44 = vld [vmem:[%s18929_s26 + $0x9e0] sm:$0xf]  ;;  %v17553_v34 = vld [vmem:[%s18929_s26 + $0xa64] sm:$0xf0]  ;;  %v11853_v63 = vld [vmem:[%s18929_s26 + $0x50] sm:$0xf] }
 0x2c0   : > { %8084 = vmatpush.bf16.msra.mxu0 %v12398_v2  ;;  %v7839_v2 = vadd.f32 %v7838_v28, %v7825_v43  ;;  %v14165_v43 = vld [vmem:[%s18929_s26 + $0x1260] sm:$0xf]  ;;  %v17519_v28 = vld [vmem:[%s18929_s26 + $0x954] sm:$0xf0]  ;;  %v14029_v55 = vld [vmem:[%s18929_s26 + $0x1150] sm:$0xf] }
 0x2c1   : > { %8098 = vmatpush.bf16.msra.mxu1 %v13486_v30  ;;  %v18131_v30 = vld [vmem:[%s18929_s26 + $0x1c74] sm:$0xf0]  ;;  %v15253_v13 = vld [vmem:[%s18929_s26 + $0x1ae0] sm:$0xf] }
 0x2c2   : > { %8112 = vmatpush.bf16.msra.mxu2 %v14574_v0  ;;  %v7852_v0 = vpop.f32.mrf.mxu3  ;;  %v15390_v29 = vor.u32 %v18131_v30, %v15389_v60  ;;  %v17791_v60 = vld [vmem:[%s18929_s26 + $0x11d4] sm:$0xf0]  ;;  %v15117_v30 = vld [vmem:[%s18929_s26 + $0x19d0] sm:$0xf] }
 0x2c3   : > { %8126 = vmatpush.bf16.msra.mxu3 %v15662_v17  ;;  %v20594_v9 = vadd.f32 %v7852_v0, %v7839_v2  ;;  %v13214_v17 = vor.u32 %v17587_v6, %v13213_v25  ;;  %v11990_v6 = vor.u32 %v17281_v59, %v11989_v8  ;;  %v12941_v25 = vld [vmem:[%s18929_s26 + $0x8d0] sm:$0xf]  ;;  %v18063_v0 = vld [vmem:[%s18929_s26 + $0x1a54] sm:$0xf0]  ;;  %v12807_v8 = vld [vmem:[%s18929_s26 + $0x848] sm:$0xf0] }
 0x2c4   : > { %8085 = vmatpush.bf16.msra.mxu0 %v12262_v1  ;;  %v17825_v1 = vld [vmem:[%s18929_s26 + $0x12e4] sm:$0xf0]  ;;  %v17740_v59 = vld [vmem:[%s18929_s26 + $0x1044] sm:$0xf] }
 0x2c5   : > { %22415 = vst [vmem:[#allocation59_spill] sm:$0xff] %v20594_v9  ;;  %8099 = vmatpush.bf16.msra.mxu1 %v13350_v62  ;;  %v18097_v62 = vld [vmem:[%s18929_s26 + $0x1b64] sm:$0xf0]  ;;  %v14166_v5 = vor.u32 %v17825_v1, %v14165_v43  ;;  %v14030_v43 = vor.u32 %v17791_v60, %v14029_v55  ;;  %v18284_v1 = vld [vmem:[%s18929_s26 + $0x2144] sm:$0xf] }
 0x2c6   : > { %8113 = vmatpush.bf16.msra.mxu2 %v14438_v50  ;;  %v17247_v50 = vld [vmem:[%s18929_s26 + $0xd4] sm:$0xf0]  ;;  %v15254_v2 = vor.u32 %v18097_v62, %v15253_v13  ;;  %v16071_v13 = vld [vmem:[%s18929_s26 + $0x21c8] sm:$0xf0]  ;;  %v15118_v62 = vor.u32 %v18063_v0, %v15117_v30  ;;  %v17434_v9 = vld [vmem:[%s18929_s26 + $0x6b4] sm:$0xf]  ;;  %v20629_v0 = vpop.f32.mrf.mxu0 }
 0x2c7   : > { %8127 = vmatpush.bf16.msra.mxu3 %v15526_v20  ;;  %v13078_v20 = vor.u32 %v17553_v34, %v13077_v44  ;;  %v18012_v44 = vld [vmem:[%s18929_s26 + $0x18c4] sm:$0xf]  ;;  %v14983_v34 = vld [vmem:[%s18929_s26 + $0x1948] sm:$0xf0]  ;;  %v18250_v55 = vld [vmem:[%s18929_s26 + $0x2034] sm:$0xf]  ;;  %v12674_v60 = vor.u32 %v17434_v9, %v12671_v45  ;;  %v20636_v45 = vpop.f32.mrf.mxu1 }
 0x2c8   : > { %8086 = vmatpush.bf16.msra.mxu0 %v12126_v49  ;;  %v17468_v49 = vld [vmem:[%s18929_s26 + $0x7c4] sm:$0xf]  ;;  %22416 = vst [vmem:[#allocation60_spill] sm:$0xff] %v20629_v0  ;;  %v20640_v9 = vld [vmem:[%s18938_s14 + $0x10] sm:$0xff]  ;;  %v17452_v0 = vld [vmem:[%s18929_s26 + $0x73c] sm:$0xf0] }
 0x2c9   : > { %8100 = vmatpush.bf16.msra.mxu1 %v13214_v17  ;;  %v11854_v17 = vor.u32 %v17247_v50, %v11853_v63  ;;  %v14986_v50 = vor.u32 %v18012_v44, %v14983_v34  ;;  %v17400_v30 = vld [vmem:[%s18929_s26 + $0x5a4] sm:$0xf]  ;;  %22417 = vst [vmem:[#allocation61_spill] sm:$0xff] %v20636_v45  ;;  %v17842_v45 = vld [vmem:[%s18929_s26 + $0x1374] sm:$0xf] }
 0x2ca   : > { %8114 = vmatpush.bf16.msra.mxu2 %v14302_v51  ;;  %v13895_v51 = vld [vmem:[%s18929_s26 + $0x10c8] sm:$0xf0]  ;;  %v17944_v34 = vld [vmem:[%s18929_s26 + $0x16a4] sm:$0xf]  ;;  %22418 = vst [vmem:[#allocation62_spill] sm:$0xff] %v20640_v9 }
 0x2cb   : > { %8128 = vmatpush.bf16.msra.mxu3 %v15390_v29  ;;  %v12942_v29 = vor.u32 %v17519_v28, %v12941_v25  ;;  %v13898_v63 = vor.u32 %v17740_v59, %v13895_v51  ;;  %v17978_v25 = vld [vmem:[%s18929_s26 + $0x17b4] sm:$0xf]  ;;  %v14847_v28 = vld [vmem:[%s18929_s26 + $0x1838] sm:$0xf0]  ;;  %v12535_v59 = vld [vmem:[%s18929_s26 + $0x628] sm:$0xf0] }
 0x2cc   : > { %8087 = vmatpush.bf16.msra.mxu0 %v11990_v6  ;;  %v12810_v6 = vor.u32 %v17468_v49, %v12807_v8  ;;  %v14850_v8 = vor.u32 %v17978_v25, %v14847_v28  ;;  %v13623_v51 = vld [vmem:[%s18929_s26 + $0xea8] sm:$0xf0]  ;;  %v13487_v28 = vld [vmem:[%s18929_s26 + $0xd98] sm:$0xf0] }
 0x2cd   : > { %8101 = vmatpush.bf16.msra.mxu1 %v13078_v20  ;;  %v16074_v20 = vor.u32 %v18284_v1, %v16071_v13  ;;  %v15799_v1 = vld [vmem:[%s18929_s26 + $0x1fa8] sm:$0xf0]  ;;  %v17366_v13 = vld [vmem:[%s18929_s26 + $0x494] sm:$0xf] }
 0x2ce   : > { %8115 = vmatpush.bf16.msra.mxu2 %v14166_v5  ;;  %v13759_v5 = vld [vmem:[%s18929_s26 + $0xfb8] sm:$0xf0] }
 0x2cf   : > { %8129 = vmatpush.bf16.msra.mxu3 %v15254_v2  ;;  %v15935_v2 = vld [vmem:[%s18929_s26 + $0x20b8] sm:$0xf0]  ;;  %v13762_v49 = vor.u32 %v17706_v38, %v13759_v5  ;;  %v12538_v38 = vor.u32 %v17400_v30, %v12535_v59  ;;  %v22343_v5 = vperm.slane %v20640_v9, 0 }
 0x2d0   : > { %8088 = vmatpush.bf16.msra.mxu0 %v11854_v17  ;;  %v17672_v17 = vld [vmem:[%s18929_s26 + $0xe24] sm:$0xf]  ;;  %v15938_v44 = vor.u32 %v18250_v55, %v15935_v2  ;;  %v17910_v55 = vld [vmem:[%s18929_s26 + $0x1594] sm:$0xf]  ;;  %v14575_v2 = vld [vmem:[%s18929_s26 + $0x1618] sm:$0xf0]  ;;  %v7866_v59 = vpop.f32.mrf.mxu0 }
 0x2d1   : > { %8102 = vmatpush.bf16.msra.mxu1 %v12942_v29  ;;  %v14711_v29 = vld [vmem:[%s18929_s26 + $0x1728] sm:$0xf0]  ;;  %v15663_v30 = vld [vmem:[%s18929_s26 + $0x1e98] sm:$0xf0] }
 0x2d2   : > { %8116 = vmatpush.bf16.msra.mxu2 %v14030_v43  ;;  %v18216_v43 = vld [vmem:[%s18929_s26 + $0x1f24] sm:$0xf] }
 0x2d3   : > { %8130 = vmatpush.bf16.msra.mxu3 %v15118_v62  ;;  %8089 = vmatmul.bf16.vlgmr.msra.gmra.mxu0 %v19056_v16  ;;  %v13626_v62 = vor.u32 %v17672_v17, %v13623_v51  ;;  %v15802_v25 = vor.u32 %v18216_v43, %v15799_v1  ;;  %v14578_v51 = vor.u32 %v17910_v55, %v14575_v2  ;;  %v17298_v2 = vld [vmem:[%s18929_s26 + $0x274] sm:$0xf] }
 0x2d4   : > { %8137 = vmatpush.bf16.msrb.mxu0 %v12810_v6  ;;  %8103 = vmatmul.bf16.vlgmr.msra.gmra.mxu1 %v19071_v23  ;;  %v14714_v6 = vor.u32 %v17944_v34, %v14711_v29  ;;  %v12263_v34 = vld [vmem:[%s18929_s26 + $0x408] sm:$0xf0]  ;;  %v17604_v29 = vld [vmem:[%s18929_s26 + $0xc04] sm:$0xf]  ;;  %v7867_v43 = vadd.f32 %v7866_v59, %v22343_v5 }
 0x2d5   : > { %8151 = vmatpush.bf16.msrb.mxu1 %v13898_v63  ;;  %8117 = vmatmul.bf16.vlgmr.msra.gmra.mxu2 %v19040_v4  ;;  %v12399_v63 = vld [vmem:[%s18929_s26 + $0x518] sm:$0xf0] }
 0x2d6   : > { %8165 = vmatpush.bf16.msrb.mxu2 %v14986_v50  ;;  %8131 = vmatmul.bf16.vlgmr.msra.gmra.mxu3 %v19069_v22  ;;  %v17638_v50 = vld [vmem:[%s18929_s26 + $0xd14] sm:$0xf] }
 0x2d7   : > { %8179 = vmatpush.bf16.msrb.mxu3 %v16074_v20  ;;  %v20650_v20 = vpop.f32.mrf.mxu2  ;;  %v13490_v17 = vor.u32 %v17638_v50, %v13487_v28 }
 0x2d8   : > { %8138 = vmatpush.bf16.msrb.mxu0 %v12674_v60  ;;  %22419 = vst [vmem:[#allocation63_spill] sm:$0xff] %v20650_v20  ;;  %v18182_v60 = vld [vmem:[%s18929_s26 + $0x1e14] sm:$0xf]  ;;  %v13215_v20 = vld [vmem:[%s18929_s26 + $0xb78] sm:$0xf0] }
 0x2d9   : > { %8152 = vmatpush.bf16.msrb.mxu1 %v13762_v49  ;;  %v20658_v49 = vpop.f32.mrf.mxu3  ;;  %v15666_v1 = vor.u32 %v18182_v60, %v15663_v30  ;;  %v12127_v60 = vld [vmem:[%s18929_s26 + $0x2f8] sm:$0xf0]  ;;  %v17570_v30 = vld [vmem:[%s18929_s26 + $0xaf4] sm:$0xf] }
 0x2da   : > { %8166 = vmatpush.bf16.msrb.mxu2 %v14850_v8  ;;  %22420 = vst [vmem:[#allocation64_spill] sm:$0xff] %v20658_v49  ;;  %v12402_v8 = vor.u32 %v17366_v13, %v12399_v63  ;;  %v17876_v13 = vld [vmem:[%s18929_s26 + $0x1484] sm:$0xf]  ;;  %v14439_v63 = vld [vmem:[%s18929_s26 + $0x1508] sm:$0xf0]  ;;  %v7880_v49 = vpop.f32.mrf.mxu1 }
 0x2db   : > { %8180 = vmatpush.bf16.msrb.mxu3 %v15938_v44  ;;  %v17332_v44 = vld [vmem:[%s18929_s26 + $0x384] sm:$0xf]  ;;  %v7881_v50 = vadd.f32 %v7880_v49, %v7867_v43  ;;  %v14442_v55 = vor.u32 %v17876_v13, %v14439_v63  ;;  %v14303_v49 = vld [vmem:[%s18929_s26 + $0x13f8] sm:$0xf0]  ;;  %v13218_v43 = vor.u32 %v17570_v30, %v13215_v20  ;;  %v11991_v13 = vld [vmem:[%s18929_s26 + $0x1e8] sm:$0xf0] }
 0x2dc   : > { %8139 = vmatpush.bf16.msrb.mxu0 %v12538_v38  ;;  %v13351_v38 = vld [vmem:[%s18929_s26 + $0xc88] sm:$0xf0]  ;;  %v12266_v28 = vor.u32 %v17332_v44, %v12263_v34  ;;  %v18114_v44 = vld [vmem:[%s18929_s26 + $0x1bf4] sm:$0xf]  ;;  %v12130_v34 = vor.u32 %v17298_v2, %v12127_v60  ;;  %v17536_v63 = vld [vmem:[%s18929_s26 + $0x9e4] sm:$0xf] }
 0x2dd   : > { %8153 = vmatpush.bf16.msrb.mxu1 %v13626_v62  ;;  %v18148_v62 = vld [vmem:[%s18929_s26 + $0x1d04] sm:$0xf]  ;;  %v17502_v30 = vld [vmem:[%s18929_s26 + $0x8d4] sm:$0xf] }
 0x2de   : > { %8167 = vmatpush.bf16.msrb.mxu2 %v14714_v6  ;;  %v15527_v6 = vld [vmem:[%s18929_s26 + $0x1d88] sm:$0xf0]  ;;  %v18080_v2 = vld [vmem:[%s18929_s26 + $0x1ae4] sm:$0xf] }
 0x2df   : > { %8181 = vmatpush.bf16.msrb.mxu3 %v15802_v25  ;;  %v13354_v25 = vor.u32 %v17604_v29, %v13351_v38  ;;  %v7894_v59 = vpop.f32.mrf.mxu2  ;;  %v15530_v5 = vor.u32 %v18148_v62, %v15527_v6  ;;  %v17264_v38 = vld [vmem:[%s18929_s26 + $0x164] sm:$0xf]  ;;  %v13079_v6 = vld [vmem:[%s18929_s26 + $0xa68] sm:$0xf0] }
 0x2e0   : > { %8140 = vmatpush.bf16.msrb.mxu0 %v12402_v8  ;;  %v7895_v8 = vadd.f32 %v7894_v59, %v7881_v50  ;;  %v17808_v50 = vld [vmem:[%s18929_s26 + $0x1264] sm:$0xf]  ;;  %v11994_v20 = vor.u32 %v17264_v38, %v11991_v13  ;;  %v12943_v59 = vld [vmem:[%s18929_s26 + $0x958] sm:$0xf0]  ;;  %v17486_v38 = vld [vmem:[%s18929_s26 + $0x84c] sm:$0xf0] }
 0x2e1   : > { %8154 = vmatpush.bf16.msrb.mxu1 %v13490_v17  ;;  %v15391_v17 = vld [vmem:[%s18929_s26 + $0x1c78] sm:$0xf0]  ;;  %v13901_v13 = vld [vmem:[%s18929_s26 + $0x1048] sm:$0xf] }
 0x2e2   : > { %8168 = vmatpush.bf16.msrb.mxu2 %v14578_v51  ;;  %v7908_v51 = vpop.f32.mrf.mxu3  ;;  %v15394_v62 = vor.u32 %v18114_v44, %v15391_v17  ;;  %v14031_v44 = vld [vmem:[%s18929_s26 + $0x11d8] sm:$0xf0]  ;;  %v18046_v17 = vld [vmem:[%s18929_s26 + $0x19d4] sm:$0xf] }
 0x2e3   : > { %8182 = vmatpush.bf16.msrb.mxu3 %v15666_v1  ;;  %v20678_v29 = vadd.f32 %v7908_v51, %v7895_v8  ;;  %v14306_v1 = vor.u32 %v17842_v45, %v14303_v49  ;;  %v17230_v45 = vld [vmem:[%s18929_s26 + $0x54] sm:$0xf]  ;;  %v15119_v51 = vld [vmem:[%s18929_s26 + $0x1a58] sm:$0xf0] }
 0x2e4   : > { %8141 = vmatpush.bf16.msrb.mxu0 %v12266_v28  ;;  %v14167_v28 = vld [vmem:[%s18929_s26 + $0x12e8] sm:$0xf0]  ;;  %v17774_v49 = vld [vmem:[%s18929_s26 + $0x1154] sm:$0xf] }
 0x2e5   : > { %22421 = vst [vmem:[#allocation65_spill] sm:$0xff] %v20678_v29  ;;  %8155 = vmatpush.bf16.msrb.mxu1 %v13354_v25  ;;  %v15255_v25 = vld [vmem:[%s18929_s26 + $0x1b68] sm:$0xf0]  ;;  %v14170_v60 = vor.u32 %v17808_v50, %v14167_v28  ;;  %v14034_v50 = vor.u32 %v17774_v49, %v14031_v44  ;;  %v16077_v28 = vld [vmem:[%s18929_s26 + $0x2148] sm:$0xf] }
 0x2e6   : > { %8169 = vmatpush.bf16.msrb.mxu2 %v14442_v55  ;;  %v11855_v55 = vld [vmem:[%s18929_s26 + $0xd8] sm:$0xf0]  ;;  %v15258_v8 = vor.u32 %v18080_v2, %v15255_v25  ;;  %v18302_v2 = vld [vmem:[%s18929_s26 + $0x21cc] sm:$0xf0]  ;;  %v15122_v25 = vor.u32 %v18046_v17, %v15119_v51  ;;  %v12677_v29 = vld [vmem:[%s18929_s26 + $0x6b8] sm:$0xf]  ;;  %v20712_v17 = vpop.f32.mrf.mxu0 }
 0x2e7   : > { %8183 = vmatpush.bf16.msrb.mxu3 %v15530_v5  ;;  %v13082_v5 = vor.u32 %v17536_v63, %v13079_v6  ;;  %v14989_v63 = vld [vmem:[%s18929_s26 + $0x18c8] sm:$0xf]  ;;  %v18030_v6 = vld [vmem:[%s18929_s26 + $0x194c] sm:$0xf0]  ;;  %v15941_v49 = vld [vmem:[%s18929_s26 + $0x2038] sm:$0xf]  ;;  %v12678_v44 = vor.u32 %v17452_v0, %v12677_v29  ;;  %v20720_v0 = vpop.f32.mrf.mxu1 }
 0x2e8   : > { %8142 = vmatpush.bf16.msrb.mxu0 %v12130_v34  ;;  %v12813_v34 = vld [vmem:[%s18929_s26 + $0x7c8] sm:$0xf]  ;;  %22422 = vst [vmem:[#allocation66_spill] sm:$0xff] %v20712_v17  ;;  %v17707_v17 = vld [vmem:[%s18929_s26 + $0xf3c] sm:$0xf] }
 0x2e9   : > { %8156 = vmatpush.bf16.msrb.mxu1 %v13218_v43  ;;  %v11858_v43 = vor.u32 %v17230_v45, %v11855_v55  ;;  %v14990_v55 = vor.u32 %v18030_v6, %v14989_v63  ;;  %v17690_v63 = vld [vmem:[%s18929_s26 + $0xeac] sm:$0xf0]  ;;  %v14717_v6 = vld [vmem:[%s18929_s26 + $0x16a8] sm:$0xf]  ;;  %22423 = vst [vmem:[#allocation67_spill] sm:$0xff] %v20720_v0 }
 0x2ea   : > { %8170 = vmatpush.bf16.msrb.mxu2 %v14306_v1  ;;  %v17758_v1 = vld [vmem:[%s18929_s26 + $0x10cc] sm:$0xf0]  ;;  %v15805_v29 = vld [vmem:[%s18929_s26 + $0x1f28] sm:$0xf]  ;;  %v12679_v0 = vld [vmem:[%s18929_s26 + $0x740] sm:$0xf0] }
 0x2eb   : > { %8184 = vmatpush.bf16.msrb.mxu3 %v15394_v62  ;;  %v12946_v62 = vor.u32 %v17502_v30, %v12943_v59  ;;  %v13902_v45 = vor.u32 %v17758_v1, %v13901_v13  ;;  %v14853_v30 = vld [vmem:[%s18929_s26 + $0x17b8] sm:$0xf]  ;;  %v17996_v59 = vld [vmem:[%s18929_s26 + $0x183c] sm:$0xf0]  ;;  %v17418_v13 = vld [vmem:[%s18929_s26 + $0x62c] sm:$0xf0] }
 0x2ec   : > { %8143 = vmatpush.bf16.msrb.mxu0 %v11994_v20  ;;  %v12814_v20 = vor.u32 %v17486_v38, %v12813_v34  ;;  %v14854_v34 = vor.u32 %v17996_v59, %v14853_v30  ;;  %v12541_v38 = vld [vmem:[%s18929_s26 + $0x5a8] sm:$0xf]  ;;  %v17656_v30 = vld [vmem:[%s18929_s26 + $0xd9c] sm:$0xf0]  ;;  %v14581_v59 = vld [vmem:[%s18929_s26 + $0x1598] sm:$0xf] }
 0x2ed   : > { %8157 = vmatpush.bf16.msrb.mxu1 %v13082_v5  ;;  %v16078_v5 = vor.u32 %v18302_v2, %v16077_v28  ;;  %v12405_v28 = vld [vmem:[%s18929_s26 + $0x498] sm:$0xf] }
 0x2ee   : > { %8171 = vmatpush.bf16.msrb.mxu2 %v14170_v60  ;;  %v17724_v60 = vld [vmem:[%s18929_s26 + $0xfbc] sm:$0xf0] }
 0x2ef   : > { %8185 = vmatpush.bf16.msrb.mxu3 %v15258_v8  ;;  %v18268_v8 = vld [vmem:[%s18929_s26 + $0x20bc] sm:$0xf0]  ;;  %v13766_v51 = vor.u32 %v17724_v60, %v13765_v15  ;;  %v12542_v15 = vor.u32 %v17418_v13, %v12541_v38 }
 0x2f0   : > { %8144 = vmatpush.bf16.msrb.mxu0 %v11858_v43  ;;  %v13629_v43 = vld [vmem:[%s18929_s26 + $0xe28] sm:$0xf]  ;;  %v15942_v1 = vor.u32 %v18268_v8, %v15941_v49  ;;  %v17928_v49 = vld [vmem:[%s18929_s26 + $0x161c] sm:$0xf0]  ;;  %v15669_v8 = vld [vmem:[%s18929_s26 + $0x1e18] sm:$0xf]  ;;  %v7922_v38 = vpop.f32.mrf.mxu0 }
 0x2f1   : > { %8158 = vmatpush.bf16.msrb.mxu1 %v12946_v62  ;;  %v17962_v62 = vld [vmem:[%s18929_s26 + $0x172c] sm:$0xf0]  ;;  %v13630_v2 = vor.u32 %v17690_v63, %v13629_v43  ;;  %v14582_v43 = vor.u32 %v17928_v49, %v14581_v59  ;;  %v12133_v49 = vld [vmem:[%s18929_s26 + $0x278] sm:$0xf] }
 0x2f2   : > { %8172 = vmatpush.bf16.msrb.mxu2 %v14034_v50  ;;  %v18234_v50 = vld [vmem:[%s18929_s26 + $0x1fac] sm:$0xf0] }
 0x2f3   : > { %8186 = vmatpush.bf16.msrb.mxu3 %v15122_v25  ;;  %8145 = vmatmul.bf16.vlgmr.msrb.gmra.mxu0 %v19056_v16  ;;  %v14718_v25 = vor.u32 %v17962_v62, %v14717_v6  ;;  %v15806_v60 = vor.u32 %v18234_v50, %v15805_v29  ;;  %v17350_v63 = vld [vmem:[%s18929_s26 + $0x40c] sm:$0xf0]  ;;  %v13357_v6 = vld [vmem:[%s18929_s26 + $0xc08] sm:$0xf] }
 0x2f4   : > { %8193 = vmatpush.bf16.msra.mxu0 %v12814_v20  ;;  %8159 = vmatmul.bf16.vlgmr.msrb.gmra.mxu1 %v19071_v23  ;;  %v17384_v20 = vld [vmem:[%s18929_s26 + $0x51c] sm:$0xf0]  ;;  %v17622_v50 = vld [vmem:[%s18929_s26 + $0xc8c] sm:$0xf0] }
 0x2f5   : > { %8207 = vmatpush.bf16.msra.mxu1 %v13902_v45  ;;  %8173 = vmatmul.bf16.vlgmr.msrb.gmra.mxu2 %v19040_v4  ;;  %v13493_v45 = vld [vmem:[%s18929_s26 + $0xd18] sm:$0xf] }
 0x2f6   : > { %8221 = vmatpush.bf16.msra.mxu2 %v14990_v55  ;;  %8187 = vmatmul.bf16.vlgmr.msrb.gmra.mxu3 %v19069_v22  ;;  %v20731_v55 = vpop.f32.mrf.mxu2  ;;  %v13494_v13 = vor.u32 %v17656_v30, %v13493_v45 }
 0x2f7   : > { %8235 = vmatpush.bf16.msra.mxu3 %v16078_v5  ;;  %22424 = vst [vmem:[#allocation68_spill] sm:$0xff] %v20731_v55  ;;  %v22346_v5 = vperm.slane %v20640_v9, 1  ;;  %v14309_v55 = vld [vmem:[%s18929_s26 + $0x1378] sm:$0xf] }
 0x2f8   : > { %8194 = vmatpush.bf16.msra.mxu0 %v12678_v44  ;;  %v18200_v44 = vld [vmem:[%s18929_s26 + $0x1e9c] sm:$0xf0] }
 0x2f9   : > { %8208 = vmatpush.bf16.msra.mxu1 %v13766_v51  ;;  %v20739_v51 = vpop.f32.mrf.mxu3  ;;  %v7923_v62 = vadd.f32 %v7922_v38, %v22346_v5  ;;  %v15670_v29 = vor.u32 %v18200_v44, %v15669_v8  ;;  %v17316_v8 = vld [vmem:[%s18929_s26 + $0x2fc] sm:$0xf0]  ;;  %v13221_v44 = vld [vmem:[%s18929_s26 + $0xaf8] sm:$0xf] }
 0x2fa   : > { %8222 = vmatpush.bf16.msra.mxu2 %v14854_v34  ;;  %22425 = vst [vmem:[#allocation69_spill] sm:$0xff] %v20739_v51  ;;  %v12406_v34 = vor.u32 %v17384_v20, %v12405_v28  ;;  %v17894_v28 = vld [vmem:[%s18929_s26 + $0x150c] sm:$0xf0]  ;;  %v7936_v20 = vpop.f32.mrf.mxu1  ;;  %v17588_v51 = vld [vmem:[%s18929_s26 + $0xb7c] sm:$0xf0] }
 0x2fb   : > { %8236 = vmatpush.bf16.msra.mxu3 %v15942_v1  ;;  %v12269_v1 = vld [vmem:[%s18929_s26 + $0x388] sm:$0xf]  ;;  %v7937_v45 = vadd.f32 %v7936_v20, %v7923_v62  ;;  %v17860_v62 = vld [vmem:[%s18929_s26 + $0x13fc] sm:$0xf0] }
 0x2fc   : > { %8195 = vmatpush.bf16.msra.mxu0 %v12542_v15  ;;  %v14445_v15 = vld [vmem:[%s18929_s26 + $0x1488] sm:$0xf]  ;;  %v12270_v30 = vor.u32 %v17350_v63, %v12269_v1  ;;  %v15397_v1 = vld [vmem:[%s18929_s26 + $0x1bf8] sm:$0xf]  ;;  %v12134_v63 = vor.u32 %v17316_v8, %v12133_v49 }
 0x2fd   : > { %8209 = vmatpush.bf16.msra.mxu1 %v13630_v2  ;;  %v15533_v2 = vld [vmem:[%s18929_s26 + $0x1d08] sm:$0xf]  ;;  %v14446_v59 = vor.u32 %v17894_v28, %v14445_v15  ;;  %v17282_v28 = vld [vmem:[%s18929_s26 + $0x1ec] sm:$0xf0] }
 0x2fe   : > { %8223 = vmatpush.bf16.msra.mxu2 %v14718_v25  ;;  %v18166_v25 = vld [vmem:[%s18929_s26 + $0x1d8c] sm:$0xf0]  ;;  %v7950_v38 = vpop.f32.mrf.mxu2  ;;  %v11997_v15 = vld [vmem:[%s18929_s26 + $0x168] sm:$0xf] }
 0x2ff   : > { %8237 = vmatpush.bf16.msra.mxu3 %v15806_v60  ;;  %v13358_v60 = vor.u32 %v17622_v50, %v13357_v6  ;;  %v15534_v5 = vor.u32 %v18166_v25, %v15533_v2  ;;  %v14310_v50 = vor.u32 %v17860_v62, %v14309_v55  ;;  %v13085_v20 = vld [vmem:[%s18929_s26 + $0x9e8] sm:$0xf]  ;;  %v17554_v25 = vld [vmem:[%s18929_s26 + $0xa6c] sm:$0xf0]  ;;  %v11861_v55 = vld [vmem:[%s18929_s26 + $0x58] sm:$0xf] }
 0x300   : > { %8196 = vmatpush.bf16.msra.mxu0 %v12406_v34  ;;  %v7951_v34 = vadd.f32 %v7950_v38, %v7937_v45  ;;  %v14173_v45 = vld [vmem:[%s18929_s26 + $0x1268] sm:$0xf]  ;;  %v17520_v38 = vld [vmem:[%s18929_s26 + $0x95c] sm:$0xf0]  ;;  %v14037_v62 = vld [vmem:[%s18929_s26 + $0x1158] sm:$0xf] }
 0x301   : > { %8210 = vmatpush.bf16.msra.mxu1 %v13494_v13  ;;  %v18132_v13 = vld [vmem:[%s18929_s26 + $0x1c7c] sm:$0xf0]  ;;  %v15261_v49 = vld [vmem:[%s18929_s26 + $0x1ae8] sm:$0xf] }
 0x302   : > { %8224 = vmatpush.bf16.msra.mxu2 %v14582_v43  ;;  %v7964_v43 = vpop.f32.mrf.mxu3  ;;  %v15398_v2 = vor.u32 %v18132_v13, %v15397_v1  ;;  %v17792_v1 = vld [vmem:[%s18929_s26 + $0x11dc] sm:$0xf0]  ;;  %v15125_v13 = vld [vmem:[%s18929_s26 + $0x19d8] sm:$0xf] }
 0x303   : > { %8238 = vmatpush.bf16.msra.mxu3 %v15670_v29  ;;  %v20759_v6 = vadd.f32 %v7964_v43, %v7951_v34  ;;  %v13222_v29 = vor.u32 %v17588_v51, %v13221_v44  ;;  %v11998_v51 = vor.u32 %v17282_v28, %v11997_v15  ;;  %v12949_v44 = vld [vmem:[%s18929_s26 + $0x8d8] sm:$0xf]  ;;  %v18064_v43 = vld [vmem:[%s18929_s26 + $0x1a5c] sm:$0xf0]  ;;  %v12815_v15 = vld [vmem:[%s18929_s26 + $0x850] sm:$0xf0] }
 0x304   : > { %8197 = vmatpush.bf16.msra.mxu0 %v12270_v30  ;;  %v17826_v30 = vld [vmem:[%s18929_s26 + $0x12ec] sm:$0xf0]  ;;  %v17741_v28 = vld [vmem:[%s18929_s26 + $0x104c] sm:$0xf] }
 0x305   : > { %22426 = vst [vmem:[#allocation70_spill] sm:$0xff] %v20759_v6  ;;  %8211 = vmatpush.bf16.msra.mxu1 %v13358_v60  ;;  %v18098_v60 = vld [vmem:[%s18929_s26 + $0x1b6c] sm:$0xf0]  ;;  %v14174_v8 = vor.u32 %v17826_v30, %v14173_v45  ;;  %v14038_v45 = vor.u32 %v17792_v1, %v14037_v62  ;;  %v18285_v30 = vld [vmem:[%s18929_s26 + $0x214c] sm:$0xf] }
 0x306   : > { %8225 = vmatpush.bf16.msra.mxu2 %v14446_v59  ;;  %v17248_v59 = vld [vmem:[%s18929_s26 + $0xdc] sm:$0xf0]  ;;  %v15262_v34 = vor.u32 %v18098_v60, %v15261_v49  ;;  %v16079_v49 = vld [vmem:[%s18929_s26 + $0x21d0] sm:$0xf0]  ;;  %v15126_v60 = vor.u32 %v18064_v43, %v15125_v13  ;;  %v17435_v6 = vld [vmem:[%s18929_s26 + $0x6bc] sm:$0xf]  ;;  %v20793_v13 = vpop.f32.mrf.mxu0 }
 0x307   : > { %8239 = vmatpush.bf16.msra.mxu3 %v15534_v5  ;;  %v13086_v5 = vor.u32 %v17554_v25, %v13085_v20  ;;  %v18013_v20 = vld [vmem:[%s18929_s26 + $0x18cc] sm:$0xf]  ;;  %v14991_v25 = vld [vmem:[%s18929_s26 + $0x1950] sm:$0xf0]  ;;  %v18251_v62 = vld [vmem:[%s18929_s26 + $0x203c] sm:$0xf]  ;;  %v12682_v1 = vor.u32 %v17435_v6, %v12679_v0  ;;  %v20801_v0 = vpop.f32.mrf.mxu1 }
 0x308   : > { %8198 = vmatpush.bf16.msra.mxu0 %v12134_v63  ;;  %v17469_v63 = vld [vmem:[%s18929_s26 + $0x7cc] sm:$0xf]  ;;  %22427 = vst [vmem:[#allocation71_spill] sm:$0xff] %v20793_v13  ;;  %v13773_v13 = vld [vmem:[%s18929_s26 + $0xf40] sm:$0xf] }
 0x309   : > { %8212 = vmatpush.bf16.msra.mxu1 %v13222_v29  ;;  %v11862_v29 = vor.u32 %v17248_v59, %v11861_v55  ;;  %v14994_v59 = vor.u32 %v18013_v20, %v14991_v25  ;;  %v13631_v20 = vld [vmem:[%s18929_s26 + $0xeb0] sm:$0xf0]  ;;  %v17945_v25 = vld [vmem:[%s18929_s26 + $0x16ac] sm:$0xf]  ;;  %22428 = vst [vmem:[#allocation72_spill] sm:$0xff] %v20801_v0 }
 0x30a   : > { %8226 = vmatpush.bf16.msra.mxu2 %v14310_v50  ;;  %v13903_v50 = vld [vmem:[%s18929_s26 + $0x10d0] sm:$0xf0]  ;;  %v18217_v6 = vld [vmem:[%s18929_s26 + $0x1f2c] sm:$0xf]  ;;  %v17453_v0 = vld [vmem:[%s18929_s26 + $0x744] sm:$0xf0] }
 0x30b   : > { %8240 = vmatpush.bf16.msra.mxu3 %v15398_v2  ;;  %v12950_v2 = vor.u32 %v17520_v38, %v12949_v44  ;;  %v13906_v55 = vor.u32 %v17741_v28, %v13903_v50  ;;  %v17979_v44 = vld [vmem:[%s18929_s26 + $0x17bc] sm:$0xf]  ;;  %v14855_v38 = vld [vmem:[%s18929_s26 + $0x1840] sm:$0xf0]  ;;  %v12543_v28 = vld [vmem:[%s18929_s26 + $0x630] sm:$0xf0] }
 0x30c   : > { %8199 = vmatpush.bf16.msra.mxu0 %v11998_v51  ;;  %v12818_v51 = vor.u32 %v17469_v63, %v12815_v15  ;;  %v14858_v63 = vor.u32 %v17979_v44, %v14855_v38  ;;  %v17401_v15 = vld [vmem:[%s18929_s26 + $0x5ac] sm:$0xf]  ;;  %v13495_v44 = vld [vmem:[%s18929_s26 + $0xda0] sm:$0xf0]  ;;  %v17911_v38 = vld [vmem:[%s18929_s26 + $0x159c] sm:$0xf] }
 0x30d   : > { %8213 = vmatpush.bf16.msra.mxu1 %v13086_v5  ;;  %v16082_v5 = vor.u32 %v18285_v30, %v16079_v49  ;;  %v17367_v30 = vld [vmem:[%s18929_s26 + $0x49c] sm:$0xf] }
 0x30e   : > { %8227 = vmatpush.bf16.msra.mxu2 %v14174_v8  ;;  %v13767_v8 = vld [vmem:[%s18929_s26 + $0xfc0] sm:$0xf0] }
 0x30f   : > { %8241 = vmatpush.bf16.msra.mxu3 %v15262_v34  ;;  %v15943_v34 = vld [vmem:[%s18929_s26 + $0x20c0] sm:$0xf0]  ;;  %v13770_v43 = vor.u32 %v17707_v17, %v13767_v8  ;;  %v12546_v17 = vor.u32 %v17401_v15, %v12543_v28 }
 0x310   : > { %8200 = vmatpush.bf16.msra.mxu0 %v11862_v29  ;;  %v17673_v29 = vld [vmem:[%s18929_s26 + $0xe2c] sm:$0xf]  ;;  %v15946_v50 = vor.u32 %v18251_v62, %v15943_v34  ;;  %v14583_v62 = vld [vmem:[%s18929_s26 + $0x1620] sm:$0xf0]  ;;  %v18183_v34 = vld [vmem:[%s18929_s26 + $0x1e1c] sm:$0xf]  ;;  %v7978_v15 = vpop.f32.mrf.mxu0 }
 0x311   : > { %8214 = vmatpush.bf16.msra.mxu1 %v12950_v2  ;;  %v14719_v2 = vld [vmem:[%s18929_s26 + $0x1730] sm:$0xf0]  ;;  %v13634_v49 = vor.u32 %v17673_v29, %v13631_v20  ;;  %v14586_v29 = vor.u32 %v17911_v38, %v14583_v62  ;;  %v17299_v62 = vld [vmem:[%s18929_s26 + $0x27c] sm:$0xf] }
 0x312   : > { %8228 = vmatpush.bf16.msra.mxu2 %v14038_v45  ;;  %v15807_v45 = vld [vmem:[%s18929_s26 + $0x1fb0] sm:$0xf0] }
 0x313   : > { %8242 = vmatpush.bf16.msra.mxu3 %v15126_v60  ;;  %8201 = vmatmul.bf16.vlgmr.msra.gmra.mxu0 %v19056_v16  ;;  %v14722_v60 = vor.u32 %v17945_v25, %v14719_v2  ;;  %v15810_v8 = vor.u32 %v18217_v6, %v15807_v45  ;;  %v12271_v20 = vld [vmem:[%s18929_s26 + $0x410] sm:$0xf0]  ;;  %v17605_v25 = vld [vmem:[%s18929_s26 + $0xc0c] sm:$0xf] }
 0x314   : > { %8249 = vmatpush.bf16.msrb.mxu0 %v12818_v51  ;;  %8215 = vmatmul.bf16.vlgmr.msra.gmra.mxu1 %v19071_v23  ;;  %v12407_v51 = vld [vmem:[%s18929_s26 + $0x520] sm:$0xf0]  ;;  %v13359_v45 = vld [vmem:[%s18929_s26 + $0xc90] sm:$0xf0] }
 0x315   : > { %8263 = vmatpush.bf16.msrb.mxu1 %v13906_v55  ;;  %8229 = vmatmul.bf16.vlgmr.msra.gmra.mxu2 %v19040_v4  ;;  %v17639_v55 = vld [vmem:[%s18929_s26 + $0xd1c] sm:$0xf] }
 0x316   : > { %8277 = vmatpush.bf16.msrb.mxu2 %v14994_v59  ;;  %8243 = vmatmul.bf16.vlgmr.msra.gmra.mxu3 %v19069_v22  ;;  %v20812_v59 = vpop.f32.mrf.mxu2  ;;  %v13498_v28 = vor.u32 %v17639_v55, %v13495_v44 }
 0x317   : > { %8291 = vmatpush.bf16.msrb.mxu3 %v16082_v5  ;;  %22429 = vst [vmem:[#allocation73_spill] sm:$0xff] %v20812_v59  ;;  %v22347_v5 = vperm.slane %v20640_v9, 2  ;;  %v17843_v59 = vld [vmem:[%s18929_s26 + $0x137c] sm:$0xf] }
 0x318   : > { %8250 = vmatpush.bf16.msrb.mxu0 %v12682_v1  ;;  %v15671_v1 = vld [vmem:[%s18929_s26 + $0x1ea0] sm:$0xf0] }
 0x319   : > { %8264 = vmatpush.bf16.msrb.mxu1 %v13770_v43  ;;  %v20820_v43 = vpop.f32.mrf.mxu3  ;;  %v7979_v2 = vadd.f32 %v7978_v15, %v22347_v5  ;;  %v15674_v6 = vor.u32 %v18183_v34, %v15671_v1  ;;  %v12135_v34 = vld [vmem:[%s18929_s26 + $0x300] sm:$0xf0]  ;;  %v17571_v1 = vld [vmem:[%s18929_s26 + $0xafc] sm:$0xf] }
 0x31a   : > { %8278 = vmatpush.bf16.msrb.mxu2 %v14858_v63  ;;  %22430 = vst [vmem:[#allocation74_spill] sm:$0xff] %v20820_v43  ;;  %v12410_v63 = vor.u32 %v17367_v30, %v12407_v51  ;;  %v14447_v30 = vld [vmem:[%s18929_s26 + $0x1510] sm:$0xf0]  ;;  %v7992_v51 = vpop.f32.mrf.mxu1  ;;  %v13223_v43 = vld [vmem:[%s18929_s26 + $0xb80] sm:$0xf0] }
 0x31b   : > { %8292 = vmatpush.bf16.msrb.mxu3 %v15946_v50  ;;  %v17333_v50 = vld [vmem:[%s18929_s26 + $0x38c] sm:$0xf]  ;;  %v7993_v55 = vadd.f32 %v7992_v51, %v7979_v2  ;;  %v14311_v2 = vld [vmem:[%s18929_s26 + $0x1400] sm:$0xf0] }
 0x31c   : > { %8251 = vmatpush.bf16.msrb.mxu0 %v12546_v17  ;;  %v17877_v17 = vld [vmem:[%s18929_s26 + $0x148c] sm:$0xf]  ;;  %v12274_v44 = vor.u32 %v17333_v50, %v12271_v20  ;;  %v18115_v50 = vld [vmem:[%s18929_s26 + $0x1bfc] sm:$0xf]  ;;  %v12138_v20 = vor.u32 %v17299_v62, %v12135_v34 }
 0x31d   : > { %8265 = vmatpush.bf16.msrb.mxu1 %v13634_v49  ;;  %v18149_v49 = vld [vmem:[%s18929_s26 + $0x1d0c] sm:$0xf]  ;;  %v14450_v38 = vor.u32 %v17877_v17, %v14447_v30  ;;  %v11999_v30 = vld [vmem:[%s18929_s26 + $0x1f0] sm:$0xf0] }
 0x31e   : > { %8279 = vmatpush.bf16.msrb.mxu2 %v14722_v60  ;;  %v15535_v60 = vld [vmem:[%s18929_s26 + $0x1d90] sm:$0xf0]  ;;  %v8006_v15 = vpop.f32.mrf.mxu2  ;;  %v17265_v17 = vld [vmem:[%s18929_s26 + $0x16c] sm:$0xf] }
 0x31f   : > { %8293 = vmatpush.bf16.msrb.mxu3 %v15810_v8  ;;  %v13362_v8 = vor.u32 %v17605_v25, %v13359_v45  ;;  %v15538_v5 = vor.u32 %v18149_v49, %v15535_v60  ;;  %v14314_v45 = vor.u32 %v17843_v59, %v14311_v2  ;;  %v17537_v51 = vld [vmem:[%s18929_s26 + $0x9ec] sm:$0xf]  ;;  %v13087_v60 = vld [vmem:[%s18929_s26 + $0xa70] sm:$0xf0]  ;;  %v17231_v59 = vld [vmem:[%s18929_s26 + $0x5c] sm:$0xf] }
 0x320   : > { %8252 = vmatpush.bf16.msrb.mxu0 %v12410_v63  ;;  %v8007_v63 = vadd.f32 %v8006_v15, %v7993_v55  ;;  %v17809_v55 = vld [vmem:[%s18929_s26 + $0x126c] sm:$0xf]  ;;  %v12951_v15 = vld [vmem:[%s18929_s26 + $0x960] sm:$0xf0]  ;;  %v17775_v2 = vld [vmem:[%s18929_s26 + $0x115c] sm:$0xf] }
 0x321   : > { %8266 = vmatpush.bf16.msrb.mxu1 %v13498_v28  ;;  %v15399_v28 = vld [vmem:[%s18929_s26 + $0x1c80] sm:$0xf0]  ;;  %v18081_v62 = vld [vmem:[%s18929_s26 + $0x1aec] sm:$0xf] }
 0x322   : > { %8280 = vmatpush.bf16.msrb.mxu2 %v14586_v29  ;;  %v8020_v29 = vpop.f32.mrf.mxu3  ;;  %v15402_v49 = vor.u32 %v18115_v50, %v15399_v28  ;;  %v14039_v50 = vld [vmem:[%s18929_s26 + $0x11e0] sm:$0xf0]  ;;  %v18047_v28 = vld [vmem:[%s18929_s26 + $0x19dc] sm:$0xf] }
 0x323   : > { %8294 = vmatpush.bf16.msrb.mxu3 %v15674_v6  ;;  %v20840_v25 = vadd.f32 %v8020_v29, %v8007_v63  ;;  %v13226_v6 = vor.u32 %v17571_v1, %v13223_v43  ;;  %v12002_v43 = vor.u32 %v17265_v17, %v11999_v30  ;;  %v17503_v1 = vld [vmem:[%s18929_s26 + $0x8dc] sm:$0xf]  ;;  %v15127_v29 = vld [vmem:[%s18929_s26 + $0x1a60] sm:$0xf0]  ;;  %v17487_v17 = vld [vmem:[%s18929_s26 + $0x854] sm:$0xf0] }
 0x324   : > { %8253 = vmatpush.bf16.msrb.mxu0 %v12274_v44  ;;  %v14175_v44 = vld [vmem:[%s18929_s26 + $0x12f0] sm:$0xf0]  ;;  %v13909_v30 = vld [vmem:[%s18929_s26 + $0x1050] sm:$0xf] }
 0x325   : > { %22431 = vst [vmem:[#allocation75_spill] sm:$0xff] %v20840_v25  ;;  %8267 = vmatpush.bf16.msrb.mxu1 %v13362_v8  ;;  %v15263_v8 = vld [vmem:[%s18929_s26 + $0x1b70] sm:$0xf0]  ;;  %v14178_v34 = vor.u32 %v17809_v55, %v14175_v44  ;;  %v14042_v55 = vor.u32 %v17775_v2, %v14039_v50  ;;  %v16085_v44 = vld [vmem:[%s18929_s26 + $0x2150] sm:$0xf] }
 0x326   : > { %8281 = vmatpush.bf16.msrb.mxu2 %v14450_v38  ;;  %v11863_v38 = vld [vmem:[%s18929_s26 + $0xe0] sm:$0xf0]  ;;  %v15266_v63 = vor.u32 %v18081_v62, %v15263_v8  ;;  %v18303_v62 = vld [vmem:[%s18929_s26 + $0x21d4] sm:$0xf0]  ;;  %v15130_v8 = vor.u32 %v18047_v28, %v15127_v29  ;;  %v12685_v25 = vld [vmem:[%s18929_s26 + $0x6c0] sm:$0xf]  ;;  %v20874_v28 = vpop.f32.mrf.mxu0 }
 0x327   : > { %8295 = vmatpush.bf16.msrb.mxu3 %v15538_v5  ;;  %v13090_v5 = vor.u32 %v17537_v51, %v13087_v60  ;;  %v14997_v51 = vld [vmem:[%s18929_s26 + $0x18d0] sm:$0xf]  ;;  %v18031_v60 = vld [vmem:[%s18929_s26 + $0x1954] sm:$0xf0]  ;;  %v15949_v2 = vld [vmem:[%s18929_s26 + $0x2040] sm:$0xf]  ;;  %v12686_v50 = vor.u32 %v17453_v0, %v12685_v25  ;;  %v20882_v0 = vpop.f32.mrf.mxu1 }
 0x328   : > { %8254 = vmatpush.bf16.msrb.mxu0 %v12138_v20  ;;  %v12821_v20 = vld [vmem:[%s18929_s26 + $0x7d0] sm:$0xf]  ;;  %22432 = vst [vmem:[#allocation76_spill] sm:$0xff] %v20874_v28  ;;  %v17708_v28 = vld [vmem:[%s18929_s26 + $0xf44] sm:$0xf] }
 0x329   : > { %8268 = vmatpush.bf16.msrb.mxu1 %v13226_v6  ;;  %v11866_v6 = vor.u32 %v17231_v59, %v11863_v38  ;;  %v14998_v38 = vor.u32 %v18031_v60, %v14997_v51  ;;  %v17691_v51 = vld [vmem:[%s18929_s26 + $0xeb4] sm:$0xf0]  ;;  %v14725_v60 = vld [vmem:[%s18929_s26 + $0x16b0] sm:$0xf]  ;;  %22433 = vst [vmem:[#allocation77_spill] sm:$0xff] %v20882_v0 }
 0x32a   : > { %8282 = vmatpush.bf16.msrb.mxu2 %v14314_v45  ;;  %v17759_v45 = vld [vmem:[%s18929_s26 + $0x10d4] sm:$0xf0]  ;;  %v15813_v25 = vld [vmem:[%s18929_s26 + $0x1f30] sm:$0xf]  ;;  %v12687_v0 = vld [vmem:[%s18929_s26 + $0x748] sm:$0xf0] }
 0x32b   : > { %8296 = vmatpush.bf16.msrb.mxu3 %v15402_v49  ;;  %v12954_v49 = vor.u32 %v17503_v1, %v12951_v15  ;;  %v13910_v59 = vor.u32 %v17759_v45, %v13909_v30  ;;  %v14861_v1 = vld [vmem:[%s18929_s26 + $0x17c0] sm:$0xf]  ;;  %v17997_v15 = vld [vmem:[%s18929_s26 + $0x1844] sm:$0xf0]  ;;  %v17419_v30 = vld [vmem:[%s18929_s26 + $0x634] sm:$0xf0] }
 0x32c   : > { %8255 = vmatpush.bf16.msrb.mxu0 %v12002_v43  ;;  %v12822_v43 = vor.u32 %v17487_v17, %v12821_v20  ;;  %v14862_v20 = vor.u32 %v17997_v15, %v14861_v1  ;;  %v12549_v17 = vld [vmem:[%s18929_s26 + $0x5b0] sm:$0xf]  ;;  %v17657_v1 = vld [vmem:[%s18929_s26 + $0xda4] sm:$0xf0]  ;;  %v14589_v15 = vld [vmem:[%s18929_s26 + $0x15a0] sm:$0xf] }
 0x32d   : > { %8269 = vmatpush.bf16.msrb.mxu1 %v13090_v5  ;;  %v16086_v5 = vor.u32 %v18303_v62, %v16085_v44  ;;  %v12413_v44 = vld [vmem:[%s18929_s26 + $0x4a0] sm:$0xf] }
 0x32e   : > { %8283 = vmatpush.bf16.msrb.mxu2 %v14178_v34  ;;  %v17725_v34 = vld [vmem:[%s18929_s26 + $0xfc4] sm:$0xf0] }
 0x32f   : > { %8297 = vmatpush.bf16.msrb.mxu3 %v15266_v63  ;;  %v18269_v63 = vld [vmem:[%s18929_s26 + $0x20c4] sm:$0xf0]  ;;  %v13774_v29 = vor.u32 %v17725_v34, %v13773_v13  ;;  %v12550_v13 = vor.u32 %v17419_v30, %v12549_v17 }
 0x330   : > { %8256 = vmatpush.bf16.msrb.mxu0 %v11866_v6  ;;  %v13637_v6 = vld [vmem:[%s18929_s26 + $0xe30] sm:$0xf]  ;;  %v15950_v45 = vor.u32 %v18269_v63, %v15949_v2  ;;  %v17929_v2 = vld [vmem:[%s18929_s26 + $0x1624] sm:$0xf0]  ;;  %v15677_v63 = vld [vmem:[%s18929_s26 + $0x1e20] sm:$0xf]  ;;  %v8034_v17 = vpop.f32.mrf.mxu0 }
 0x331   : > { %8270 = vmatpush.bf16.msrb.mxu1 %v12954_v49  ;;  %v17963_v49 = vld [vmem:[%s18929_s26 + $0x1734] sm:$0xf0]  ;;  %v13638_v62 = vor.u32 %v17691_v51, %v13637_v6  ;;  %v14590_v6 = vor.u32 %v17929_v2, %v14589_v15  ;;  %v12141_v2 = vld [vmem:[%s18929_s26 + $0x280] sm:$0xf] }
 0x332   : > { %8284 = vmatpush.bf16.msrb.mxu2 %v14042_v55  ;;  %v18235_v55 = vld [vmem:[%s18929_s26 + $0x1fb4] sm:$0xf0] }
 0x333   : > { %8298 = vmatpush.bf16.msrb.mxu3 %v15130_v8  ;;  %8257 = vmatmul.bf16.vlgmr.msrb.gmra.mxu0 %v19056_v16  ;;  %v14726_v8 = vor.u32 %v17963_v49, %v14725_v60  ;;  %v15814_v34 = vor.u32 %v18235_v55, %v15813_v25  ;;  %v17351_v51 = vld [vmem:[%s18929_s26 + $0x414] sm:$0xf0]  ;;  %v13365_v60 = vld [vmem:[%s18929_s26 + $0xc10] sm:$0xf] }
 0x334   : > { %8305 = vmatpush.bf16.msra.mxu0 %v12822_v43  ;;  %8271 = vmatmul.bf16.vlgmr.msrb.gmra.mxu1 %v19071_v23  ;;  %v17385_v43 = vld [vmem:[%s18929_s26 + $0x524] sm:$0xf0]  ;;  %v17623_v55 = vld [vmem:[%s18929_s26 + $0xc94] sm:$0xf0] }
 0x335   : > { %8319 = vmatpush.bf16.msra.mxu1 %v13910_v59  ;;  %8285 = vmatmul.bf16.vlgmr.msrb.gmra.mxu2 %v19040_v4  ;;  %v13501_v59 = vld [vmem:[%s18929_s26 + $0xd20] sm:$0xf] }
 0x336   : > { %8333 = vmatpush.bf16.msra.mxu2 %v14998_v38  ;;  %8299 = vmatmul.bf16.vlgmr.msrb.gmra.mxu3 %v19069_v22  ;;  %v20893_v38 = vpop.f32.mrf.mxu2  ;;  %v13502_v30 = vor.u32 %v17657_v1, %v13501_v59 }
 0x337   : > { %8347 = vmatpush.bf16.msra.mxu3 %v16086_v5  ;;  %22434 = vst [vmem:[#allocation78_spill] sm:$0xff] %v20893_v38  ;;  %v22348_v5 = vperm.slane %v20640_v9, 3  ;;  %v14317_v38 = vld [vmem:[%s18929_s26 + $0x1380] sm:$0xf]  ;;  %v13781_v9 = vld [vmem:[%s18929_s26 + $0xf48] sm:$0xf] }
 0x338   : > { %8306 = vmatpush.bf16.msra.mxu0 %v12686_v50  ;;  %v18201_v50 = vld [vmem:[%s18929_s26 + $0x1ea4] sm:$0xf0] }
 0x339   : > { %8320 = vmatpush.bf16.msra.mxu1 %v13774_v29  ;;  %v20901_v29 = vpop.f32.mrf.mxu3  ;;  %v8035_v49 = vadd.f32 %v8034_v17, %v22348_v5  ;;  %v15678_v25 = vor.u32 %v18201_v50, %v15677_v63  ;;  %v17317_v63 = vld [vmem:[%s18929_s26 + $0x304] sm:$0xf0]  ;;  %v13229_v50 = vld [vmem:[%s18929_s26 + $0xb00] sm:$0xf] }
 0x33a   : > { %8334 = vmatpush.bf16.msra.mxu2 %v14862_v20  ;;  %22435 = vst [vmem:[#allocation79_spill] sm:$0xff] %v20901_v29  ;;  %v12414_v20 = vor.u32 %v17385_v43, %v12413_v44  ;;  %v17895_v44 = vld [vmem:[%s18929_s26 + $0x1514] sm:$0xf0]  ;;  %v8048_v43 = vpop.f32.mrf.mxu1  ;;  %v17589_v29 = vld [vmem:[%s18929_s26 + $0xb84] sm:$0xf0] }
 0x33b   : > { %8348 = vmatpush.bf16.msra.mxu3 %v15950_v45  ;;  %v12277_v45 = vld [vmem:[%s18929_s26 + $0x390] sm:$0xf]  ;;  %v8049_v59 = vadd.f32 %v8048_v43, %v8035_v49  ;;  %v17861_v49 = vld [vmem:[%s18929_s26 + $0x1404] sm:$0xf0] }
 0x33c   : > { %8307 = vmatpush.bf16.msra.mxu0 %v12550_v13  ;;  %v14453_v13 = vld [vmem:[%s18929_s26 + $0x1490] sm:$0xf]  ;;  %v12278_v1 = vor.u32 %v17351_v51, %v12277_v45  ;;  %v15405_v45 = vld [vmem:[%s18929_s26 + $0x1c00] sm:$0xf]  ;;  %v12142_v51 = vor.u32 %v17317_v63, %v12141_v2 }
 0x33d   : > { %8321 = vmatpush.bf16.msra.mxu1 %v13638_v62  ;;  %v15541_v62 = vld [vmem:[%s18929_s26 + $0x1d10] sm:$0xf]  ;;  %v14454_v15 = vor.u32 %v17895_v44, %v14453_v13  ;;  %v17283_v44 = vld [vmem:[%s18929_s26 + $0x1f4] sm:$0xf0] }
 0x33e   : > { %8335 = vmatpush.bf16.msra.mxu2 %v14726_v8  ;;  %v18167_v8 = vld [vmem:[%s18929_s26 + $0x1d94] sm:$0xf0]  ;;  %v8062_v17 = vpop.f32.mrf.mxu2  ;;  %v12005_v13 = vld [vmem:[%s18929_s26 + $0x170] sm:$0xf] }
 0x33f   : > { %8349 = vmatpush.bf16.msra.mxu3 %v15814_v34  ;;  %v13366_v34 = vor.u32 %v17623_v55, %v13365_v60  ;;  %v15542_v5 = vor.u32 %v18167_v8, %v15541_v62  ;;  %v14318_v55 = vor.u32 %v17861_v49, %v14317_v38  ;;  %v13093_v43 = vld [vmem:[%s18929_s26 + $0x9f0] sm:$0xf]  ;;  %v17555_v8 = vld [vmem:[%s18929_s26 + $0xa74] sm:$0xf0]  ;;  %v11869_v38 = vld [vmem:[%s18929_s26 + $0x60] sm:$0xf] }
 0x340   : > { %8308 = vmatpush.bf16.msra.mxu0 %v12414_v20  ;;  %v8063_v20 = vadd.f32 %v8062_v17, %v8049_v59  ;;  %v14181_v59 = vld [vmem:[%s18929_s26 + $0x1270] sm:$0xf]  ;;  %v17521_v17 = vld [vmem:[%s18929_s26 + $0x964] sm:$0xf0]  ;;  %v14045_v49 = vld [vmem:[%s18929_s26 + $0x1160] sm:$0xf] }
 0x341   : > { %8322 = vmatpush.bf16.msra.mxu1 %v13502_v30  ;;  %v18133_v30 = vld [vmem:[%s18929_s26 + $0x1c84] sm:$0xf0]  ;;  %v15269_v2 = vld [vmem:[%s18929_s26 + $0x1af0] sm:$0xf] }
 0x342   : > { %8336 = vmatpush.bf16.msra.mxu2 %v14590_v6  ;;  %v8076_v6 = vpop.f32.mrf.mxu3  ;;  %v15406_v62 = vor.u32 %v18133_v30, %v15405_v45  ;;  %v17793_v45 = vld [vmem:[%s18929_s26 + $0x11e4] sm:$0xf0]  ;;  %v15133_v30 = vld [vmem:[%s18929_s26 + $0x19e0] sm:$0xf] }
 0x343   : > { %8350 = vmatpush.bf16.msra.mxu3 %v15678_v25  ;;  %v20921_v60 = vadd.f32 %v8076_v6, %v8063_v20  ;;  %v13230_v25 = vor.u32 %v17589_v29, %v13229_v50  ;;  %v12006_v29 = vor.u32 %v17283_v44, %v12005_v13  ;;  %v12957_v50 = vld [vmem:[%s18929_s26 + $0x8e0] sm:$0xf]  ;;  %v18065_v6 = vld [vmem:[%s18929_s26 + $0x1a64] sm:$0xf0]  ;;  %v12823_v13 = vld [vmem:[%s18929_s26 + $0x858] sm:$0xf0] }
 0x344   : > { %8309 = vmatpush.bf16.msra.mxu0 %v12278_v1  ;;  %v17827_v1 = vld [vmem:[%s18929_s26 + $0x12f4] sm:$0xf0]  ;;  %v17742_v44 = vld [vmem:[%s18929_s26 + $0x1054] sm:$0xf] }
 0x345   : > { %22436 = vst [vmem:[#allocation80_spill] sm:$0xff] %v20921_v60  ;;  %8323 = vmatpush.bf16.msra.mxu1 %v13366_v34  ;;  %v18099_v34 = vld [vmem:[%s18929_s26 + $0x1b74] sm:$0xf0]  ;;  %v14182_v63 = vor.u32 %v17827_v1, %v14181_v59  ;;  %v14046_v59 = vor.u32 %v17793_v45, %v14045_v49  ;;  %v18286_v1 = vld [vmem:[%s18929_s26 + $0x2154] sm:$0xf] }
 0x346   : > { %8337 = vmatpush.bf16.msra.mxu2 %v14454_v15  ;;  %v17249_v15 = vld [vmem:[%s18929_s26 + $0xe4] sm:$0xf0]  ;;  %v15270_v20 = vor.u32 %v18099_v34, %v15269_v2  ;;  %v16087_v2 = vld [vmem:[%s18929_s26 + $0x21d8] sm:$0xf0]  ;;  %v15134_v34 = vor.u32 %v18065_v6, %v15133_v30  ;;  %v17436_v60 = vld [vmem:[%s18929_s26 + $0x6c4] sm:$0xf]  ;;  %v20955_v30 = vpop.f32.mrf.mxu0 }
 0x347   : > { %8351 = vmatpush.bf16.msra.mxu3 %v15542_v5  ;;  %v13094_v5 = vor.u32 %v17555_v8, %v13093_v43  ;;  %v18014_v43 = vld [vmem:[%s18929_s26 + $0x18d4] sm:$0xf]  ;;  %v14999_v8 = vld [vmem:[%s18929_s26 + $0x1958] sm:$0xf0]  ;;  %v18252_v49 = vld [vmem:[%s18929_s26 + $0x2044] sm:$0xf]  ;;  %v12690_v45 = vor.u32 %v17436_v60, %v12687_v0  ;;  %v20963_v0 = vpop.f32.mrf.mxu1 }
 0x348   : > { %8310 = vmatpush.bf16.msra.mxu0 %v12142_v51  ;;  %v17470_v51 = vld [vmem:[%s18929_s26 + $0x7d4] sm:$0xf]  ;;  %22437 = vst [vmem:[#allocation81_spill] sm:$0xff] %v20955_v30  ;;  %v17454_v30 = vld [vmem:[%s18929_s26 + $0x74c] sm:$0xf0] }
 0x349   : > { %8324 = vmatpush.bf16.msra.mxu1 %v13230_v25  ;;  %v11870_v25 = vor.u32 %v17249_v15, %v11869_v38  ;;  %v15002_v15 = vor.u32 %v18014_v43, %v14999_v8  ;;  %v13639_v43 = vld [vmem:[%s18929_s26 + $0xeb8] sm:$0xf0]  ;;  %v17946_v8 = vld [vmem:[%s18929_s26 + $0x16b4] sm:$0xf]  ;;  %22438 = vst [vmem:[#allocation82_spill] sm:$0xff] %v20963_v0 }
 0x34a   : > { %8338 = vmatpush.bf16.msra.mxu2 %v14318_v55  ;;  %v13911_v55 = vld [vmem:[%s18929_s26 + $0x10d8] sm:$0xf0]  ;;  %v18218_v60 = vld [vmem:[%s18929_s26 + $0x1f34] sm:$0xf]  ;;  %v17844_v0 = vld [vmem:[%s18929_s26 + $0x1384] sm:$0xf] }
 0x34b   : > { %8352 = vmatpush.bf16.msra.mxu3 %v15406_v62  ;;  %v12958_v62 = vor.u32 %v17521_v17, %v12957_v50  ;;  %v13914_v38 = vor.u32 %v17742_v44, %v13911_v55  ;;  %v17980_v50 = vld [vmem:[%s18929_s26 + $0x17c4] sm:$0xf]  ;;  %v14863_v17 = vld [vmem:[%s18929_s26 + $0x1848] sm:$0xf0]  ;;  %v12551_v44 = vld [vmem:[%s18929_s26 + $0x638] sm:$0xf0] }
 0x34c   : > { %8311 = vmatpush.bf16.msra.mxu0 %v12006_v29  ;;  %v12826_v29 = vor.u32 %v17470_v51, %v12823_v13  ;;  %v14866_v51 = vor.u32 %v17980_v50, %v14863_v17  ;;  %v17402_v13 = vld [vmem:[%s18929_s26 + $0x5b4] sm:$0xf]  ;;  %v13503_v17 = vld [vmem:[%s18929_s26 + $0xda8] sm:$0xf0] }
 0x34d   : > { %8325 = vmatpush.bf16.msra.mxu1 %v13094_v5  ;;  %v16090_v5 = vor.u32 %v18286_v1, %v16087_v2  ;;  %v17368_v1 = vld [vmem:[%s18929_s26 + $0x4a4] sm:$0xf] }
 0x34e   : > { %8339 = vmatpush.bf16.msra.mxu2 %v14182_v63  ;;  %v13775_v63 = vld [vmem:[%s18929_s26 + $0xfc8] sm:$0xf0] }
 0x34f   : > { %8353 = vmatpush.bf16.msra.mxu3 %v15270_v20  ;;  %v15951_v20 = vld [vmem:[%s18929_s26 + $0x20c8] sm:$0xf0]  ;;  %v13778_v6 = vor.u32 %v17708_v28, %v13775_v63  ;;  %v12554_v28 = vor.u32 %v17402_v13, %v12551_v44 }
 0x350   : > { %8312 = vmatpush.bf16.msra.mxu0 %v11870_v25  ;;  %v17674_v25 = vld [vmem:[%s18929_s26 + $0xe34] sm:$0xf]  ;;  %v15954_v55 = vor.u32 %v18252_v49, %v15951_v20  ;;  %v17912_v49 = vld [vmem:[%s18929_s26 + $0x15a4] sm:$0xf]  ;;  %v14591_v20 = vld [vmem:[%s18929_s26 + $0x1628] sm:$0xf0]  ;;  %v8090_v44 = vpop.f32.mrf.mxu0 }
 0x351   : > { %8326 = vmatpush.bf16.msra.mxu1 %v12958_v62  ;;  %v14727_v62 = vld [vmem:[%s18929_s26 + $0x1738] sm:$0xf0]  ;;  %v13642_v2 = vor.u32 %v17674_v25, %v13639_v43  ;;  %v17334_v43 = vld [vmem:[%s18929_s26 + $0x394] sm:$0xf] }
 0x352   : > { %8340 = vmatpush.bf16.msra.mxu2 %v14046_v59  ;;  %v15815_v59 = vld [vmem:[%s18929_s26 + $0x1fb8] sm:$0xf0] }
 0x353   : > { %8354 = vmatpush.bf16.msra.mxu3 %v15134_v34  ;;  %8313 = vmatmul.bf16.vlgmr.msra.gmra.mxu0 %v19056_v16  ;;  %v14730_v34 = vor.u32 %v17946_v8, %v14727_v62  ;;  %v15818_v50 = vor.u32 %v18218_v60, %v15815_v59  ;;  %v12279_v8 = vld [vmem:[%s18929_s26 + $0x418] sm:$0xf0]  ;;  %v17606_v62 = vld [vmem:[%s18929_s26 + $0xc14] sm:$0xf] }
 0x354   : > { %8361 = vmatpush.bf16.msrb.mxu0 %v12826_v29  ;;  %8327 = vmatmul.bf16.vlgmr.msra.gmra.mxu1 %v19071_v23  ;;  %v12415_v29 = vld [vmem:[%s18929_s26 + $0x528] sm:$0xf0] }
 0x355   : > { %8375 = vmatpush.bf16.msrb.mxu1 %v13914_v38  ;;  %8341 = vmatmul.bf16.vlgmr.msra.gmra.mxu2 %v19040_v4  ;;  %v17640_v38 = vld [vmem:[%s18929_s26 + $0xd24] sm:$0xf]  ;;  %v12418_v13 = vor.u32 %v17368_v1, %v12415_v29  ;;  %v17878_v1 = vld [vmem:[%s18929_s26 + $0x1494] sm:$0xf]  ;;  %v14455_v29 = vld [vmem:[%s18929_s26 + $0x1518] sm:$0xf0] }
 0x356   : > { %8389 = vmatpush.bf16.msrb.mxu2 %v15002_v15  ;;  %8355 = vmatmul.bf16.vlgmr.msra.gmra.mxu3 %v19069_v22  ;;  %v20974_v15 = vpop.f32.mrf.mxu2  ;;  %v13506_v25 = vor.u32 %v17640_v38, %v13503_v17  ;;  %v12282_v17 = vor.u32 %v17334_v43, %v12279_v8  ;;  %v18116_v43 = vld [vmem:[%s18929_s26 + $0x1c04] sm:$0xf] }
 0x357   : > { %8403 = vmatpush.bf16.msrb.mxu3 %v16090_v5  ;;  %22439 = vst [vmem:[#allocation83_spill] sm:$0xff] %v20974_v15  ;;  %v20977_v5 = vld [vmem:[%s18938_s14 + $0x10] sm:$0xff]  ;;  %v13231_v15 = vld [vmem:[%s18929_s26 + $0xb88] sm:$0xf0] }
 0x358   : > { %8362 = vmatpush.bf16.msrb.mxu0 %v12690_v45  ;;  %22440 = vst [vmem:[#allocation84_spill] sm:$0xff] %v20977_v5  ;;  %v22349_v63 = vperm.slane %v20977_v5, 4  ;;  %v18184_v45 = vld [vmem:[%s18929_s26 + $0x1e24] sm:$0xf] }
 0x359   : > { %8376 = vmatpush.bf16.msrb.mxu1 %v13778_v6  ;;  %v15679_v6 = vld [vmem:[%s18929_s26 + $0x1ea8] sm:$0xf0] }
 0x35a   : > { %8390 = vmatpush.bf16.msrb.mxu2 %v14866_v51  ;;  %v20985_v51 = vpop.f32.mrf.mxu3  ;;  %v8091_v60 = vadd.f32 %v8090_v44, %v22349_v63  ;;  %v15682_v59 = vor.u32 %v18184_v45, %v15679_v6  ;;  %v12143_v45 = vld [vmem:[%s18929_s26 + $0x308] sm:$0xf0]  ;;  %v17572_v6 = vld [vmem:[%s18929_s26 + $0xb04] sm:$0xf] }
 0x35b   : > { %8404 = vmatpush.bf16.msrb.mxu3 %v15954_v55  ;;  %22441 = vst [vmem:[#allocation85_spill] sm:$0xff] %v20985_v51  ;;  %v14594_v55 = vor.u32 %v17912_v49, %v14591_v20  ;;  %v8104_v51 = vpop.f32.mrf.mxu1  ;;  %v14458_v49 = vor.u32 %v17878_v1, %v14455_v29  ;;  %v17300_v20 = vld [vmem:[%s18929_s26 + $0x284] sm:$0xf]  ;;  %v12007_v1 = vld [vmem:[%s18929_s26 + $0x1f8] sm:$0xf0] }
 0x35c   : > { %8363 = vmatpush.bf16.msrb.mxu0 %v12554_v28  ;;  %v13367_v28 = vld [vmem:[%s18929_s26 + $0xc98] sm:$0xf0]  ;;  %v8105_v38 = vadd.f32 %v8104_v51, %v8091_v60  ;;  %v14319_v51 = vld [vmem:[%s18929_s26 + $0x1408] sm:$0xf0]  ;;  %v12146_v8 = vor.u32 %v17300_v20, %v12143_v45  ;;  %v13234_v60 = vor.u32 %v17572_v6, %v13231_v15  ;;  %v17538_v29 = vld [vmem:[%s18929_s26 + $0x9f4] sm:$0xf] }
 0x35d   : > { %8377 = vmatpush.bf16.msrb.mxu1 %v13642_v2  ;;  %v18150_v2 = vld [vmem:[%s18929_s26 + $0x1d14] sm:$0xf]  ;;  %v17504_v6 = vld [vmem:[%s18929_s26 + $0x8e4] sm:$0xf] }
 0x35e   : > { %8391 = vmatpush.bf16.msrb.mxu2 %v14730_v34  ;;  %v15543_v34 = vld [vmem:[%s18929_s26 + $0x1d98] sm:$0xf0]  ;;  %v8118_v44 = vpop.f32.mrf.mxu2  ;;  %v18082_v20 = vld [vmem:[%s18929_s26 + $0x1af4] sm:$0xf] }
 0x35f   : > { %8405 = vmatpush.bf16.msrb.mxu3 %v15818_v50  ;;  %v13370_v50 = vor.u32 %v17606_v62, %v13367_v28  ;;  %v15546_v63 = vor.u32 %v18150_v2, %v15543_v34  ;;  %v17266_v28 = vld [vmem:[%s18929_s26 + $0x174] sm:$0xf]  ;;  %v13095_v34 = vld [vmem:[%s18929_s26 + $0xa78] sm:$0xf0] }
 0x360   : > { %8364 = vmatpush.bf16.msrb.mxu0 %v12418_v13  ;;  %v8119_v13 = vadd.f32 %v8118_v44, %v8105_v38  ;;  %v17810_v38 = vld [vmem:[%s18929_s26 + $0x1274] sm:$0xf]  ;;  %v12010_v15 = vor.u32 %v17266_v28, %v12007_v1  ;;  %v12959_v44 = vld [vmem:[%s18929_s26 + $0x968] sm:$0xf0]  ;;  %v17488_v28 = vld [vmem:[%s18929_s26 + $0x85c] sm:$0xf0] }
 0x361   : > { %8378 = vmatpush.bf16.msrb.mxu1 %v13506_v25  ;;  %v15407_v25 = vld [vmem:[%s18929_s26 + $0x1c88] sm:$0xf0]  ;;  %v13917_v1 = vld [vmem:[%s18929_s26 + $0x1058] sm:$0xf] }
 0x362   : > { %8392 = vmatpush.bf16.msrb.mxu2 %v14594_v55  ;;  %v8132_v55 = vpop.f32.mrf.mxu3  ;;  %v15410_v2 = vor.u32 %v18116_v43, %v15407_v25  ;;  %v14047_v43 = vld [vmem:[%s18929_s26 + $0x11e8] sm:$0xf0]  ;;  %v18048_v25 = vld [vmem:[%s18929_s26 + $0x19e4] sm:$0xf] }
 0x363   : > { %8406 = vmatpush.bf16.msrb.mxu3 %v15682_v59  ;;  %v21005_v62 = vadd.f32 %v8132_v55, %v8119_v13  ;;  %v14322_v59 = vor.u32 %v17844_v0, %v14319_v51  ;;  %v17232_v0 = vld [vmem:[%s18929_s26 + $0x64] sm:$0xf]  ;;  %v15135_v55 = vld [vmem:[%s18929_s26 + $0x1a68] sm:$0xf0] }
 0x364   : > { %8365 = vmatpush.bf16.msrb.mxu0 %v12282_v17  ;;  %v14183_v17 = vld [vmem:[%s18929_s26 + $0x12f8] sm:$0xf0]  ;;  %v17776_v51 = vld [vmem:[%s18929_s26 + $0x1164] sm:$0xf] }
 0x365   : > { %22442 = vst [vmem:[#allocation86_spill] sm:$0xff] %v21005_v62  ;;  %8379 = vmatpush.bf16.msrb.mxu1 %v13370_v50  ;;  %v15271_v50 = vld [vmem:[%s18929_s26 + $0x1b78] sm:$0xf0]  ;;  %v14186_v45 = vor.u32 %v17810_v38, %v14183_v17  ;;  %v14050_v38 = vor.u32 %v17776_v51, %v14047_v43  ;;  %v16093_v17 = vld [vmem:[%s18929_s26 + $0x2158] sm:$0xf] }
 0x366   : > { %8393 = vmatpush.bf16.msrb.mxu2 %v14458_v49  ;;  %v11871_v49 = vld [vmem:[%s18929_s26 + $0xe8] sm:$0xf0]  ;;  %v15274_v13 = vor.u32 %v18082_v20, %v15271_v50  ;;  %v18304_v20 = vld [vmem:[%s18929_s26 + $0x21dc] sm:$0xf0]  ;;  %v15138_v50 = vor.u32 %v18048_v25, %v15135_v55  ;;  %v12693_v62 = vld [vmem:[%s18929_s26 + $0x6c8] sm:$0xf]  ;;  %v21039_v25 = vpop.f32.mrf.mxu0 }
 0x367   : > { %8407 = vmatpush.bf16.msrb.mxu3 %v15546_v63  ;;  %v13098_v63 = vor.u32 %v17538_v29, %v13095_v34  ;;  %v15005_v29 = vld [vmem:[%s18929_s26 + $0x18d8] sm:$0xf]  ;;  %v18032_v34 = vld [vmem:[%s18929_s26 + $0x195c] sm:$0xf0]  ;;  %v15957_v51 = vld [vmem:[%s18929_s26 + $0x2048] sm:$0xf]  ;;  %v12694_v43 = vor.u32 %v17454_v30, %v12693_v62  ;;  %v21047_v30 = vpop.f32.mrf.mxu1 }
 0x368   : > { %8366 = vmatpush.bf16.msrb.mxu0 %v12146_v8  ;;  %v12829_v8 = vld [vmem:[%s18929_s26 + $0x7d8] sm:$0xf]  ;;  %22443 = vst [vmem:[#allocation87_spill] sm:$0xff] %v21039_v25  ;;  %v17709_v25 = vld [vmem:[%s18929_s26 + $0xf4c] sm:$0xf] }
 0x369   : > { %8380 = vmatpush.bf16.msrb.mxu1 %v13234_v60  ;;  %v11874_v60 = vor.u32 %v17232_v0, %v11871_v49  ;;  %v15006_v49 = vor.u32 %v18032_v34, %v15005_v29  ;;  %v17692_v29 = vld [vmem:[%s18929_s26 + $0xebc] sm:$0xf0]  ;;  %v14733_v34 = vld [vmem:[%s18929_s26 + $0x16b8] sm:$0xf]  ;;  %22444 = vst [vmem:[#allocation88_spill] sm:$0xff] %v21047_v30 }
 0x36a   : > { %8394 = vmatpush.bf16.msrb.mxu2 %v14322_v59  ;;  %v17760_v59 = vld [vmem:[%s18929_s26 + $0x10dc] sm:$0xf0]  ;;  %v15821_v62 = vld [vmem:[%s18929_s26 + $0x1f38] sm:$0xf]  ;;  %v12695_v30 = vld [vmem:[%s18929_s26 + $0x750] sm:$0xf0] }
 0x36b   : > { %8408 = vmatpush.bf16.msrb.mxu3 %v15410_v2  ;;  %v12962_v2 = vor.u32 %v17504_v6, %v12959_v44  ;;  %v13918_v0 = vor.u32 %v17760_v59, %v13917_v1  ;;  %v14869_v6 = vld [vmem:[%s18929_s26 + $0x17c8] sm:$0xf]  ;;  %v17998_v44 = vld [vmem:[%s18929_s26 + $0x184c] sm:$0xf0]  ;;  %v17420_v1 = vld [vmem:[%s18929_s26 + $0x63c] sm:$0xf0] }
 0x36c   : > { %8367 = vmatpush.bf16.msrb.mxu0 %v12010_v15  ;;  %v12830_v15 = vor.u32 %v17488_v28, %v12829_v8  ;;  %v14870_v8 = vor.u32 %v17998_v44, %v14869_v6  ;;  %v12557_v28 = vld [vmem:[%s18929_s26 + $0x5b8] sm:$0xf]  ;;  %v17658_v6 = vld [vmem:[%s18929_s26 + $0xdac] sm:$0xf0]  ;;  %v14597_v44 = vld [vmem:[%s18929_s26 + $0x15a8] sm:$0xf] }
 0x36d   : > { %8381 = vmatpush.bf16.msrb.mxu1 %v13098_v63  ;;  %v16094_v63 = vor.u32 %v18304_v20, %v16093_v17  ;;  %v12421_v17 = vld [vmem:[%s18929_s26 + $0x4a8] sm:$0xf] }
 0x36e   : > { %8395 = vmatpush.bf16.msrb.mxu2 %v14186_v45  ;;  %v17726_v45 = vld [vmem:[%s18929_s26 + $0xfcc] sm:$0xf0] }
 0x36f   : > { %8409 = vmatpush.bf16.msrb.mxu3 %v15274_v13  ;;  %v18270_v13 = vld [vmem:[%s18929_s26 + $0x20cc] sm:$0xf0]  ;;  %v13782_v55 = vor.u32 %v17726_v45, %v13781_v9  ;;  %v12558_v9 = vor.u32 %v17420_v1, %v12557_v28 }
 0x370   : > { %8368 = vmatpush.bf16.msrb.mxu0 %v11874_v60  ;;  %v13645_v60 = vld [vmem:[%s18929_s26 + $0xe38] sm:$0xf]  ;;  %v15958_v59 = vor.u32 %v18270_v13, %v15957_v51  ;;  %v17930_v51 = vld [vmem:[%s18929_s26 + $0x162c] sm:$0xf0]  ;;  %v15685_v13 = vld [vmem:[%s18929_s26 + $0x1e28] sm:$0xf]  ;;  %v8146_v28 = vpop.f32.mrf.mxu0 }
 0x371   : > { %8382 = vmatpush.bf16.msrb.mxu1 %v12962_v2  ;;  %v17964_v2 = vld [vmem:[%s18929_s26 + $0x173c] sm:$0xf0]  ;;  %v13646_v20 = vor.u32 %v17692_v29, %v13645_v60  ;;  %v14598_v60 = vor.u32 %v17930_v51, %v14597_v44  ;;  %v12149_v51 = vld [vmem:[%s18929_s26 + $0x288] sm:$0xf] }
 0x372   : > { %8396 = vmatpush.bf16.msrb.mxu2 %v14050_v38  ;;  %v18236_v38 = vld [vmem:[%s18929_s26 + $0x1fbc] sm:$0xf0] }
 0x373   : > { %8410 = vmatpush.bf16.msrb.mxu3 %v15138_v50  ;;  %8369 = vmatmul.bf16.vlgmr.msrb.gmra.mxu0 %v19056_v16  ;;  %v14734_v50 = vor.u32 %v17964_v2, %v14733_v34  ;;  %v15822_v45 = vor.u32 %v18236_v38, %v15821_v62  ;;  %v17352_v29 = vld [vmem:[%s18929_s26 + $0x41c] sm:$0xf0]  ;;  %v13373_v34 = vld [vmem:[%s18929_s26 + $0xc18] sm:$0xf] }
 0x374   : > { %8417 = vmatpush.bf16.msra.mxu0 %v12830_v15  ;;  %8383 = vmatmul.bf16.vlgmr.msrb.gmra.mxu1 %v19071_v23  ;;  %v17386_v15 = vld [vmem:[%s18929_s26 + $0x52c] sm:$0xf0]  ;;  %v17624_v38 = vld [vmem:[%s18929_s26 + $0xc9c] sm:$0xf0] }
 0x375   : > { %8431 = vmatpush.bf16.msra.mxu1 %v13918_v0  ;;  %8397 = vmatmul.bf16.vlgmr.msrb.gmra.mxu2 %v19040_v4  ;;  %v13509_v0 = vld [vmem:[%s18929_s26 + $0xd28] sm:$0xf] }
 0x376   : > { %8445 = vmatpush.bf16.msra.mxu2 %v15006_v49  ;;  %8411 = vmatmul.bf16.vlgmr.msrb.gmra.mxu3 %v19069_v22  ;;  %v21058_v49 = vpop.f32.mrf.mxu2  ;;  %v13510_v1 = vor.u32 %v17658_v6, %v13509_v0 }
 0x377   : > { %8459 = vmatpush.bf16.msra.mxu3 %v16094_v63  ;;  %22445 = vst [vmem:[#allocation89_spill] sm:$0xff] %v21058_v49  ;;  %v22352_v63 = vperm.slane %v20977_v5, 5  ;;  %v14325_v49 = vld [vmem:[%s18929_s26 + $0x1388] sm:$0xf] }
 0x378   : > { %8418 = vmatpush.bf16.msra.mxu0 %v12694_v43  ;;  %v18202_v43 = vld [vmem:[%s18929_s26 + $0x1eac] sm:$0xf0] }
 0x379   : > { %8432 = vmatpush.bf16.msra.mxu1 %v13782_v55  ;;  %v21066_v55 = vpop.f32.mrf.mxu3  ;;  %v8147_v2 = vadd.f32 %v8146_v28, %v22352_v63  ;;  %v15686_v62 = vor.u32 %v18202_v43, %v15685_v13  ;;  %v17318_v13 = vld [vmem:[%s18929_s26 + $0x30c] sm:$0xf0]  ;;  %v13237_v43 = vld [vmem:[%s18929_s26 + $0xb08] sm:$0xf] }
 0x37a   : > { %8446 = vmatpush.bf16.msra.mxu2 %v14870_v8  ;;  %22446 = vst [vmem:[#allocation90_spill] sm:$0xff] %v21066_v55  ;;  %v12422_v8 = vor.u32 %v17386_v15, %v12421_v17  ;;  %v17896_v17 = vld [vmem:[%s18929_s26 + $0x151c] sm:$0xf0]  ;;  %v8160_v15 = vpop.f32.mrf.mxu1  ;;  %v17590_v55 = vld [vmem:[%s18929_s26 + $0xb8c] sm:$0xf0] }
 0x37b   : > { %8460 = vmatpush.bf16.msra.mxu3 %v15958_v59  ;;  %v12285_v59 = vld [vmem:[%s18929_s26 + $0x398] sm:$0xf]  ;;  %v8161_v0 = vadd.f32 %v8160_v15, %v8147_v2  ;;  %v17862_v2 = vld [vmem:[%s18929_s26 + $0x140c] sm:$0xf0] }
 0x37c   : > { %8419 = vmatpush.bf16.msra.mxu0 %v12558_v9  ;;  %v14461_v9 = vld [vmem:[%s18929_s26 + $0x1498] sm:$0xf]  ;;  %v12286_v6 = vor.u32 %v17352_v29, %v12285_v59  ;;  %v15413_v59 = vld [vmem:[%s18929_s26 + $0x1c08] sm:$0xf]  ;;  %v12150_v29 = vor.u32 %v17318_v13, %v12149_v51 }
 0x37d   : > { %8433 = vmatpush.bf16.msra.mxu1 %v13646_v20  ;;  %v15549_v20 = vld [vmem:[%s18929_s26 + $0x1d18] sm:$0xf]  ;;  %v14462_v44 = vor.u32 %v17896_v17, %v14461_v9  ;;  %v17284_v17 = vld [vmem:[%s18929_s26 + $0x1fc] sm:$0xf0] }
 0x37e   : > { %8447 = vmatpush.bf16.msra.mxu2 %v14734_v50  ;;  %v18168_v50 = vld [vmem:[%s18929_s26 + $0x1d9c] sm:$0xf0]  ;;  %v8174_v28 = vpop.f32.mrf.mxu2  ;;  %v12013_v9 = vld [vmem:[%s18929_s26 + $0x178] sm:$0xf] }
 0x37f   : > { %8461 = vmatpush.bf16.msra.mxu3 %v15822_v45  ;;  %v13374_v45 = vor.u32 %v17624_v38, %v13373_v34  ;;  %v15550_v63 = vor.u32 %v18168_v50, %v15549_v20  ;;  %v14326_v38 = vor.u32 %v17862_v2, %v14325_v49  ;;  %v13101_v15 = vld [vmem:[%s18929_s26 + $0x9f8] sm:$0xf]  ;;  %v17556_v50 = vld [vmem:[%s18929_s26 + $0xa7c] sm:$0xf0]  ;;  %v11877_v49 = vld [vmem:[%s18929_s26 + $0x68] sm:$0xf] }
 0x380   : > { %8420 = vmatpush.bf16.msra.mxu0 %v12422_v8  ;;  %v8175_v8 = vadd.f32 %v8174_v28, %v8161_v0  ;;  %v14189_v0 = vld [vmem:[%s18929_s26 + $0x1278] sm:$0xf]  ;;  %v17522_v28 = vld [vmem:[%s18929_s26 + $0x96c] sm:$0xf0]  ;;  %v14053_v2 = vld [vmem:[%s18929_s26 + $0x1168] sm:$0xf] }
 0x381   : > { %8434 = vmatpush.bf16.msra.mxu1 %v13510_v1  ;;  %v18134_v1 = vld [vmem:[%s18929_s26 + $0x1c8c] sm:$0xf0]  ;;  %v15277_v51 = vld [vmem:[%s18929_s26 + $0x1af8] sm:$0xf] }
 0x382   : > { %8448 = vmatpush.bf16.msra.mxu2 %v14598_v60  ;;  %v8188_v60 = vpop.f32.mrf.mxu3  ;;  %v15414_v20 = vor.u32 %v18134_v1, %v15413_v59  ;;  %v17794_v59 = vld [vmem:[%s18929_s26 + $0x11ec] sm:$0xf0]  ;;  %v15141_v1 = vld [vmem:[%s18929_s26 + $0x19e8] sm:$0xf] }
 0x383   : > { %8462 = vmatpush.bf16.msra.mxu3 %v15686_v62  ;;  %v21086_v34 = vadd.f32 %v8188_v60, %v8175_v8  ;;  %v13238_v62 = vor.u32 %v17590_v55, %v13237_v43  ;;  %v12014_v55 = vor.u32 %v17284_v17, %v12013_v9  ;;  %v12965_v43 = vld [vmem:[%s18929_s26 + $0x8e8] sm:$0xf]  ;;  %v18066_v60 = vld [vmem:[%s18929_s26 + $0x1a6c] sm:$0xf0]  ;;  %v12831_v9 = vld [vmem:[%s18929_s26 + $0x860] sm:$0xf0] }
 0x384   : > { %8421 = vmatpush.bf16.msra.mxu0 %v12286_v6  ;;  %v17828_v6 = vld [vmem:[%s18929_s26 + $0x12fc] sm:$0xf0]  ;;  %v17743_v17 = vld [vmem:[%s18929_s26 + $0x105c] sm:$0xf] }
 0x385   : > { %22447 = vst [vmem:[#allocation91_spill] sm:$0xff] %v21086_v34  ;;  %8435 = vmatpush.bf16.msra.mxu1 %v13374_v45  ;;  %v18100_v45 = vld [vmem:[%s18929_s26 + $0x1b7c] sm:$0xf0]  ;;  %v14190_v13 = vor.u32 %v17828_v6, %v14189_v0  ;;  %v14054_v0 = vor.u32 %v17794_v59, %v14053_v2  ;;  %v18287_v6 = vld [vmem:[%s18929_s26 + $0x215c] sm:$0xf] }
 0x386   : > { %8449 = vmatpush.bf16.msra.mxu2 %v14462_v44  ;;  %v17250_v44 = vld [vmem:[%s18929_s26 + $0xec] sm:$0xf0]  ;;  %v15278_v8 = vor.u32 %v18100_v45, %v15277_v51  ;;  %v16095_v51 = vld [vmem:[%s18929_s26 + $0x21e0] sm:$0xf0]  ;;  %v15142_v45 = vor.u32 %v18066_v60, %v15141_v1  ;;  %v17437_v34 = vld [vmem:[%s18929_s26 + $0x6cc] sm:$0xf]  ;;  %v21120_v1 = vpop.f32.mrf.mxu0 }
 0x387   : > { %8463 = vmatpush.bf16.msra.mxu3 %v15550_v63  ;;  %v13102_v63 = vor.u32 %v17556_v50, %v13101_v15  ;;  %v18015_v15 = vld [vmem:[%s18929_s26 + $0x18dc] sm:$0xf]  ;;  %v15007_v50 = vld [vmem:[%s18929_s26 + $0x1960] sm:$0xf0]  ;;  %v18253_v2 = vld [vmem:[%s18929_s26 + $0x204c] sm:$0xf]  ;;  %v12698_v59 = vor.u32 %v17437_v34, %v12695_v30  ;;  %v21128_v30 = vpop.f32.mrf.mxu1 }
 0x388   : > { %8422 = vmatpush.bf16.msra.mxu0 %v12150_v29  ;;  %v17471_v29 = vld [vmem:[%s18929_s26 + $0x7dc] sm:$0xf]  ;;  %22448 = vst [vmem:[#allocation92_spill] sm:$0xff] %v21120_v1  ;;  %v13789_v1 = vld [vmem:[%s18929_s26 + $0xf50] sm:$0xf] }
 0x389   : > { %8436 = vmatpush.bf16.msra.mxu1 %v13238_v62  ;;  %v11878_v62 = vor.u32 %v17250_v44, %v11877_v49  ;;  %v15010_v44 = vor.u32 %v18015_v15, %v15007_v50  ;;  %v13647_v15 = vld [vmem:[%s18929_s26 + $0xec0] sm:$0xf0]  ;;  %v17947_v50 = vld [vmem:[%s18929_s26 + $0x16bc] sm:$0xf]  ;;  %22449 = vst [vmem:[#allocation93_spill] sm:$0xff] %v21128_v30 }
 0x38a   : > { %8450 = vmatpush.bf16.msra.mxu2 %v14326_v38  ;;  %v13919_v38 = vld [vmem:[%s18929_s26 + $0x10e0] sm:$0xf0]  ;;  %v18219_v34 = vld [vmem:[%s18929_s26 + $0x1f3c] sm:$0xf]  ;;  %v17455_v30 = vld [vmem:[%s18929_s26 + $0x754] sm:$0xf0] }
 0x38b   : > { %8464 = vmatpush.bf16.msra.mxu3 %v15414_v20  ;;  %v12966_v20 = vor.u32 %v17522_v28, %v12965_v43  ;;  %v13922_v49 = vor.u32 %v17743_v17, %v13919_v38  ;;  %v17981_v43 = vld [vmem:[%s18929_s26 + $0x17cc] sm:$0xf]  ;;  %v14871_v28 = vld [vmem:[%s18929_s26 + $0x1850] sm:$0xf0]  ;;  %v12559_v17 = vld [vmem:[%s18929_s26 + $0x640] sm:$0xf0] }
 0x38c   : > { %8423 = vmatpush.bf16.msra.mxu0 %v12014_v55  ;;  %v12834_v55 = vor.u32 %v17471_v29, %v12831_v9  ;;  %v14874_v29 = vor.u32 %v17981_v43, %v14871_v28  ;;  %v17403_v9 = vld [vmem:[%s18929_s26 + $0x5bc] sm:$0xf]  ;;  %v13511_v43 = vld [vmem:[%s18929_s26 + $0xdb0] sm:$0xf0]  ;;  %v17913_v28 = vld [vmem:[%s18929_s26 + $0x15ac] sm:$0xf] }
 0x38d   : > { %8437 = vmatpush.bf16.msra.mxu1 %v13102_v63  ;;  %v16098_v63 = vor.u32 %v18287_v6, %v16095_v51  ;;  %v17369_v6 = vld [vmem:[%s18929_s26 + $0x4ac] sm:$0xf] }
 0x38e   : > { %8451 = vmatpush.bf16.msra.mxu2 %v14190_v13  ;;  %v13783_v13 = vld [vmem:[%s18929_s26 + $0xfd0] sm:$0xf0] }
 0x38f   : > { %8465 = vmatpush.bf16.msra.mxu3 %v15278_v8  ;;  %v15959_v8 = vld [vmem:[%s18929_s26 + $0x20d0] sm:$0xf0]  ;;  %v13786_v60 = vor.u32 %v17709_v25, %v13783_v13  ;;  %v12562_v25 = vor.u32 %v17403_v9, %v12559_v17 }
 0x390   : > { %8424 = vmatpush.bf16.msra.mxu0 %v11878_v62  ;;  %v17675_v62 = vld [vmem:[%s18929_s26 + $0xe3c] sm:$0xf]  ;;  %v15962_v38 = vor.u32 %v18253_v2, %v15959_v8  ;;  %v14599_v2 = vld [vmem:[%s18929_s26 + $0x1630] sm:$0xf0]  ;;  %v18185_v8 = vld [vmem:[%s18929_s26 + $0x1e2c] sm:$0xf]  ;;  %v8202_v9 = vpop.f32.mrf.mxu0 }
 0x391   : > { %8438 = vmatpush.bf16.msra.mxu1 %v12966_v20  ;;  %v14735_v20 = vld [vmem:[%s18929_s26 + $0x1740] sm:$0xf0]  ;;  %v13650_v51 = vor.u32 %v17675_v62, %v13647_v15  ;;  %v14602_v62 = vor.u32 %v17913_v28, %v14599_v2  ;;  %v17301_v2 = vld [vmem:[%s18929_s26 + $0x28c] sm:$0xf] }
 0x392   : > { %8452 = vmatpush.bf16.msra.mxu2 %v14054_v0  ;;  %v15823_v0 = vld [vmem:[%s18929_s26 + $0x1fc0] sm:$0xf0] }
 0x393   : > { %8466 = vmatpush.bf16.msra.mxu3 %v15142_v45  ;;  %8425 = vmatmul.bf16.vlgmr.msra.gmra.mxu0 %v19056_v16  ;;  %v14738_v45 = vor.u32 %v17947_v50, %v14735_v20  ;;  %v15826_v13 = vor.u32 %v18219_v34, %v15823_v0  ;;  %v12287_v15 = vld [vmem:[%s18929_s26 + $0x420] sm:$0xf0]  ;;  %v17607_v50 = vld [vmem:[%s18929_s26 + $0xc1c] sm:$0xf] }
 0x394   : > { %8473 = vmatpush.bf16.msrb.mxu0 %v12834_v55  ;;  %8439 = vmatmul.bf16.vlgmr.msra.gmra.mxu1 %v19071_v23  ;;  %v12423_v55 = vld [vmem:[%s18929_s26 + $0x530] sm:$0xf0]  ;;  %v13375_v0 = vld [vmem:[%s18929_s26 + $0xca0] sm:$0xf0] }
 0x395   : > { %8487 = vmatpush.bf16.msrb.mxu1 %v13922_v49  ;;  %8453 = vmatmul.bf16.vlgmr.msra.gmra.mxu2 %v19040_v4  ;;  %v17641_v49 = vld [vmem:[%s18929_s26 + $0xd2c] sm:$0xf] }
 0x396   : > { %8501 = vmatpush.bf16.msrb.mxu2 %v15010_v44  ;;  %8467 = vmatmul.bf16.vlgmr.msra.gmra.mxu3 %v19069_v22  ;;  %v21139_v44 = vpop.f32.mrf.mxu2  ;;  %v13514_v17 = vor.u32 %v17641_v49, %v13511_v43 }
 0x397   : > { %8515 = vmatpush.bf16.msrb.mxu3 %v16098_v63  ;;  %22450 = vst [vmem:[#allocation94_spill] sm:$0xff] %v21139_v44  ;;  %v22353_v63 = vperm.slane %v20977_v5, 6  ;;  %v17845_v44 = vld [vmem:[%s18929_s26 + $0x138c] sm:$0xf] }
 0x398   : > { %8474 = vmatpush.bf16.msrb.mxu0 %v12698_v59  ;;  %v15687_v59 = vld [vmem:[%s18929_s26 + $0x1eb0] sm:$0xf0] }
 0x399   : > { %8488 = vmatpush.bf16.msrb.mxu1 %v13786_v60  ;;  %v21147_v60 = vpop.f32.mrf.mxu3  ;;  %v8203_v20 = vadd.f32 %v8202_v9, %v22353_v63  ;;  %v15690_v34 = vor.u32 %v18185_v8, %v15687_v59  ;;  %v12151_v8 = vld [vmem:[%s18929_s26 + $0x310] sm:$0xf0]  ;;  %v17573_v59 = vld [vmem:[%s18929_s26 + $0xb0c] sm:$0xf] }
 0x39a   : > { %8502 = vmatpush.bf16.msrb.mxu2 %v14874_v29  ;;  %22451 = vst [vmem:[#allocation95_spill] sm:$0xff] %v21147_v60  ;;  %v12426_v29 = vor.u32 %v17369_v6, %v12423_v55  ;;  %v14463_v6 = vld [vmem:[%s18929_s26 + $0x1520] sm:$0xf0]  ;;  %v8216_v55 = vpop.f32.mrf.mxu1  ;;  %v13239_v60 = vld [vmem:[%s18929_s26 + $0xb90] sm:$0xf0] }
 0x39b   : > { %8516 = vmatpush.bf16.msrb.mxu3 %v15962_v38  ;;  %v17335_v38 = vld [vmem:[%s18929_s26 + $0x39c] sm:$0xf]  ;;  %v8217_v49 = vadd.f32 %v8216_v55, %v8203_v20  ;;  %v14327_v20 = vld [vmem:[%s18929_s26 + $0x1410] sm:$0xf0] }
 0x39c   : > { %8475 = vmatpush.bf16.msrb.mxu0 %v12562_v25  ;;  %v17879_v25 = vld [vmem:[%s18929_s26 + $0x149c] sm:$0xf]  ;;  %v12290_v43 = vor.u32 %v17335_v38, %v12287_v15  ;;  %v18117_v38 = vld [vmem:[%s18929_s26 + $0x1c0c] sm:$0xf]  ;;  %v12154_v15 = vor.u32 %v17301_v2, %v12151_v8 }
 0x39d   : > { %8489 = vmatpush.bf16.msrb.mxu1 %v13650_v51  ;;  %v18151_v51 = vld [vmem:[%s18929_s26 + $0x1d1c] sm:$0xf]  ;;  %v14466_v28 = vor.u32 %v17879_v25, %v14463_v6  ;;  %v12015_v6 = vld [vmem:[%s18929_s26 + $0x200] sm:$0xf0] }
 0x39e   : > { %8503 = vmatpush.bf16.msrb.mxu2 %v14738_v45  ;;  %v15551_v45 = vld [vmem:[%s18929_s26 + $0x1da0] sm:$0xf0]  ;;  %v8230_v9 = vpop.f32.mrf.mxu2  ;;  %v17267_v25 = vld [vmem:[%s18929_s26 + $0x17c] sm:$0xf] }
 0x39f   : > { %8517 = vmatpush.bf16.msrb.mxu3 %v15826_v13  ;;  %v13378_v13 = vor.u32 %v17607_v50, %v13375_v0  ;;  %v15554_v63 = vor.u32 %v18151_v51, %v15551_v45  ;;  %v14330_v0 = vor.u32 %v17845_v44, %v14327_v20  ;;  %v17539_v55 = vld [vmem:[%s18929_s26 + $0x9fc] sm:$0xf]  ;;  %v13103_v45 = vld [vmem:[%s18929_s26 + $0xa80] sm:$0xf0]  ;;  %v17233_v44 = vld [vmem:[%s18929_s26 + $0x6c] sm:$0xf] }
 0x3a0   : > { %8476 = vmatpush.bf16.msrb.mxu0 %v12426_v29  ;;  %v8231_v29 = vadd.f32 %v8230_v9, %v8217_v49  ;;  %v17811_v49 = vld [vmem:[%s18929_s26 + $0x127c] sm:$0xf]  ;;  %v12967_v9 = vld [vmem:[%s18929_s26 + $0x970] sm:$0xf0]  ;;  %v17777_v20 = vld [vmem:[%s18929_s26 + $0x116c] sm:$0xf] }
 0x3a1   : > { %8490 = vmatpush.bf16.msrb.mxu1 %v13514_v17  ;;  %v15415_v17 = vld [vmem:[%s18929_s26 + $0x1c90] sm:$0xf0]  ;;  %v18083_v2 = vld [vmem:[%s18929_s26 + $0x1afc] sm:$0xf] }
 0x3a2   : > { %8504 = vmatpush.bf16.msrb.mxu2 %v14602_v62  ;;  %v8244_v62 = vpop.f32.mrf.mxu3  ;;  %v15418_v51 = vor.u32 %v18117_v38, %v15415_v17  ;;  %v14055_v38 = vld [vmem:[%s18929_s26 + $0x11f0] sm:$0xf0]  ;;  %v18049_v17 = vld [vmem:[%s18929_s26 + $0x19ec] sm:$0xf] }
 0x3a3   : > { %8518 = vmatpush.bf16.msrb.mxu3 %v15690_v34  ;;  %v21167_v50 = vadd.f32 %v8244_v62, %v8231_v29  ;;  %v13242_v34 = vor.u32 %v17573_v59, %v13239_v60  ;;  %v12018_v60 = vor.u32 %v17267_v25, %v12015_v6  ;;  %v17505_v59 = vld [vmem:[%s18929_s26 + $0x8ec] sm:$0xf]  ;;  %v15143_v62 = vld [vmem:[%s18929_s26 + $0x1a70] sm:$0xf0]  ;;  %v17489_v25 = vld [vmem:[%s18929_s26 + $0x864] sm:$0xf0] }
 0x3a4   : > { %8477 = vmatpush.bf16.msrb.mxu0 %v12290_v43  ;;  %v14191_v43 = vld [vmem:[%s18929_s26 + $0x1300] sm:$0xf0]  ;;  %v13925_v6 = vld [vmem:[%s18929_s26 + $0x1060] sm:$0xf] }
 0x3a5   : > { %22452 = vst [vmem:[#allocation96_spill] sm:$0xff] %v21167_v50  ;;  %8491 = vmatpush.bf16.msrb.mxu1 %v13378_v13  ;;  %v15279_v13 = vld [vmem:[%s18929_s26 + $0x1b80] sm:$0xf0]  ;;  %v14194_v8 = vor.u32 %v17811_v49, %v14191_v43  ;;  %v14058_v49 = vor.u32 %v17777_v20, %v14055_v38  ;;  %v16101_v43 = vld [vmem:[%s18929_s26 + $0x2160] sm:$0xf] }
 0x3a6   : > { %8505 = vmatpush.bf16.msrb.mxu2 %v14466_v28  ;;  %v11879_v28 = vld [vmem:[%s18929_s26 + $0xf0] sm:$0xf0]  ;;  %v15282_v29 = vor.u32 %v18083_v2, %v15279_v13  ;;  %v18305_v2 = vld [vmem:[%s18929_s26 + $0x21e4] sm:$0xf0]  ;;  %v15146_v13 = vor.u32 %v18049_v17, %v15143_v62  ;;  %v12701_v50 = vld [vmem:[%s18929_s26 + $0x6d0] sm:$0xf]  ;;  %v21201_v17 = vpop.f32.mrf.mxu0 }
 0x3a7   : > { %8519 = vmatpush.bf16.msrb.mxu3 %v15554_v63  ;;  %v13106_v63 = vor.u32 %v17539_v55, %v13103_v45  ;;  %v15013_v55 = vld [vmem:[%s18929_s26 + $0x18e0] sm:$0xf]  ;;  %v18033_v45 = vld [vmem:[%s18929_s26 + $0x1964] sm:$0xf0]  ;;  %v15965_v20 = vld [vmem:[%s18929_s26 + $0x2050] sm:$0xf]  ;;  %v12702_v38 = vor.u32 %v17455_v30, %v12701_v50  ;;  %v21209_v30 = vpop.f32.mrf.mxu1 }
 0x3a8   : > { %8478 = vmatpush.bf16.msrb.mxu0 %v12154_v15  ;;  %v12837_v15 = vld [vmem:[%s18929_s26 + $0x7e0] sm:$0xf]  ;;  %22453 = vst [vmem:[#allocation97_spill] sm:$0xff] %v21201_v17  ;;  %v17710_v17 = vld [vmem:[%s18929_s26 + $0xf54] sm:$0xf] }
 0x3a9   : > { %8492 = vmatpush.bf16.msrb.mxu1 %v13242_v34  ;;  %v11882_v34 = vor.u32 %v17233_v44, %v11879_v28  ;;  %v15014_v28 = vor.u32 %v18033_v45, %v15013_v55  ;;  %v17693_v55 = vld [vmem:[%s18929_s26 + $0xec4] sm:$0xf0]  ;;  %v14741_v45 = vld [vmem:[%s18929_s26 + $0x16c0] sm:$0xf]  ;;  %22454 = vst [vmem:[#allocation98_spill] sm:$0xff] %v21209_v30 }
 0x3aa   : > { %8506 = vmatpush.bf16.msrb.mxu2 %v14330_v0  ;;  %v17761_v0 = vld [vmem:[%s18929_s26 + $0x10e4] sm:$0xf0]  ;;  %v15829_v50 = vld [vmem:[%s18929_s26 + $0x1f40] sm:$0xf]  ;;  %v12703_v30 = vld [vmem:[%s18929_s26 + $0x758] sm:$0xf0] }
 0x3ab   : > { %8520 = vmatpush.bf16.msrb.mxu3 %v15418_v51  ;;  %v12970_v51 = vor.u32 %v17505_v59, %v12967_v9  ;;  %v13926_v44 = vor.u32 %v17761_v0, %v13925_v6  ;;  %v14877_v59 = vld [vmem:[%s18929_s26 + $0x17d0] sm:$0xf]  ;;  %v17999_v9 = vld [vmem:[%s18929_s26 + $0x1854] sm:$0xf0]  ;;  %v17421_v6 = vld [vmem:[%s18929_s26 + $0x644] sm:$0xf0] }
 0x3ac   : > { %8479 = vmatpush.bf16.msrb.mxu0 %v12018_v60  ;;  %v12838_v60 = vor.u32 %v17489_v25, %v12837_v15  ;;  %v14878_v15 = vor.u32 %v17999_v9, %v14877_v59  ;;  %v12565_v25 = vld [vmem:[%s18929_s26 + $0x5c0] sm:$0xf]  ;;  %v17659_v59 = vld [vmem:[%s18929_s26 + $0xdb4] sm:$0xf0]  ;;  %v14605_v9 = vld [vmem:[%s18929_s26 + $0x15b0] sm:$0xf] }
 0x3ad   : > { %8493 = vmatpush.bf16.msrb.mxu1 %v13106_v63  ;;  %v16102_v63 = vor.u32 %v18305_v2, %v16101_v43  ;;  %v12429_v43 = vld [vmem:[%s18929_s26 + $0x4b0] sm:$0xf] }
 0x3ae   : > { %8507 = vmatpush.bf16.msrb.mxu2 %v14194_v8  ;;  %v17727_v8 = vld [vmem:[%s18929_s26 + $0xfd4] sm:$0xf0] }
 0x3af   : > { %8521 = vmatpush.bf16.msrb.mxu3 %v15282_v29  ;;  %v18271_v29 = vld [vmem:[%s18929_s26 + $0x20d4] sm:$0xf0]  ;;  %v13790_v62 = vor.u32 %v17727_v8, %v13789_v1  ;;  %v12566_v1 = vor.u32 %v17421_v6, %v12565_v25 }
 0x3b0   : > { %8480 = vmatpush.bf16.msrb.mxu0 %v11882_v34  ;;  %v13653_v34 = vld [vmem:[%s18929_s26 + $0xe40] sm:$0xf]  ;;  %v15966_v0 = vor.u32 %v18271_v29, %v15965_v20  ;;  %v17931_v20 = vld [vmem:[%s18929_s26 + $0x1634] sm:$0xf0]  ;;  %v15693_v29 = vld [vmem:[%s18929_s26 + $0x1e30] sm:$0xf]  ;;  %v8258_v25 = vpop.f32.mrf.mxu0 }
 0x3b1   : > { %8494 = vmatpush.bf16.msrb.mxu1 %v12970_v51  ;;  %v17965_v51 = vld [vmem:[%s18929_s26 + $0x1744] sm:$0xf0]  ;;  %v13654_v2 = vor.u32 %v17693_v55, %v13653_v34  ;;  %v14606_v34 = vor.u32 %v17931_v20, %v14605_v9  ;;  %v12157_v20 = vld [vmem:[%s18929_s26 + $0x290] sm:$0xf] }
 0x3b2   : > { %8508 = vmatpush.bf16.msrb.mxu2 %v14058_v49  ;;  %v18237_v49 = vld [vmem:[%s18929_s26 + $0x1fc4] sm:$0xf0] }
 0x3b3   : > { %8522 = vmatpush.bf16.msrb.mxu3 %v15146_v13  ;;  %8481 = vmatmul.bf16.vlgmr.msrb.gmra.mxu0 %v19056_v16  ;;  %v14742_v13 = vor.u32 %v17965_v51, %v14741_v45  ;;  %v15830_v8 = vor.u32 %v18237_v49, %v15829_v50  ;;  %v17353_v55 = vld [vmem:[%s18929_s26 + $0x424] sm:$0xf0]  ;;  %v13381_v45 = vld [vmem:[%s18929_s26 + $0xc20] sm:$0xf] }
 0x3b4   : > { %8529 = vmatpush.bf16.msra.mxu0 %v12838_v60  ;;  %8495 = vmatmul.bf16.vlgmr.msrb.gmra.mxu1 %v19071_v23  ;;  %v17387_v60 = vld [vmem:[%s18929_s26 + $0x534] sm:$0xf0]  ;;  %v17625_v49 = vld [vmem:[%s18929_s26 + $0xca4] sm:$0xf0] }
 0x3b5   : > { %8543 = vmatpush.bf16.msra.mxu1 %v13926_v44  ;;  %8509 = vmatmul.bf16.vlgmr.msrb.gmra.mxu2 %v19040_v4  ;;  %v13517_v44 = vld [vmem:[%s18929_s26 + $0xd30] sm:$0xf] }
 0x3b6   : > { %8557 = vmatpush.bf16.msra.mxu2 %v15014_v28  ;;  %8523 = vmatmul.bf16.vlgmr.msrb.gmra.mxu3 %v19069_v22  ;;  %v21220_v28 = vpop.f32.mrf.mxu2  ;;  %v13518_v6 = vor.u32 %v17659_v59, %v13517_v44 }
 0x3b7   : > { %8571 = vmatpush.bf16.msra.mxu3 %v16102_v63  ;;  %22455 = vst [vmem:[#allocation99_spill] sm:$0xff] %v21220_v28  ;;  %v22354_v63 = vperm.slane %v20977_v5, 7  ;;  %v14333_v28 = vld [vmem:[%s18929_s26 + $0x1390] sm:$0xf]  ;;  %v13797_v5 = vld [vmem:[%s18929_s26 + $0xf58] sm:$0xf] }
 0x3b8   : > { %8530 = vmatpush.bf16.msra.mxu0 %v12702_v38  ;;  %v18203_v38 = vld [vmem:[%s18929_s26 + $0x1eb4] sm:$0xf0] }
 0x3b9   : > { %8544 = vmatpush.bf16.msra.mxu1 %v13790_v62  ;;  %v21228_v62 = vpop.f32.mrf.mxu3  ;;  %v8259_v51 = vadd.f32 %v8258_v25, %v22354_v63  ;;  %v15694_v50 = vor.u32 %v18203_v38, %v15693_v29  ;;  %v17319_v29 = vld [vmem:[%s18929_s26 + $0x314] sm:$0xf0]  ;;  %v13245_v38 = vld [vmem:[%s18929_s26 + $0xb10] sm:$0xf] }
 0x3ba   : > { %8558 = vmatpush.bf16.msra.mxu2 %v14878_v15  ;;  %22456 = vst [vmem:[#allocation100_spill] sm:$0xff] %v21228_v62  ;;  %v12430_v15 = vor.u32 %v17387_v60, %v12429_v43  ;;  %v17897_v43 = vld [vmem:[%s18929_s26 + $0x1524] sm:$0xf0]  ;;  %v8272_v60 = vpop.f32.mrf.mxu1  ;;  %v17591_v62 = vld [vmem:[%s18929_s26 + $0xb94] sm:$0xf0] }
 0x3bb   : > { %8572 = vmatpush.bf16.msra.mxu3 %v15966_v0  ;;  %v12293_v0 = vld [vmem:[%s18929_s26 + $0x3a0] sm:$0xf]  ;;  %v8273_v44 = vadd.f32 %v8272_v60, %v8259_v51  ;;  %v17863_v51 = vld [vmem:[%s18929_s26 + $0x1414] sm:$0xf0] }
 0x3bc   : > { %8531 = vmatpush.bf16.msra.mxu0 %v12566_v1  ;;  %v14469_v1 = vld [vmem:[%s18929_s26 + $0x14a0] sm:$0xf]  ;;  %v12294_v59 = vor.u32 %v17353_v55, %v12293_v0  ;;  %v15421_v0 = vld [vmem:[%s18929_s26 + $0x1c10] sm:$0xf]  ;;  %v12158_v55 = vor.u32 %v17319_v29, %v12157_v20 }
 0x3bd   : > { %8545 = vmatpush.bf16.msra.mxu1 %v13654_v2  ;;  %v15557_v2 = vld [vmem:[%s18929_s26 + $0x1d20] sm:$0xf]  ;;  %v14470_v9 = vor.u32 %v17897_v43, %v14469_v1  ;;  %v17285_v43 = vld [vmem:[%s18929_s26 + $0x204] sm:$0xf0] }
 0x3be   : > { %8559 = vmatpush.bf16.msra.mxu2 %v14742_v13  ;;  %v18169_v13 = vld [vmem:[%s18929_s26 + $0x1da4] sm:$0xf0]  ;;  %v8286_v25 = vpop.f32.mrf.mxu2  ;;  %v12021_v1 = vld [vmem:[%s18929_s26 + $0x180] sm:$0xf] }
 0x3bf   : > { %8573 = vmatpush.bf16.msra.mxu3 %v15830_v8  ;;  %v13382_v8 = vor.u32 %v17625_v49, %v13381_v45  ;;  %v15558_v63 = vor.u32 %v18169_v13, %v15557_v2  ;;  %v14334_v49 = vor.u32 %v17863_v51, %v14333_v28  ;;  %v13109_v60 = vld [vmem:[%s18929_s26 + $0xa00] sm:$0xf]  ;;  %v17557_v13 = vld [vmem:[%s18929_s26 + $0xa84] sm:$0xf0]  ;;  %v11885_v28 = vld [vmem:[%s18929_s26 + $0x70] sm:$0xf] }
 0x3c0   : > { %8532 = vmatpush.bf16.msra.mxu0 %v12430_v15  ;;  %v8287_v15 = vadd.f32 %v8286_v25, %v8273_v44  ;;  %v14197_v44 = vld [vmem:[%s18929_s26 + $0x1280] sm:$0xf]  ;;  %v17523_v25 = vld [vmem:[%s18929_s26 + $0x974] sm:$0xf0]  ;;  %v14061_v51 = vld [vmem:[%s18929_s26 + $0x1170] sm:$0xf] }
 0x3c1   : > { %8546 = vmatpush.bf16.msra.mxu1 %v13518_v6  ;;  %v18135_v6 = vld [vmem:[%s18929_s26 + $0x1c94] sm:$0xf0]  ;;  %v15285_v20 = vld [vmem:[%s18929_s26 + $0x1b00] sm:$0xf] }
 0x3c2   : > { %8560 = vmatpush.bf16.msra.mxu2 %v14606_v34  ;;  %v8300_v34 = vpop.f32.mrf.mxu3  ;;  %v15422_v2 = vor.u32 %v18135_v6, %v15421_v0  ;;  %v17795_v0 = vld [vmem:[%s18929_s26 + $0x11f4] sm:$0xf0]  ;;  %v15149_v6 = vld [vmem:[%s18929_s26 + $0x19f0] sm:$0xf] }
 0x3c3   : > { %8574 = vmatpush.bf16.msra.mxu3 %v15694_v50  ;;  %v21248_v45 = vadd.f32 %v8300_v34, %v8287_v15  ;;  %v13246_v50 = vor.u32 %v17591_v62, %v13245_v38  ;;  %v12022_v62 = vor.u32 %v17285_v43, %v12021_v1  ;;  %v12973_v38 = vld [vmem:[%s18929_s26 + $0x8f0] sm:$0xf]  ;;  %v18067_v34 = vld [vmem:[%s18929_s26 + $0x1a74] sm:$0xf0]  ;;  %v12839_v1 = vld [vmem:[%s18929_s26 + $0x868] sm:$0xf0] }
 0x3c4   : > { %8533 = vmatpush.bf16.msra.mxu0 %v12294_v59  ;;  %v17829_v59 = vld [vmem:[%s18929_s26 + $0x1304] sm:$0xf0]  ;;  %v17744_v43 = vld [vmem:[%s18929_s26 + $0x1064] sm:$0xf] }
 0x3c5   : > { %22457 = vst [vmem:[#allocation101_spill] sm:$0xff] %v21248_v45  ;;  %8547 = vmatpush.bf16.msra.mxu1 %v13382_v8  ;;  %v18101_v8 = vld [vmem:[%s18929_s26 + $0x1b84] sm:$0xf0]  ;;  %v14198_v29 = vor.u32 %v17829_v59, %v14197_v44  ;;  %v14062_v44 = vor.u32 %v17795_v0, %v14061_v51  ;;  %v18288_v59 = vld [vmem:[%s18929_s26 + $0x2164] sm:$0xf] }
 0x3c6   : > { %8561 = vmatpush.bf16.msra.mxu2 %v14470_v9  ;;  %v17251_v9 = vld [vmem:[%s18929_s26 + $0xf4] sm:$0xf0]  ;;  %v15286_v15 = vor.u32 %v18101_v8, %v15285_v20  ;;  %v16103_v20 = vld [vmem:[%s18929_s26 + $0x21e8] sm:$0xf0]  ;;  %v15150_v8 = vor.u32 %v18067_v34, %v15149_v6  ;;  %v17438_v45 = vld [vmem:[%s18929_s26 + $0x6d4] sm:$0xf]  ;;  %v21283_v34 = vpop.f32.mrf.mxu0 }
 0x3c7   : > { %8575 = vmatpush.bf16.msra.mxu3 %v15558_v63  ;;  %v13110_v63 = vor.u32 %v17557_v13, %v13109_v60  ;;  %v18016_v60 = vld [vmem:[%s18929_s26 + $0x18e4] sm:$0xf]  ;;  %v15015_v13 = vld [vmem:[%s18929_s26 + $0x1968] sm:$0xf0]  ;;  %v18254_v51 = vld [vmem:[%s18929_s26 + $0x2054] sm:$0xf]  ;;  %v12706_v0 = vor.u32 %v17438_v45, %v12703_v30  ;;  %v21290_v30 = vpop.f32.mrf.mxu1 }
 0x3c8   : > { %8534 = vmatpush.bf16.msra.mxu0 %v12158_v55  ;;  %v17472_v55 = vld [vmem:[%s18929_s26 + $0x7e4] sm:$0xf]  ;;  %22458 = vst [vmem:[#allocation102_spill] sm:$0xff] %v21283_v34  ;;  %v21294_v45 = vld [vmem:[%s18938_s14 + $0x18] sm:$0xff] }
 0x3c9   : > { %8548 = vmatpush.bf16.msra.mxu1 %v13246_v50  ;;  %v11886_v50 = vor.u32 %v17251_v9, %v11885_v28  ;;  %v15018_v9 = vor.u32 %v18016_v60, %v15015_v13  ;;  %v17404_v6 = vld [vmem:[%s18929_s26 + $0x5c4] sm:$0xf]  ;;  %22459 = vst [vmem:[#allocation103_spill] sm:$0xff] %v21290_v30  ;;  %v17846_v30 = vld [vmem:[%s18929_s26 + $0x1394] sm:$0xf] }
 0x3ca   : > { %8562 = vmatpush.bf16.msra.mxu2 %v14334_v49  ;;  %v13927_v49 = vld [vmem:[%s18929_s26 + $0x10e8] sm:$0xf0]  ;;  %v17948_v13 = vld [vmem:[%s18929_s26 + $0x16c4] sm:$0xf]  ;;  %v17456_v34 = vld [vmem:[%s18929_s26 + $0x75c] sm:$0xf0] }
 0x3cb   : > { %8576 = vmatpush.bf16.msra.mxu3 %v15422_v2  ;;  %v12974_v2 = vor.u32 %v17523_v25, %v12973_v38  ;;  %v13930_v28 = vor.u32 %v17744_v43, %v13927_v49  ;;  %v17982_v38 = vld [vmem:[%s18929_s26 + $0x17d4] sm:$0xf]  ;;  %v14879_v25 = vld [vmem:[%s18929_s26 + $0x1858] sm:$0xf0]  ;;  %v12567_v43 = vld [vmem:[%s18929_s26 + $0x648] sm:$0xf0] }
 0x3cc   : > { %8535 = vmatpush.bf16.msra.mxu0 %v12022_v62  ;;  %v12842_v62 = vor.u32 %v17472_v55, %v12839_v1  ;;  %v14882_v1 = vor.u32 %v17982_v38, %v14879_v25  ;;  %v13655_v49 = vld [vmem:[%s18929_s26 + $0xec8] sm:$0xf0]  ;;  %v13519_v25 = vld [vmem:[%s18929_s26 + $0xdb8] sm:$0xf0] }
 0x3cd   : > { %8549 = vmatpush.bf16.msra.mxu1 %v13110_v63  ;;  %v16106_v63 = vor.u32 %v18288_v59, %v16103_v20  ;;  %v15831_v59 = vld [vmem:[%s18929_s26 + $0x1fc8] sm:$0xf0]  ;;  %v17370_v20 = vld [vmem:[%s18929_s26 + $0x4b4] sm:$0xf] }
 0x3ce   : > { %8563 = vmatpush.bf16.msra.mxu2 %v14198_v29  ;;  %v13791_v29 = vld [vmem:[%s18929_s26 + $0xfd8] sm:$0xf0] }
 0x3cf   : > { %8577 = vmatpush.bf16.msra.mxu3 %v15286_v15  ;;  %v15967_v15 = vld [vmem:[%s18929_s26 + $0x20d8] sm:$0xf0]  ;;  %v13794_v55 = vor.u32 %v17710_v17, %v13791_v29  ;;  %v12570_v17 = vor.u32 %v17404_v6, %v12567_v43  ;;  %v22355_v29 = vperm.slane %v21294_v45, 0 }
 0x3d0   : > { %8536 = vmatpush.bf16.msra.mxu0 %v11886_v50  ;;  %v17676_v50 = vld [vmem:[%s18929_s26 + $0xe44] sm:$0xf]  ;;  %v15970_v60 = vor.u32 %v18254_v51, %v15967_v15  ;;  %v17914_v51 = vld [vmem:[%s18929_s26 + $0x15b4] sm:$0xf]  ;;  %v14607_v15 = vld [vmem:[%s18929_s26 + $0x1638] sm:$0xf0]  ;;  %v8314_v43 = vpop.f32.mrf.mxu0 }
 0x3d1   : > { %8550 = vmatpush.bf16.msra.mxu1 %v12974_v2  ;;  %v14743_v2 = vld [vmem:[%s18929_s26 + $0x1748] sm:$0xf0]  ;;  %v15695_v6 = vld [vmem:[%s18929_s26 + $0x1eb8] sm:$0xf0] }
 0x3d2   : > { %8564 = vmatpush.bf16.msra.mxu2 %v14062_v44  ;;  %v18220_v44 = vld [vmem:[%s18929_s26 + $0x1f44] sm:$0xf] }
 0x3d3   : > { %8578 = vmatpush.bf16.msra.mxu3 %v15150_v8  ;;  %8537 = vmatmul.bf16.vlgmr.msra.gmra.mxu0 %v19056_v16  ;;  %v13658_v8 = vor.u32 %v17676_v50, %v13655_v49  ;;  %v15834_v38 = vor.u32 %v18220_v44, %v15831_v59  ;;  %v14610_v49 = vor.u32 %v17914_v51, %v14607_v15  ;;  %v17302_v15 = vld [vmem:[%s18929_s26 + $0x294] sm:$0xf] }
 0x3d4   : > { %8585 = vmatpush.bf16.msrb.mxu0 %v12842_v62  ;;  %8551 = vmatmul.bf16.vlgmr.msra.gmra.mxu1 %v19071_v23  ;;  %v14746_v62 = vor.u32 %v17948_v13, %v14743_v2  ;;  %v12295_v13 = vld [vmem:[%s18929_s26 + $0x428] sm:$0xf0]  ;;  %v17608_v2 = vld [vmem:[%s18929_s26 + $0xc24] sm:$0xf]  ;;  %v8315_v44 = vadd.f32 %v8314_v43, %v22355_v29 }
 0x3d5   : > { %8599 = vmatpush.bf16.msrb.mxu1 %v13930_v28  ;;  %8565 = vmatmul.bf16.vlgmr.msra.gmra.mxu2 %v19040_v4  ;;  %v12431_v28 = vld [vmem:[%s18929_s26 + $0x538] sm:$0xf0] }
 0x3d6   : > { %8613 = vmatpush.bf16.msrb.mxu2 %v15018_v9  ;;  %8579 = vmatmul.bf16.vlgmr.msra.gmra.mxu3 %v19069_v22  ;;  %v17642_v9 = vld [vmem:[%s18929_s26 + $0xd34] sm:$0xf] }
 0x3d7   : > { %8627 = vmatpush.bf16.msrb.mxu3 %v16106_v63  ;;  %v21304_v63 = vpop.f32.mrf.mxu2  ;;  %v13522_v50 = vor.u32 %v17642_v9, %v13519_v25 }
 0x3d8   : > { %8586 = vmatpush.bf16.msrb.mxu0 %v12706_v0  ;;  %22460 = vst [vmem:[#allocation104_spill] sm:$0xff] %v21304_v63  ;;  %v18186_v0 = vld [vmem:[%s18929_s26 + $0x1e34] sm:$0xf]  ;;  %v13247_v63 = vld [vmem:[%s18929_s26 + $0xb98] sm:$0xf0] }
 0x3d9   : > { %8600 = vmatpush.bf16.msrb.mxu1 %v13794_v55  ;;  %v21312_v55 = vpop.f32.mrf.mxu3  ;;  %v15698_v59 = vor.u32 %v18186_v0, %v15695_v6  ;;  %v12159_v0 = vld [vmem:[%s18929_s26 + $0x318] sm:$0xf0]  ;;  %v17574_v6 = vld [vmem:[%s18929_s26 + $0xb14] sm:$0xf] }
 0x3da   : > { %8614 = vmatpush.bf16.msrb.mxu2 %v14882_v1  ;;  %22461 = vst [vmem:[#allocation105_spill] sm:$0xff] %v21312_v55  ;;  %v12434_v1 = vor.u32 %v17370_v20, %v12431_v28  ;;  %v17880_v20 = vld [vmem:[%s18929_s26 + $0x14a4] sm:$0xf]  ;;  %v14471_v28 = vld [vmem:[%s18929_s26 + $0x1528] sm:$0xf0]  ;;  %v8328_v55 = vpop.f32.mrf.mxu1 }
 0x3db   : > { %8628 = vmatpush.bf16.msrb.mxu3 %v15970_v60  ;;  %v17336_v60 = vld [vmem:[%s18929_s26 + $0x3a4] sm:$0xf]  ;;  %v8329_v9 = vadd.f32 %v8328_v55, %v8315_v44  ;;  %v14474_v51 = vor.u32 %v17880_v20, %v14471_v28  ;;  %v14335_v55 = vld [vmem:[%s18929_s26 + $0x1418] sm:$0xf0]  ;;  %v13250_v44 = vor.u32 %v17574_v6, %v13247_v63  ;;  %v12023_v20 = vld [vmem:[%s18929_s26 + $0x208] sm:$0xf0] }
 0x3dc   : > { %8587 = vmatpush.bf16.msrb.mxu0 %v12570_v17  ;;  %v13383_v17 = vld [vmem:[%s18929_s26 + $0xca8] sm:$0xf0]  ;;  %v12298_v25 = vor.u32 %v17336_v60, %v12295_v13  ;;  %v18118_v60 = vld [vmem:[%s18929_s26 + $0x1c14] sm:$0xf]  ;;  %v12162_v13 = vor.u32 %v17302_v15, %v12159_v0  ;;  %v17540_v28 = vld [vmem:[%s18929_s26 + $0xa04] sm:$0xf] }
 0x3dd   : > { %8601 = vmatpush.bf16.msrb.mxu1 %v13658_v8  ;;  %v18152_v8 = vld [vmem:[%s18929_s26 + $0x1d24] sm:$0xf]  ;;  %v17506_v6 = vld [vmem:[%s18929_s26 + $0x8f4] sm:$0xf] }
 0x3de   : > { %8615 = vmatpush.bf16.msrb.mxu2 %v14746_v62  ;;  %v15559_v62 = vld [vmem:[%s18929_s26 + $0x1da8] sm:$0xf0]  ;;  %v18084_v15 = vld [vmem:[%s18929_s26 + $0x1b04] sm:$0xf] }
 0x3df   : > { %8629 = vmatpush.bf16.msrb.mxu3 %v15834_v38  ;;  %v13386_v38 = vor.u32 %v17608_v2, %v13383_v17  ;;  %v8342_v43 = vpop.f32.mrf.mxu2  ;;  %v15562_v29 = vor.u32 %v18152_v8, %v15559_v62  ;;  %v17268_v17 = vld [vmem:[%s18929_s26 + $0x184] sm:$0xf]  ;;  %v13111_v62 = vld [vmem:[%s18929_s26 + $0xa88] sm:$0xf0] }
 0x3e0   : > { %8588 = vmatpush.bf16.msrb.mxu0 %v12434_v1  ;;  %v8343_v1 = vadd.f32 %v8342_v43, %v8329_v9  ;;  %v17812_v9 = vld [vmem:[%s18929_s26 + $0x1284] sm:$0xf]  ;;  %v12026_v63 = vor.u32 %v17268_v17, %v12023_v20  ;;  %v12975_v43 = vld [vmem:[%s18929_s26 + $0x978] sm:$0xf0]  ;;  %v17490_v17 = vld [vmem:[%s18929_s26 + $0x86c] sm:$0xf0] }
 0x3e1   : > { %8602 = vmatpush.bf16.msrb.mxu1 %v13522_v50  ;;  %v15423_v50 = vld [vmem:[%s18929_s26 + $0x1c98] sm:$0xf0]  ;;  %v13933_v20 = vld [vmem:[%s18929_s26 + $0x1068] sm:$0xf] }
 0x3e2   : > { %8616 = vmatpush.bf16.msrb.mxu2 %v14610_v49  ;;  %v8356_v49 = vpop.f32.mrf.mxu3  ;;  %v15426_v8 = vor.u32 %v18118_v60, %v15423_v50  ;;  %v14063_v60 = vld [vmem:[%s18929_s26 + $0x11f8] sm:$0xf0]  ;;  %v18050_v50 = vld [vmem:[%s18929_s26 + $0x19f4] sm:$0xf] }
 0x3e3   : > { %8630 = vmatpush.bf16.msrb.mxu3 %v15698_v59  ;;  %v21332_v2 = vadd.f32 %v8356_v49, %v8343_v1  ;;  %v14338_v59 = vor.u32 %v17846_v30, %v14335_v55  ;;  %v17234_v30 = vld [vmem:[%s18929_s26 + $0x74] sm:$0xf]  ;;  %v15151_v49 = vld [vmem:[%s18929_s26 + $0x1a78] sm:$0xf0] }
 0x3e4   : > { %8589 = vmatpush.bf16.msrb.mxu0 %v12298_v25  ;;  %v14199_v25 = vld [vmem:[%s18929_s26 + $0x1308] sm:$0xf0]  ;;  %v17778_v55 = vld [vmem:[%s18929_s26 + $0x1174] sm:$0xf] }
 0x3e5   : > { %22462 = vst [vmem:[#allocation106_spill] sm:$0xff] %v21332_v2  ;;  %8603 = vmatpush.bf16.msrb.mxu1 %v13386_v38  ;;  %v15287_v38 = vld [vmem:[%s18929_s26 + $0x1b88] sm:$0xf0]  ;;  %v14202_v0 = vor.u32 %v17812_v9, %v14199_v25  ;;  %v14066_v9 = vor.u32 %v17778_v55, %v14063_v60  ;;  %v16109_v25 = vld [vmem:[%s18929_s26 + $0x2168] sm:$0xf] }
 0x3e6   : > { %8617 = vmatpush.bf16.msrb.mxu2 %v14474_v51  ;;  %v11887_v51 = vld [vmem:[%s18929_s26 + $0xf8] sm:$0xf0]  ;;  %v15290_v1 = vor.u32 %v18084_v15, %v15287_v38  ;;  %v18306_v15 = vld [vmem:[%s18929_s26 + $0x21ec] sm:$0xf0]  ;;  %v15154_v38 = vor.u32 %v18050_v50, %v15151_v49  ;;  %v12709_v2 = vld [vmem:[%s18929_s26 + $0x6d8] sm:$0xf]  ;;  %v21366_v50 = vpop.f32.mrf.mxu0 }
 0x3e7   : > { %8631 = vmatpush.bf16.msrb.mxu3 %v15562_v29  ;;  %v13114_v29 = vor.u32 %v17540_v28, %v13111_v62  ;;  %v15021_v28 = vld [vmem:[%s18929_s26 + $0x18e8] sm:$0xf]  ;;  %v18034_v62 = vld [vmem:[%s18929_s26 + $0x196c] sm:$0xf0]  ;;  %v15973_v55 = vld [vmem:[%s18929_s26 + $0x2058] sm:$0xf]  ;;  %v12710_v60 = vor.u32 %v17456_v34, %v12709_v2  ;;  %v21374_v34 = vpop.f32.mrf.mxu1 }
 0x3e8   : > { %8590 = vmatpush.bf16.msrb.mxu0 %v12162_v13  ;;  %v12845_v13 = vld [vmem:[%s18929_s26 + $0x7e8] sm:$0xf]  ;;  %22463 = vst [vmem:[#allocation107_spill] sm:$0xff] %v21366_v50  ;;  %v17711_v50 = vld [vmem:[%s18929_s26 + $0xf5c] sm:$0xf] }
 0x3e9   : > { %8604 = vmatpush.bf16.msrb.mxu1 %v13250_v44  ;;  %v11890_v44 = vor.u32 %v17234_v30, %v11887_v51  ;;  %v15022_v51 = vor.u32 %v18034_v62, %v15021_v28  ;;  %v17694_v28 = vld [vmem:[%s18929_s26 + $0xecc] sm:$0xf0]  ;;  %v14749_v62 = vld [vmem:[%s18929_s26 + $0x16c8] sm:$0xf]  ;;  %22464 = vst [vmem:[#allocation108_spill] sm:$0xff] %v21374_v34 }
 0x3ea   : > { %8618 = vmatpush.bf16.msrb.mxu2 %v14338_v59  ;;  %v17762_v59 = vld [vmem:[%s18929_s26 + $0x10ec] sm:$0xf0]  ;;  %v15837_v2 = vld [vmem:[%s18929_s26 + $0x1f48] sm:$0xf]  ;;  %v12711_v34 = vld [vmem:[%s18929_s26 + $0x760] sm:$0xf0] }
 0x3eb   : > { %8632 = vmatpush.bf16.msrb.mxu3 %v15426_v8  ;;  %v12978_v8 = vor.u32 %v17506_v6, %v12975_v43  ;;  %v13934_v30 = vor.u32 %v17762_v59, %v13933_v20  ;;  %v14885_v6 = vld [vmem:[%s18929_s26 + $0x17d8] sm:$0xf]  ;;  %v18000_v43 = vld [vmem:[%s18929_s26 + $0x185c] sm:$0xf0]  ;;  %v17422_v20 = vld [vmem:[%s18929_s26 + $0x64c] sm:$0xf0] }
 0x3ec   : > { %8591 = vmatpush.bf16.msrb.mxu0 %v12026_v63  ;;  %v12846_v63 = vor.u32 %v17490_v17, %v12845_v13  ;;  %v14886_v13 = vor.u32 %v18000_v43, %v14885_v6  ;;  %v12573_v17 = vld [vmem:[%s18929_s26 + $0x5c8] sm:$0xf]  ;;  %v17660_v6 = vld [vmem:[%s18929_s26 + $0xdbc] sm:$0xf0]  ;;  %v14613_v43 = vld [vmem:[%s18929_s26 + $0x15b8] sm:$0xf] }
 0x3ed   : > { %8605 = vmatpush.bf16.msrb.mxu1 %v13114_v29  ;;  %v16110_v29 = vor.u32 %v18306_v15, %v16109_v25  ;;  %v12437_v25 = vld [vmem:[%s18929_s26 + $0x4b8] sm:$0xf] }
 0x3ee   : > { %8619 = vmatpush.bf16.msrb.mxu2 %v14202_v0  ;;  %v17728_v0 = vld [vmem:[%s18929_s26 + $0xfdc] sm:$0xf0] }
 0x3ef   : > { %8633 = vmatpush.bf16.msrb.mxu3 %v15290_v1  ;;  %v18272_v1 = vld [vmem:[%s18929_s26 + $0x20dc] sm:$0xf0]  ;;  %v13798_v49 = vor.u32 %v17728_v0, %v13797_v5  ;;  %v12574_v5 = vor.u32 %v17422_v20, %v12573_v17 }
 0x3f0   : > { %8592 = vmatpush.bf16.msrb.mxu0 %v11890_v44  ;;  %v13661_v44 = vld [vmem:[%s18929_s26 + $0xe48] sm:$0xf]  ;;  %v15974_v59 = vor.u32 %v18272_v1, %v15973_v55  ;;  %v17932_v55 = vld [vmem:[%s18929_s26 + $0x163c] sm:$0xf0]  ;;  %v15701_v1 = vld [vmem:[%s18929_s26 + $0x1e38] sm:$0xf]  ;;  %v8370_v17 = vpop.f32.mrf.mxu0 }
 0x3f1   : > { %8606 = vmatpush.bf16.msrb.mxu1 %v12978_v8  ;;  %v17966_v8 = vld [vmem:[%s18929_s26 + $0x174c] sm:$0xf0]  ;;  %v13662_v15 = vor.u32 %v17694_v28, %v13661_v44  ;;  %v14614_v44 = vor.u32 %v17932_v55, %v14613_v43  ;;  %v12165_v55 = vld [vmem:[%s18929_s26 + $0x298] sm:$0xf] }
 0x3f2   : > { %8620 = vmatpush.bf16.msrb.mxu2 %v14066_v9  ;;  %v18238_v9 = vld [vmem:[%s18929_s26 + $0x1fcc] sm:$0xf0] }
 0x3f3   : > { %8634 = vmatpush.bf16.msrb.mxu3 %v15154_v38  ;;  %8593 = vmatmul.bf16.vlgmr.msrb.gmra.mxu0 %v19056_v16  ;;  %v14750_v38 = vor.u32 %v17966_v8, %v14749_v62  ;;  %v15838_v0 = vor.u32 %v18238_v9, %v15837_v2  ;;  %v17354_v28 = vld [vmem:[%s18929_s26 + $0x42c] sm:$0xf0]  ;;  %v13389_v62 = vld [vmem:[%s18929_s26 + $0xc28] sm:$0xf] }
 0x3f4   : > { %8641 = vmatpush.bf16.msra.mxu0 %v12846_v63  ;;  %8607 = vmatmul.bf16.vlgmr.msrb.gmra.mxu1 %v19071_v23  ;;  %v17388_v63 = vld [vmem:[%s18929_s26 + $0x53c] sm:$0xf0]  ;;  %v17626_v9 = vld [vmem:[%s18929_s26 + $0xcac] sm:$0xf0] }
 0x3f5   : > { %8655 = vmatpush.bf16.msra.mxu1 %v13934_v30  ;;  %8621 = vmatmul.bf16.vlgmr.msrb.gmra.mxu2 %v19040_v4  ;;  %v13525_v30 = vld [vmem:[%s18929_s26 + $0xd38] sm:$0xf] }
 0x3f6   : > { %8669 = vmatpush.bf16.msra.mxu2 %v15022_v51  ;;  %8635 = vmatmul.bf16.vlgmr.msrb.gmra.mxu3 %v19069_v22  ;;  %v21385_v51 = vpop.f32.mrf.mxu2  ;;  %v13526_v20 = vor.u32 %v17660_v6, %v13525_v30 }
 0x3f7   : > { %8683 = vmatpush.bf16.msra.mxu3 %v16110_v29  ;;  %22465 = vst [vmem:[#allocation109_spill] sm:$0xff] %v21385_v51  ;;  %v22358_v29 = vperm.slane %v21294_v45, 1  ;;  %v14341_v51 = vld [vmem:[%s18929_s26 + $0x1398] sm:$0xf] }
 0x3f8   : > { %8642 = vmatpush.bf16.msra.mxu0 %v12710_v60  ;;  %v18204_v60 = vld [vmem:[%s18929_s26 + $0x1ebc] sm:$0xf0] }
 0x3f9   : > { %8656 = vmatpush.bf16.msra.mxu1 %v13798_v49  ;;  %v21393_v49 = vpop.f32.mrf.mxu3  ;;  %v8371_v8 = vadd.f32 %v8370_v17, %v22358_v29  ;;  %v15702_v2 = vor.u32 %v18204_v60, %v15701_v1  ;;  %v17320_v1 = vld [vmem:[%s18929_s26 + $0x31c] sm:$0xf0]  ;;  %v13253_v60 = vld [vmem:[%s18929_s26 + $0xb18] sm:$0xf] }
 0x3fa   : > { %8670 = vmatpush.bf16.msra.mxu2 %v14886_v13  ;;  %22466 = vst [vmem:[#allocation110_spill] sm:$0xff] %v21393_v49  ;;  %v12438_v13 = vor.u32 %v17388_v63, %v12437_v25  ;;  %v17898_v25 = vld [vmem:[%s18929_s26 + $0x152c] sm:$0xf0]  ;;  %v8384_v63 = vpop.f32.mrf.mxu1  ;;  %v17592_v49 = vld [vmem:[%s18929_s26 + $0xb9c] sm:$0xf0] }
 0x3fb   : > { %8684 = vmatpush.bf16.msra.mxu3 %v15974_v59  ;;  %v12301_v59 = vld [vmem:[%s18929_s26 + $0x3a8] sm:$0xf]  ;;  %v8385_v30 = vadd.f32 %v8384_v63, %v8371_v8  ;;  %v17864_v8 = vld [vmem:[%s18929_s26 + $0x141c] sm:$0xf0] }
 0x3fc   : > { %8643 = vmatpush.bf16.msra.mxu0 %v12574_v5  ;;  %v14477_v5 = vld [vmem:[%s18929_s26 + $0x14a8] sm:$0xf]  ;;  %v12302_v6 = vor.u32 %v17354_v28, %v12301_v59  ;;  %v15429_v59 = vld [vmem:[%s18929_s26 + $0x1c18] sm:$0xf]  ;;  %v12166_v28 = vor.u32 %v17320_v1, %v12165_v55 }
 0x3fd   : > { %8657 = vmatpush.bf16.msra.mxu1 %v13662_v15  ;;  %v15565_v15 = vld [vmem:[%s18929_s26 + $0x1d28] sm:$0xf]  ;;  %v14478_v43 = vor.u32 %v17898_v25, %v14477_v5  ;;  %v17286_v25 = vld [vmem:[%s18929_s26 + $0x20c] sm:$0xf0] }
 0x3fe   : > { %8671 = vmatpush.bf16.msra.mxu2 %v14750_v38  ;;  %v18170_v38 = vld [vmem:[%s18929_s26 + $0x1dac] sm:$0xf0]  ;;  %v8398_v17 = vpop.f32.mrf.mxu2  ;;  %v12029_v5 = vld [vmem:[%s18929_s26 + $0x188] sm:$0xf] }
 0x3ff   : > { %8685 = vmatpush.bf16.msra.mxu3 %v15838_v0  ;;  %v13390_v0 = vor.u32 %v17626_v9, %v13389_v62  ;;  %v15566_v29 = vor.u32 %v18170_v38, %v15565_v15  ;;  %v14342_v9 = vor.u32 %v17864_v8, %v14341_v51  ;;  %v13117_v63 = vld [vmem:[%s18929_s26 + $0xa08] sm:$0xf]  ;;  %v17558_v38 = vld [vmem:[%s18929_s26 + $0xa8c] sm:$0xf0]  ;;  %v11893_v51 = vld [vmem:[%s18929_s26 + $0x78] sm:$0xf] }
 0x400   : > { %8644 = vmatpush.bf16.msra.mxu0 %v12438_v13  ;;  %v8399_v13 = vadd.f32 %v8398_v17, %v8385_v30  ;;  %v14205_v30 = vld [vmem:[%s18929_s26 + $0x1288] sm:$0xf]  ;;  %v17524_v17 = vld [vmem:[%s18929_s26 + $0x97c] sm:$0xf0]  ;;  %v14069_v8 = vld [vmem:[%s18929_s26 + $0x1178] sm:$0xf] }
 0x401   : > { %8658 = vmatpush.bf16.msra.mxu1 %v13526_v20  ;;  %v18136_v20 = vld [vmem:[%s18929_s26 + $0x1c9c] sm:$0xf0]  ;;  %v15293_v55 = vld [vmem:[%s18929_s26 + $0x1b08] sm:$0xf] }
 0x402   : > { %8672 = vmatpush.bf16.msra.mxu2 %v14614_v44  ;;  %v8412_v44 = vpop.f32.mrf.mxu3  ;;  %v15430_v15 = vor.u32 %v18136_v20, %v15429_v59  ;;  %v17796_v59 = vld [vmem:[%s18929_s26 + $0x11fc] sm:$0xf0]  ;;  %v15157_v20 = vld [vmem:[%s18929_s26 + $0x19f8] sm:$0xf] }
 0x403   : > { %8686 = vmatpush.bf16.msra.mxu3 %v15702_v2  ;;  %v21413_v62 = vadd.f32 %v8412_v44, %v8399_v13  ;;  %v13254_v2 = vor.u32 %v17592_v49, %v13253_v60  ;;  %v12030_v49 = vor.u32 %v17286_v25, %v12029_v5  ;;  %v12981_v60 = vld [vmem:[%s18929_s26 + $0x8f8] sm:$0xf]  ;;  %v18068_v44 = vld [vmem:[%s18929_s26 + $0x1a7c] sm:$0xf0]  ;;  %v12847_v5 = vld [vmem:[%s18929_s26 + $0x870] sm:$0xf0] }
 0x404   : > { %8645 = vmatpush.bf16.msra.mxu0 %v12302_v6  ;;  %v17830_v6 = vld [vmem:[%s18929_s26 + $0x130c] sm:$0xf0]  ;;  %v17745_v25 = vld [vmem:[%s18929_s26 + $0x106c] sm:$0xf] }
 0x405   : > { %22467 = vst [vmem:[#allocation111_spill] sm:$0xff] %v21413_v62  ;;  %8659 = vmatpush.bf16.msra.mxu1 %v13390_v0  ;;  %v18102_v0 = vld [vmem:[%s18929_s26 + $0x1b8c] sm:$0xf0]  ;;  %v14206_v1 = vor.u32 %v17830_v6, %v14205_v30  ;;  %v14070_v30 = vor.u32 %v17796_v59, %v14069_v8  ;;  %v18289_v6 = vld [vmem:[%s18929_s26 + $0x216c] sm:$0xf] }
 0x406   : > { %8673 = vmatpush.bf16.msra.mxu2 %v14478_v43  ;;  %v17252_v43 = vld [vmem:[%s18929_s26 + $0xfc] sm:$0xf0]  ;;  %v15294_v13 = vor.u32 %v18102_v0, %v15293_v55  ;;  %v16111_v55 = vld [vmem:[%s18929_s26 + $0x21f0] sm:$0xf0]  ;;  %v15158_v0 = vor.u32 %v18068_v44, %v15157_v20  ;;  %v17439_v62 = vld [vmem:[%s18929_s26 + $0x6dc] sm:$0xf] }
 0x407   : > { %8687 = vmatpush.bf16.msra.mxu3 %v15566_v29  ;;  %v13118_v29 = vor.u32 %v17558_v38, %v13117_v63  ;;  %v18017_v63 = vld [vmem:[%s18929_s26 + $0x18ec] sm:$0xf]  ;;  %v15023_v38 = vld [vmem:[%s18929_s26 + $0x1970] sm:$0xf0]  ;;  %v18255_v8 = vld [vmem:[%s18929_s26 + $0x205c] sm:$0xf]  ;;  %v12714_v59 = vor.u32 %v17439_v62, %v12711_v34 }
 0x408   : > { %8646 = vmatpush.bf16.msra.mxu0 %v12166_v28  ;;  %v17473_v28 = vld [vmem:[%s18929_s26 + $0x7ec] sm:$0xf]  ;;  %v15839_v34 = vld [vmem:[%s18929_s26 + $0x1fd0] sm:$0xf0] }
 0x409   : > { %8660 = vmatpush.bf16.msra.mxu1 %v13254_v2  ;;  %v11894_v2 = vor.u32 %v17252_v43, %v11893_v51  ;;  %v15026_v43 = vor.u32 %v18017_v63, %v15023_v38  ;;  %v17949_v63 = vld [vmem:[%s18929_s26 + $0x16cc] sm:$0xf]  ;;  %v14751_v38 = vld [vmem:[%s18929_s26 + $0x1750] sm:$0xf0] }
 0x40a   : > { %8674 = vmatpush.bf16.msra.mxu2 %v14342_v9  ;;  %v13935_v9 = vld [vmem:[%s18929_s26 + $0x10f0] sm:$0xf0] }
 0x40b   : > { %8688 = vmatpush.bf16.msra.mxu3 %v15430_v15  ;;  %v12982_v15 = vor.u32 %v17524_v17, %v12981_v60  ;;  %v13938_v51 = vor.u32 %v17745_v25, %v13935_v9  ;;  %v17983_v60 = vld [vmem:[%s18929_s26 + $0x17dc] sm:$0xf]  ;;  %v14887_v17 = vld [vmem:[%s18929_s26 + $0x1860] sm:$0xf0]  ;;  %v17677_v25 = vld [vmem:[%s18929_s26 + $0xe4c] sm:$0xf] }
 0x40c   : > { %8647 = vmatpush.bf16.msra.mxu0 %v12030_v49  ;;  %v12850_v49 = vor.u32 %v17473_v28, %v12847_v5  ;;  %v14890_v44 = vor.u32 %v17983_v60, %v14887_v17  ;;  %v17405_v28 = vld [vmem:[%s18929_s26 + $0x5cc] sm:$0xf]  ;;  %v12575_v5 = vld [vmem:[%s18929_s26 + $0x650] sm:$0xf0]  ;;  %v15703_v60 = vld [vmem:[%s18929_s26 + $0x1ec0] sm:$0xf0] }
 0x40d   : > { %8661 = vmatpush.bf16.msra.mxu1 %v13118_v29  ;;  %v16114_v29 = vor.u32 %v18289_v6, %v16111_v55  ;;  %v13663_v9 = vld [vmem:[%s18929_s26 + $0xed0] sm:$0xf0]  ;;  %v17371_v6 = vld [vmem:[%s18929_s26 + $0x4bc] sm:$0xf]  ;;  %v12439_v55 = vld [vmem:[%s18929_s26 + $0x540] sm:$0xf0] }
 0x40e   : > { %8675 = vmatpush.bf16.msra.mxu2 %v14206_v1  ;;  %v13799_v1 = vld [vmem:[%s18929_s26 + $0xfe0] sm:$0xf0]  ;;  %v13666_v62 = vor.u32 %v17677_v25, %v13663_v9  ;;  %v12442_v17 = vor.u32 %v17371_v6, %v12439_v55  ;;  %v17881_v25 = vld [vmem:[%s18929_s26 + $0x14ac] sm:$0xf] }
 0x40f   : > { %8689 = vmatpush.bf16.msra.mxu3 %v15294_v13  ;;  %v15975_v13 = vld [vmem:[%s18929_s26 + $0x20e0] sm:$0xf0]  ;;  %v13802_v20 = vor.u32 %v17711_v50, %v13799_v1  ;;  %v12578_v50 = vor.u32 %v17405_v28, %v12575_v5  ;;  %v18187_v1 = vld [vmem:[%s18929_s26 + $0x1e3c] sm:$0xf]  ;;  %v13391_v5 = vld [vmem:[%s18929_s26 + $0xcb0] sm:$0xf0] }
 0x410   : > { %8648 = vmatpush.bf16.msra.mxu0 %v11894_v2  ;;  %v15978_v2 = vor.u32 %v18255_v8, %v15975_v13  ;;  %v15706_v28 = vor.u32 %v18187_v1, %v15703_v60  ;;  %v18153_v9 = vld [vmem:[%s18929_s26 + $0x1d2c] sm:$0xf]  ;;  %v13255_v55 = vld [vmem:[%s18929_s26 + $0xba0] sm:$0xf0] }
 0x411   : > { %8662 = vmatpush.bf16.msra.mxu1 %v12982_v15  ;;  %v18221_v15 = vld [vmem:[%s18929_s26 + $0x1f4c] sm:$0xf] }
 0x412   : > { %8676 = vmatpush.bf16.msra.mxu2 %v14070_v30  ;;  %v14754_v30 = vor.u32 %v17949_v63, %v14751_v38  ;;  %v15567_v63 = vld [vmem:[%s18929_s26 + $0x1db0] sm:$0xf0] }
 0x413   : > { %8690 = vmatpush.bf16.msra.mxu3 %v15158_v0  ;;  %8649 = vmatmul.bf16.vlgmr.msra.gmra.mxu0 %v19056_v16  ;;  %v17643_v0 = vld [vmem:[%s18929_s26 + $0xd3c] sm:$0xf]  ;;  %v15570_v6 = vor.u32 %v18153_v9, %v15567_v63  ;;  %v11895_v63 = vld [vmem:[%s18929_s26 + $0x100] sm:$0xf0] }
 0x414   : > { %8697 = vmatpush.bf16.msrb.mxu0 %v12850_v49  ;;  %8663 = vmatmul.bf16.vlgmr.msra.gmra.mxu1 %v19071_v23  ;;  %v15842_v49 = vor.u32 %v18221_v15, %v15839_v34  ;;  %v17235_v9 = vld [vmem:[%s18929_s26 + $0x7c] sm:$0xf] }
 0x415   : > { %8711 = vmatpush.bf16.msrb.mxu1 %v13938_v51  ;;  %8677 = vmatmul.bf16.vlgmr.msra.gmra.mxu2 %v19040_v4  ;;  %v13527_v51 = vld [vmem:[%s18929_s26 + $0xdc0] sm:$0xf0] }
 0x416   : > { %8725 = vmatpush.bf16.msrb.mxu2 %v15026_v43  ;;  %8691 = vmatmul.bf16.vlgmr.msra.gmra.mxu3 %v19069_v22  ;;  %v17915_v43 = vld [vmem:[%s18929_s26 + $0x15bc] sm:$0xf]  ;;  %v13530_v8 = vor.u32 %v17643_v0, %v13527_v51 }
 0x417   : > { %8739 = vmatpush.bf16.msrb.mxu3 %v16114_v29  ;;  %v14615_v29 = vld [vmem:[%s18929_s26 + $0x1640] sm:$0xf0]  ;;  %v17847_v0 = vld [vmem:[%s18929_s26 + $0x139c] sm:$0xf] }
 0x418   : > { %8698 = vmatpush.bf16.msrb.mxu0 %v12714_v59  ;;  %v14618_v13 = vor.u32 %v17915_v43, %v14615_v29  ;;  %v17337_v59 = vld [vmem:[%s18929_s26 + $0x3ac] sm:$0xf]  ;;  %v18119_v51 = vld [vmem:[%s18929_s26 + $0x1c1c] sm:$0xf]  ;;  %v15431_v43 = vld [vmem:[%s18929_s26 + $0x1ca0] sm:$0xf0] }
 0x419   : > { %8712 = vmatpush.bf16.msrb.mxu1 %v13802_v20  ;;  %v12303_v20 = vld [vmem:[%s18929_s26 + $0x430] sm:$0xf0] }
 0x41a   : > { %8726 = vmatpush.bf16.msrb.mxu2 %v14890_v44  ;;  %v17609_v44 = vld [vmem:[%s18929_s26 + $0xc2c] sm:$0xf]  ;;  %v12306_v38 = vor.u32 %v17337_v59, %v12303_v20  ;;  %v15434_v59 = vor.u32 %v18119_v51, %v15431_v43  ;;  %v13119_v20 = vld [vmem:[%s18929_s26 + $0xa90] sm:$0xf0]  ;;  %v17491_v51 = vld [vmem:[%s18929_s26 + $0x874] sm:$0xf0] }
 0x41b   : > { %8740 = vmatpush.bf16.msrb.mxu3 %v15978_v2  ;;  %v14479_v2 = vld [vmem:[%s18929_s26 + $0x1530] sm:$0xf0]  ;;  %v13394_v15 = vor.u32 %v17609_v44, %v13391_v5  ;;  %v17813_v44 = vld [vmem:[%s18929_s26 + $0x128c] sm:$0xf]  ;;  %v13941_v43 = vld [vmem:[%s18929_s26 + $0x1070] sm:$0xf] }
 0x41c   : > { %8699 = vmatpush.bf16.msrb.mxu0 %v12578_v50  ;;  %v14482_v34 = vor.u32 %v17881_v25, %v14479_v2  ;;  %v17303_v50 = vld [vmem:[%s18929_s26 + $0x29c] sm:$0xf]  ;;  %v18085_v5 = vld [vmem:[%s18929_s26 + $0x1b0c] sm:$0xf]  ;;  %v15295_v25 = vld [vmem:[%s18929_s26 + $0x1b90] sm:$0xf0] }
 0x41d   : > { %8713 = vmatpush.bf16.msrb.mxu1 %v13666_v62  ;;  %v12167_v62 = vld [vmem:[%s18929_s26 + $0x320] sm:$0xf0] }
 0x41e   : > { %8727 = vmatpush.bf16.msrb.mxu2 %v14754_v30  ;;  %v17575_v30 = vld [vmem:[%s18929_s26 + $0xb1c] sm:$0xf]  ;;  %v12170_v29 = vor.u32 %v17303_v50, %v12167_v62  ;;  %v12983_v50 = vld [vmem:[%s18929_s26 + $0x980] sm:$0xf0] }
 0x41f   : > { %8741 = vmatpush.bf16.msrb.mxu3 %v15842_v49  ;;  %v14343_v49 = vld [vmem:[%s18929_s26 + $0x1420] sm:$0xf0]  ;;  %v13258_v1 = vor.u32 %v17575_v30, %v13255_v55  ;;  %v17779_v62 = vld [vmem:[%s18929_s26 + $0x117c] sm:$0xf]  ;;  %v15298_v30 = vor.u32 %v18085_v5, %v15295_v25 }
 0x420   : > { %8700 = vmatpush.bf16.msrb.mxu0 %v12442_v17  ;;  %v14346_v60 = vor.u32 %v17847_v0, %v14343_v49  ;;  %v17269_v17 = vld [vmem:[%s18929_s26 + $0x18c] sm:$0xf]  ;;  %v18051_v55 = vld [vmem:[%s18929_s26 + $0x19fc] sm:$0xf]  ;;  %v15159_v0 = vld [vmem:[%s18929_s26 + $0x1a80] sm:$0xf0] }
 0x421   : > { %8714 = vmatpush.bf16.msrb.mxu1 %v13530_v8  ;;  %v12031_v8 = vld [vmem:[%s18929_s26 + $0x210] sm:$0xf0]  ;;  %v12853_v49 = vld [vmem:[%s18929_s26 + $0x7f0] sm:$0xf] }
 0x422   : > { %8728 = vmatpush.bf16.msrb.mxu2 %v14618_v13  ;;  %v17541_v13 = vld [vmem:[%s18929_s26 + $0xa0c] sm:$0xf]  ;;  %v12034_v2 = vor.u32 %v17269_v17, %v12031_v8  ;;  %v18035_v17 = vld [vmem:[%s18929_s26 + $0x1974] sm:$0xf0] }
 0x423   : > { %8742 = vmatpush.bf16.msrb.mxu3 %v15706_v28  ;;  %v14207_v28 = vld [vmem:[%s18929_s26 + $0x1310] sm:$0xf0] }
 0x424   : > { %8701 = vmatpush.bf16.msrb.mxu0 %v12306_v38  ;;  %v13122_v38 = vor.u32 %v17541_v13, %v13119_v20  ;;  %v18307_v20 = vld [vmem:[%s18929_s26 + $0x21f4] sm:$0xf0] }
 0x425   : > { %8715 = vmatpush.bf16.msrb.mxu1 %v13394_v15  ;;  %v14210_v15 = vor.u32 %v17813_v44, %v14207_v28  ;;  %v15162_v44 = vor.u32 %v18051_v55, %v15159_v0  ;;  %v12854_v28 = vor.u32 %v17491_v51, %v12853_v49  ;;  %v12581_v49 = vld [vmem:[%s18929_s26 + $0x5d0] sm:$0xf]  ;;  %v17423_v51 = vld [vmem:[%s18929_s26 + $0x654] sm:$0xf0] }
 0x426   : > { %8729 = vmatpush.bf16.msrb.mxu2 %v14482_v34  ;;  %v17507_v34 = vld [vmem:[%s18929_s26 + $0x8fc] sm:$0xf] }
 0x427   : > { %8743 = vmatpush.bf16.msrb.mxu3 %v15570_v6  ;;  %v14071_v6 = vld [vmem:[%s18929_s26 + $0x1200] sm:$0xf0]  ;;  %v12986_v8 = vor.u32 %v17507_v34, %v12983_v50  ;;  %v14893_v34 = vld [vmem:[%s18929_s26 + $0x17e0] sm:$0xf]  ;;  %v18001_v50 = vld [vmem:[%s18929_s26 + $0x1864] sm:$0xf0] }
 0x428   : > { %8702 = vmatpush.bf16.msrb.mxu0 %v12170_v29  ;;  %v11898_v29 = vor.u32 %v17235_v9, %v11895_v63  ;;  %v14074_v13 = vor.u32 %v17779_v62, %v14071_v6  ;;  %v17457_v9 = vld [vmem:[%s18929_s26 + $0x764] sm:$0xf0]  ;;  %v13805_v63 = vld [vmem:[%s18929_s26 + $0xf60] sm:$0xf]  ;;  %v14894_v0 = vor.u32 %v18001_v50, %v14893_v34 }
 0x429   : > { %8716 = vmatpush.bf16.msrb.mxu1 %v13258_v1  ;;  %v17763_v1 = vld [vmem:[%s18929_s26 + $0x10f4] sm:$0xf0]  ;;  %v15981_v62 = vld [vmem:[%s18929_s26 + $0x2060] sm:$0xf]  ;;  %v18205_v34 = vld [vmem:[%s18929_s26 + $0x1ec4] sm:$0xf0] }
 0x42a   : > { %8730 = vmatpush.bf16.msrb.mxu2 %v14346_v60  ;;  %v15029_v60 = vld [vmem:[%s18929_s26 + $0x18f0] sm:$0xf]  ;;  %v13942_v5 = vor.u32 %v17763_v1, %v13941_v43  ;;  %v17695_v1 = vld [vmem:[%s18929_s26 + $0xed4] sm:$0xf0] }
 0x42b   : > { %8744 = vmatpush.bf16.msrb.mxu3 %v15434_v59  ;;  %v16117_v59 = vld [vmem:[%s18929_s26 + $0x2170] sm:$0xf]  ;;  %v15030_v25 = vor.u32 %v18035_v17, %v15029_v60  ;;  %v17967_v17 = vld [vmem:[%s18929_s26 + $0x1754] sm:$0xf0] }
 0x42c   : > { %8703 = vmatpush.bf16.msrb.mxu0 %v12034_v2  ;;  %v12717_v2 = vld [vmem:[%s18929_s26 + $0x6e0] sm:$0xf]  ;;  %v13669_v43 = vld [vmem:[%s18929_s26 + $0xe50] sm:$0xf] }
 0x42d   : > { %8717 = vmatpush.bf16.msrb.mxu1 %v13122_v38  ;;  %v16118_v38 = vor.u32 %v18307_v20, %v16117_v59  ;;  %v12718_v6 = vor.u32 %v17457_v9, %v12717_v2  ;;  %v14757_v60 = vld [vmem:[%s18929_s26 + $0x16d0] sm:$0xf]  ;;  %v12582_v59 = vor.u32 %v17423_v51, %v12581_v49  ;;  %v13670_v20 = vor.u32 %v17695_v1, %v13669_v43  ;;  %v17661_v9 = vld [vmem:[%s18929_s26 + $0xdc4] sm:$0xf0]  ;;  %v17627_v51 = vld [vmem:[%s18929_s26 + $0xcb4] sm:$0xf0] }
 0x42e   : > { %8731 = vmatpush.bf16.msrb.mxu2 %v14210_v15  ;;  %v17729_v15 = vld [vmem:[%s18929_s26 + $0xfe4] sm:$0xf0]  ;;  %v14485_v43 = vld [vmem:[%s18929_s26 + $0x14b0] sm:$0xf] }
 0x42f   : > { %8745 = vmatpush.bf16.msrb.mxu3 %v15298_v30  ;;  %v18273_v30 = vld [vmem:[%s18929_s26 + $0x20e4] sm:$0xf0]  ;;  %v13806_v55 = vor.u32 %v17729_v15, %v13805_v63  ;;  %v14621_v63 = vld [vmem:[%s18929_s26 + $0x15c0] sm:$0xf]  ;;  %v15573_v1 = vld [vmem:[%s18929_s26 + $0x1d30] sm:$0xf] }
 0x430   : > { %8704 = vmatpush.bf16.msrb.mxu0 %v11898_v29  ;;  %v15982_v29 = vor.u32 %v18273_v30, %v15981_v62  ;;  %v15709_v15 = vld [vmem:[%s18929_s26 + $0x1e40] sm:$0xf] }
 0x431   : > { %8718 = vmatpush.bf16.msrb.mxu1 %v12986_v8  ;;  %v15845_v8 = vld [vmem:[%s18929_s26 + $0x1f50] sm:$0xf]  ;;  %v15710_v49 = vor.u32 %v18205_v34, %v15709_v15 }
 0x432   : > { %8732 = vmatpush.bf16.msrb.mxu2 %v14074_v13  ;;  %v18239_v13 = vld [vmem:[%s18929_s26 + $0x1fd4] sm:$0xf0] }
 0x433   : > { %8746 = vmatpush.bf16.msrb.mxu3 %v15162_v44  ;;  %8705 = vmatmul.bf16.vlgmr.msrb.gmra.mxu0 %v19056_v16  ;;  %v14758_v44 = vor.u32 %v17967_v17, %v14757_v60  ;;  %v15846_v2 = vor.u32 %v18239_v13, %v15845_v8  ;;  %v18171_v60 = vld [vmem:[%s18929_s26 + $0x1db4] sm:$0xf0] }
 0x434   : > { %8753 = vmatpush.bf16.msra.mxu0 %v12854_v28  ;;  %8719 = vmatmul.bf16.vlgmr.msrb.gmra.mxu1 %v19071_v23  ;;  %v12445_v28 = vld [vmem:[%s18929_s26 + $0x4c0] sm:$0xf] }
 0x435   : > { %8767 = vmatpush.bf16.msra.mxu1 %v13942_v5  ;;  %8733 = vmatmul.bf16.vlgmr.msrb.gmra.mxu2 %v19040_v4  ;;  %v17389_v5 = vld [vmem:[%s18929_s26 + $0x544] sm:$0xf0] }
 0x436   : > { %8781 = vmatpush.bf16.msra.mxu2 %v15030_v25  ;;  %8747 = vmatmul.bf16.vlgmr.msrb.gmra.mxu3 %v19069_v22  ;;  %v13533_v25 = vld [vmem:[%s18929_s26 + $0xd40] sm:$0xf]  ;;  %v12446_v50 = vor.u32 %v17389_v5, %v12445_v28  ;;  %v15574_v28 = vor.u32 %v18171_v60, %v15573_v1  ;;  %v17593_v5 = vld [vmem:[%s18929_s26 + $0xba4] sm:$0xf0] }
 0x437   : > { %8795 = vmatpush.bf16.msra.mxu3 %v16118_v38  ;;  %v17933_v38 = vld [vmem:[%s18929_s26 + $0x1644] sm:$0xf0]  ;;  %v13534_v62 = vor.u32 %v17661_v9, %v13533_v25  ;;  %v14349_v25 = vld [vmem:[%s18929_s26 + $0x13a0] sm:$0xf] }
 0x438   : > { %8754 = vmatpush.bf16.msra.mxu0 %v12718_v6  ;;  %v14622_v30 = vor.u32 %v17933_v38, %v14621_v63  ;;  %v12309_v6 = vld [vmem:[%s18929_s26 + $0x3b0] sm:$0xf]  ;;  %v15437_v9 = vld [vmem:[%s18929_s26 + $0x1c20] sm:$0xf]  ;;  %v18137_v63 = vld [vmem:[%s18929_s26 + $0x1ca4] sm:$0xf0] }
 0x439   : > { %8768 = vmatpush.bf16.msra.mxu1 %v13806_v55  ;;  %v17355_v55 = vld [vmem:[%s18929_s26 + $0x434] sm:$0xf0]  ;;  %v11901_v1 = vld [vmem:[%s18929_s26 + $0x80] sm:$0xf]  ;;  %v17253_v60 = vld [vmem:[%s18929_s26 + $0x104] sm:$0xf0] }
 0x43a   : > { %8782 = vmatpush.bf16.msra.mxu2 %v14894_v0  ;;  %v13397_v0 = vld [vmem:[%s18929_s26 + $0xc30] sm:$0xf]  ;;  %v12310_v17 = vor.u32 %v17355_v55, %v12309_v6  ;;  %v15438_v6 = vor.u32 %v18137_v63, %v15437_v9  ;;  %v17559_v55 = vld [vmem:[%s18929_s26 + $0xa94] sm:$0xf0]  ;;  %v12855_v9 = vld [vmem:[%s18929_s26 + $0x878] sm:$0xf0] }
 0x43b   : > { %8796 = vmatpush.bf16.msra.mxu3 %v15982_v29  ;;  %v17899_v29 = vld [vmem:[%s18929_s26 + $0x1534] sm:$0xf0]  ;;  %v13398_v8 = vor.u32 %v17627_v51, %v13397_v0  ;;  %v14213_v0 = vld [vmem:[%s18929_s26 + $0x1290] sm:$0xf]  ;;  %v17746_v63 = vld [vmem:[%s18929_s26 + $0x1074] sm:$0xf] }
 0x43c   : > { %8755 = vmatpush.bf16.msra.mxu0 %v12582_v59  ;;  %v14486_v13 = vor.u32 %v17899_v29, %v14485_v43  ;;  %v12173_v59 = vld [vmem:[%s18929_s26 + $0x2a0] sm:$0xf]  ;;  %v15301_v51 = vld [vmem:[%s18929_s26 + $0x1b10] sm:$0xf]  ;;  %v18103_v43 = vld [vmem:[%s18929_s26 + $0x1b94] sm:$0xf0] }
 0x43d   : > { %8769 = vmatpush.bf16.msra.mxu1 %v13670_v20  ;;  %v17321_v20 = vld [vmem:[%s18929_s26 + $0x324] sm:$0xf0] }
 0x43e   : > { %8783 = vmatpush.bf16.msra.mxu2 %v14758_v44  ;;  %v13261_v44 = vld [vmem:[%s18929_s26 + $0xb20] sm:$0xf]  ;;  %v12174_v38 = vor.u32 %v17321_v20, %v12173_v59  ;;  %v17525_v59 = vld [vmem:[%s18929_s26 + $0x984] sm:$0xf0] }
 0x43f   : > { %8797 = vmatpush.bf16.msra.mxu3 %v15846_v2  ;;  %v17865_v2 = vld [vmem:[%s18929_s26 + $0x1424] sm:$0xf0]  ;;  %v13262_v15 = vor.u32 %v17593_v5, %v13261_v44  ;;  %v14077_v20 = vld [vmem:[%s18929_s26 + $0x1180] sm:$0xf]  ;;  %v15302_v44 = vor.u32 %v18103_v43, %v15301_v51 }
 0x440   : > { %8756 = vmatpush.bf16.msra.mxu0 %v12446_v50  ;;  %v14350_v34 = vor.u32 %v17865_v2, %v14349_v25  ;;  %v12037_v50 = vld [vmem:[%s18929_s26 + $0x190] sm:$0xf]  ;;  %v15165_v5 = vld [vmem:[%s18929_s26 + $0x1a00] sm:$0xf]  ;;  %v18069_v25 = vld [vmem:[%s18929_s26 + $0x1a84] sm:$0xf0] }
 0x441   : > { %8770 = vmatpush.bf16.msra.mxu1 %v13534_v62  ;;  %v17287_v62 = vld [vmem:[%s18929_s26 + $0x214] sm:$0xf0]  ;;  %v17474_v2 = vld [vmem:[%s18929_s26 + $0x7f4] sm:$0xf] }
 0x442   : > { %8784 = vmatpush.bf16.msra.mxu2 %v14622_v30  ;;  %v13125_v30 = vld [vmem:[%s18929_s26 + $0xa10] sm:$0xf]  ;;  %v12038_v29 = vor.u32 %v17287_v62, %v12037_v50  ;;  %v15031_v50 = vld [vmem:[%s18929_s26 + $0x1978] sm:$0xf0] }
 0x443   : > { %8798 = vmatpush.bf16.msra.mxu3 %v15710_v49  ;;  %v17831_v49 = vld [vmem:[%s18929_s26 + $0x1314] sm:$0xf0] }
 0x444   : > { %8757 = vmatpush.bf16.msra.mxu0 %v12310_v17  ;;  %v13126_v17 = vor.u32 %v17559_v55, %v13125_v30  ;;  %v16119_v55 = vld [vmem:[%s18929_s26 + $0x21f8] sm:$0xf0] }
 0x445   : > { %8771 = vmatpush.bf16.msra.mxu1 %v13398_v8  ;;  %v14214_v8 = vor.u32 %v17831_v49, %v14213_v0  ;;  %v15166_v0 = vor.u32 %v18069_v25, %v15165_v5  ;;  %v12858_v49 = vor.u32 %v17474_v2, %v12855_v9  ;;  %v17406_v2 = vld [vmem:[%s18929_s26 + $0x5d4] sm:$0xf]  ;;  %v12583_v9 = vld [vmem:[%s18929_s26 + $0x658] sm:$0xf0] }
 0x446   : > { %8785 = vmatpush.bf16.msra.mxu2 %v14486_v13  ;;  %v12989_v13 = vld [vmem:[%s18929_s26 + $0x900] sm:$0xf] }
 0x447   : > { %8799 = vmatpush.bf16.msra.mxu3 %v15574_v28  ;;  %v17797_v28 = vld [vmem:[%s18929_s26 + $0x1204] sm:$0xf0]  ;;  %v12990_v62 = vor.u32 %v17525_v59, %v12989_v13  ;;  %v17984_v13 = vld [vmem:[%s18929_s26 + $0x17e4] sm:$0xf]  ;;  %v14895_v59 = vld [vmem:[%s18929_s26 + $0x1868] sm:$0xf0] }
 0x448   : > { %8758 = vmatpush.bf16.msra.mxu0 %v12174_v38  ;;  %v11902_v38 = vor.u32 %v17253_v60, %v11901_v1  ;;  %v14078_v30 = vor.u32 %v17797_v28, %v14077_v20  ;;  %v12719_v1 = vld [vmem:[%s18929_s26 + $0x768] sm:$0xf0]  ;;  %v17712_v60 = vld [vmem:[%s18929_s26 + $0xf64] sm:$0xf]  ;;  %v14898_v25 = vor.u32 %v17984_v13, %v14895_v59 }
 0x449   : > { %8772 = vmatpush.bf16.msra.mxu1 %v13262_v15  ;;  %v13943_v15 = vld [vmem:[%s18929_s26 + $0x10f8] sm:$0xf0]  ;;  %v18256_v20 = vld [vmem:[%s18929_s26 + $0x2064] sm:$0xf]  ;;  %v15711_v13 = vld [vmem:[%s18929_s26 + $0x1ec8] sm:$0xf0] }
 0x44a   : > { %8786 = vmatpush.bf16.msra.mxu2 %v14350_v34  ;;  %v18018_v34 = vld [vmem:[%s18929_s26 + $0x18f4] sm:$0xf]  ;;  %v13946_v51 = vor.u32 %v17746_v63, %v13943_v15  ;;  %v13671_v15 = vld [vmem:[%s18929_s26 + $0xed8] sm:$0xf0] }
 0x44b   : > { %8800 = vmatpush.bf16.msra.mxu3 %v15438_v6  ;;  %v18290_v6 = vld [vmem:[%s18929_s26 + $0x2174] sm:$0xf]  ;;  %v15034_v43 = vor.u32 %v18018_v34, %v15031_v50  ;;  %v14759_v50 = vld [vmem:[%s18929_s26 + $0x1758] sm:$0xf0] }
 0x44c   : > { %8759 = vmatpush.bf16.msra.mxu0 %v12038_v29  ;;  %v17440_v29 = vld [vmem:[%s18929_s26 + $0x6e4] sm:$0xf]  ;;  %v17678_v63 = vld [vmem:[%s18929_s26 + $0xe54] sm:$0xf] }
 0x44d   : > { %8773 = vmatpush.bf16.msra.mxu1 %v13126_v17  ;;  %v16122_v17 = vor.u32 %v18290_v6, %v16119_v55  ;;  %v12722_v28 = vor.u32 %v17440_v29, %v12719_v1  ;;  %v17950_v34 = vld [vmem:[%s18929_s26 + $0x16d4] sm:$0xf]  ;;  %v12586_v6 = vor.u32 %v17406_v2, %v12583_v9  ;;  %v13674_v55 = vor.u32 %v17678_v63, %v13671_v15  ;;  %v13535_v1 = vld [vmem:[%s18929_s26 + $0xdc8] sm:$0xf0]  ;;  %v13399_v9 = vld [vmem:[%s18929_s26 + $0xcb8] sm:$0xf0] }
 0x44e   : > { %8787 = vmatpush.bf16.msra.mxu2 %v14214_v8  ;;  %v13807_v8 = vld [vmem:[%s18929_s26 + $0xfe8] sm:$0xf0]  ;;  %v17882_v63 = vld [vmem:[%s18929_s26 + $0x14b4] sm:$0xf] }
 0x44f   : > { %8801 = vmatpush.bf16.msra.mxu3 %v15302_v44  ;;  %v15983_v44 = vld [vmem:[%s18929_s26 + $0x20e8] sm:$0xf0]  ;;  %v13810_v5 = vor.u32 %v17712_v60, %v13807_v8  ;;  %v17916_v60 = vld [vmem:[%s18929_s26 + $0x15c4] sm:$0xf]  ;;  %v18154_v15 = vld [vmem:[%s18929_s26 + $0x1d34] sm:$0xf] }
 0x450   : > { %8760 = vmatpush.bf16.msra.mxu0 %v11902_v38  ;;  %v15986_v38 = vor.u32 %v18256_v20, %v15983_v44  ;;  %v18188_v8 = vld [vmem:[%s18929_s26 + $0x1e44] sm:$0xf] }
 0x451   : > { %8774 = vmatpush.bf16.msra.mxu1 %v12990_v62  ;;  %v18222_v62 = vld [vmem:[%s18929_s26 + $0x1f54] sm:$0xf]  ;;  %v15714_v2 = vor.u32 %v18188_v8, %v15711_v13 }
 0x452   : > { %8788 = vmatpush.bf16.msra.mxu2 %v14078_v30  ;;  %v15847_v30 = vld [vmem:[%s18929_s26 + $0x1fd8] sm:$0xf0] }
 0x453   : > { %8802 = vmatpush.bf16.msra.mxu3 %v15166_v0  ;;  %8761 = vmatmul.bf16.vlgmr.msra.gmra.mxu0 %v19056_v16  ;;  %v14762_v0 = vor.u32 %v17950_v34, %v14759_v50  ;;  %v15850_v29 = vor.u32 %v18222_v62, %v15847_v30  ;;  %v15575_v34 = vld [vmem:[%s18929_s26 + $0x1db8] sm:$0xf0] }
 0x454   : > { %8809 = vmatpush.bf16.msrb.mxu0 %v12858_v49  ;;  %8775 = vmatmul.bf16.vlgmr.msra.gmra.mxu1 %v19071_v23  ;;  %v17372_v49 = vld [vmem:[%s18929_s26 + $0x4c4] sm:$0xf] }
 0x455   : > { %8823 = vmatpush.bf16.msrb.mxu1 %v13946_v51  ;;  %8789 = vmatmul.bf16.vlgmr.msra.gmra.mxu2 %v19040_v4  ;;  %v12447_v51 = vld [vmem:[%s18929_s26 + $0x548] sm:$0xf0] }
 0x456   : > { %8837 = vmatpush.bf16.msrb.mxu2 %v15034_v43  ;;  %8803 = vmatmul.bf16.vlgmr.msra.gmra.mxu3 %v19069_v22  ;;  %v17644_v43 = vld [vmem:[%s18929_s26 + $0xd44] sm:$0xf]  ;;  %v12450_v59 = vor.u32 %v17372_v49, %v12447_v51  ;;  %v15578_v49 = vor.u32 %v18154_v15, %v15575_v34  ;;  %v13263_v51 = vld [vmem:[%s18929_s26 + $0xba8] sm:$0xf0] }
 0x457   : > { %8851 = vmatpush.bf16.msrb.mxu3 %v16122_v17  ;;  %v14623_v17 = vld [vmem:[%s18929_s26 + $0x1648] sm:$0xf0]  ;;  %v13538_v20 = vor.u32 %v17644_v43, %v13535_v1  ;;  %v17848_v43 = vld [vmem:[%s18929_s26 + $0x13a4] sm:$0xf] }
 0x458   : > { %8810 = vmatpush.bf16.msrb.mxu0 %v12722_v28  ;;  %v14626_v44 = vor.u32 %v17916_v60, %v14623_v17  ;;  %v17338_v28 = vld [vmem:[%s18929_s26 + $0x3b4] sm:$0xf]  ;;  %v18120_v1 = vld [vmem:[%s18929_s26 + $0x1c24] sm:$0xf]  ;;  %v15439_v60 = vld [vmem:[%s18929_s26 + $0x1ca8] sm:$0xf0] }
 0x459   : > { %8824 = vmatpush.bf16.msrb.mxu1 %v13810_v5  ;;  %v12311_v5 = vld [vmem:[%s18929_s26 + $0x438] sm:$0xf0] }
 0x45a   : > { %8838 = vmatpush.bf16.msrb.mxu2 %v14898_v25  ;;  %v17610_v25 = vld [vmem:[%s18929_s26 + $0xc34] sm:$0xf]  ;;  %v12314_v50 = vor.u32 %v17338_v28, %v12311_v5  ;;  %v15442_v28 = vor.u32 %v18120_v1, %v15439_v60  ;;  %v13127_v5 = vld [vmem:[%s18929_s26 + $0xa98] sm:$0xf0] }
 0x45b   : > { %8852 = vmatpush.bf16.msrb.mxu3 %v15986_v38  ;;  %v14487_v38 = vld [vmem:[%s18929_s26 + $0x1538] sm:$0xf0]  ;;  %v13402_v62 = vor.u32 %v17610_v25, %v13399_v9  ;;  %v17814_v25 = vld [vmem:[%s18929_s26 + $0x1294] sm:$0xf] }
 0x45c   : > { %8811 = vmatpush.bf16.msrb.mxu0 %v12586_v6  ;;  %v14490_v30 = vor.u32 %v17882_v63, %v14487_v38  ;;  %v17304_v6 = vld [vmem:[%s18929_s26 + $0x2a4] sm:$0xf]  ;;  %v18086_v9 = vld [vmem:[%s18929_s26 + $0x1b14] sm:$0xf]  ;;  %v15303_v63 = vld [vmem:[%s18929_s26 + $0x1b98] sm:$0xf0] }
 0x45d   : > { %8825 = vmatpush.bf16.msrb.mxu1 %v13674_v55  ;;  %v12175_v55 = vld [vmem:[%s18929_s26 + $0x328] sm:$0xf0] }
 0x45e   : > { %8839 = vmatpush.bf16.msrb.mxu2 %v14762_v0  ;;  %v17576_v0 = vld [vmem:[%s18929_s26 + $0xb24] sm:$0xf]  ;;  %v12178_v17 = vor.u32 %v17304_v6, %v12175_v55  ;;  %v15306_v6 = vor.u32 %v18086_v9, %v15303_v63  ;;  %v12991_v55 = vld [vmem:[%s18929_s26 + $0x988] sm:$0xf0]  ;;  %v21651_v9 = vpop.f32.mrf.mxu1 }
 0x45f   : > { %8853 = vmatpush.bf16.msrb.mxu3 %v15850_v29  ;;  %v14351_v29 = vld [vmem:[%s18929_s26 + $0x1428] sm:$0xf0]  ;;  %v13266_v8 = vor.u32 %v17576_v0, %v13263_v51  ;;  %v17780_v0 = vld [vmem:[%s18929_s26 + $0x1184] sm:$0xf] }
 0x460   : > { %8812 = vmatpush.bf16.msrb.mxu0 %v12450_v59  ;;  %v14354_v13 = vor.u32 %v17848_v43, %v14351_v29  ;;  %v17270_v59 = vld [vmem:[%s18929_s26 + $0x194] sm:$0xf]  ;;  %v18052_v51 = vld [vmem:[%s18929_s26 + $0x1a04] sm:$0xf]  ;;  %v15167_v43 = vld [vmem:[%s18929_s26 + $0x1a88] sm:$0xf0] }
 0x461   : > { %8826 = vmatpush.bf16.msrb.mxu1 %v13538_v20  ;;  %v12039_v20 = vld [vmem:[%s18929_s26 + $0x218] sm:$0xf0]  ;;  %v18313_v63 = vld [vmem:[%s21636_s2 + $0x28] sm:$0xff] }
 0x462   : > { %8840 = vmatpush.bf16.msrb.mxu2 %v14626_v44  ;;  %v17542_v44 = vld [vmem:[%s18929_s26 + $0xa14] sm:$0xf]  ;;  %v12042_v38 = vor.u32 %v17270_v59, %v12039_v20  ;;  %v18331_v59 = vld [vmem:[%s21636_s2 + $0xb8] sm:$0xff] }
 0x463   : > { %8854 = vmatpush.bf16.msrb.mxu3 %v15714_v2  ;;  %v14215_v2 = vld [vmem:[%s18929_s26 + $0x1318] sm:$0xf0]  ;;  %v13130_v15 = vor.u32 %v17542_v44, %v13127_v5  ;;  %v18314_v44 = vld [vmem:[%s21636_s2 + $0x30] sm:$0xff] }
 0x464   : > { %8813 = vmatpush.bf16.msrb.mxu0 %v12314_v50  ;;  %v14218_v34 = vor.u32 %v17814_v25, %v14215_v2  ;;  %v17236_v50 = vld [vmem:[%s18929_s26 + $0x84] sm:$0xf]  ;;  %v18339_v20 = vld [vmem:[%s21636_s2 + $0xf8] sm:$0xff]  ;;  %v18330_v5 = vld [vmem:[%s21636_s2 + $0xb0] sm:$0xff]  ;;  %v21647_v2 = vpop.f32.mrf.mxu0 }
 0x465   : > { %8827 = vmatpush.bf16.msrb.mxu1 %v13402_v62  ;;  %v11903_v62 = vld [vmem:[%s18929_s26 + $0x108] sm:$0xf0]  ;;  %v18338_v25 = vld [vmem:[%s21636_s2 + $0xf0] sm:$0xff] }
 0x466   : > { %8841 = vmatpush.bf16.msrb.mxu2 %v14490_v30  ;;  %v17508_v30 = vld [vmem:[%s18929_s26 + $0x904] sm:$0xf]  ;;  %v11906_v29 = vor.u32 %v17236_v50, %v11903_v62  ;;  %v22468_v50 = vperm.slane %v19352_v54, 0 }
 0x467   : > { %8855 = vmatpush.bf16.msrb.mxu3 %v15578_v49  ;;  %v14079_v49 = vld [vmem:[%s18929_s26 + $0x1208] sm:$0xf0]  ;;  %v12994_v1 = vor.u32 %v17508_v30, %v12991_v55  ;;  %v22469_v30 = vperm.slane %v19352_v54, 1  ;;  %v22470_v55 = vperm.slane %v19352_v54, 2  ;;  %s17215_s26 = sshll.u32 %s22632_s18, 4 }
 0x468   : > { %8814 = vmatpush.bf16.msrb.mxu0 %v12178_v17  ;;  %v14082_v60 = vor.u32 %v17780_v0, %v14079_v49  ;;  %v15170_v17 = vor.u32 %v18052_v51, %v15167_v43  ;;  %v6973_v62 = vadd.f32 %v19404_v10, %v22468_v50  ;;  %v22471_v51 = vperm.slane %v19352_v54, 3  ;;  %v18311_v10 = vld [vmem:[%s21636_s2 + $0x18] sm:$0xff]  ;;  %s324_s7 = scalar_lea.vmem %s22321_s4, %s17215_s26 }
 0x469   : > { %8828 = vmatpush.bf16.msrb.mxu1 %v13266_v8  ;;  %v18315_v8 = vld [vmem:[%s21636_s2 + $0x38] sm:$0xff]  ;;  %v7085_v0 = vadd.f32 %v19566_v31, %v22470_v55 }
 0x46a   : > { %8842 = vmatpush.bf16.msrb.mxu2 %v14354_v13  ;;  %v18323_v13 = vld [vmem:[%s21636_s2 + $0x78] sm:$0xff]  ;;  %v7141_v43 = vadd.f32 %v19647_v7, %v22471_v51  ;;  %v6987_v31 = vadd.f32 %v19412_v21, %v6973_v62  ;;  %v18334_v21 = vld [vmem:[%s21636_s2 + $0xd0] sm:$0xff] }
 0x46b   : > { %8856 = vmatpush.bf16.msrb.mxu3 %v15442_v28  ;;  %v18322_v28 = vld [vmem:[%s21636_s2 + $0x70] sm:$0xff]  ;;  %v7099_v7 = vadd.f32 %v19574_v47, %v7085_v0  ;;  %v18347_v50 = vld [vmem:[%s21636_s2 + $0x138] sm:$0xff] }
 0x46c   : > { %8815 = vmatpush.bf16.msrb.mxu0 %v12042_v38  ;;  %v18321_v38 = vld [vmem:[%s21636_s2 + $0x68] sm:$0xff]  ;;  %v21671_v49 = vpop.f32.mrf.mxu0 }
 0x46d   : > { %8829 = vmatpush.bf16.msrb.mxu1 %v13130_v15  ;;  %v18329_v15 = vld [vmem:[%s21636_s2 + $0xa8] sm:$0xff] }
 0x46e   : > { %8843 = vmatpush.bf16.msrb.mxu2 %v14218_v34  ;;  %v18328_v34 = vld [vmem:[%s21636_s2 + $0xa0] sm:$0xff] }
 0x46f   : > { %8857 = vmatpush.bf16.msrb.mxu3 %v15306_v6  ;;  %v7029_v6 = vadd.f32 %v19485_v11, %v22469_v30  ;;  %v18319_v11 = vld [vmem:[%s21636_s2 + $0x58] sm:$0xff] }
 0x470   : > { %8816 = vmatpush.bf16.msrb.mxu0 %v11906_v29  ;;  %v21676_v29 = vpop.f32.mrf.mxu1  ;;  %v18363_v30 = vld [vmem:[%s21636_s2 + $0x1b8] sm:$0xff] }
 0x471   : > { %8830 = vmatpush.bf16.msrb.mxu1 %v12994_v1  ;;  %v18327_v1 = vld [vmem:[%s21636_s2 + $0x98] sm:$0xff]  ;;  %v7043_v54 = vadd.f32 %v19493_v26, %v7029_v6  ;;  %v8868_v6 = vmax.f32 %v19613_v56, 0.0  ;;  %v18354_v56 = vld [vmem:[%s21636_s2 + $0x170] sm:$0xff] }
 0x472   : > { %8844 = vmatpush.bf16.msrb.mxu2 %v14082_v60  ;;  %v18335_v60 = vld [vmem:[%s21636_s2 + $0xd8] sm:$0xff] }
 0x473   : > { %8858 = vmatpush.bf16.msrb.mxu3 %v15170_v17  ;;  %8817 = vmatmul.bf16.vlgmr.msrb.gmra.mxu0 %v19056_v16  ;;  %v18337_v16 = vld [vmem:[%s21636_s2 + $0xe8] sm:$0xff]  ;;  %v7155_v17 = vadd.f32 %v19655_v24, %v7141_v43  ;;  %v7057_v26 = vadd.f32 %v19504_v37, %v7043_v54 }
 0x474   : > { %11145 = vmatpush.bf16.msra.mxu0 %v18315_v8  ;;  %8831 = vmatmul.bf16.vlgmr.msrb.gmra.mxu1 %v19071_v23  ;;  %v18312_v23 = vld [vmem:[%s21636_s2 + $0x20] sm:$0xff]  ;;  %v18310_v8 = vld [vmem:[%s21636_s2 + $0x10] sm:$0xff]  ;;  %v18309_v24 = vld [vmem:[%s21636_s2 + $0x8] sm:$0xff] }
 0x475   : > { %11159 = vmatpush.bf16.msra.mxu1 %v18323_v13  ;;  %8845 = vmatmul.bf16.vlgmr.msrb.gmra.mxu2 %v19040_v4  ;;  %v18320_v4 = vld [vmem:[%s21636_s2 + $0x60] sm:$0xff]  ;;  %v18318_v13 = vld [vmem:[%s21636_s2 + $0x50] sm:$0xff]  ;;  %v7169_v47 = vadd.f32 %v19666_v41, %v7155_v17  ;;  %v18333_v37 = vld [vmem:[%s21636_s2 + $0xc8] sm:$0xff] }
 0x476   : > { %11173 = vmatpush.bf16.msra.mxu2 %v18331_v59  ;;  %8859 = vmatmul.bf16.vlgmr.msrb.gmra.mxu3 %v19069_v22  ;;  %v18336_v22 = vld [vmem:[%s21636_s2 + $0xe0] sm:$0xff]  ;;  %v18326_v59 = vld [vmem:[%s21636_s2 + $0x90] sm:$0xff]  ;;  %v18353_v54 = vld [vmem:[%s21636_s2 + $0x168] sm:$0xff] }
 0x477   : > { %11187 = vmatpush.bf16.msra.mxu3 %v18339_v20  ;;  %v7001_v20 = vadd.f32 %v19423_v32, %v6987_v31  ;;  %v18325_v32 = vld [vmem:[%s21636_s2 + $0x88] sm:$0xff]  ;;  %v18370_v31 = vld [vmem:[%s21636_s2 + $0x1f0] sm:$0xff] }
 0x478   : > { %11146 = vmatpush.bf16.msra.mxu0 %v18314_v44  ;;  %v7113_v44 = vadd.f32 %v19585_v58, %v7099_v7  ;;  %v7071_v58 = vadd.f32 %v19512_v46, %v7057_v26  ;;  %v8866_v46 = vmax.f32 %v19451_v14, 0.0  ;;  %v18361_v7 = vld [vmem:[%s21636_s2 + $0x1a8] sm:$0xff] }
 0x479   : > { %11160 = vmatpush.bf16.msra.mxu1 %v18322_v28  ;;  %v21695_v28 = vpop.f32.mrf.mxu0  ;;  %v18369_v17 = vld [vmem:[%s21636_s2 + $0x1e8] sm:$0xff] }
 0x47a   : > { %11174 = vmatpush.bf16.msra.mxu2 %v18330_v5  ;;  %v18317_v5 = vld [vmem:[%s21636_s2 + $0x48] sm:$0xff]  ;;  %v7127_v41 = vadd.f32 %v19593_v3, %v7113_v44  ;;  %v8900_v3 = vmax.f32 %v7071_v58, 0.0 }
 0x47b   : > { %11188 = vmatpush.bf16.msra.mxu3 %v18338_v25  ;;  %v7015_v25 = vadd.f32 %v19431_v40, %v7001_v20  ;;  %v18324_v40 = vld [vmem:[%s21636_s2 + $0x80] sm:$0xff] }
 0x47c   : > { %11147 = vmatpush.bf16.msra.mxu0 %v18313_v63  ;;  %v21700_v63 = vpop.f32.mrf.mxu1  ;;  %v8901_v62 = vmax.f32 %v7127_v41, 0.0  ;;  %v8934_v43 = vpack.c.bf16 %v8900_v3, %v8866_v46  ;;  %v18360_v20 = vld [vmem:[%s21636_s2 + $0x1a0] sm:$0xff]  ;;  %v18343_v41 = vld [vmem:[%s21636_s2 + $0x118] sm:$0xff]  ;;  %v22477_v46 = vld [vmem:[#allocation21_spill] sm:$0xff] }
 0x47d   : > { %11161 = vmatpush.bf16.msra.mxu1 %v18321_v38  ;;  %v7183_v38 = vadd.f32 %v19677_v53, %v7169_v47  ;;  %v8867_v53 = vmax.f32 %v19532_v27, 0.0  ;;  %v18346_v27 = vld [vmem:[%s21636_s2 + $0x130] sm:$0xff]  ;;  %v18368_v47 = vld [vmem:[%s21636_s2 + $0x1e0] sm:$0xff] }
 0x47e   : > { %11175 = vmatpush.bf16.msra.mxu2 %v18329_v15  ;;  %v18308_v15 = vld [vmem:[%s21636_s2] sm:$0xff] }
 0x47f   : > { %11189 = vmatpush.bf16.msra.mxu3 %v18337_v16  ;;  %v18316_v16 = vld [vmem:[%s21636_s2 + $0x40] sm:$0xff]  ;;  %v8902_v55 = vmax.f32 %v7183_v38, 0.0  ;;  %v18359_v38 = vld [vmem:[%s21636_s2 + $0x198] sm:$0xff] }
 0x480   : > { %11148 = vmatpush.bf16.msra.mxu0 %v18312_v23  ;;  %v8865_v23 = vmax.f32 %v19389_v48, 0.0  ;;  %v18371_v48 = vld [vmem:[%s21636_s2 + $0x1f8] sm:$0xff] }
 0x481   : > { %11162 = vmatpush.bf16.msra.mxu1 %v18320_v4  ;;  %v8899_v4 = vmax.f32 %v7015_v25, 0.0  ;;  %v21718_v0 = vpop.f32.mrf.mxu0 }
 0x482   : > { %11176 = vmatpush.bf16.msra.mxu2 %v18328_v34  ;;  %v18332_v34 = vld [vmem:[%s21636_s2 + $0xc0] sm:$0xff] }
 0x483   : > { %11190 = vmatpush.bf16.msra.mxu3 %v18336_v22  ;;  %v18355_v22 = vld [vmem:[%s21636_s2 + $0x178] sm:$0xff]  ;;  %v8933_v14 = vpack.c.bf16 %v8899_v4, %v8865_v23  ;;  %v18350_v23 = vld [vmem:[%s21636_s2 + $0x150] sm:$0xff] }
 0x484   : > { %11149 = vmatpush.bf16.msra.mxu0 %v18311_v10  ;;  %v21720_v51 = vpop.f32.mrf.mxu1  ;;  %v8935_v10 = vpack.c.bf16 %v8901_v62, %v8867_v53  ;;  %v18341_v53 = vld [vmem:[%s21636_s2 + $0x108] sm:$0xff] }
 0x485   : > { %11163 = vmatpush.bf16.msra.mxu1 %v18319_v11  ;;  %v18362_v11 = vld [vmem:[%s21636_s2 + $0x1b0] sm:$0xff]  ;;  %v18349_v62 = vld [vmem:[%s21636_s2 + $0x148] sm:$0xff] }
 0x486   : > { %11177 = vmatpush.bf16.msra.mxu2 %v18327_v1  ;;  %v8936_v1 = vpack.c.bf16 %v8902_v55, %v8868_v6  ;;  %v18365_v6 = vld [vmem:[%s21636_s2 + $0x1c8] sm:$0xff] }
 0x487   : > { %11191 = vmatpush.bf16.msra.mxu3 %v18335_v60  ;;  %v18345_v60 = vld [vmem:[%s21636_s2 + $0x128] sm:$0xff] }
 0x488   : > { %11150 = vmatpush.bf16.msra.mxu0 %v18310_v8  ;;  %v18344_v8 = vld [vmem:[%s21636_s2 + $0x120] sm:$0xff] }
 0x489   : > { %11164 = vmatpush.bf16.msra.mxu1 %v18318_v13  ;;  %v21731_v13 = vpop.f32.mrf.mxu0 }
 0x48a   : > { %11178 = vmatpush.bf16.msra.mxu2 %v18326_v59  ;;  %v18352_v59 = vld [vmem:[%s21636_s2 + $0x160] sm:$0xff] }
 0x48b   : > { %11192 = vmatpush.bf16.msra.mxu3 %v18334_v21  ;;  %v22472_v21 = vperm.slane %v19669_v42, 4 }
 0x48c   : > { %11151 = vmatpush.bf16.msra.mxu0 %v18309_v24  ;;  %v21738_v44 = vpop.f32.mrf.mxu1  ;;  %v22473_v24 = vperm.slane %v19669_v42, 5 }
 0x48d   : > { %11165 = vmatpush.bf16.msra.mxu1 %v18317_v5  ;;  %v7197_v26 = vadd.f32 %v19731_v18, %v22472_v21  ;;  %v18351_v18 = vld [vmem:[%s21636_s2 + $0x158] sm:$0xff] }
 0x48e   : > { %11179 = vmatpush.bf16.msra.mxu2 %v18325_v32  ;;  %v7253_v5 = vadd.f32 %v19812_v12, %v22473_v24  ;;  %v22474_v32 = vperm.slane %v19669_v42, 6  ;;  %v18367_v12 = vld [vmem:[%s21636_s2 + $0x1d8] sm:$0xff] }
 0x48f   : > { %11193 = vmatpush.bf16.msra.mxu3 %v18333_v37  ;;  %v22475_v37 = vperm.slane %v19669_v42, 7  ;;  %v18387_v24 = vld [vmem:[%s21636_s2 + $0x278] sm:$0xff] }
 0x490   : > { %11152 = vmatpush.bf16.msra.mxu0 %v18308_v15  ;;  %v7309_v25 = vadd.f32 %v19893_v19, %v22474_v32  ;;  %v7211_v15 = vadd.f32 %v19739_v39, %v7197_v26  ;;  %v18358_v39 = vld [vmem:[%s21636_s2 + $0x190] sm:$0xff]  ;;  %v22485_v32 = vld [vmem:[#allocation19_spill] sm:$0xff] }
 0x491   : > { %11166 = vmatpush.bf16.msra.mxu1 %v18316_v16  ;;  %v7365_v58 = vadd.f32 %v19975_v36, %v22475_v37  ;;  %v7267_v16 = vadd.f32 %v19820_v35, %v7253_v5  ;;  %v18342_v36 = vld [vmem:[%s21636_s2 + $0x110] sm:$0xff]  ;;  %v18395_v5 = vld [vmem:[%s21636_s2 + $0x2b8] sm:$0xff] }
 0x492   : > { %11180 = vmatpush.bf16.msra.mxu2 %v18324_v40  ;;  %v7323_v19 = vadd.f32 %v19901_v33, %v7309_v25  ;;  %v21759_v40 = vpop.f32.mrf.mxu0  ;;  %v7225_v4 = vadd.f32 %v19750_v61, %v7211_v15  ;;  %v18366_v35 = vld [vmem:[%s21636_s2 + $0x1d0] sm:$0xff]  ;;  %v22478_v61 = vld [vmem:[#allocation13_spill] sm:$0xff]  ;;  %v8872_v25 = vmax.f32 %v22485_v32, 0.0 }
 0x493   : > { %11194 = vmatpush.bf16.msra.mxu3 %v18332_v34  ;;  %11153 = vmatmul.bf16.vlgmr.msra.gmra.mxu0 %v8933_v14  ;;  %v7379_v42 = vadd.f32 %v19982_v52, %v7365_v58  ;;  %v7281_v33 = vadd.f32 %v19831_v57, %v7267_v16  ;;  %v22476_v52 = vld [vmem:[#allocation17_spill] sm:$0xff]  ;;  %v22479_v57 = vld [vmem:[#allocation15_spill] sm:$0xff]  ;;  %v18386_v16 = vld [vmem:[%s21636_s2 + $0x270] sm:$0xff] }
 0x494   : > { %11201 = vmatpush.bf16.msrb.mxu0 %v18347_v50  ;;  %11167 = vmatmul.bf16.vlgmr.msra.gmra.mxu1 %v8934_v43  ;;  %v21764_v34 = vpop.f32.mrf.mxu1  ;;  %v7337_v50 = vadd.f32 %v22476_v52, %v7323_v19  ;;  %v18394_v19 = vld [vmem:[%s21636_s2 + $0x2b0] sm:$0xff]  ;;  %v18401_v52 = vld [vmem:[%s21636_s2 + $0x2e8] sm:$0xff] }
 0x495   : > { %11215 = vmatpush.bf16.msrb.mxu1 %v18355_v22  ;;  %11181 = vmatmul.bf16.vlgmr.msra.gmra.mxu2 %v8935_v10  ;;  %v7393_v3 = vadd.f32 %v22477_v46, %v7379_v42  ;;  %v18357_v22 = vld [vmem:[%s21636_s2 + $0x188] sm:$0xff]  ;;  %v7295_v55 = vadd.f32 %v22479_v57, %v7281_v33  ;;  %v18340_v10 = vld [vmem:[%s21636_s2 + $0x100] sm:$0xff]  ;;  %v18374_v32 = vld [vmem:[%s21636_s2 + $0x210] sm:$0xff] }
 0x496   : > { %11229 = vmatpush.bf16.msrb.mxu2 %v18363_v30  ;;  %11195 = vmatmul.bf16.vlgmr.msra.gmra.mxu3 %v8936_v1  ;;  %v7239_v30 = vadd.f32 %v22478_v61, %v7225_v4  ;;  %v22482_v1 = vld [vmem:[#allocation12_spill] sm:$0xff]  ;;  %v18385_v4 = vld [vmem:[%s21636_s2 + $0x268] sm:$0xff] }
 0x497   : > { %11243 = vmatpush.bf16.msrb.mxu3 %v18371_v48  ;;  %v22480_v48 = vld [vmem:[#allocation18_spill] sm:$0xff]  ;;  %v18384_v46 = vld [vmem:[%s21636_s2 + $0x260] sm:$0xff]  ;;  %v22490_v57 = vld [vmem:[#allocation29_spill] sm:$0xff] }
 0x498   : > { %11202 = vmatpush.bf16.msrb.mxu0 %v18346_v27  ;;  %v7351_v14 = vadd.f32 %v22480_v48, %v7337_v50  ;;  %v22481_v27 = vld [vmem:[#allocation22_spill] sm:$0xff]  ;;  %v18376_v50 = vld [vmem:[%s21636_s2 + $0x220] sm:$0xff] }
 0x499   : > { %11216 = vmatpush.bf16.msrb.mxu1 %v18354_v56  ;;  %v7407_v43 = vadd.f32 %v22481_v27, %v7393_v3  ;;  %v18348_v56 = vld [vmem:[%s21636_s2 + $0x140] sm:$0xff] }
 0x49a   : > { %11230 = vmatpush.bf16.msrb.mxu2 %v18362_v11  ;;  %v18356_v11 = vld [vmem:[%s21636_s2 + $0x180] sm:$0xff]  ;;  %v8905_v26 = vmax.f32 %v7351_v14, 0.0  ;;  %v22492_v14 = vld [vmem:[#allocation34_spill] sm:$0xff] }
 0x49b   : > { %11244 = vmatpush.bf16.msrb.mxu3 %v18370_v31  ;;  %v8869_v31 = vmax.f32 %v22482_v1, 0.0  ;;  %v8906_v37 = vmax.f32 %v7407_v43, 0.0  ;;  %v18392_v3 = vld [vmem:[%s21636_s2 + $0x2a0] sm:$0xff]  ;;  %v18383_v1 = vld [vmem:[%s21636_s2 + $0x258] sm:$0xff] }
 0x49c   : > { %11203 = vmatpush.bf16.msrb.mxu0 %v18345_v60  ;;  %v8903_v60 = vmax.f32 %v7239_v30, 0.0  ;;  %v21791_v58 = vpop.f32.mrf.mxu1  ;;  %v18400_v30 = vld [vmem:[%s21636_s2 + $0x2e0] sm:$0xff] }
 0x49d   : > { %11217 = vmatpush.bf16.msrb.mxu1 %v18353_v54  ;;  %v18364_v54 = vld [vmem:[%s21636_s2 + $0x1c0] sm:$0xff]  ;;  %v8940_v42 = vpack.c.bf16 %v8906_v37, %v8872_v25  ;;  %v18382_v25 = vld [vmem:[%s21636_s2 + $0x250] sm:$0xff] }
 0x49e   : > { %11231 = vmatpush.bf16.msrb.mxu2 %v18361_v7  ;;  %v18379_v7 = vld [vmem:[%s21636_s2 + $0x238] sm:$0xff]  ;;  %v18390_v37 = vld [vmem:[%s21636_s2 + $0x290] sm:$0xff] }
 0x49f   : > { %11245 = vmatpush.bf16.msrb.mxu3 %v18369_v17  ;;  %v22483_v17 = vld [vmem:[#allocation14_spill] sm:$0xff] }
 0x4a0   : > { %11204 = vmatpush.bf16.msrb.mxu0 %v18344_v8  ;;  %v8870_v8 = vmax.f32 %v22483_v17, 0.0  ;;  %v22496_v17 = vld [vmem:[#allocation30_spill] sm:$0xff] }
 0x4a1   : > { %11218 = vmatpush.bf16.msrb.mxu1 %v18352_v59  ;;  %v8904_v59 = vmax.f32 %v7295_v55, 0.0 }
 0x4a2   : > { %11232 = vmatpush.bf16.msrb.mxu2 %v18360_v20  ;;  %v22484_v20 = vld [vmem:[#allocation16_spill] sm:$0xff] }
 0x4a3   : > { %11246 = vmatpush.bf16.msrb.mxu3 %v18368_v47  ;;  %v8871_v21 = vmax.f32 %v22484_v20, 0.0  ;;  %v21786_v47 = vpop.f32.mrf.mxu0  ;;  %v8938_v15 = vpack.c.bf16 %v8904_v59, %v8870_v8  ;;  %v22497_v59 = vld [vmem:[#allocation35_spill] sm:$0xff] }
 0x4a4   : > { %11205 = vmatpush.bf16.msrb.mxu0 %v18343_v41  ;;  %v18403_v41 = vld [vmem:[%s21636_s2 + $0x2f8] sm:$0xff]  ;;  %v21803_v33 = vpop.f32.mrf.mxu1 }
 0x4a5   : > { %11219 = vmatpush.bf16.msrb.mxu1 %v18351_v18  ;;  %v8937_v18 = vpack.c.bf16 %v8903_v60, %v8869_v31  ;;  %v18391_v31 = vld [vmem:[%s21636_s2 + $0x298] sm:$0xff]  ;;  %v22495_v60 = vld [vmem:[#allocation25_spill] sm:$0xff] }
 0x4a6   : > { %11233 = vmatpush.bf16.msrb.mxu2 %v18359_v38  ;;  %v18378_v38 = vld [vmem:[%s21636_s2 + $0x230] sm:$0xff] }
 0x4a7   : > { %11247 = vmatpush.bf16.msrb.mxu3 %v18367_v12  ;;  %v8939_v12 = vpack.c.bf16 %v8905_v26, %v8871_v21  ;;  %v22498_v26 = vld [vmem:[#allocation40_spill] sm:$0xff] }
 0x4a8   : > { %11206 = vmatpush.bf16.msrb.mxu0 %v18342_v36  ;;  %v18402_v36 = vld [vmem:[%s21636_s2 + $0x2f0] sm:$0xff] }
 0x4a9   : > { %11220 = vmatpush.bf16.msrb.mxu1 %v18350_v23  ;;  %v18377_v23 = vld [vmem:[%s21636_s2 + $0x228] sm:$0xff] }
 0x4aa   : > { %11234 = vmatpush.bf16.msrb.mxu2 %v18358_v39 }
 0x4ab   : > { %11248 = vmatpush.bf16.msrb.mxu3 %v18366_v35  ;;  %v21799_v39 = vpop.f32.mrf.mxu0  ;;  %v18393_v35 = vld [vmem:[%s21636_s2 + $0x2a8] sm:$0xff] }
 0x4ac   : > { %11207 = vmatpush.bf16.msrb.mxu0 %v18341_v53  ;;  %v22486_v53 = vld [vmem:[#allocation20_spill] sm:$0xff] }
 0x4ad   : > { %11221 = vmatpush.bf16.msrb.mxu1 %v18349_v62  ;;  %v22487_v62 = vperm.slane %v22486_v53, 0  ;;  %v22491_v48 = vperm.slane %v22486_v53, 2  ;;  %v22493_v43 = vperm.slane %v22486_v53, 3 }
 0x4ae   : > { %11235 = vmatpush.bf16.msrb.mxu2 %v18357_v22  ;;  %v22488_v22 = vld [vmem:[#allocation24_spill] sm:$0xff] }
 0x4af   : > { %11249 = vmatpush.bf16.msrb.mxu3 %v18365_v6  ;;  %v7421_v61 = vadd.f32 %v22488_v22, %v22487_v62  ;;  %v22489_v6 = vperm.slane %v22486_v53, 1  ;;  %v7533_v27 = vadd.f32 %v22492_v14, %v22491_v48  ;;  %v22505_v62 = vld [vmem:[#allocation37_spill] sm:$0xff]  ;;  %v18380_v48 = vld [vmem:[%s21636_s2 + $0x240] sm:$0xff] }
 0x4b0   : > { %11208 = vmatpush.bf16.msrb.mxu0 %v18340_v10  ;;  %v22494_v10 = vld [vmem:[#allocation39_spill] sm:$0xff]  ;;  %v18388_v14 = vld [vmem:[%s21636_s2 + $0x280] sm:$0xff] }
 0x4b1   : > { %11222 = vmatpush.bf16.msrb.mxu1 %v18348_v56  ;;  %v7477_v55 = vadd.f32 %v22490_v57, %v22489_v6  ;;  %v7589_v56 = vadd.f32 %v22494_v10, %v22493_v43  ;;  %v7547_v20 = vadd.f32 %v22497_v59, %v7533_v27  ;;  %v22507_v27 = vld [vmem:[#allocation23_spill] sm:$0xff] }
 0x4b2   : > { %11236 = vmatpush.bf16.msrb.mxu2 %v18356_v11  ;;  %v18375_v11 = vld [vmem:[%s21636_s2 + $0x218] sm:$0xff]  ;;  %v8873_v43 = vmax.f32 %v22507_v27, 0.0 }
 0x4b3   : > { %11250 = vmatpush.bf16.msrb.mxu3 %v18364_v54  ;;  %11209 = vmatmul.bf16.vlgmr.msrb.gmra.mxu0 %v8937_v18  ;;  %v7435_v54 = vadd.f32 %v22495_v60, %v7421_v61  ;;  %v7491_v8 = vadd.f32 %v22496_v17, %v7477_v55  ;;  %v21829_v21 = vpop.f32.mrf.mxu0  ;;  %v18372_v55 = vld [vmem:[%s21636_s2 + $0x200] sm:$0xff]  ;;  %v18427_v59 = vld [vmem:[%s21636_s2 + $0x3b8] sm:$0xff] }
 0x4b4   : > { %11257 = vmatpush.bf16.msra.mxu0 %v18379_v7  ;;  %11223 = vmatmul.bf16.vlgmr.msrb.gmra.mxu1 %v8938_v15  ;;  %v18399_v7 = vld [vmem:[%s21636_s2 + $0x2d8] sm:$0xff] }
 0x4b5   : > { %11271 = vmatpush.bf16.msra.mxu1 %v18387_v24  ;;  %11237 = vmatmul.bf16.vlgmr.msrb.gmra.mxu2 %v8939_v12  ;;  %v7603_v24 = vadd.f32 %v22498_v26, %v7589_v56  ;;  %v22500_v15 = vld [vmem:[#allocation31_spill] sm:$0xff]  ;;  %v18396_v56 = vld [vmem:[%s21636_s2 + $0x2c0] sm:$0xff] }
 0x4b6   : > { %11285 = vmatpush.bf16.msra.mxu2 %v18395_v5  ;;  %11251 = vmatmul.bf16.vlgmr.msrb.gmra.mxu3 %v8940_v42  ;;  %v21832_v5 = vpop.f32.mrf.mxu1  ;;  %v7505_v12 = vadd.f32 %v22500_v15, %v7491_v8  ;;  %v22502_v42 = vld [vmem:[#allocation41_spill] sm:$0xff]  ;;  %v18419_v8 = vld [vmem:[%s21636_s2 + $0x378] sm:$0xff]  ;;  %v18426_v15 = vld [vmem:[%s21636_s2 + $0x3b0] sm:$0xff] }
 0x4b7   : > { %11299 = vmatpush.bf16.msra.mxu3 %v18403_v41  ;;  %v22499_v41 = vld [vmem:[#allocation26_spill] sm:$0xff]  ;;  %v22517_v27 = vld [vmem:[#allocation55_spill] sm:$0xff] }
 0x4b8   : > { %11258 = vmatpush.bf16.msra.mxu0 %v18378_v38  ;;  %v7449_v18 = vadd.f32 %v22499_v41, %v7435_v54  ;;  %v18398_v38 = vld [vmem:[%s21636_s2 + $0x2d0] sm:$0xff]  ;;  %v22509_v54 = vld [vmem:[#allocation33_spill] sm:$0xff] }
 0x4b9   : > { %11272 = vmatpush.bf16.msra.mxu1 %v18386_v16  ;;  %v22501_v16 = vld [vmem:[#allocation36_spill] sm:$0xff] }
 0x4ba   : > { %11286 = vmatpush.bf16.msra.mxu2 %v18394_v19  ;;  %v7561_v19 = vadd.f32 %v22501_v16, %v7547_v20  ;;  %v22510_v20 = vld [vmem:[#allocation38_spill] sm:$0xff] }
 0x4bb   : > { %11300 = vmatpush.bf16.msra.mxu3 %v18402_v36  ;;  %v7617_v36 = vadd.f32 %v22502_v42, %v7603_v24  ;;  %v21849_v61 = vpop.f32.mrf.mxu0  ;;  %v8876_v26 = vmax.f32 %v22510_v20, 0.0  ;;  %v18434_v16 = vld [vmem:[%s21636_s2 + $0x3f0] sm:$0xff]  ;;  %v22521_v20 = vld [vmem:[#allocation51_spill] sm:$0xff] }
 0x4bc   : > { %11259 = vmatpush.bf16.msra.mxu0 %v18377_v23  ;;  %v18373_v23 = vld [vmem:[%s21636_s2 + $0x208] sm:$0xff]  ;;  %v7575_v22 = vadd.f32 %v22505_v62, %v7561_v19 }
 0x4bd   : > { %11273 = vmatpush.bf16.msra.mxu1 %v18385_v4  ;;  %v18381_v4 = vld [vmem:[%s21636_s2 + $0x248] sm:$0xff] }
 0x4be   : > { %11287 = vmatpush.bf16.msra.mxu2 %v18393_v35  ;;  %v18389_v35 = vld [vmem:[%s21636_s2 + $0x288] sm:$0xff]  ;;  %v21852_v57 = vpop.f32.mrf.mxu1  ;;  %v8909_v17 = vmax.f32 %v7575_v22, 0.0 }
 0x4bf   : > { %11301 = vmatpush.bf16.msra.mxu3 %v18401_v52  ;;  %v22503_v52 = vld [vmem:[#allocation27_spill] sm:$0xff]  ;;  %v22513_v62 = vld [vmem:[#allocation45_spill] sm:$0xff] }
 0x4c0   : > { %11260 = vmatpush.bf16.msra.mxu0 %v18376_v50  ;;  %v7463_v50 = vadd.f32 %v22503_v52, %v7449_v18  ;;  %v18408_v52 = vld [vmem:[%s21636_s2 + $0x320] sm:$0xff] }
 0x4c1   : > { %11274 = vmatpush.bf16.msra.mxu1 %v18384_v46  ;;  %v18397_v46 = vld [vmem:[%s21636_s2 + $0x2c8] sm:$0xff] }
 0x4c2   : > { %11288 = vmatpush.bf16.msra.mxu2 %v18392_v3  ;;  %v22504_v3 = vld [vmem:[#allocation32_spill] sm:$0xff]  ;;  %v8907_v10 = vmax.f32 %v7463_v50, 0.0 }
 0x4c3   : > { %11302 = vmatpush.bf16.msra.mxu3 %v18400_v30  ;;  %v7519_v53 = vadd.f32 %v22504_v3, %v7505_v12  ;;  %v22506_v30 = vld [vmem:[#allocation43_spill] sm:$0xff]  ;;  %v21870_v19 = vpop.f32.mrf.mxu0  ;;  %v18416_v50 = vld [vmem:[%s21636_s2 + $0x360] sm:$0xff]  ;;  %v22511_v3 = vld [vmem:[#allocation42_spill] sm:$0xff] }
 0x4c4   : > { %11261 = vmatpush.bf16.msra.mxu0 %v18375_v11  ;;  %v7631_v6 = vadd.f32 %v22506_v30, %v7617_v36  ;;  %v18411_v11 = vld [vmem:[%s21636_s2 + $0x338] sm:$0xff]  ;;  %v18409_v36 = vld [vmem:[%s21636_s2 + $0x328] sm:$0xff]  ;;  %v18432_v30 = vld [vmem:[%s21636_s2 + $0x3e0] sm:$0xff] }
 0x4c5   : > { %11275 = vmatpush.bf16.msra.mxu1 %v18383_v1  ;;  %v22508_v1 = vld [vmem:[#allocation28_spill] sm:$0xff]  ;;  %v8908_v60 = vmax.f32 %v7519_v53, 0.0  ;;  %v22512_v53 = vperm.slane %v22511_v3, 4 }
 0x4c6   : > { %11289 = vmatpush.bf16.msra.mxu2 %v18391_v31  ;;  %v8874_v31 = vmax.f32 %v22508_v1, 0.0  ;;  %v8910_v24 = vmax.f32 %v7631_v6, 0.0  ;;  %v21872_v42 = vpop.f32.mrf.mxu1  ;;  %v22514_v6 = vperm.slane %v22511_v3, 5 }
 0x4c7   : > { %11303 = vmatpush.bf16.msra.mxu3 %v18399_v7  ;;  %v8875_v7 = vmax.f32 %v22509_v54, 0.0  ;;  %v7645_v22 = vadd.f32 %v22513_v62, %v22512_v53  ;;  %v18415_v54 = vld [vmem:[%s21636_s2 + $0x358] sm:$0xff]  ;;  %v18413_v62 = vld [vmem:[%s21636_s2 + $0x348] sm:$0xff] }
 0x4c8   : > { %11262 = vmatpush.bf16.msra.mxu0 %v18374_v32  ;;  %v18435_v32 = vld [vmem:[%s21636_s2 + $0x3f8] sm:$0xff]  ;;  %v8942_v41 = vpack.c.bf16 %v8908_v60, %v8874_v31  ;;  %v8944_v12 = vpack.c.bf16 %v8910_v24, %v8876_v26  ;;  %v22522_v24 = vld [vmem:[#allocation56_spill] sm:$0xff] }
 0x4c9   : > { %11276 = vmatpush.bf16.msra.mxu1 %v18382_v25  ;;  %v8941_v25 = vpack.c.bf16 %v8907_v10, %v8873_v43  ;;  %v8943_v18 = vpack.c.bf16 %v8909_v17, %v8875_v7  ;;  %v18407_v60 = vld [vmem:[%s21636_s2 + $0x318] sm:$0xff]  ;;  %v22520_v17 = vld [vmem:[#allocation46_spill] sm:$0xff] }
 0x4ca   : > { %11290 = vmatpush.bf16.msra.mxu2 %v18390_v37  ;;  %v18410_v37 = vld [vmem:[%s21636_s2 + $0x330] sm:$0xff]  ;;  %v18423_v7 = vld [vmem:[%s21636_s2 + $0x398] sm:$0xff] }
 0x4cb   : > { %11304 = vmatpush.bf16.msra.mxu3 %v18398_v38  ;;  %v18418_v38 = vld [vmem:[%s21636_s2 + $0x370] sm:$0xff]  ;;  %v21891_v10 = vpop.f32.mrf.mxu0 }
 0x4cc   : > { %11263 = vmatpush.bf16.msra.mxu0 %v18373_v23  ;;  %v18417_v23 = vld [vmem:[%s21636_s2 + $0x368] sm:$0xff] }
 0x4cd   : > { %11277 = vmatpush.bf16.msra.mxu1 %v18381_v4  ;;  %v18425_v4 = vld [vmem:[%s21636_s2 + $0x3a8] sm:$0xff] }
 0x4ce   : > { %11291 = vmatpush.bf16.msra.mxu2 %v18389_v35  ;;  %v18433_v35 = vld [vmem:[%s21636_s2 + $0x3e8] sm:$0xff]  ;;  %v21896_v31 = vpop.f32.mrf.mxu1 }
 0x4cf   : > { %11305 = vmatpush.bf16.msra.mxu3 %v18397_v46  ;;  %v18424_v46 = vld [vmem:[%s21636_s2 + $0x3a0] sm:$0xff] }
 0x4d0   : > { %11264 = vmatpush.bf16.msra.mxu0 %v18372_v55  ;;  %v22515_v55 = vld [vmem:[#allocation50_spill] sm:$0xff] }
 0x4d1   : > { %11278 = vmatpush.bf16.msra.mxu1 %v18380_v48  ;;  %v7701_v48 = vadd.f32 %v22515_v55, %v22514_v6  ;;  %v21922_v55 = vpop.f32.mrf.mxu3 }
 0x4d2   : > { %11292 = vmatpush.bf16.msra.mxu2 %v18388_v14  ;;  %v22516_v14 = vperm.slane %v22511_v3, 6 }
 0x4d3   : > { %11306 = vmatpush.bf16.msra.mxu3 %v18396_v56  ;;  %11265 = vmatmul.bf16.vlgmr.msra.gmra.mxu0 %v8941_v25  ;;  %v22518_v56 = vperm.slane %v22511_v3, 7  ;;  %v7715_v26 = vadd.f32 %v22521_v20, %v7701_v48  ;;  %v22523_v25 = vld [vmem:[#allocation61_spill] sm:$0xff]  ;;  %v21917_v53 = vpop.f32.mrf.mxu0 }
 0x4d4   : > { %11313 = vmatpush.bf16.msrb.mxu0 %v18411_v11  ;;  %11279 = vmatmul.bf16.vlgmr.msra.gmra.mxu1 %v8942_v41  ;;  %v7757_v43 = vadd.f32 %v22517_v27, %v22516_v14  ;;  %v22519_v11 = vld [vmem:[#allocation60_spill] sm:$0xff]  ;;  %v21906_v41 = vpop.f32.mrf.mxu2  ;;  %v18405_v3 = vld [vmem:[%s21636_s2 + $0x308] sm:$0xff] }
 0x4d5   : > { %11327 = vmatpush.bf16.msrb.mxu1 %v18419_v8  ;;  %11293 = vmatmul.bf16.vlgmr.msra.gmra.mxu2 %v8943_v18  ;;  %v7813_v1 = vadd.f32 %v22519_v11, %v22518_v56  ;;  %v7659_v8 = vadd.f32 %v22520_v17, %v7645_v22  ;;  %v18406_v18 = vld [vmem:[%s21636_s2 + $0x310] sm:$0xff]  ;;  %v18421_v22 = vld [vmem:[%s21636_s2 + $0x388] sm:$0xff]  ;;  %v18412_v17 = vld [vmem:[%s21636_s2 + $0x340] sm:$0xff] }
 0x4d6   : > { %11341 = vmatpush.bf16.msrb.mxu2 %v18427_v59  ;;  %11307 = vmatmul.bf16.vlgmr.msra.gmra.mxu3 %v8944_v12  ;;  %v18431_v59 = vld [vmem:[%s21636_s2 + $0x3d8] sm:$0xff]  ;;  %v21924_v48 = vpop.f32.mrf.mxu1  ;;  %v18429_v14 = vld [vmem:[%s21636_s2 + $0x3c8] sm:$0xff]  ;;  %v22530_v56 = vld [vmem:[#allocation58_spill] sm:$0xff] }
 0x4d7   : > { %11355 = vmatpush.bf16.msrb.mxu3 %v18435_v32  ;;  %v7771_v32 = vadd.f32 %v22522_v24, %v7757_v43  ;;  %v22524_v12 = vld [vmem:[#allocation47_spill] sm:$0xff]  ;;  %v22529_v27 = vld [vmem:[#allocation53_spill] sm:$0xff]  ;;  %v18428_v24 = vld [vmem:[%s21636_s2 + $0x3c0] sm:$0xff] }
 0x4d8   : > { %11314 = vmatpush.bf16.msrb.mxu0 %v18410_v37  ;;  %v7827_v37 = vadd.f32 %v22523_v25, %v7813_v1  ;;  %v22531_v1 = vld [vmem:[#allocation64_spill] sm:$0xff]  ;;  %v22533_v25 = vld [vmem:[#allocation49_spill] sm:$0xff] }
 0x4d9   : > { %11328 = vmatpush.bf16.msrb.mxu1 %v18418_v38  ;;  %v18414_v38 = vld [vmem:[%s21636_s2 + $0x350] sm:$0xff] }
 0x4da   : > { %11342 = vmatpush.bf16.msrb.mxu2 %v18426_v15  ;;  %v18422_v15 = vld [vmem:[%s21636_s2 + $0x390] sm:$0xff] }
 0x4db   : > { %11356 = vmatpush.bf16.msrb.mxu3 %v18434_v16  ;;  %v7673_v16 = vadd.f32 %v22524_v12, %v7659_v8  ;;  %v18420_v8 = vld [vmem:[%s21636_s2 + $0x380] sm:$0xff] }
 0x4dc   : > { %11315 = vmatpush.bf16.msrb.mxu0 %v18409_v36  ;;  %v18430_v36 = vld [vmem:[%s21636_s2 + $0x3d0] sm:$0xff] }
 0x4dd   : > { %11329 = vmatpush.bf16.msrb.mxu1 %v18417_v23  ;;  %v22525_v23 = vld [vmem:[#allocation52_spill] sm:$0xff] }
 0x4de   : > { %11343 = vmatpush.bf16.msrb.mxu2 %v18425_v4  ;;  %v7729_v4 = vadd.f32 %v22525_v23, %v7715_v26  ;;  %v22535_v23 = vld [vmem:[#allocation59_spill] sm:$0xff] }
 0x4df   : > { %11357 = vmatpush.bf16.msrb.mxu3 %v18433_v35  ;;  %v22526_v35 = vld [vmem:[#allocation57_spill] sm:$0xff] }
 0x4e0   : > { %11316 = vmatpush.bf16.msrb.mxu0 %v18408_v52  ;;  %v7785_v52 = vadd.f32 %v22526_v35, %v7771_v32  ;;  %v7743_v43 = vadd.f32 %v22529_v27, %v7729_v4  ;;  %v18443_v32 = vld [vmem:[%s21636_s2 + $0x438] sm:$0xff]  ;;  %v8880_v4 = vmax.f32 %v22535_v23, 0.0  ;;  %v18458_v27 = vld [vmem:[%s21636_s2 + $0x4b0] sm:$0xff] }
 0x4e1   : > { %11330 = vmatpush.bf16.msrb.mxu1 %v18416_v50  ;;  %v22527_v50 = vld [vmem:[#allocation63_spill] sm:$0xff] }
 0x4e2   : > { %11344 = vmatpush.bf16.msrb.mxu2 %v18424_v46  ;;  %v7841_v46 = vadd.f32 %v22527_v50, %v7827_v37  ;;  %v7799_v11 = vadd.f32 %v22530_v56, %v7785_v52  ;;  %v8878_v37 = vmax.f32 %v22533_v25, 0.0  ;;  %v18467_v52 = vld [vmem:[%s21636_s2 + $0x4f8] sm:$0xff]  ;;  %v21944_v50 = vpop.f32.mrf.mxu0  ;;  %v18466_v56 = vld [vmem:[%s21636_s2 + $0x4f0] sm:$0xff] }
 0x4e3   : > { %11358 = vmatpush.bf16.msrb.mxu3 %v18432_v30  ;;  %v22528_v30 = vld [vmem:[#allocation48_spill] sm:$0xff]  ;;  %22536 = vst [vmem:[#allocation17_spill] sm:$0xff] %v21944_v50  ;;  %v22541_v25 = vld [vmem:[#allocation66_spill] sm:$0xff] }
 0x4e4   : > { %11317 = vmatpush.bf16.msrb.mxu0 %v18407_v60  ;;  %v7687_v6 = vadd.f32 %v22528_v30, %v7673_v16  ;;  %v7855_v60 = vadd.f32 %v22531_v1, %v7841_v46  ;;  %v8913_v12 = vmax.f32 %v7799_v11, 0.0  ;;  %v18451_v16 = vld [vmem:[%s21636_s2 + $0x478] sm:$0xff]  ;;  %v18441_v1 = vld [vmem:[%s21636_s2 + $0x428] sm:$0xff] }
 0x4e5   : > { %11331 = vmatpush.bf16.msrb.mxu1 %v18415_v54  ;;  %v21930_v54 = vpop.f32.mrf.mxu2 }
 0x4e6   : > { %11345 = vmatpush.bf16.msrb.mxu2 %v18423_v7  ;;  %v18404_v7 = vld [vmem:[%s21636_s2 + $0x300] sm:$0xff]  ;;  %v8911_v26 = vmax.f32 %v7687_v6, 0.0  ;;  %v8914_v35 = vmax.f32 %v7855_v60, 0.0  ;;  %v18449_v60 = vld [vmem:[%s21636_s2 + $0x468] sm:$0xff] }
 0x4e7   : > { %11359 = vmatpush.bf16.msrb.mxu3 %v18431_v59  ;;  %v22532_v59 = vld [vmem:[#allocation44_spill] sm:$0xff] }
 0x4e8   : > { %11318 = vmatpush.bf16.msrb.mxu0 %v18406_v18  ;;  %v8877_v20 = vmax.f32 %v22532_v59, 0.0  ;;  %v8912_v18 = vmax.f32 %v7743_v43, 0.0  ;;  %v8948_v43 = vpack.c.bf16 %v8914_v35, %v8880_v4  ;;  %v22546_v4 = vld [vmem:[#allocation76_spill] sm:$0xff] }
 0x4e9   : > { %11332 = vmatpush.bf16.msrb.mxu1 %v18414_v38  ;;  %v22534_v38 = vld [vmem:[#allocation54_spill] sm:$0xff] }
 0x4ea   : > { %11346 = vmatpush.bf16.msrb.mxu2 %v18422_v15  ;;  %v8879_v15 = vmax.f32 %v22534_v38, 0.0  ;;  %v8945_v46 = vpack.c.bf16 %v8911_v26, %v8877_v20  ;;  %v8946_v30 = vpack.c.bf16 %v8912_v18, %v8878_v37  ;;  %v21961_v59 = vpop.f32.mrf.mxu0  ;;  %v18448_v20 = vld [vmem:[%s21636_s2 + $0x460] sm:$0xff] }
 0x4eb   : > { %11360 = vmatpush.bf16.msrb.mxu3 %v18430_v36  ;;  %v18459_v36 = vld [vmem:[%s21636_s2 + $0x4b8] sm:$0xff]  ;;  %22538 = vst [vmem:[#allocation13_spill] sm:$0xff] %v21961_v59  ;;  %v18456_v26 = vld [vmem:[%s21636_s2 + $0x4a0] sm:$0xff] }
 0x4ec   : > { %11319 = vmatpush.bf16.msrb.mxu0 %v18405_v3  ;;  %v21946_v3 = vpop.f32.mrf.mxu3  ;;  %v8947_v6 = vpack.c.bf16 %v8913_v12, %v8879_v15  ;;  %v18464_v15 = vld [vmem:[%s21636_s2 + $0x4e0] sm:$0xff] }
 0x4ed   : > { %11333 = vmatpush.bf16.msrb.mxu1 %v18413_v62  ;;  %v21948_v62 = vpop.f32.mrf.mxu1  ;;  %v21954_v11 = vpop.f32.mrf.mxu2  ;;  %v22590_v59 = vld [vmem:[#allocation104_spill] sm:$0xff] }
 0x4ee   : > { %11347 = vmatpush.bf16.msrb.mxu2 %v18421_v22  ;;  %22537 = vst [vmem:[#allocation21_spill] sm:$0xff] %v21948_v62  ;;  %v18442_v22 = vld [vmem:[%s21636_s2 + $0x430] sm:$0xff] }
 0x4ef   : > { %11361 = vmatpush.bf16.msrb.mxu3 %v18429_v14  ;;  %v18450_v14 = vld [vmem:[%s21636_s2 + $0x470] sm:$0xff] }
 0x4f0   : > { %11320 = vmatpush.bf16.msrb.mxu0 %v18404_v7  ;;  %v18457_v7 = vld [vmem:[%s21636_s2 + $0x4a8] sm:$0xff] }
 0x4f1   : > { %11334 = vmatpush.bf16.msrb.mxu1 %v18412_v17  ;;  %v18465_v17 = vld [vmem:[%s21636_s2 + $0x4e8] sm:$0xff] }
 0x4f2   : > { %11348 = vmatpush.bf16.msrb.mxu2 %v18420_v8  ;;  %v18440_v8 = vld [vmem:[%s21636_s2 + $0x420] sm:$0xff] }
 0x4f3   : > { %11362 = vmatpush.bf16.msrb.mxu3 %v18428_v24  ;;  %11321 = vmatmul.bf16.vlgmr.msrb.gmra.mxu0 %v8945_v46  ;;  %v22539_v24 = vld [vmem:[#allocation62_spill] sm:$0xff]  ;;  %v22548_v46 = vld [vmem:[#allocation81_spill] sm:$0xff] }
 0x4f4   : > { %11369 = vmatpush.bf16.msra.mxu0 %v18443_v32  ;;  %11335 = vmatmul.bf16.vlgmr.msrb.gmra.mxu1 %v8946_v30  ;;  %v22540_v32 = vperm.slane %v22539_v24, 0  ;;  %v21968_v18 = vpop.f32.mrf.mxu3  ;;  %v22543_v12 = vperm.slane %v22539_v24, 1  ;;  %v22545_v23 = vperm.slane %v22539_v24, 2 }
 0x4f5   : > { %11383 = vmatpush.bf16.msra.mxu1 %v18451_v16  ;;  %11349 = vmatmul.bf16.vlgmr.msrb.gmra.mxu2 %v8947_v6  ;;  %v21970_v38 = vpop.f32.mrf.mxu1  ;;  %v22544_v16 = vld [vmem:[#allocation71_spill] sm:$0xff]  ;;  %v21982_v30 = vpop.f32.mrf.mxu2 }
 0x4f6   : > { %11397 = vmatpush.bf16.msra.mxu2 %v18459_v36  ;;  %11363 = vmatmul.bf16.vlgmr.msrb.gmra.mxu3 %v8948_v43  ;;  %v7869_v37 = vadd.f32 %v22541_v25, %v22540_v32  ;;  %22542 = vst [vmem:[#allocation15_spill] sm:$0xff] %v21970_v38  ;;  %v7925_v36 = vadd.f32 %v22544_v16, %v22543_v12  ;;  %v18439_v6 = vld [vmem:[%s21636_s2 + $0x418] sm:$0xff]  ;;  %v22552_v32 = vld [vmem:[#allocation82_spill] sm:$0xff]  ;;  %v21995_v12 = vpop.f32.mrf.mxu0 }
 0x4f7   : > { %11411 = vmatpush.bf16.msra.mxu3 %v18467_v52  ;;  %v7981_v35 = vadd.f32 %v22546_v4, %v22545_v23  ;;  %v22547_v52 = vperm.slane %v22539_v24, 3  ;;  %v22549_v43 = vld [vmem:[#allocation67_spill] sm:$0xff]  ;;  %22553 = vst [vmem:[#allocation18_spill] sm:$0xff] %v21995_v12  ;;  %v22556_v4 = vld [vmem:[#allocation73_spill] sm:$0xff] }
 0x4f8   : > { %11370 = vmatpush.bf16.msra.mxu0 %v18442_v22 }
 0x4f9   : > { %11384 = vmatpush.bf16.msra.mxu1 %v18450_v14  ;;  %v8037_v22 = vadd.f32 %v22548_v46, %v22547_v52  ;;  %v18447_v14 = vld [vmem:[%s21636_s2 + $0x458] sm:$0xff]  ;;  %v22557_v52 = vld [vmem:[#allocation78_spill] sm:$0xff] }
 0x4fa   : > { %11398 = vmatpush.bf16.msra.mxu2 %v18458_v27  ;;  %v18455_v27 = vld [vmem:[%s21636_s2 + $0x498] sm:$0xff] }
 0x4fb   : > { %11412 = vmatpush.bf16.msra.mxu3 %v18466_v56  ;;  %v7883_v56 = vadd.f32 %v22549_v43, %v7869_v37  ;;  %v8051_v25 = vadd.f32 %v22552_v32, %v8037_v22  ;;  %v22554_v37 = vld [vmem:[#allocation68_spill] sm:$0xff]  ;;  %v22558_v22 = vld [vmem:[#allocation83_spill] sm:$0xff]  ;;  %v18453_v43 = vld [vmem:[%s21636_s2 + $0x488] sm:$0xff] }
 0x4fc   : > { %11371 = vmatpush.bf16.msra.mxu0 %v18441_v1  ;;  %v18463_v1 = vld [vmem:[%s21636_s2 + $0x4d8] sm:$0xff]  ;;  %v21998_v16 = vpop.f32.mrf.mxu3 }
 0x4fd   : > { %11385 = vmatpush.bf16.msra.mxu1 %v18449_v60  ;;  %v22550_v60 = vld [vmem:[#allocation72_spill] sm:$0xff]  ;;  %v22001_v23 = vpop.f32.mrf.mxu1  ;;  %v22561_v32 = vld [vmem:[#allocation79_spill] sm:$0xff] }
 0x4fe   : > { %11399 = vmatpush.bf16.msra.mxu2 %v18457_v7  ;;  %v7939_v7 = vadd.f32 %v22550_v60, %v7925_v36  ;;  %v18462_v36 = vld [vmem:[%s21636_s2 + $0x4d0] sm:$0xff]  ;;  %22555 = vst [vmem:[#allocation22_spill] sm:$0xff] %v22001_v23  ;;  %v22010_v60 = vpop.f32.mrf.mxu2  ;;  %v18491_v23 = vld [vmem:[%s21636_s2 + $0x5b8] sm:$0xff] }
 0x4ff   : > { %11413 = vmatpush.bf16.msra.mxu3 %v18465_v17  ;;  %v22551_v17 = vld [vmem:[#allocation77_spill] sm:$0xff] }
 0x500   : > { %11372 = vmatpush.bf16.msra.mxu0 %v18440_v8  ;;  %v7995_v24 = vadd.f32 %v22551_v17, %v7981_v35  ;;  %v18438_v8 = vld [vmem:[%s21636_s2 + $0x410] sm:$0xff]  ;;  %v7953_v35 = vadd.f32 %v22556_v4, %v7939_v7  ;;  %v18461_v7 = vld [vmem:[%s21636_s2 + $0x4c8] sm:$0xff] }
 0x501   : > { %11386 = vmatpush.bf16.msra.mxu1 %v18448_v20  ;;  %v18446_v20 = vld [vmem:[%s21636_s2 + $0x450] sm:$0xff]  ;;  %v22563_v4 = vld [vmem:[#allocation65_spill] sm:$0xff] }
 0x502   : > { %11400 = vmatpush.bf16.msra.mxu2 %v18456_v26  ;;  %v18454_v26 = vld [vmem:[%s21636_s2 + $0x490] sm:$0xff]  ;;  %v8009_v46 = vadd.f32 %v22557_v52, %v7995_v24  ;;  %v8881_v52 = vmax.f32 %v22563_v4, 0.0 }
 0x503   : > { %11414 = vmatpush.bf16.msra.mxu3 %v18464_v15  ;;  %v7897_v15 = vadd.f32 %v22554_v37, %v7883_v56  ;;  %v22559_v56 = vld [vmem:[#allocation69_spill] sm:$0xff]  ;;  %v22560_v17 = vld [vmem:[#allocation74_spill] sm:$0xff] }
 0x504   : > { %11373 = vmatpush.bf16.msra.mxu0 %v18439_v6  ;;  %v8065_v6 = vadd.f32 %v22558_v22, %v8051_v25  ;;  %v7967_v24 = vadd.f32 %v22560_v17, %v7953_v35  ;;  %v8023_v25 = vadd.f32 %v22561_v32, %v8009_v46  ;;  %v22564_v35 = vld [vmem:[#allocation70_spill] sm:$0xff]  ;;  %v22565_v32 = vld [vmem:[#allocation75_spill] sm:$0xff]  ;;  %v22029_v4 = vpop.f32.mrf.mxu3 }
 0x505   : > { %11387 = vmatpush.bf16.msra.mxu1 %v18447_v14  ;;  %v18437_v14 = vld [vmem:[%s21636_s2 + $0x408] sm:$0xff]  ;;  %v8882_v17 = vmax.f32 %v22564_v35, 0.0  ;;  %v18474_v35 = vld [vmem:[%s21636_s2 + $0x530] sm:$0xff] }
 0x506   : > { %11401 = vmatpush.bf16.msra.mxu2 %v18455_v27  ;;  %v18445_v27 = vld [vmem:[%s21636_s2 + $0x448] sm:$0xff]  ;;  %v8916_v46 = vmax.f32 %v7967_v24, 0.0 }
 0x507   : > { %11415 = vmatpush.bf16.msra.mxu3 %v18463_v1  ;;  %v7911_v1 = vadd.f32 %v22559_v56, %v7897_v15  ;;  %v18452_v15 = vld [vmem:[%s21636_s2 + $0x480] sm:$0xff]  ;;  %v18475_v56 = vld [vmem:[%s21636_s2 + $0x538] sm:$0xff] }
 0x508   : > { %11374 = vmatpush.bf16.msra.mxu0 %v18438_v8  ;;  %v22562_v8 = vld [vmem:[#allocation85_spill] sm:$0xff] }
 0x509   : > { %11388 = vmatpush.bf16.msra.mxu1 %v18446_v20  ;;  %v8079_v37 = vadd.f32 %v22562_v8, %v8065_v6  ;;  %v18436_v20 = vld [vmem:[%s21636_s2 + $0x400] sm:$0xff]  ;;  %v8915_v22 = vmax.f32 %v7911_v1, 0.0  ;;  %v8883_v6 = vmax.f32 %v22565_v32, 0.0  ;;  %v8917_v8 = vmax.f32 %v8023_v25, 0.0  ;;  %v18499_v1 = vld [vmem:[%s21636_s2 + $0x5f8] sm:$0xff]  ;;  %v22034_v25 = vpop.f32.mrf.mxu2 }
 0x50a   : > { %11402 = vmatpush.bf16.msra.mxu2 %v18454_v26  ;;  %v18444_v26 = vld [vmem:[%s21636_s2 + $0x440] sm:$0xff]  ;;  %v8950_v32 = vpack.c.bf16 %v8916_v46, %v8882_v17 }
 0x50b   : > { %11416 = vmatpush.bf16.msra.mxu3 %v18462_v36  ;;  %v18460_v36 = vld [vmem:[%s21636_s2 + $0x4c0] sm:$0xff]  ;;  %v8918_v62 = vmax.f32 %v8079_v37, 0.0  ;;  %v8949_v24 = vpack.c.bf16 %v8915_v22, %v8881_v52  ;;  %v8951_v37 = vpack.c.bf16 %v8917_v8, %v8883_v6  ;;  %v18481_v52 = vld [vmem:[%s21636_s2 + $0x568] sm:$0xff] }
 0x50c   : > { %11375 = vmatpush.bf16.msra.mxu0 %v18437_v14  ;;  %v18483_v14 = vld [vmem:[%s21636_s2 + $0x578] sm:$0xff]  ;;  %v18489_v22 = vld [vmem:[%s21636_s2 + $0x5a8] sm:$0xff]  ;;  %v18480_v46 = vld [vmem:[%s21636_s2 + $0x560] sm:$0xff] }
 0x50d   : > { %11389 = vmatpush.bf16.msra.mxu1 %v18445_v27  ;;  %v22026_v27 = vpop.f32.mrf.mxu0  ;;  %v18488_v6 = vld [vmem:[%s21636_s2 + $0x5a0] sm:$0xff] }
 0x50e   : > { %11403 = vmatpush.bf16.msra.mxu2 %v18453_v43  ;;  %22566 = vst [vmem:[#allocation12_spill] sm:$0xff] %v22026_v27  ;;  %v22567_v43 = vld [vmem:[#allocation80_spill] sm:$0xff] }
 0x50f   : > { %11417 = vmatpush.bf16.msra.mxu3 %v18461_v7  ;;  %v8884_v38 = vmax.f32 %v22567_v43, 0.0  ;;  %v22032_v7 = vpop.f32.mrf.mxu1  ;;  %v18490_v43 = vld [vmem:[%s21636_s2 + $0x5b0] sm:$0xff]  ;;  %v22571_v8 = vld [vmem:[#allocation84_spill] sm:$0xff] }
 0x510   : > { %11376 = vmatpush.bf16.msra.mxu0 %v18436_v20  ;;  %22568 = vst [vmem:[#allocation14_spill] sm:$0xff] %v22032_v7  ;;  %v18482_v20 = vld [vmem:[%s21636_s2 + $0x570] sm:$0xff] }
 0x511   : > { %11390 = vmatpush.bf16.msra.mxu1 %v18444_v26  ;;  %v8952_v7 = vpack.c.bf16 %v8918_v62, %v8884_v38  ;;  %v18498_v26 = vld [vmem:[%s21636_s2 + $0x5f0] sm:$0xff]  ;;  %v18497_v62 = vld [vmem:[%s21636_s2 + $0x5e8] sm:$0xff] }
 0x512   : > { %11404 = vmatpush.bf16.msra.mxu2 %v18452_v15  ;;  %v18473_v15 = vld [vmem:[%s21636_s2 + $0x528] sm:$0xff] }
 0x513   : > { %11418 = vmatpush.bf16.msra.mxu3 %v18460_v36  ;;  %11377 = vmatmul.bf16.vlgmr.msra.gmra.mxu0 %v8949_v24  ;;  %v22054_v24 = vpop.f32.mrf.mxu2 }
 0x514   : > { %11425 = vmatpush.bf16.msrb.mxu0 %v18475_v56  ;;  %11391 = vmatmul.bf16.vlgmr.msra.gmra.mxu1 %v8950_v32  ;;  %v18472_v56 = vld [vmem:[%s21636_s2 + $0x520] sm:$0xff]  ;;  %v22574_v32 = vperm.slane %v22571_v8, 5 }
 0x515   : > { %11439 = vmatpush.bf16.msrb.mxu1 %v18483_v14  ;;  %11405 = vmatmul.bf16.vlgmr.msra.gmra.mxu2 %v8951_v37  ;;  %v11154_v38 = vpop.f32.mrf.mxu0  ;;  %v22572_v14 = vperm.slane %v22571_v8, 4  ;;  %v22575_v37 = vld [vmem:[#allocation92_spill] sm:$0xff] }
 0x516   : > { %11453 = vmatpush.bf16.msrb.mxu2 %v18491_v23  ;;  %11419 = vmatmul.bf16.vlgmr.msra.gmra.mxu3 %v8952_v7  ;;  %v22043_v23 = vpop.f32.mrf.mxu3 }
 0x517   : > { %11467 = vmatpush.bf16.msrb.mxu3 %v18499_v1  ;;  %22569 = vst [vmem:[#allocation16_spill] sm:$0xff] %v22043_v23  ;;  %v11168_v36 = vpop.f32.mrf.mxu1  ;;  %v22573_v1 = vld [vmem:[#allocation87_spill] sm:$0xff] }
 0x518   : > { %11426 = vmatpush.bf16.msrb.mxu0 %v18474_v35  ;;  %v22047_v17 = vadd.f32 %v11168_v36, %v11154_v38  ;;  %v8093_v7 = vadd.f32 %v22573_v1, %v22572_v14  ;;  %v18496_v35 = vld [vmem:[%s21636_s2 + $0x5e0] sm:$0xff]  ;;  %v18471_v36 = vld [vmem:[%s21636_s2 + $0x518] sm:$0xff] }
 0x519   : > { %11440 = vmatpush.bf16.msrb.mxu1 %v18482_v20  ;;  %v8149_v20 = vadd.f32 %v22575_v37, %v22574_v32  ;;  %v18479_v14 = vld [vmem:[%s21636_s2 + $0x558] sm:$0xff]  ;;  %v22580_v1 = vld [vmem:[#allocation88_spill] sm:$0xff]  ;;  %v22581_v37 = vld [vmem:[#allocation93_spill] sm:$0xff] }
 0x51a   : > { %11454 = vmatpush.bf16.msrb.mxu2 %v18490_v43  ;;  %22570 = vst [vmem:[#allocation19_spill] sm:$0xff] %v22047_v17  ;;  %v22576_v43 = vperm.slane %v22571_v8, 6  ;;  %v8107_v17 = vadd.f32 %v22580_v1, %v8093_v7  ;;  %v18495_v32 = vld [vmem:[%s21636_s2 + $0x5d8] sm:$0xff]  ;;  %v22586_v1 = vld [vmem:[#allocation89_spill] sm:$0xff] }
 0x51b   : > { %11468 = vmatpush.bf16.msrb.mxu3 %v18498_v26  ;;  %v22577_v26 = vld [vmem:[#allocation97_spill] sm:$0xff]  ;;  %v8163_v27 = vadd.f32 %v22581_v37, %v8149_v20  ;;  %v18486_v20 = vld [vmem:[%s21636_s2 + $0x590] sm:$0xff]  ;;  %v22082_v37 = vpop.f32.mrf.mxu2 }
 0x51c   : > { %11427 = vmatpush.bf16.msrb.mxu0 %v18473_v15  ;;  %v8205_v15 = vadd.f32 %v22577_v26, %v22576_v43  ;;  %v22582_v43 = vld [vmem:[#allocation98_spill] sm:$0xff]  ;;  %22587 = vst [vmem:[#allocation29_spill] sm:$0xff] %v22082_v37 }
 0x51d   : > { %11441 = vmatpush.bf16.msrb.mxu1 %v18481_v52  ;;  %v22578_v52 = vperm.slane %v22571_v8, 7  ;;  %v11156_v26 = vpop.f32.mrf.mxu0 }
 0x51e   : > { %11455 = vmatpush.bf16.msrb.mxu2 %v18489_v22  ;;  %v22579_v22 = vld [vmem:[#allocation102_spill] sm:$0xff]  ;;  %v8219_v8 = vadd.f32 %v22582_v43, %v8205_v15  ;;  %v8121_v15 = vadd.f32 %v22586_v1, %v8107_v17 }
 0x51f   : > { %11469 = vmatpush.bf16.msrb.mxu3 %v18497_v62  ;;  %v8261_v38 = vadd.f32 %v22579_v22, %v22578_v52  ;;  %v18487_v62 = vld [vmem:[%s21636_s2 + $0x598] sm:$0xff]  ;;  %v22074_v22 = vpop.f32.mrf.mxu3  ;;  %v22588_v43 = vld [vmem:[#allocation94_spill] sm:$0xff] }
 0x520   : > { %11428 = vmatpush.bf16.msrb.mxu0 %v18472_v56  ;;  %v22583_v52 = vld [vmem:[#allocation103_spill] sm:$0xff]  ;;  %22584 = vst [vmem:[#allocation20_spill] sm:$0xff] %v22074_v22  ;;  %v22591_v17 = vld [vmem:[#allocation90_spill] sm:$0xff] }
 0x521   : > { %11442 = vmatpush.bf16.msrb.mxu1 %v18480_v46  ;;  %v8275_v56 = vadd.f32 %v22583_v52, %v8261_v38  ;;  %v11170_v46 = vpop.f32.mrf.mxu1  ;;  %v18494_v38 = vld [vmem:[%s21636_s2 + $0x5d0] sm:$0xff]  ;;  %v22589_v52 = vld [vmem:[#allocation99_spill] sm:$0xff]  ;;  %v8135_v1 = vadd.f32 %v22591_v17, %v8121_v15 }
 0x522   : > { %11456 = vmatpush.bf16.msrb.mxu2 %v18488_v6  ;;  %v18470_v6 = vld [vmem:[%s21636_s2 + $0x510] sm:$0xff]  ;;  %v22077_v7 = vadd.f32 %v11170_v46, %v11156_v26  ;;  %v8233_v12 = vadd.f32 %v22589_v52, %v8219_v8  ;;  %v18477_v26 = vld [vmem:[%s21636_s2 + $0x548] sm:$0xff]  ;;  %v22593_v8 = vld [vmem:[#allocation100_spill] sm:$0xff] }
 0x523   : > { %11470 = vmatpush.bf16.msrb.mxu3 %v18496_v35  ;;  %v18478_v35 = vld [vmem:[%s21636_s2 + $0x550] sm:$0xff]  ;;  %v18485_v46 = vld [vmem:[%s21636_s2 + $0x588] sm:$0xff]  ;;  %v8919_v17 = vmax.f32 %v8135_v1, 0.0  ;;  %v18523_v22 = vld [vmem:[%s21636_s2 + $0x6b8] sm:$0xff]  ;;  %v22109_v37 = vpop.f32.mrf.mxu2 }
 0x524   : > { %11429 = vmatpush.bf16.msrb.mxu0 %v18471_v36  ;;  %22585 = vst [vmem:[#allocation24_spill] sm:$0xff] %v22077_v7  ;;  %v8177_v36 = vadd.f32 %v22588_v43, %v8163_v27  ;;  %v22592_v27 = vld [vmem:[#allocation95_spill] sm:$0xff]  ;;  %v8247_v52 = vadd.f32 %v22593_v8, %v8233_v12  ;;  %v22594_v7 = vld [vmem:[#allocation105_spill] sm:$0xff]  ;;  %v22596_v15 = vld [vmem:[#allocation86_spill] sm:$0xff] }
 0x525   : > { %11443 = vmatpush.bf16.msrb.mxu1 %v18479_v14  ;;  %v8289_v14 = vadd.f32 %v22590_v59, %v8275_v56  ;;  %v22597_v12 = vld [vmem:[#allocation91_spill] sm:$0xff] }
 0x526   : > { %11457 = vmatpush.bf16.msrb.mxu2 %v18487_v62  ;;  %v18469_v62 = vld [vmem:[%s21636_s2 + $0x508] sm:$0xff]  ;;  %v8191_v43 = vadd.f32 %v22592_v27, %v8177_v36  ;;  %v18492_v36 = vld [vmem:[%s21636_s2 + $0x5c0] sm:$0xff]  ;;  %v18507_v27 = vld [vmem:[%s21636_s2 + $0x638] sm:$0xff]  ;;  %v8886_v8 = vmax.f32 %v22597_v12, 0.0 }
 0x527   : > { %11471 = vmatpush.bf16.msrb.mxu3 %v18495_v32  ;;  %v18493_v32 = vld [vmem:[%s21636_s2 + $0x5c8] sm:$0xff]  ;;  %v8303_v59 = vadd.f32 %v22594_v7, %v8289_v14  ;;  %v22096_v56 = vpop.f32.mrf.mxu3  ;;  %v22598_v14 = vld [vmem:[#allocation96_spill] sm:$0xff]  ;;  %v18531_v1 = vld [vmem:[%s21636_s2 + $0x6f8] sm:$0xff] }
 0x528   : > { %11430 = vmatpush.bf16.msrb.mxu0 %v18470_v6  ;;  %22595 = vst [vmem:[#allocation34_spill] sm:$0xff] %v22096_v56  ;;  %v18468_v6 = vld [vmem:[%s21636_s2 + $0x500] sm:$0xff]  ;;  %v8920_v7 = vmax.f32 %v8191_v43, 0.0  ;;  %v8887_v50 = vmax.f32 %v22598_v14, 0.0  ;;  %v18515_v56 = vld [vmem:[%s21636_s2 + $0x678] sm:$0xff]  ;;  %v18506_v43 = vld [vmem:[%s21636_s2 + $0x630] sm:$0xff] }
 0x529   : > { %11444 = vmatpush.bf16.msrb.mxu1 %v18478_v35  ;;  %v18476_v35 = vld [vmem:[%s21636_s2 + $0x540] sm:$0xff]  ;;  %v8922_v23 = vmax.f32 %v8303_v59, 0.0  ;;  %v18514_v12 = vld [vmem:[%s21636_s2 + $0x670] sm:$0xff] }
 0x52a   : > { %11458 = vmatpush.bf16.msrb.mxu2 %v18486_v20  ;;  %v18484_v20 = vld [vmem:[%s21636_s2 + $0x580] sm:$0xff]  ;;  %v18522_v59 = vld [vmem:[%s21636_s2 + $0x6b0] sm:$0xff] }
 0x52b   : > { %11472 = vmatpush.bf16.msrb.mxu3 %v18494_v38  ;;  %v8885_v38 = vmax.f32 %v22596_v15, 0.0 }
 0x52c   : > { %11431 = vmatpush.bf16.msrb.mxu0 %v18469_v62  ;;  %v8921_v62 = vmax.f32 %v8247_v52, 0.0  ;;  %v8954_v52 = vpack.c.bf16 %v8920_v7, %v8886_v8  ;;  %v18512_v8 = vld [vmem:[%s21636_s2 + $0x660] sm:$0xff] }
 0x52d   : > { %11445 = vmatpush.bf16.msrb.mxu1 %v18477_v26  ;;  %v22599_v26 = vld [vmem:[#allocation101_spill] sm:$0xff]  ;;  %v18520_v7 = vld [vmem:[%s21636_s2 + $0x6a0] sm:$0xff] }
 0x52e   : > { %11459 = vmatpush.bf16.msrb.mxu2 %v18485_v46  ;;  %v8888_v46 = vmax.f32 %v22599_v26, 0.0  ;;  %v8955_v15 = vpack.c.bf16 %v8921_v62, %v8887_v50  ;;  %v18505_v50 = vld [vmem:[%s21636_s2 + $0x628] sm:$0xff]  ;;  %v22600_v62 = vperm.slane %v21294_v45, 0  ;;  %v22601_v26 = vld [vmem:[#allocation107_spill] sm:$0xff] }
 0x52f   : > { %11473 = vmatpush.bf16.msrb.mxu3 %v18493_v32  ;;  %v8953_v32 = vpack.c.bf16 %v8919_v17, %v8885_v38  ;;  %v22125_v38 = vld [vmem:[%s18938_s14 + $0x18] sm:$0xff] }
 0x530   : > { %11432 = vmatpush.bf16.msrb.mxu0 %v18468_v6  ;;  %v8956_v14 = vpack.c.bf16 %v8922_v23, %v8888_v46  ;;  %v18530_v6 = vld [vmem:[%s21636_s2 + $0x6f0] sm:$0xff]  ;;  %v18521_v23 = vld [vmem:[%s21636_s2 + $0x6a8] sm:$0xff]  ;;  %v1459_v17 = vperm.slane %v22125_v38, 2  ;;  %v8317_v46 = vadd.f32 %v22601_v26, %v22600_v62 }
 0x531   : > { %11446 = vmatpush.bf16.msrb.mxu1 %v18476_v35  ;;  %v22116_v35 = vpop.f32.mrf.mxu3 }
 0x532   : > { %11460 = vmatpush.bf16.msrb.mxu2 %v18484_v20  ;;  %v18529_v20 = vld [vmem:[%s21636_s2 + $0x6e8] sm:$0xff] }
 0x533   : > { %11474 = vmatpush.bf16.msrb.mxu3 %v18492_v36  ;;  %11433 = vmatmul.bf16.vlgmr.msrb.gmra.mxu0 %v8953_v32  ;;  %v1460_v36 = vperm.slane %v22125_v38, 3  ;;  %v22602_v32 = vperm.slane %v21294_v45, 1  ;;  %v18519_v45 = vld [vmem:[%s21636_s2 + $0x698] sm:$0xff] }
 0x534   : > { %11481 = vmatpush.bf16.msra.mxu0 %v18507_v27  ;;  %11447 = vmatmul.bf16.vlgmr.msrb.gmra.mxu1 %v8954_v52  ;;  %v18504_v27 = vld [vmem:[%s21636_s2 + $0x620] sm:$0xff]  ;;  %v8427_v52 = vadd.f32 %v21671_v49, %v1459_v17  ;;  %v18527_v49 = vld [vmem:[%s21636_s2 + $0x6d8] sm:$0xff] }
 0x535   : > { %11495 = vmatpush.bf16.msra.mxu1 %v18515_v56  ;;  %11461 = vmatmul.bf16.vlgmr.msrb.gmra.mxu2 %v8955_v15  ;;  %v22121_v56 = vpop.f32.mrf.mxu2  ;;  %v8429_v15 = vadd.f32 %v21695_v28, %v1459_v17 }
 0x536   : > { %11509 = vmatpush.bf16.msra.mxu2 %v18523_v22  ;;  %11475 = vmatmul.bf16.vlgmr.msrb.gmra.mxu3 %v8956_v14  ;;  %v18513_v22 = vld [vmem:[%s21636_s2 + $0x668] sm:$0xff] }
 0x537   : > { %11523 = vmatpush.bf16.msra.mxu3 %v18531_v1  ;;  %v18528_v1 = vld [vmem:[%s21636_s2 + $0x6e0] sm:$0xff] }
 0x538   : > { %11482 = vmatpush.bf16.msra.mxu0 %v18506_v43  ;;  %v8373_v43 = vadd.f32 %v21647_v2, %v22602_v32  ;;  %v22603_v2 = vld [vmem:[#allocation108_spill] sm:$0xff]  ;;  %v18517_v32 = vld [vmem:[%s21636_s2 + $0x688] sm:$0xff] }
 0x539   : > { %11496 = vmatpush.bf16.msra.mxu1 %v18514_v12  ;;  %v8483_v12 = vadd.f32 %v21718_v0, %v1460_v36  ;;  %v22143_v14 = vpop.f32.mrf.mxu3  ;;  %v8441_v0 = vadd.f32 %v21676_v29, %v8427_v52  ;;  %v18526_v29 = vld [vmem:[%s21636_s2 + $0x6d0] sm:$0xff] }
 0x53a   : > { %11510 = vmatpush.bf16.msra.mxu2 %v18522_v59  ;;  %v8485_v59 = vadd.f32 %v21731_v13, %v1460_v36  ;;  %v8387_v28 = vadd.f32 %v21651_v9, %v8373_v43  ;;  %v8443_v13 = vadd.f32 %v21700_v63, %v8429_v15  ;;  %v18502_v36 = vld [vmem:[%s21636_s2 + $0x610] sm:$0xff]  ;;  %v22604_v9 = vld [vmem:[#allocation109_spill] sm:$0xff] }
 0x53b   : > { %11524 = vmatpush.bf16.msra.mxu3 %v18530_v6  ;;  %v18503_v6 = vld [vmem:[%s21636_s2 + $0x618] sm:$0xff]  ;;  %v22605_v43 = vld [vmem:[#allocation110_spill] sm:$0xff] }
 0x53c   : > { %11483 = vmatpush.bf16.msra.mxu0 %v18505_v50  ;;  %v18511_v50 = vld [vmem:[%s21636_s2 + $0x658] sm:$0xff]  ;;  %v8401_v63 = vadd.f32 %v21906_v41, %v8387_v28 }
 0x53d   : > { %11497 = vmatpush.bf16.msra.mxu1 %v18513_v22  ;;  %v8331_v22 = vadd.f32 %v22603_v2, %v8317_v46  ;;  %v22155_v17 = vpop.f32.mrf.mxu2  ;;  %v18501_v46 = vld [vmem:[%s21636_s2 + $0x608] sm:$0xff] }
 0x53e   : > { %11511 = vmatpush.bf16.msra.mxu2 %v18521_v23  ;;  %v8497_v23 = vadd.f32 %v21720_v51, %v8483_v12  ;;  %v8455_v51 = vadd.f32 %v21930_v54, %v8441_v0  ;;  %v18525_v54 = vld [vmem:[%s21636_s2 + $0x6c8] sm:$0xff] }
 0x53f   : > { %11525 = vmatpush.bf16.msra.mxu3 %v18529_v20  ;;  %v8499_v20 = vadd.f32 %v21738_v44, %v8485_v59  ;;  %v8457_v44 = vadd.f32 %v21954_v11, %v8443_v13  ;;  %v8415_v11 = vadd.f32 %v21922_v55, %v8401_v63  ;;  %v18516_v55 = vld [vmem:[%s21636_s2 + $0x680] sm:$0xff]  ;;  %v18547_v13 = vld [vmem:[%s21636_s2 + $0x778] sm:$0xff] }
 0x540   : > { %11484 = vmatpush.bf16.msra.mxu0 %v18504_v27  ;;  %v18510_v27 = vld [vmem:[%s21636_s2 + $0x650] sm:$0xff]  ;;  %v8511_v62 = vadd.f32 %v21982_v30, %v8497_v23  ;;  %v8469_v30 = vadd.f32 %v21946_v3, %v8455_v51  ;;  %v18555_v23 = vld [vmem:[%s21636_s2 + $0x7b8] sm:$0xff] }
 0x541   : > { %11498 = vmatpush.bf16.msra.mxu1 %v18512_v8  ;;  %v18518_v8 = vld [vmem:[%s21636_s2 + $0x690] sm:$0xff]  ;;  %v8513_v26 = vadd.f32 %v22010_v60, %v8499_v20  ;;  %v22171_v41 = vpop.f32.mrf.mxu3  ;;  %v8471_v60 = vadd.f32 %v21968_v18, %v8457_v44  ;;  %v18524_v18 = vld [vmem:[%s21636_s2 + $0x6c0] sm:$0xff] }
 0x542   : > { %11512 = vmatpush.bf16.msra.mxu2 %v18520_v7  ;;  %v8345_v7 = vadd.f32 %v22604_v9, %v8331_v22  ;;  %v8525_v15 = vadd.f32 %v21998_v16, %v8511_v62  ;;  %v18539_v22 = vld [vmem:[%s21636_s2 + $0x738] sm:$0xff]  ;;  %v8891_v28 = vmax.f32 %v8469_v30, 0.0  ;;  %v18546_v51 = vld [vmem:[%s21636_s2 + $0x770] sm:$0xff]  ;;  %v18561_v30 = vld [vmem:[%s21636_s2 + $0x7e8] sm:$0xff] }
 0x543   : > { %11526 = vmatpush.bf16.msra.mxu3 %v18528_v1  ;;  %v18509_v1 = vld [vmem:[%s21636_s2 + $0x648] sm:$0xff]  ;;  %v8527_v12 = vadd.f32 %v22029_v4, %v8513_v26  ;;  %v22607_v16 = vld [vmem:[#allocation111_spill] sm:$0xff]  ;;  %v8924_v4 = vmax.f32 %v8415_v11, 0.0  ;;  %v8925_v0 = vmax.f32 %v8471_v60, 0.0  ;;  %v18554_v44 = vld [vmem:[%s21636_s2 + $0x7b0] sm:$0xff]  ;;  %v1463_v11 = vperm.slane %v22125_v38, 6 }
 0x544   : > { %11485 = vmatpush.bf16.msra.mxu0 %v18503_v6  ;;  %v8359_v52 = vadd.f32 %v22605_v43, %v8345_v7  ;;  %v18500_v6 = vld [vmem:[%s21636_s2 + $0x600] sm:$0xff]  ;;  %v8892_v20 = vmax.f32 %v8525_v15, 0.0  ;;  %v18538_v7 = vld [vmem:[%s21636_s2 + $0x730] sm:$0xff]  ;;  %v18545_v43 = vld [vmem:[%s21636_s2 + $0x768] sm:$0xff]  ;;  %v1464_v60 = vperm.slane %v22125_v38, 7 }
 0x545   : > { %11499 = vmatpush.bf16.msra.mxu1 %v18511_v50  ;;  %v22179_v59 = vpop.f32.mrf.mxu2  ;;  %v18508_v50 = vld [vmem:[%s21636_s2 + $0x640] sm:$0xff]  ;;  %v8959_v63 = vpack.c.bf16 %v8925_v0, %v8891_v28  ;;  %v18562_v26 = vld [vmem:[%s21636_s2 + $0x7f0] sm:$0xff]  ;;  %v18559_v0 = vld [vmem:[%s21636_s2 + $0x7d8] sm:$0xff] }
 0x546   : > { %11513 = vmatpush.bf16.msra.mxu2 %v18519_v45  ;;  %v22606_v45 = vld [vmem:[#allocation106_spill] sm:$0xff]  ;;  %v8923_v3 = vmax.f32 %v8359_v52, 0.0  ;;  %v18553_v52 = vld [vmem:[%s21636_s2 + $0x7a8] sm:$0xff]  ;;  %v18536_v15 = vld [vmem:[%s21636_s2 + $0x720] sm:$0xff] }
 0x547   : > { %11527 = vmatpush.bf16.msra.mxu3 %v18527_v49  ;;  %v8889_v2 = vmax.f32 %v22606_v45, 0.0  ;;  %v8890_v49 = vmax.f32 %v22607_v16, 0.0 }
 0x548   : > { %11486 = vmatpush.bf16.msra.mxu0 %v18502_v36  ;;  %v8926_v36 = vmax.f32 %v8527_v12, 0.0 }
 0x549   : > { %11500 = vmatpush.bf16.msra.mxu1 %v18510_v27  ;;  %v18563_v27 = vld [vmem:[%s21636_s2 + $0x7f8] sm:$0xff]  ;;  %v22191_v9 = vpop.f32.mrf.mxu3 }
 0x54a   : > { %11514 = vmatpush.bf16.msra.mxu2 %v18518_v8  ;;  %v8957_v8 = vpack.c.bf16 %v8923_v3, %v8889_v2  ;;  %v8960_v62 = vpack.c.bf16 %v8926_v36, %v8892_v20  ;;  %v8651_v3 = vadd.f32 %v21849_v61, %v1463_v11  ;;  %v18543_v61 = vld [vmem:[%s21636_s2 + $0x758] sm:$0xff]  ;;  %v22608_v20 = vld [vmem:[#allocation29_spill] sm:$0xff] }
 0x54b   : > { %11528 = vmatpush.bf16.msra.mxu3 %v18526_v29  ;;  %v8958_v29 = vpack.c.bf16 %v8924_v4, %v8890_v49 }
 0x54c   : > { %11487 = vmatpush.bf16.msra.mxu0 %v18501_v46 }
 0x54d   : > { %11501 = vmatpush.bf16.msra.mxu1 %v18509_v1  ;;  %v22197_v46 = vpop.f32.mrf.mxu2  ;;  %v18537_v1 = vld [vmem:[%s21636_s2 + $0x728] sm:$0xff] }
 0x54e   : > { %11515 = vmatpush.bf16.msra.mxu2 %v18517_v32  ;;  %v1461_v32 = vperm.slane %v22125_v38, 4 }
 0x54f   : > { %11529 = vmatpush.bf16.msra.mxu3 %v18525_v54  ;;  %v1462_v54 = vperm.slane %v22125_v38, 5  ;;  %v8653_v38 = vadd.f32 %v21870_v19, %v1463_v11  ;;  %v18551_v19 = vld [vmem:[%s21636_s2 + $0x798] sm:$0xff] }
 0x550   : > { %11488 = vmatpush.bf16.msra.mxu0 %v18500_v6  ;;  %v8539_v12 = vadd.f32 %v21759_v40, %v1461_v32  ;;  %v8541_v6 = vadd.f32 %v21786_v47, %v1461_v32  ;;  %v18560_v40 = vld [vmem:[%s21636_s2 + $0x7e0] sm:$0xff]  ;;  %v8707_v47 = vadd.f32 %v21891_v10, %v1464_v60  ;;  %v18557_v32 = vld [vmem:[%s21636_s2 + $0x7c8] sm:$0xff] }
 0x551   : > { %11502 = vmatpush.bf16.msra.mxu1 %v18508_v50  ;;  %v18544_v50 = vld [vmem:[%s21636_s2 + $0x760] sm:$0xff]  ;;  %v8595_v45 = vadd.f32 %v21799_v39, %v1462_v54  ;;  %v8597_v2 = vadd.f32 %v21829_v21, %v1462_v54  ;;  %v18535_v39 = vld [vmem:[%s21636_s2 + $0x718] sm:$0xff]  ;;  %v8667_v28 = vadd.f32 %v21872_v42, %v8653_v38 }
 0x552   : > { %11516 = vmatpush.bf16.msra.mxu2 %v18516_v55  ;;  %v18552_v55 = vld [vmem:[%s21636_s2 + $0x7a0] sm:$0xff]  ;;  %v8553_v21 = vadd.f32 %v21764_v34, %v8539_v12  ;;  %v8555_v49 = vadd.f32 %v21791_v58, %v8541_v6  ;;  %v8721_v34 = vadd.f32 %v21896_v31, %v8707_v47  ;;  %v18570_v47 = vld [vmem:[%s21636_s2 + $0x830] sm:$0xff] }
 0x553   : > { %11530 = vmatpush.bf16.msra.mxu3 %v18524_v18  ;;  %11489 = vmatmul.bf16.vlgmr.msra.gmra.mxu0 %v8957_v8  ;;  %v8750_v18 = vpop.f32.mrf.mxu3  ;;  %v8609_v10 = vadd.f32 %v21803_v33, %v8595_v45  ;;  %v8611_v4 = vadd.f32 %v21832_v5, %v8597_v2  ;;  %v18542_v5 = vld [vmem:[%s21636_s2 + $0x750] sm:$0xff]  ;;  %v18532_v54 = vld [vmem:[%s21636_s2 + $0x700] sm:$0xff]  ;;  %v18579_v45 = vld [vmem:[%s21636_s2 + $0x878] sm:$0xff] }
 0x554   : > { %11537 = vmatpush.bf16.msrb.mxu0 %v18539_v22  ;;  %11503 = vmatmul.bf16.vlgmr.msra.gmra.mxu1 %v8958_v29  ;;  %v8709_v22 = vadd.f32 %v21917_v53, %v1464_v60  ;;  %v8665_v53 = vadd.f32 %v21852_v57, %v8651_v3  ;;  %v8569_v33 = vadd.f32 %v22054_v24, %v8555_v49  ;;  %v18550_v57 = vld [vmem:[%s21636_s2 + $0x790] sm:$0xff]  ;;  %v22609_v29 = vld [vmem:[#allocation16_spill] sm:$0xff]  ;;  %v18569_v49 = vld [vmem:[%s21636_s2 + $0x828] sm:$0xff] }
 0x555   : > { %11551 = vmatpush.bf16.msrb.mxu1 %v18547_v13  ;;  %11517 = vmatmul.bf16.vlgmr.msra.gmra.mxu2 %v8959_v63  ;;  %v22219_v16 = vpop.f32.mrf.mxu2  ;;  %v18534_v13 = vld [vmem:[%s21636_s2 + $0x710] sm:$0xff]  ;;  %v8623_v42 = vadd.f32 %v22608_v20, %v8609_v10  ;;  %v8625_v31 = vadd.f32 %v22109_v37, %v8611_v4  ;;  %v8735_v24 = vadd.f32 %v22179_v59, %v8721_v34  ;;  %v18556_v6 = vld [vmem:[%s21636_s2 + $0x7c0] sm:$0xff]  ;;  %v22613_v34 = vld [vmem:[#allocation13_spill] sm:$0xff] }
 0x556   : > { %11565 = vmatpush.bf16.msrb.mxu2 %v18555_v23  ;;  %11531 = vmatmul.bf16.vlgmr.msra.gmra.mxu3 %v8960_v62  ;;  %v8723_v58 = vadd.f32 %v21924_v48, %v8709_v22  ;;  %v8567_v23 = vadd.f32 %v22034_v25, %v8553_v21  ;;  %v8679_v36 = vadd.f32 %v22121_v56, %v8665_v53  ;;  %v18558_v25 = vld [vmem:[%s21636_s2 + $0x7d0] sm:$0xff]  ;;  %v18541_v56 = vld [vmem:[%s21636_s2 + $0x748] sm:$0xff]  ;;  %v1427_v21 = vld [vmem:[%s18938_s14 + $0x20] sm:$0x3] }
 0x557   : > { %11579 = vmatpush.bf16.msrb.mxu3 %v18563_v27  ;;  %v8681_v48 = vadd.f32 %v22155_v17, %v8667_v28  ;;  %v18549_v17 = vld [vmem:[%s21636_s2 + $0x788] sm:$0xff]  ;;  %v8639_v59 = vadd.f32 %v22116_v35, %v8625_v31  ;;  %v18540_v35 = vld [vmem:[%s21636_s2 + $0x740] sm:$0xff]  ;;  %v1466_v10 = vperm.slane %v1427_v21, 1 }
 0x558   : > { %11538 = vmatpush.bf16.msrb.mxu0 %v18538_v7  ;;  %v8737_v8 = vadd.f32 %v22197_v46, %v8723_v58  ;;  %v18533_v7 = vld [vmem:[%s21636_s2 + $0x708] sm:$0xff]  ;;  %v8581_v63 = vadd.f32 %v22609_v29, %v8567_v23  ;;  %v18568_v53 = vld [vmem:[%s21636_s2 + $0x820] sm:$0xff]  ;;  %v22614_v23 = vld [vmem:[#allocation18_spill] sm:$0xff] }
 0x559   : > { %11552 = vmatpush.bf16.msrb.mxu1 %v18546_v51  ;;  %v22610_v51 = vld [vmem:[#allocation20_spill] sm:$0xff]  ;;  %v8695_v46 = vadd.f32 %v22171_v41, %v8681_v48  ;;  %v8928_v41 = vmax.f32 %v8639_v59, 0.0  ;;  %v22612_v28 = vld [vmem:[#allocation17_spill] sm:$0xff]  ;;  %v22617_v48 = vld [vmem:[#allocation15_spill] sm:$0xff] }
 0x55a   : > { %11566 = vmatpush.bf16.msrb.mxu2 %v18554_v44  ;;  %v8583_v37 = vadd.f32 %v22610_v51, %v8569_v33  ;;  %v22611_v44 = vld [vmem:[#allocation34_spill] sm:$0xff]  ;;  %v8893_v11 = vmax.f32 %v8581_v63, 0.0  ;;  %v8819_v33 = vadd.f32 %v22614_v23, %v1466_v10  ;;  %v22616_v31 = vld [vmem:[#allocation21_spill] sm:$0xff] }
 0x55b   : > { %11580 = vmatpush.bf16.msrb.mxu3 %v18562_v26  ;;  %v22242_v27 = vpop.f32.mrf.mxu3  ;;  %v8637_v62 = vadd.f32 %v22611_v44, %v8623_v42  ;;  %v8693_v26 = vadd.f32 %v22143_v14, %v8679_v36  ;;  %v18548_v14 = vld [vmem:[%s21636_s2 + $0x780] sm:$0xff]  ;;  %v8929_v12 = vmax.f32 %v8695_v46, 0.0  ;;  %v18567_v42 = vld [vmem:[%s21636_s2 + $0x818] sm:$0xff]  ;;  %v22619_v29 = vld [vmem:[#allocation14_spill] sm:$0xff] }
 0x55c   : > { %11539 = vmatpush.bf16.msrb.mxu0 %v18537_v1  ;;  %v18574_v44 = vld [vmem:[%s21636_s2 + $0x850] sm:$0xff]  ;;  %v18565_v46 = vld [vmem:[%s21636_s2 + $0x808] sm:$0xff] }
 0x55d   : > { %11553 = vmatpush.bf16.msrb.mxu1 %v18545_v43  ;;  %v22256_v1 = vpop.f32.mrf.mxu2  ;;  %v8749_v43 = vadd.f32 %v22191_v9, %v8735_v24  ;;  %v8894_v60 = vmax.f32 %v8637_v62, 0.0  ;;  %v18575_v24 = vld [vmem:[%s21636_s2 + $0x858] sm:$0xff] }
 0x55e   : > { %11567 = vmatpush.bf16.msrb.mxu2 %v18553_v52  ;;  %v8751_v52 = vadd.f32 %v8750_v18, %v8737_v8  ;;  %v22618_v8 = vld [vmem:[#allocation22_spill] sm:$0xff] }
 0x55f   : > { %11581 = vmatpush.bf16.msrb.mxu3 %v18561_v30  ;;  %v8927_v30 = vmax.f32 %v8583_v37, 0.0  ;;  %v8896_v9 = vmax.f32 %v8749_v43, 0.0  ;;  %v8962_v38 = vpack.c.bf16 %v8928_v41, %v8894_v60  ;;  %v18566_v37 = vld [vmem:[%s21636_s2 + $0x810] sm:$0xff] }
 0x560   : > { %11540 = vmatpush.bf16.msrb.mxu0 %v18536_v15  ;;  %v8895_v15 = vmax.f32 %v8693_v26, 0.0 }
 0x561   : > { %11554 = vmatpush.bf16.msrb.mxu1 %v18544_v50  ;;  %v18571_v50 = vld [vmem:[%s21636_s2 + $0x838] sm:$0xff]  ;;  %v8961_v3 = vpack.c.bf16 %v8927_v30, %v8893_v11 }
 0x562   : > { %11568 = vmatpush.bf16.msrb.mxu2 %v18552_v55  ;;  %v8930_v55 = vmax.f32 %v8751_v52, 0.0  ;;  %v8963_v18 = vpack.c.bf16 %v8929_v12, %v8895_v15  ;;  %v18573_v52 = vld [vmem:[%s21636_s2 + $0x848] sm:$0xff] }
 0x563   : > { %11582 = vmatpush.bf16.msrb.mxu3 %v18560_v40  ;;  %v8806_v2 = vpop.f32.mrf.mxu3 }
 0x564   : > { %11541 = vmatpush.bf16.msrb.mxu0 %v18535_v39  ;;  %v8964_v22 = vpack.c.bf16 %v8930_v55, %v8896_v9  ;;  %v18578_v39 = vld [vmem:[%s21636_s2 + $0x870] sm:$0xff] }
 0x565   : > { %11555 = vmatpush.bf16.msrb.mxu1 %v18543_v61  ;;  %v8846_v40 = vpop.f32.mrf.mxu2  ;;  %v1465_v61 = vperm.slane %v1427_v21, 0 }
 0x566   : > { %11569 = vmatpush.bf16.msrb.mxu2 %v18551_v19  ;;  %v18577_v19 = vld [vmem:[%s21636_s2 + $0x868] sm:$0xff] }
 0x567   : > { %11583 = vmatpush.bf16.msrb.mxu3 %v18559_v0  ;;  %v8763_v0 = vadd.f32 %v22612_v28, %v1465_v61  ;;  %v8765_v58 = vadd.f32 %v22613_v34, %v1465_v61 }
 0x568   : > { %11542 = vmatpush.bf16.msrb.mxu0 %v18534_v13  ;;  %v18576_v13 = vld [vmem:[%s21636_s2 + $0x860] sm:$0xff] }
 0x569   : > { %11556 = vmatpush.bf16.msrb.mxu1 %v18542_v5  ;;  %v22615_v5 = vld [vmem:[#allocation12_spill] sm:$0xff]  ;;  %v8777_v36 = vadd.f32 %v22616_v31, %v8763_v0 }
 0x56a   : > { %11570 = vmatpush.bf16.msrb.mxu2 %v18550_v57  ;;  %v8821_v57 = vadd.f32 %v22615_v5, %v1466_v10  ;;  %v22620_v10 = vld [vmem:[#allocation19_spill] sm:$0xff] }
 0x56b   : > { %11584 = vmatpush.bf16.msrb.mxu3 %v18558_v25  ;;  %v8860_v4 = vpop.f32.mrf.mxu3  ;;  %v8779_v25 = vadd.f32 %v22617_v48, %v8765_v58 }
 0x56c   : > { %11543 = vmatpush.bf16.msrb.mxu0 %v18533_v7  ;;  %v8833_v7 = vadd.f32 %v22618_v8, %v8819_v33  ;;  %v8835_v63 = vadd.f32 %v22619_v29, %v8821_v57 }
 0x56d   : > { %11557 = vmatpush.bf16.msrb.mxu1 %v18541_v56  ;;  %v8848_v20 = vpop.f32.mrf.mxu2  ;;  %v8791_v56 = vadd.f32 %v22219_v16, %v8777_v36  ;;  %v18564_v16 = vld [vmem:[%s21636_s2 + $0x800] sm:$0xff] }
 0x56e   : > { %11571 = vmatpush.bf16.msrb.mxu2 %v18549_v17  ;;  %v8793_v17 = vadd.f32 %v22256_v1, %v8779_v25  ;;  %v8847_v62 = vadd.f32 %v8846_v40, %v8833_v7  ;;  %v8849_v59 = vadd.f32 %v8848_v20, %v8835_v63  ;;  %v18572_v1 = vld [vmem:[%s21636_s2 + $0x840] sm:$0xff] }
 0x56f   : > { %11585 = vmatpush.bf16.msrb.mxu3 %v18557_v32  ;;  %v8805_v32 = vadd.f32 %v22242_v27, %v8791_v56  ;;  %v11210_v27 = vpop.f32.mrf.mxu0 }
 0x570   : > { %11544 = vmatpush.bf16.msrb.mxu0 %v18532_v54  ;;  %v8807_v43 = vadd.f32 %v8806_v2, %v8793_v17  ;;  %v8861_v54 = vadd.f32 %v8860_v4, %v8847_v62 }
 0x571   : > { %11558 = vmatpush.bf16.msrb.mxu1 %v18540_v35  ;;  %v8897_v30 = vmax.f32 %v8805_v32, 0.0 }
 0x572   : > { %11572 = vmatpush.bf16.msrb.mxu2 %v18548_v14  ;;  %v8931_v35 = vmax.f32 %v8807_v43, 0.0  ;;  %v8898_v14 = vmax.f32 %v8861_v54, 0.0 }
 0x573   : > { %11586 = vmatpush.bf16.msrb.mxu3 %v18556_v6  ;;  %11545 = vmatmul.bf16.vlgmr.msrb.gmra.mxu0 %v8961_v3  ;;  %v8862_v51 = vpop.f32.mrf.mxu3 }
 0x574   : > { %11593 = vmatpush.bf16.msra.mxu0 %v18571_v50  ;;  %11559 = vmatmul.bf16.vlgmr.msrb.gmra.mxu1 %v8962_v38  ;;  %v8863_v11 = vadd.f32 %v8862_v51, %v8849_v59  ;;  %v8965_v15 = vpack.c.bf16 %v8931_v35, %v8897_v30  ;;  %v11224_v50 = vpop.f32.mrf.mxu1 }
 0x575   : > { %11607 = vmatpush.bf16.msra.mxu1 %v18579_v45  ;;  %11573 = vmatmul.bf16.vlgmr.msrb.gmra.mxu2 %v8963_v18  ;;  %v11182_v26 = vpop.f32.mrf.mxu2 }
 0x576   : > { %11587 = vmatmul.bf16.vlgmr.msrb.gmra.mxu3 %v8964_v22  ;;  %v8932_v60 = vmax.f32 %v8863_v11, 0.0  ;;  %v11183_v4 = vadd.f32 %v11182_v26, %v22620_v10 }
 0x577   : > { %v11212_v45 = vpop.f32.mrf.mxu0 }
 0x578   : > { %11594 = vmatpush.bf16.msra.mxu0 %v18570_v47  ;;  %v8966_v12 = vpack.c.bf16 %v8932_v60, %v8898_v14 }
 0x579   : > { %11608 = vmatpush.bf16.msra.mxu1 %v18578_v39 }
 0x57b   : > { %v11196_v41 = vpop.f32.mrf.mxu3 }
 0x57c   : > { %11595 = vmatpush.bf16.msra.mxu0 %v18569_v49  ;;  %v11226_v2 = vpop.f32.mrf.mxu1  ;;  %v11197_v28 = vadd.f32 %v11196_v41, %v11183_v4 }
 0x57d   : > { %11609 = vmatpush.bf16.msra.mxu1 %v18577_v19  ;;  %v11184_v6 = vpop.f32.mrf.mxu2 }
 0x57e   : > { %v11211_v34 = vadd.f32 %v11210_v27, %v11197_v28 }
 0x57f   : > { %v11266_v18 = vpop.f32.mrf.mxu0 }
 0x580   : > { %11596 = vmatpush.bf16.msra.mxu0 %v18568_v53  ;;  %v11225_v5 = vadd.f32 %v11224_v50, %v11211_v34 }
 0x581   : > { %11610 = vmatpush.bf16.msra.mxu1 %v18576_v13  ;;  %v22621_v13 = vld [vmem:[#allocation24_spill] sm:$0xff] }
 0x582   : > { %v11185_v23 = vadd.f32 %v11184_v6, %v22621_v13 }
 0x583   : > { %v11198_v9 = vpop.f32.mrf.mxu3 }
 0x584   : > { %11597 = vmatpush.bf16.msra.mxu0 %v18567_v42  ;;  %v11280_v40 = vpop.f32.mrf.mxu1  ;;  %v11199_v20 = vadd.f32 %v11198_v9, %v11185_v23 }
 0x585   : > { %11611 = vmatpush.bf16.msra.mxu1 %v18575_v24  ;;  %v11238_v55 = vpop.f32.mrf.mxu2 }
 0x586   : > { %v11239_v42 = vadd.f32 %v11238_v55, %v11225_v5  ;;  %v11213_v36 = vadd.f32 %v11212_v45, %v11199_v20 }
 0x587   : > { %v11268_v39 = vpop.f32.mrf.mxu0 }
 0x588   : > { %11598 = vmatpush.bf16.msra.mxu0 %v18566_v37  ;;  %v11227_v8 = vadd.f32 %v11226_v2, %v11213_v36 }
 0x589   : > { %11612 = vmatpush.bf16.msra.mxu1 %v18574_v44 }
 0x58b   : > { %v11252_v3 = vpop.f32.mrf.mxu3 }
 0x58c   : > { %11599 = vmatpush.bf16.msra.mxu0 %v18565_v46  ;;  %v11282_v21 = vpop.f32.mrf.mxu1  ;;  %v11253_v48 = vadd.f32 %v11252_v3, %v11239_v42 }
 0x58d   : > { %11613 = vmatpush.bf16.msra.mxu1 %v18573_v52  ;;  %v11240_v38 = vpop.f32.mrf.mxu2 }
 0x58e   : > { %v11267_v7 = vadd.f32 %v11266_v18, %v11253_v48  ;;  %v11241_v63 = vadd.f32 %v11240_v38, %v11227_v8 }
 0x58f   : > { %v11322_v19 = vpop.f32.mrf.mxu0 }
 0x590   : > { %11600 = vmatpush.bf16.msra.mxu0 %v18564_v16  ;;  %v11281_v51 = vadd.f32 %v11280_v40, %v11267_v7 }
 0x591   : > { %11614 = vmatpush.bf16.msra.mxu1 %v18572_v1 }
 0x593   : > { %11601 = vmatmul.bf16.vlgmr.msra.gmra.mxu0 %v8965_v15  ;;  %v11254_v47 = vpop.f32.mrf.mxu3 }
 0x594   : > { %11615 = vmatmul.bf16.vlgmr.msra.gmra.mxu1 %v8966_v12  ;;  %v11336_v53 = vpop.f32.mrf.mxu1  ;;  %v11255_v56 = vadd.f32 %v11254_v47, %v11241_v63 }
 0x595   : > { %v11294_v22 = vpop.f32.mrf.mxu2 }
 0x596   : > { %v11295_v17 = vadd.f32 %v11294_v22, %v11281_v51  ;;  %v11269_v62 = vadd.f32 %v11268_v39, %v11255_v56 }
 0x597   : > { %v11324_v33 = vpop.f32.mrf.mxu0 }
 0x598   : > { %v11283_v32 = vadd.f32 %v11282_v21, %v11269_v62 }
 0x59b   : > { %v11308_v49 = vpop.f32.mrf.mxu3 }
 0x59c   : > { %v11338_v57 = vpop.f32.mrf.mxu1  ;;  %v11309_v26 = vadd.f32 %v11308_v49, %v11295_v17 }
 0x59d   : > { %v11296_v61 = vpop.f32.mrf.mxu2 }
 0x59e   : > { %v11323_v43 = vadd.f32 %v11322_v19, %v11309_v26  ;;  %v11297_v54 = vadd.f32 %v11296_v61, %v11283_v32 }
 0x59f   : > { %v11378_v24 = vpop.f32.mrf.mxu0 }
 0x5a0   : > { %v11337_v11 = vadd.f32 %v11336_v53, %v11323_v43 }
 0x5a3   : > { %v11310_v0 = vpop.f32.mrf.mxu3 }
 0x5a4   : > { %v11392_v29 = vpop.f32.mrf.mxu1  ;;  %v11311_v35 = vadd.f32 %v11310_v0, %v11297_v54 }
 0x5a5   : > { %v11350_v58 = vpop.f32.mrf.mxu2 }
 0x5a6   : > { %v11351_v1 = vadd.f32 %v11350_v58, %v11337_v11  ;;  %v11325_v60 = vadd.f32 %v11324_v33, %v11311_v35 }
 0x5a7   : > { %v11380_v59 = vpop.f32.mrf.mxu0 }
 0x5a8   : > { %v11339_v12 = vadd.f32 %v11338_v57, %v11325_v60 }
 0x5ab   : > { %v11364_v31 = vpop.f32.mrf.mxu3 }
 0x5ac   : > { %v11394_v46 = vpop.f32.mrf.mxu1  ;;  %v11365_v41 = vadd.f32 %v11364_v31, %v11351_v1 }
 0x5ad   : > { %v11352_v25 = vpop.f32.mrf.mxu2 }
 0x5ae   : > { %v11379_v6 = vadd.f32 %v11378_v24, %v11365_v41  ;;  %v11353_v50 = vadd.f32 %v11352_v25, %v11339_v12 }
 0x5b0   : > { %v11434_v30 = vpop.f32.mrf.mxu0  ;;  %v11393_v55 = vadd.f32 %v11392_v29, %v11379_v6 }
 0x5b3   : > { %v11366_v37 = vpop.f32.mrf.mxu3 }
 0x5b4   : > { %v11448_v14 = vpop.f32.mrf.mxu1  ;;  %v11367_v2 = vadd.f32 %v11366_v37, %v11353_v50 }
 0x5b5   : > { %v11406_v44 = vpop.f32.mrf.mxu2 }
 0x5b6   : > { %v11407_v3 = vadd.f32 %v11406_v44, %v11393_v55  ;;  %v11381_v18 = vadd.f32 %v11380_v59, %v11367_v2 }
 0x5b8   : > { %v11436_v9 = vpop.f32.mrf.mxu0  ;;  %v11395_v39 = vadd.f32 %v11394_v46, %v11381_v18 }
 0x5bb   : > { %v11420_v52 = vpop.f32.mrf.mxu3 }
 0x5bc   : > { %v11450_v45 = vpop.f32.mrf.mxu1  ;;  %v11421_v40 = vadd.f32 %v11420_v52, %v11407_v3 }
 0x5bd   : > { %v11408_v16 = vpop.f32.mrf.mxu2 }
 0x5be   : > { %v11435_v21 = vadd.f32 %v11434_v30, %v11421_v40  ;;  %v11409_v61 = vadd.f32 %v11408_v16, %v11395_v39 }
 0x5c0   : > { %v11449_v19 = vadd.f32 %v11448_v14, %v11435_v21 }
 0x5c3   : > { %v11422_v15 = vpop.f32.mrf.mxu3 }
 0x5c4   : > { %v11423_v4 = vadd.f32 %v11422_v15, %v11409_v61 }
 0x5c5   : > { %v11462_v27 = vpop.f32.mrf.mxu2 }
 0x5c6   : > { %v11463_v53 = vadd.f32 %v11462_v27, %v11449_v19  ;;  %v11437_v0 = vadd.f32 %v11436_v9, %v11423_v4 }
 0x5c8   : > { %v11451_v23 = vadd.f32 %v11450_v45, %v11437_v0 }
 0x5cb   : > { %v11476_v38 = vpop.f32.mrf.mxu3 }
 0x5cc   : > { %v11477_v58 = vadd.f32 %v11476_v38, %v11463_v53 }
 0x5cd   : > { %v11464_v47 = vpop.f32.mrf.mxu2 }
 0x5ce   : > { %v11465_v57 = vadd.f32 %v11464_v47, %v11451_v23 }
 0x5d0   : > { %v11490_v22 = vpop.f32.mrf.mxu0 }
 0x5d1   : > { %v11504_v49 = vpop.f32.mrf.mxu1  ;;  %v11491_v33 = vadd.f32 %v11490_v22, %v11477_v58 }
 0x5d3   : > { %v11478_v10 = vpop.f32.mrf.mxu3  ;;  %v11505_v20 = vadd.f32 %v11504_v49, %v11491_v33 }
 0x5d4   : > { %v11479_v36 = vadd.f32 %v11478_v10, %v11465_v57 }
 0x5d8   : > { %v11518_v28 = vpop.f32.mrf.mxu2  ;;  %v11492_v34 = vpop.f32.mrf.mxu0 }
 0x5d9   : > { %v11506_v13 = vpop.f32.mrf.mxu1  ;;  %v11519_v48 = vadd.f32 %v11518_v28, %v11505_v20  ;;  %v11493_v24 = vadd.f32 %v11492_v34, %v11479_v36 }
 0x5db   : > { %v11532_v5 = vpop.f32.mrf.mxu3  ;;  %v11507_v29 = vadd.f32 %v11506_v13, %v11493_v24 }
 0x5dc   : > { %v11533_v8 = vadd.f32 %v11532_v5, %v11519_v48 }
 0x5e0   : > { %v11520_v42 = vpop.f32.mrf.mxu2 }
 0x5e1   : > { %v11521_v37 = vadd.f32 %v11520_v42, %v11507_v29 }
 0x5e3   : > { %v11534_v7 = vpop.f32.mrf.mxu3 }
 0x5e4   : > { %v11535_v62 = vadd.f32 %v11534_v7, %v11521_v37 }
 0x5f0   : > { %v11546_v31 = vpop.f32.mrf.mxu0 }
 0x5f1   : > { %v11560_v25 = vpop.f32.mrf.mxu1  ;;  %v11547_v63 = vadd.f32 %v11546_v31, %v11533_v8 }
 0x5f3   : > { %v11561_v17 = vadd.f32 %v11560_v25, %v11547_v63 }
 0x5f8   : > { %v11574_v51 = vpop.f32.mrf.mxu2  ;;  %v11548_v56 = vpop.f32.mrf.mxu0 }
 0x5f9   : > { %v11562_v44 = vpop.f32.mrf.mxu1  ;;  %v11575_v59 = vadd.f32 %v11574_v51, %v11561_v17  ;;  %v11588_v26 = vpop.f32.mrf.mxu3  ;;  %v11549_v46 = vadd.f32 %v11548_v56, %v11535_v62 }
 0x5fb   : > { %v11589_v32 = vadd.f32 %v11588_v26, %v11575_v59  ;;  %v11563_v54 = vadd.f32 %v11562_v44, %v11549_v46 }
 0x600   : > { %v11576_v43 = vpop.f32.mrf.mxu2 }
 0x601   : > { %v11577_v30 = vadd.f32 %v11576_v43, %v11563_v54  ;;  %v11590_v1 = vpop.f32.mrf.mxu3 }
 0x603   : > { %v11591_v14 = vadd.f32 %v11590_v1, %v11577_v30 }
 0x610   : > { %v11602_v52 = vpop.f32.mrf.mxu0 }
 0x611   : > { %v11603_v11 = vadd.f32 %v11602_v52, %v11589_v32  ;;  %v11616_v16 = vpop.f32.mrf.mxu1 }
 0x613   : > { %v11617_v35 = vadd.f32 %v11616_v16, %v11603_v11 }
 0x615   : > { %11623 = vst [vmem:[%s324_s7] sm:$0xff] %v11617_v35 }
 0x618   : > { %v11604_v60 = vpop.f32.mrf.mxu0 }
 0x619   : > { %v11605_v41 = vadd.f32 %v11604_v60, %v11591_v14  ;;  %v11618_v15 = vpop.f32.mrf.mxu1 }
 0x61b   : > { %v11619_v12 = vadd.f32 %v11618_v15, %v11605_v41 }
 0x61d   : > { %11624 = vst [vmem:[%s324_s7 + $0x8] sm:$0xff] %v11619_v12 }
 0x61e PF: > { %s20_s20 = sadd.s32 1, %s18805_s20   ;;  %s22622_s18 = sld [smem:[#allocation9_spill]] }
 0x61f   : > { %p17_p0 = scmp.ge.s32.totalorder %s20_s20, 4   ;;  %s22623_s17 = sld [smem:[#allocation11_spill]] }
 0x620   : > { %s22624_s14 = sld [smem:[#allocation10_spill]]  ;;  %s22625_s15 = smov %s18789_s16 }
 0x622   :  { %19 = sbr.rel (!%p17_p0) target bundleno = 8 (0x8), region = 104 }
 0x624   : > { %s22626_s16 = smov %s22622_s18  ;;  %s22627_s18 = smov %s18801_s19 }
 0x626   : > { %s22628_s19 = smov %s22624_s14 }
 0x627   :  { %11646 = vsyncpa [#allocation3], 1 }
 0x628   :  { %11648 = vsyncpa [#allocation3 + $0x1], 1 }
 0x629   :  { %11649 = vsyncpa [#allocation5], 1 }
 0x62a   :  { %11651 = vsyncpa [#allocation5 + $0x1], 1 }

</bundles_post_ra>
